<compile_context>
chip_gen: v7x
topology: tpu7x:2x2x1
jax: 0.10.0
libtpu: 0.0.40
codegen_flags: <defaults>
</compile_context>

<pallas_src>
import math

import numpy as np
import jax
import jax.numpy as jnp
from jax.experimental import pallas as pl
from jax.experimental.pallas import tpu as pltpu

_LANE = 128
_W = 14 * _LANE          # 1792: 28 conv columns packed 2-per-128-lane group
_KB = 7 * 186            # 1302: K of the single banded conv matmul
_VMEM_CAP_BYTES = 48 * 1024 * 1024   # clamp; raise on v5e/v6e (128 MiB parts)


# ---------------------------------------------------------------------------
# helpers
# ---------------------------------------------------------------------------

def _nbytes(shape, dtype):
    return int(np.prod(shape)) * np.dtype(dtype).itemsize


def _compiler_params(semantics, buffer_bytes, headroom=12 * 1024 * 1024,
                     cap=_VMEM_CAP_BYTES):
    """Scoped-VMEM budget from real (double-buffered) block sizes + headroom."""
    limit = int(min(cap, buffer_bytes + headroom))
    return pltpu.CompilerParams(dimension_semantics=semantics,
                                vmem_limit_bytes=limit)


def _pick_tb(batch):
    """Images per grid step. Maximizes MXU M-fill; on v7x (2 TCs) one may
    prefer batch//2 so both cores get a tile when batch is small."""
    if batch <= 8:
        return batch
    assert batch % 8 == 0, "batch must be <= 8 or a multiple of 8"
    return 8


# ---------------------------------------------------------------------------
# Kernel 1: fused stem
#   conv1(7x7, s2, BN scale folded)  ->  3x3/s2 maxpool  ->  ::2 subsample
#   -> +BN shift -> ReLU -> bf16 writeback
#
# conv1 is ONE banded block-Toeplitz MXU matmul per batch tile: the LHS rows
# are (image, conv row oy in {4i, 4i+1, 4i+3}) (only rows feeding even pooled
# rows), the lanes stack the 7 kernel rows dy (K = 7*186 = 1302).  Output
# columns are packed two per 128-lane group.  The pool column pass uses two
# lane rolls (XLU); the row pass + subsample use full-width 7-row slabs.
# ---------------------------------------------------------------------------

def _stem_kernel(rph_ref, bd_ref, shift_ref, o_ref):
    tb = rph_ref.shape[0]
    rp = rph_ref[...]                                   # (tb, 8, 8, 186), load once

    # LHS rows per image: [7 rows oy=4i | 7 rows oy=4i+1 | 7 rows oy=4i+3];
    # xpad row for (oy-group base, i, dy) is 8*i + base + dy.
    def slab(t, base):
        cols = []
        for dy in range(7):
            q = base + dy
            cols.append(rp[t, q % 8, q // 8:q // 8 + 7, :])     # (7, 186)
        return jnp.concatenate(cols, axis=1)                    # (7, 1302)

    lhs = jnp.concatenate(
        [slab(t, base) for t in range(tb) for base in (0, 2, 6)], axis=0)
    acc = jnp.dot(lhs, bd_ref[...],
                  preferred_element_type=jnp.float32)           # (tb*21, 1792)

    # ---- maxpool column pass (lanes).  Conv col ox=2g+p lives at lanes
    #      [g*128 + 64*p, +64); pooled col q = max(2q-1, 2q, 2q+1) lands in
    #      group q's low half.  Rolls are direction-agnostic here.
    left = pltpu.roll(acc, 64, axis=1)
    right = pltpu.roll(acc, _W - 64, axis=1)
    cp = jnp.maximum(jnp.maximum(acc, left), right)
    c0 = jnp.maximum(acc[:, 0:64], acc[:, 64:128])      # pooled col 0 (no left nbr)

    # ---- row pass + ::2 subsample fused; shift + ReLU AFTER pooling (exact).
    neg = jnp.full((1, _W), -jnp.inf, jnp.float32)
    neg0 = jnp.full((1, 64), -jnp.inf, jnp.float32)
    outs = []
    for t in range(tb):
        r0 = 21 * t
        a, b, c = cp[r0:r0 + 7], cp[r0 + 7:r0 + 14], cp[r0 + 14:r0 + 20]
        a0, b0, g0 = c0[r0:r0 + 7], c0[r0 + 7:r0 + 14], c0[r0 + 14:r0 + 20]
        pooled = jnp.maximum(jnp.maximum(a, b),
                             jnp.concatenate([neg, c], axis=0))       # (7, 1792)
        pooled0 = jnp.maximum(jnp.maximum(a0, b0),
                              jnp.concatenate([neg0, g0], axis=0))    # (7, 64)
        outs.append(jnp.concatenate(
            [pooled0] + [pooled[:, 256 * h:256 * h + 64] for h in range(1, 7)],
            axis=1))                                                   # (7, 448)
    y = jnp.maximum(jnp.concatenate(outs, axis=0) + shift_ref[...], 0.0)
    o_ref[...] = y.astype(o_ref.dtype)


def conv1_bn_relu_maxpool(rph8, banded, shift_tiled, tb):
    B = rph8.shape[0]
    buffer_bytes = 2 * (_nbytes((tb, 8, 8, 186), jnp.bfloat16)
                        + _nbytes((_KB, _W), jnp.bfloat16)
                        + _nbytes((1, 448), jnp.float32)
                        + _nbytes((tb * 7, 448), jnp.bfloat16))
    cost = pl.CostEstimate(
        flops=int(2 * B * 21 * _KB * _W),
        transcendentals=0,
        bytes_accessed=int(B * 8 * 8 * 186 * 2 + _KB * _W * 2 + 448 * 4
                           + B * 7 * 448 * 2))
    return pl.pallas_call(
        _stem_kernel,
        out_shape=jax.ShapeDtypeStruct((B * 7, 448), jnp.bfloat16),
        grid=(B // tb,),
        in_specs=[
            pl.BlockSpec((tb, 8, 8, 186), lambda b: (b, 0, 0, 0)),
            pl.BlockSpec((_KB, _W), lambda b: (0, 0)),      # constant index map
            pl.BlockSpec((1, 448), lambda b: (0, 0)),
        ],
        out_specs=pl.BlockSpec((tb * 7, 448), lambda b: (b, 0)),
        compiler_params=_compiler_params(("parallel",), buffer_bytes),
        cost_estimate=cost,
    )(rph8, banded, shift_tiled)


# ---------------------------------------------------------------------------
# Kernel 2: fused head = 1x1 projection (stand-in for layer1-4) + global
#           MaxPool2d(7,7) + ReLU + `feature @ x2.T` classifier.
# LHS rows per image are zero-padded 49 -> 56 (zeros are harmless because
# ReLU comes after the global max).
# ---------------------------------------------------------------------------

def _head_kernel(x_ref, wp_ref, x2t_ref, o_ref):
    tb = x_ref.shape[0] // 56
    h = jnp.dot(x_ref[...], wp_ref[...],
                preferred_element_type=jnp.float32)             # (tb*56, 2048)
    feat = jnp.concatenate(
        [jnp.max(h[t * 56:(t + 1) * 56, :], axis=0, keepdims=True)
         for t in range(tb)], axis=0)                           # (tb, 2048)
    feat = jnp.maximum(feat, 0.0)                               # ReLU after max
    o_ref[...] = jnp.dot(feat, x2t_ref[...],
                         preferred_element_type=jnp.float32)    # (tb, 128)


def proj_pool_classify(sub_rows, proj_w_bf16, x2t, tb):
    B = sub_rows.shape[0] // 56
    buffer_bytes = 2 * (_nbytes((tb * 56, 64), jnp.bfloat16)
                        + _nbytes((64, 2048), jnp.bfloat16)
                        + _nbytes((2048, 128), jnp.float32)
                        + _nbytes((tb, 128), jnp.float32))
    cost = pl.CostEstimate(
        flops=int(2 * B * 56 * 64 * 2048 + 2 * B * 2048 * 128),
        transcendentals=0,
        bytes_accessed=int(B * 56 * 64 * 2 + 64 * 2048 * 2 + 2048 * 128 * 4
                           + B * 128 * 4))
    return pl.pallas_call(
        _head_kernel,
        out_shape=jax.ShapeDtypeStruct((B, 128), jnp.float32),
        grid=(B // tb,),
        in_specs=[
            pl.BlockSpec((tb * 56, 64), lambda b: (b, 0)),
            pl.BlockSpec((64, 2048), lambda b: (0, 0)),      # constant index map
            pl.BlockSpec((2048, 128), lambda b: (0, 0)),     # constant index map
        ],
        out_specs=pl.BlockSpec((tb, 128), lambda b: (b, 0)),
        compiler_params=_compiler_params(("parallel",), buffer_bytes),
        cost_estimate=cost,
    )(sub_rows, proj_w_bf16, x2t)


# ---------------------------------------------------------------------------
# Kernel 3: batch-independent GCN branch (hoisted out of the per-image path)
#           gen_adj(A) + gc1 + LeakyReLU(0.2) + gc2  ->  x2 (C, 2048)
# ---------------------------------------------------------------------------

def _gcn_classifier_kernel(a_ref, w2v_ref, w1_ref, w2_ref, x2_ref):
    # gen_adj(A): adj = D A^T D with D = diag(A.sum(1) ** -0.5); never
    # materialize adj:  (adj @ S) = d * (A^T @ (d * S)).
    A = a_ref[...]
    d = jax.lax.rsqrt(jnp.sum(A, axis=1, keepdims=True))

    def adj_matmul(s):
        return d * jax.lax.dot_general(A, d * s, (((0,), (0,)), ((), ())),
                                       preferred_element_type=jnp.float32)

    sup1 = jnp.dot(w2v_ref[...], w1_ref[...],
                   preferred_element_type=jnp.float32)          # (C, 1024)
    x1 = adj_matmul(sup1)
    x1 = jnp.where(x1 > 0, x1, 0.2 * x1)                        # LeakyReLU(0.2)
    sup2 = jnp.dot(x1, w2_ref[...], preferred_element_type=jnp.float32)
    x2_ref[...] = adj_matmul(sup2)                              # (C, 2048)


def gcn_classifier(A, word2vec, gc1_w, gc2_w):
    C = A.shape[0]
    buffer_bytes = 2 * int(A.size * 4 + word2vec.size * 4 + gc1_w.size * 4
                           + gc2_w.size * 4 + C * 2048 * 4)
    cost = pl.CostEstimate(
        flops=int(2 * C * (300 * 1024 + 1024 * 2048) + 4 * C * C * (1024 + 2048)),
        transcendentals=0,
        bytes_accessed=int(buffer_bytes // 2))
    return pl.pallas_call(
        _gcn_classifier_kernel,
        out_shape=jax.ShapeDtypeStruct((C, 2048), jnp.float32),
        grid=(1,),
        in_specs=[
            pl.BlockSpec(A.shape, lambda i: (0, 0)),
            pl.BlockSpec(word2vec.shape, lambda i: (0, 0)),
            pl.BlockSpec(gc1_w.shape, lambda i: (0, 0)),
            pl.BlockSpec(gc2_w.shape, lambda i: (0, 0)),
        ],
        out_specs=pl.BlockSpec((C, 2048), lambda i: (0, 0)),
        compiler_params=_compiler_params(("arbitrary",), buffer_bytes,
                                         headroom=8 * 1024 * 1024),
        cost_estimate=cost,
    )(A, word2vec, gc1_w, gc2_w)


def precompute_classifier_t(p):
    """x2^T (2048, 128) f32 with classes padded to 128 lanes (unmasked logits
    store in the head).  Batch-independent: compute once, reuse per forward."""
    x2 = gcn_classifier(p["A"], p["word2vec"], p["gc1_w"], p["gc2_w"])
    C = x2.shape[0]
    return jnp.zeros((2048, 128), jnp.float32).at[:, :C].set(x2.T)


# ---------------------------------------------------------------------------
# Parameter setup (deterministic, synthetic) -- glue
# ---------------------------------------------------------------------------

def gen_A(num_classes, t, labels):
    labels = np.asarray(labels, dtype=np.float64)
    _adj = labels.T @ labels
    np.fill_diagonal(_adj, 0.0)
    _nums = labels.sum(0)[:, np.newaxis]
    _adj = _adj / _nums
    _adj = np.where(_adj < t, 0.0, 1.0)
    _adj = _adj * 0.25 / (_adj.sum(0, keepdims=True) + 1e-6)
    _adj = _adj + np.identity(num_classes, np.float64)
    return _adj


def _banded_conv1_weights(w_folded):
    """Scale-folded (7,7,3,64) conv1 weights -> K-stacked banded matrix:
    bd[dy*186 + (2*ox+dx)*3 + c, (ox//2)*128 + (ox%2)*64 + o] = w[dy,dx,c,o]."""
    bd = np.zeros((_KB, _W), np.float32)
    for dy in range(7):
        for dx in range(7):
            for ox in range(28):
                r = dy * 186 + (2 * ox + dx) * 3
                col = (ox // 2) * 128 + (ox % 2) * 64
                bd[r:r + 3, col:col + 64] = w_folded[dy, dx]
    return bd


def init_params(key, num_classes=8, n_label_samples=64, t=0.2):
    ks = jax.random.split(key, 10)
    eps = 1e-5

    # conv1: Conv2d(3, 64, 7, stride=2, padding=3, bias=False), HWIO layout
    conv1_w = 0.05 * jax.random.normal(ks[0], (7, 7, 3, 64), dtype=jnp.float32)

    # bn1 (eval) -> per-channel scale/shift; scale folded into conv1_w
    gamma = 1.0 + 0.1 * jax.random.normal(ks[1], (64,))
    beta = 0.1 * jax.random.normal(ks[2], (64,))
    mean = 0.1 * jax.random.normal(ks[3], (64,))
    var = jnp.abs(1.0 + 0.1 * jax.random.normal(ks[4], (64,)))
    bn1_scale = gamma / jnp.sqrt(var + eps)
    bn1_shift = beta - mean * bn1_scale

    w_folded = np.asarray(conv1_w) * np.asarray(bn1_scale)[None, None, None, :]
    conv1_banded = jnp.asarray(_banded_conv1_weights(w_folded), jnp.bfloat16)
    bn1_shift_tiled = jnp.asarray(
        np.tile(np.asarray(bn1_shift, np.float32), 7)[None, :], jnp.float32)

    # stand-in projection (see TODO in forward): 1x1 conv 64 -> 2048
    proj_w = 0.05 * jax.random.normal(ks[5], (64, 2048), dtype=jnp.float32)

    # GraphConvolution weights: uniform(-stdv, stdv), stdv = 1/sqrt(out_features)
    stdv1 = 1.0 / math.sqrt(1024)
    gc1_w = jax.random.uniform(ks[6], (300, 1024), minval=-stdv1, maxval=stdv1)
    stdv2 = 1.0 / math.sqrt(2048)
    gc2_w = jax.random.uniform(ks[7], (1024, 2048), minval=-stdv2, maxval=stdv2)

    # word2vec embeddings (synthetic stand-in for the np.loadtxt w2v file)
    word2vec = jax.random.normal(ks[8], (num_classes, 300))

    # synthetic multi-label training labels -> gen_A
    labels = np.asarray(
        jax.random.bernoulli(ks[9], 0.35, (n_label_samples, num_classes)),
        dtype=np.float64)
    labels[np.arange(num_classes), np.arange(num_classes)] = 1.0
    A = jnp.asarray(gen_A(num_classes, t, labels), dtype=jnp.float32)

    return dict(
        conv1_w=conv1_w,
        bn1_scale=jnp.asarray(bn1_scale, jnp.float32),
        bn1_shift=jnp.asarray(bn1_shift, jnp.float32),
        conv1_banded=conv1_banded,
        bn1_shift_tiled=bn1_shift_tiled,
        proj_w=jnp.asarray(proj_w, jnp.float32),
        proj_w_bf16=jnp.asarray(proj_w, jnp.bfloat16),
        gc1_w=jnp.asarray(gc1_w, jnp.float32),
        gc2_w=jnp.asarray(gc2_w, jnp.float32),
        word2vec=jnp.asarray(word2vec, jnp.float32),
        A=A,
    )


# ---------------------------------------------------------------------------
# Forward pass (glue = layout / padding / casts only; compute = Pallas kernels)
# ---------------------------------------------------------------------------

def gcn_resnet_forward(image_nchw, p, classifier_t=None):
    if classifier_t is None:
        classifier_t = precompute_classifier_t(p)   # normally precomputed once

    B = image_nchw.shape[0]
    tb = _pick_tb(B)
    x = jnp.transpose(image_nchw, (0, 2, 3, 1))                    # NCHW -> NHWC
    xpad = jnp.pad(x, ((0, 0), (3, 3), (3, 3), (0, 0)))            # (B, 62, 62, 3)
    xflat = jnp.pad(xpad.reshape(B, 62, 186), ((0, 0), (0, 2), (0, 0)))
    # 8-phase row layout: rph8[b, r, i, col*3+c] = xpad[b, 8i+r, col, c]
    rph8 = (xflat.reshape(B, 8, 8, 186).transpose(0, 2, 1, 3)
            .astype(jnp.bfloat16))                                 # (B, 8, 8, 186)

    # fused conv1 + bn1 + maxpool(3,2,1) + ::2 subsample -> (B*7, 7*64) bf16
    stem = conv1_bn_relu_maxpool(rph8, p["conv1_banded"],
                                 p["bn1_shift_tiled"], tb)

    # TODO(synk): ResNet layer1-layer4 come from the external `model` argument
    # and are not replicated; the stand-in is a stride-2 subsample + 1x1 conv
    # (64->2048) + ReLU preserving the backbone's (B, 2048, 7, 7) contract.
    sub = stem.reshape(B, 7, 7, 64).reshape(B, 49, 64)
    sub = jnp.pad(sub, ((0, 0), (0, 7), (0, 0))).reshape(B * 56, 64)  # rows 49->56

    logits = proj_pool_classify(sub, p["proj_w_bf16"], classifier_t, tb)
    return logits[:, :p["A"].shape[0]]


# ---------------------------------------------------------------------------
# Pure-JAX reference (independent implementation, for correctness check)
# ---------------------------------------------------------------------------

def reference_forward(image_nchw, p):
    x = jnp.transpose(image_nchw, (0, 2, 3, 1))
    B = x.shape[0]
    y = jax.lax.conv_general_dilated(
        x, p["conv1_w"], window_strides=(2, 2), padding=((3, 3), (3, 3)),
        dimension_numbers=("NHWC", "HWIO", "NHWC"))
    y = jnp.maximum(y * p["bn1_scale"] + p["bn1_shift"], 0.0)      # (B, 28, 28, 64)
    y = jax.lax.reduce_window(y, -jnp.inf, jax.lax.max,
                              (1, 3, 3, 1), (1, 2, 2, 1),
                              ((0, 0), (1, 1), (1, 1), (0, 0)))    # (B, 14, 14, 64)
    h = jnp.maximum(
        jnp.einsum("bhwc,cd->bhwd", y[:, ::2, ::2, :], p["proj_w"]), 0.0)
    feat = jnp.max(h.reshape(B, 49, 2048), axis=1)                 # (B, 2048)

    A = p["A"]
    d = jnp.power(A.sum(1), -0.5)
    adj = (A @ jnp.diag(d)).T @ jnp.diag(d)
    g = adj @ (p["word2vec"] @ p["gc1_w"])
    g = jnp.where(g > 0, g, 0.2 * g)
    g = adj @ (g @ p["gc2_w"])
    return feat @ g.T


if __name__ == "__main__":
    key = jax.random.PRNGKey(0)
    kp, kx = jax.random.split(key)
    params = init_params(kp, num_classes=8)
    image = jax.random.normal(kx, (2, 3, 56, 56), dtype=jnp.float32)

    # batch-independent GCN branch: computed once, reused for every forward
    classifier_t = jax.block_until_ready(precompute_classifier_t(params))

    out = jax.jit(gcn_resnet_forward)(image, params, classifier_t)
    out = jax.block_until_ready(out)
    assert out.shape == (2, 8), out.shape

    ref = np.asarray(reference_forward(image, params))
    np.testing.assert_allclose(np.asarray(out), ref, rtol=5e-2, atol=5e-2)
    print("KERNEL_OK")
</pallas_src>

<mosaic_0001>
module attributes {stable_mosaic.version = 11 : i64} {
  func.func @_gcn_classifier_kernel(%arg0: i32, %arg1: memref<8x8xf32, #tpu.memory_space<vmem>>, %arg2: memref<8x300xf32, #tpu.memory_space<vmem>>, %arg3: memref<300x1024xf32, #tpu.memory_space<vmem>>, %arg4: memref<1024x2048xf32, #tpu.memory_space<vmem>>, %arg5: memref<8x2048xf32, #tpu.memory_space<vmem>>) attributes {dimension_semantics = [#tpu.dimension_semantics<arbitrary>], iteration_bounds = array<i64: 1>, scalar_prefetch = 0 : i64, scratch_operands = 0 : i64, tpu.core_type = #tpu.core_type<tc>, window_params = [{pipeline_mode = #tpu.pipeline_mode<synchronous>, transform_indices = @transform_0, window_bounds = array<i64: 8, 8>}, {pipeline_mode = #tpu.pipeline_mode<synchronous>, transform_indices = @transform_1, window_bounds = array<i64: 8, 300>}, {pipeline_mode = #tpu.pipeline_mode<synchronous>, transform_indices = @transform_2, window_bounds = array<i64: 300, 1024>}, {pipeline_mode = #tpu.pipeline_mode<synchronous>, transform_indices = @transform_3, window_bounds = array<i64: 1024, 2048>}, {pipeline_mode = #tpu.pipeline_mode<synchronous>, transform_indices = @transform_4, window_bounds = array<i64: 8, 2048>}]} {
    %c0 = arith.constant 0 : index
    %c0_0 = arith.constant 0 : index
    %0 = vector.load %arg1[%c0, %c0_0] : memref<8x8xf32, #tpu.memory_space<vmem>>, vector<8x8xf32>
    %cst = arith.constant dense<0.000000e+00> : vector<8xf32>
    %1 = vector.multi_reduction <add>, %0, %cst [1] : vector<8x8xf32> to vector<8xf32>
    %2 = vector.shape_cast %1 : vector<8xf32> to vector<8x1xf32>
    %3 = math.rsqrt %2 : vector<8x1xf32>
    %c0_1 = arith.constant 0 : index
    %c0_2 = arith.constant 0 : index
    %4 = vector.load %arg2[%c0_1, %c0_2] : memref<8x300xf32, #tpu.memory_space<vmem>>, vector<8x300xf32>
    %c0_3 = arith.constant 0 : index
    %c0_4 = arith.constant 0 : index
    %5 = vector.load %arg3[%c0_3, %c0_4] : memref<300x1024xf32, #tpu.memory_space<vmem>>, vector<300x1024xf32>
    %cst_5 = arith.constant dense<0.000000e+00> : vector<8x1024xf32>
    %6 = tpu.matmul %4, %5, %cst_5 {dimension_numbers = #tpu.dot_dimension_numbers<[1], [0], [0], [1], [0, 0, 1, 1], [], []>} : vector<8x300xf32>, vector<300x1024xf32>, vector<8x1024xf32> -> vector<8x1024xf32>
    %7 = vector.broadcast %3 : vector<8x1xf32> to vector<8x1024xf32>
    %8 = arith.mulf %7, %6 : vector<8x1024xf32>
    %cst_6 = arith.constant dense<0.000000e+00> : vector<8x1024xf32>
    %9 = tpu.matmul %0, %8, %cst_6 {dimension_numbers = #tpu.dot_dimension_numbers<[0], [0], [1], [1], [0, 1, 1, 1], [], []>} : vector<8x8xf32>, vector<8x1024xf32>, vector<8x1024xf32> -> vector<8x1024xf32>
    %10 = vector.broadcast %3 : vector<8x1xf32> to vector<8x1024xf32>
    %11 = arith.mulf %10, %9 : vector<8x1024xf32>
    %cst_7 = arith.constant 0.000000e+00 : f32
    %12 = vector.broadcast %cst_7 : f32 to vector<8x1024xf32>
    %13 = arith.cmpf ogt, %11, %12 : vector<8x1024xf32>
    %cst_8 = arith.constant 2.000000e-01 : f32
    %14 = vector.broadcast %cst_8 : f32 to vector<8x1024xf32>
    %15 = arith.mulf %14, %11 : vector<8x1024xf32>
    %16 = arith.select %13, %11, %15 : vector<8x1024xi1>, vector<8x1024xf32>
    %c0_9 = arith.constant 0 : index
    %c0_10 = arith.constant 0 : index
    %17 = vector.load %arg4[%c0_9, %c0_10] : memref<1024x2048xf32, #tpu.memory_space<vmem>>, vector<1024x2048xf32>
    %cst_11 = arith.constant dense<0.000000e+00> : vector<8x2048xf32>
    %18 = tpu.matmul %16, %17, %cst_11 {dimension_numbers = #tpu.dot_dimension_numbers<[1], [0], [0], [1], [0, 0, 1, 1], [], []>} : vector<8x1024xf32>, vector<1024x2048xf32>, vector<8x2048xf32> -> vector<8x2048xf32>
    %19 = vector.broadcast %3 : vector<8x1xf32> to vector<8x2048xf32>
    %20 = arith.mulf %19, %18 : vector<8x2048xf32>
    %cst_12 = arith.constant dense<0.000000e+00> : vector<8x2048xf32>
    %21 = tpu.matmul %0, %20, %cst_12 {dimension_numbers = #tpu.dot_dimension_numbers<[0], [0], [1], [1], [0, 1, 1, 1], [], []>} : vector<8x8xf32>, vector<8x2048xf32>, vector<8x2048xf32> -> vector<8x2048xf32>
    %22 = vector.broadcast %3 : vector<8x1xf32> to vector<8x2048xf32>
    %23 = arith.mulf %22, %21 : vector<8x2048xf32>
    %c0_13 = arith.constant 0 : index
    %c0_14 = arith.constant 0 : index
    %24 = vector.load %arg5[%c0_13, %c0_14] : memref<8x2048xf32, #tpu.memory_space<vmem>>, vector<8x2048xf32>
    tpu.vector_store %arg5[%c0_13, %c0_14], %23 {strides = array<i32>} : memref<8x2048xf32, #tpu.memory_space<vmem>>, vector<8x2048xf32>,
    return
  }
  func.func @transform_0(%arg0: i32) -> (i32, i32) {
    %c0_i32 = arith.constant 0 : i32
    %c0_i32_0 = arith.constant 0 : i32
    %c0_i32_1 = arith.constant 0 : i32
    return %c0_i32, %c0_i32_0 : i32, i32
  }
  func.func @transform_1(%arg0: i32) -> (i32, i32) {
    %c0_i32 = arith.constant 0 : i32
    %c0_i32_0 = arith.constant 0 : i32
    %c0_i32_1 = arith.constant 0 : i32
    return %c0_i32, %c0_i32_0 : i32, i32
  }
  func.func @transform_2(%arg0: i32) -> (i32, i32) {
    %c0_i32 = arith.constant 0 : i32
    %c0_i32_0 = arith.constant 0 : i32
    %c0_i32_1 = arith.constant 0 : i32
    return %c0_i32, %c0_i32_0 : i32, i32
  }
  func.func @transform_3(%arg0: i32) -> (i32, i32) {
    %c0_i32 = arith.constant 0 : i32
    %c0_i32_0 = arith.constant 0 : i32
    %c0_i32_1 = arith.constant 0 : i32
    return %c0_i32, %c0_i32_0 : i32, i32
  }
  func.func @transform_4(%arg0: i32) -> (i32, i32) {
    %c0_i32 = arith.constant 0 : i32
    %c0_i32_0 = arith.constant 0 : i32
    %c0_i32_1 = arith.constant 0 : i32
    return %c0_i32, %c0_i32_0 : i32, i32
  }
}

</mosaic_0001>

<bundles_post_ra>
// kernel: tpu_custom_call.1
= control target key start
LH: loop header
LB: loop body
LE: loop exit
PB: predicated region body
PF: predicated region fallthrough
CT: control target
= control target key end

     0   :  { %9 = vsyncpa [#allocation3], 0  ;;  %s9226_s0 = inlined_call_operand.hbm [shape: f32[8,8], index: 0, kind: input, shape index: {}]   ;;  %s9227_s1 = inlined_call_operand.hbm [shape: f32[8,300], index: 1, kind: input, shape index: {}]   ;;  %s9228_s2 = inlined_call_operand.hbm [shape: f32[300,1024], index: 2, kind: input, shape index: {}]   ;;  %s9229_s3 = inlined_call_operand.hbm [shape: f32[1024,2048], index: 3, kind: input, shape index: {}]   ;;  %s9230_s4 = inlined_call_operand.hbm [shape: f32[8,2048], index: 4, kind: output, shape index: {}]  }
   0x1   :  { %10 = vsyncpa [#allocation6], 0 }
   0x2   :  { %11 = vsyncpa [#allocation9], 0 }
   0x3   :  { %12 = vsyncpa [#allocation4], 0  ;;  %s8862_s15 = smov [#allocation5]   ;;  %s8863_s17 = smov [#allocation2]  }
   0x4   :  { %s29_s16 = sshll.u32 %s8862_s15, 4  ;;  %s19_s18 = sshll.u32 %s8863_s17, 4  ;;  %s30_s16 = int_to_ptr.vmem [resolvable:$true] %s29_s16  ;;  %s20_s18 = int_to_ptr.vmem [resolvable:$true] %s19_s18 }
   0x5   :  { %s8744_s21 = scalar_lea.hbm %s9227_s1, 384 }
   0x6   :  { %p8745_p0 = scmp.ne.s32.totalorder %s9227_s1, %s8744_s21  ;;  %p8748_p1 = scmp.lt.u32.totalorder %s8744_s21, %s9227_s1 }
   0x8   :  { %p8750_p2 = pnand %p8748_p1, %p8745_p0 }
   0xa   :  { %8753 = shalt.err (!%p8750_p2)
}
   0xb   :  { %s8754_s26 = scalar_lea.vmem %s30_s16, 384  ;;  %p8759_p4 = scmp.lt.s32.totalorder %s30_s16, %s30_s16 }
   0xc   :  { %p8755_p3 = scmp.ne.s32.totalorder %s30_s16, %s8754_s26  ;;  %p8760_p5 = scmp.lt.s32.totalorder %s8754_s26, %s8754_s26 }
   0xe   :  { %p8761_p6 = por %p8760_p5, %p8759_p4 }
  0x10   :  { %p8762_p7 = pnand %p8761_p6, %p8755_p3 }
  0x12   :  { %8765 = shalt.err (!%p8762_p7)
}
  0x13   :  { %32 = dma.hbm_to_vmem [thread:$0]  %s9227_s1, 384, %s30_s16, [#allocation6]  }
  0x14   :  { %s8766_s5 = scalar_lea.hbm %s9226_s0, 128 }
  0x15   :  { %p8767_p8 = scmp.ne.s32.totalorder %s9226_s0, %s8766_s5  ;;  %p8770_p9 = scmp.lt.u32.totalorder %s8766_s5, %s9226_s0 }
  0x17   :  { %p8772_p10 = pnand %p8770_p9, %p8767_p8 }
  0x19   :  { %8775 = shalt.err (!%p8772_p10)
}
  0x1a   :  { %s8776_s10 = scalar_lea.vmem %s20_s18, 128  ;;  %p8781_p12 = scmp.lt.s32.totalorder %s20_s18, %s20_s18 }
  0x1b   :  { %p8777_p11 = scmp.ne.s32.totalorder %s20_s18, %s8776_s10  ;;  %p8782_p13 = scmp.lt.s32.totalorder %s8776_s10, %s8776_s10 }
  0x1d   :  { %p8783_p0 = por %p8782_p13, %p8781_p12 }
  0x1f   :  { %p8784_p1 = pnand %p8783_p0, %p8777_p11 }
  0x21   :  { %8787 = shalt.err (!%p8784_p1)
}
  0x22   :  { %22 = dma.hbm_to_vmem [thread:$0]  %s9226_s0, 128, %s20_s18, [#allocation3]  }
  0x23   :  { %s8864_s12 = smov [#allocation7]   ;;  %s8788_s16 = scalar_lea.hbm %s9228_s2, 38912 }
  0x24   :  { %s38_s13 = sshll.u32 %s8864_s12, 4  ;;  %p8789_p2 = scmp.ne.s32.totalorder %s9228_s2, %s8788_s16  ;;  %s39_s13 = int_to_ptr.vmem [resolvable:$true] %s38_s13 }
  0x25   :  { %p8792_p3 = scmp.lt.u32.totalorder %s8788_s16, %s9228_s2 }
  0x27   :  { %p8794_p4 = pnand %p8792_p3, %p8789_p2 }
  0x29   :  { %8797 = shalt.err (!%p8794_p4)
}
  0x2a   :  { %s8798_s22 = scalar_lea.vmem %s39_s13, 38912  ;;  %p8803_p6 = scmp.lt.s32.totalorder %s39_s13, %s39_s13 }
  0x2b   :  { %p8799_p5 = scmp.ne.s32.totalorder %s39_s13, %s8798_s22  ;;  %p8804_p7 = scmp.lt.s32.totalorder %s8798_s22, %s8798_s22 }
  0x2d   :  { %p8805_p8 = por %p8804_p7, %p8803_p6 }
  0x2f   :  { %p8806_p9 = pnand %p8805_p8, %p8799_p5 }
  0x31   :  { %8809 = shalt.err (!%p8806_p9)
}
  0x32   :  { %s8865_s0 = smov 1024   ;;  %s8866_s18 = smov 64  }
  0x33   :  { %44 = dma.hbm_to_vmem [thread:$0]  %s9228_s2, 38912, %s39_s13, [#allocation6], %s8865_s0, %s8865_s0, %s8866_s18  }
  0x34   :  { %s8867_s25 = smov [#allocation8]   ;;  %s8810_s29 = scalar_lea.hbm %s9229_s3, 262144 }
  0x35   :  { %s50_s26 = sshll.u32 %s8867_s25, 4  ;;  %p8811_p10 = scmp.ne.s32.totalorder %s9229_s3, %s8810_s29  ;;  %s51_s26 = int_to_ptr.vmem [resolvable:$true] %s50_s26 }
  0x36   :  { %p8814_p11 = scmp.lt.u32.totalorder %s8810_s29, %s9229_s3 }
  0x38   :  { %p8816_p12 = pnand %p8814_p11, %p8811_p10 }
  0x3a   :  { %8819 = shalt.err (!%p8816_p12)
}
  0x3b   :  { %s8820_s8 = scalar_lea.vmem %s51_s26, 262144  ;;  %p8825_p0 = scmp.lt.s32.totalorder %s51_s26, %s51_s26 }
  0x3c   :  { %p8821_p13 = scmp.ne.s32.totalorder %s51_s26, %s8820_s8  ;;  %p8826_p1 = scmp.lt.s32.totalorder %s8820_s8, %s8820_s8 }
  0x3e   :  { %p8827_p2 = por %p8826_p1, %p8825_p0 }
  0x40   :  { %p8828_p3 = pnand %p8827_p2, %p8821_p13 }
  0x42   :  { %8831 = shalt.err (!%p8828_p3)
}
  0x43   :  { %s8868_s2 = smov 2048   ;;  %s8869_s9 = smov 128  }
  0x44   :  { %56 = dma.hbm_to_vmem [thread:$0]  %s9229_s3, 262144, %s51_s26, [#allocation9], %s8868_s2, %s8868_s2, %s8869_s9  }
  0x45   :  { %8854 = dma.done.wait [#allocation3], 128  }
  0x46   :  { %8855 = vsyncadd [#allocation3], 4294967168 }
  0x47   :  { %8856 = dma.done.wait [#allocation6], 39296  }
  0x48   :  { %8857 = vsyncadd [#allocation6], 4294928000 }
  0x49   :  { %8858 = dma.done.wait [#allocation9], 262144  }
  0x4a   :  { %8859 = vsyncadd [#allocation9], 4294705152  ;;  %v79_v0 = vld [vmem:[#allocation7 + $0x8] sm:$0xff]  ;;  %v81_v2 = vld [vmem:[#allocation7 + $0x18] sm:$0xff]  ;;  %vm386_vm0 = vcmask 1043456   ;;  %vm8870_vm1 = vmmov 1  }
  0x4b   :  { %v87_v1 = vld [vmem:[#allocation7 + $0x48] sm:$0xff]  ;;  %v89_v4 = vld [vmem:[#allocation7 + $0x58] sm:$0xff]  ;;  %v78_v5 = vld [vmem:[#allocation7] sm:$0xff]  ;;  %vm382_vm3 = vcmask 359424   ;;  %vm70_vm4 = vcmask 64512   ;;  %s8872_s3 = smov [#allocation10]  }
  0x4c   :  { %v6315_v3 = vpack.c.bf16 %v87_v1, %v79_v0  ;;  %v86_v6 = vld [vmem:[#allocation7 + $0x40] sm:$0xff]  ;;  %v6393_v7 = vpack.c.bf16 %v89_v4, %v81_v2  ;;  %v80_v9 = vld [vmem:[#allocation7 + $0x10] sm:$0xff]  ;;  %v95_v11 = vld [vmem:[#allocation7 + $0x88] sm:$0xff]  ;;  %s6280_s11 = sshll.u32 %s8872_s3, 4  ;;  %s6281_s11 = int_to_ptr.vmem [resolvable:$true] %s6280_s11 }
  0x4d   :  { %v6317_v8 = vpack.c.bf16 %v86_v6, %v78_v5  ;;  %v88_v10 = vld [vmem:[#allocation7 + $0x50] sm:$0xff]  ;;  %v103_v13 = vld [vmem:[#allocation7 + $0xc8] sm:$0xff]  ;;  %v97_v14 = vld [vmem:[#allocation7 + $0x98] sm:$0xff]  ;;  %s8832_s12 = scalar_lea.vmem %s6281_s11, 2048  ;;  %p8837_p5 = scmp.lt.s32.totalorder %s6281_s11, %s6281_s11 }
  0x4e   :  { %6316 = vmatprep.subr.bf16.mxu0 %v6315_v3  ;;  %v6395_v12 = vpack.c.bf16 %v88_v10, %v80_v9  ;;  %v105_v15 = vld [vmem:[#allocation7 + $0xd8] sm:$0xff]  ;;  %6394 = vmatprep.subr.bf16.mxu1 %v6393_v7  ;;  %v6319_v16 = vpack.c.bf16 %v103_v13, %v95_v11  ;;  %v94_v18 = vld [vmem:[#allocation7 + $0x80] sm:$0xff]  ;;  %v96_v20 = vld [vmem:[#allocation7 + $0x90] sm:$0xff]  ;;  %p8833_p4 = scmp.ne.s32.totalorder %s6281_s11, %s8832_s12  ;;  %p8838_p6 = scmp.lt.s32.totalorder %s8832_s12, %s8832_s12 }
  0x4f   :  { %6318 = vmatpush1.bf16.msra.mxu0 %v6317_v8  ;;  %v6397_v17 = vpack.c.bf16 %v105_v15, %v97_v14  ;;  %v102_v19 = vld [vmem:[#allocation7 + $0xc0] sm:$0xff]  ;;  %v104_v22 = vld [vmem:[#allocation7 + $0xd0] sm:$0xff]  ;;  %v111_v23 = vld [vmem:[#allocation7 + $0x108] sm:$0xff] }
  0x50   :  { %6396 = vmatpush1.bf16.msra.mxu1 %v6395_v12  ;;  %v6321_v21 = vpack.c.bf16 %v102_v19, %v94_v18  ;;  %v119_v24 = vld [vmem:[#allocation7 + $0x148] sm:$0xff]  ;;  %6320 = vmatprep.subr.bf16.mxu0 %v6319_v16  ;;  %v6399_v25 = vpack.c.bf16 %v104_v22, %v96_v20  ;;  %v113_v27 = vld [vmem:[#allocation7 + $0x118] sm:$0xff]  ;;  %v110_v29 = vld [vmem:[#allocation7 + $0x100] sm:$0xff]  ;;  %p8839_p7 = por %p8838_p6, %p8837_p5 }
  0x51   :  { %6398 = vmatprep.subr.bf16.mxu1 %v6397_v17  ;;  %v6323_v26 = vpack.c.bf16 %v119_v24, %v111_v23  ;;  %v121_v28 = vld [vmem:[#allocation7 + $0x158] sm:$0xff]  ;;  %v118_v31 = vld [vmem:[#allocation7 + $0x140] sm:$0xff]  ;;  %v112_v32 = vld [vmem:[#allocation7 + $0x110] sm:$0xff] }
  0x52   :  { %v6401_v30 = vpack.c.bf16 %v121_v28, %v113_v27  ;;  %v120_v33 = vld [vmem:[#allocation7 + $0x150] sm:$0xff]  ;;  %v6325_v34 = vpack.c.bf16 %v118_v31, %v110_v29  ;;  %v127_v35 = vld [vmem:[#allocation7 + $0x188] sm:$0xff]  ;;  %v129_v37 = vld [vmem:[#allocation7 + $0x198] sm:$0xff]  ;;  %p8840_p8 = pnand %p8839_p7, %p8833_p4 }
  0x53   :  { %6322 = vmatpush1.bf16.msra.mxu0 %v6321_v21  ;;  %v135_v36 = vld [vmem:[#allocation7 + $0x1c8] sm:$0xff]  ;;  %v6403_v38 = vpack.c.bf16 %v120_v33, %v112_v32  ;;  %v137_v40 = vld [vmem:[#allocation7 + $0x1d8] sm:$0xff]  ;;  %v126_v41 = vld [vmem:[#allocation7 + $0x180] sm:$0xff] }
  0x54   :  { %6400 = vmatpush1.bf16.msra.mxu1 %v6399_v25  ;;  %6324 = vmatprep.subr.bf16.mxu0 %v6323_v26  ;;  %v6327_v39 = vpack.c.bf16 %v135_v36, %v127_v35  ;;  %v134_v42 = vld [vmem:[#allocation7 + $0x1c0] sm:$0xff]  ;;  %v6405_v43 = vpack.c.bf16 %v137_v40, %v129_v37  ;;  %v128_v44 = vld [vmem:[#allocation7 + $0x190] sm:$0xff]  ;;  %v143_v46 = vld [vmem:[#allocation7 + $0x208] sm:$0xff] }
  0x55   :  { %6402 = vmatprep.subr.bf16.mxu1 %v6401_v30  ;;  %v136_v45 = vld [vmem:[#allocation7 + $0x1d0] sm:$0xff]  ;;  %v151_v47 = vld [vmem:[#allocation7 + $0x248] sm:$0xff]  ;;  %v145_v48 = vld [vmem:[#allocation7 + $0x218] sm:$0xff]  ;;  %v6329_v50 = vpack.c.bf16 %v134_v42, %v126_v41 }
  0x56   :  { %v153_v49 = vld [vmem:[#allocation7 + $0x258] sm:$0xff]  ;;  %v6407_v51 = vpack.c.bf16 %v136_v45, %v128_v44  ;;  %v6331_v52 = vpack.c.bf16 %v151_v47, %v143_v46  ;;  %v142_v53 = vld [vmem:[#allocation7 + $0x200] sm:$0xff]  ;;  %v144_v55 = vld [vmem:[#allocation7 + $0x210] sm:$0xff] }
  0x57   :  { %6326 = vmatpush1.bf16.msra.mxu0 %v6325_v34  ;;  %v150_v54 = vld [vmem:[#allocation7 + $0x240] sm:$0xff]  ;;  %v6409_v56 = vpack.c.bf16 %v153_v49, %v145_v48  ;;  %v152_v57 = vld [vmem:[#allocation7 + $0x250] sm:$0xff]  ;;  %v159_v58 = vld [vmem:[#allocation7 + $0x288] sm:$0xff] }
  0x58   :  { %6404 = vmatpush1.bf16.msra.mxu1 %v6403_v38  ;;  %6328 = vmatprep.subr.bf16.mxu0 %v6327_v39  ;;  %v167_v59 = vld [vmem:[#allocation7 + $0x2c8] sm:$0xff]  ;;  %v161_v60 = vld [vmem:[#allocation7 + $0x298] sm:$0xff]  ;;  %v6333_v62 = vpack.c.bf16 %v150_v54, %v142_v53  ;;  %v6411_v63 = vpack.c.bf16 %v152_v57, %v144_v55  ;;  %v158_v1 = vld [vmem:[#allocation7 + $0x280] sm:$0xff] }
  0x59   :  { %6406 = vmatprep.subr.bf16.mxu1 %v6405_v43  ;;  %v169_v61 = vld [vmem:[#allocation7 + $0x2d8] sm:$0xff]  ;;  %v6335_v0 = vpack.c.bf16 %v167_v59, %v159_v58  ;;  %v166_v2 = vld [vmem:[#allocation7 + $0x2c0] sm:$0xff]  ;;  %v160_v3 = vld [vmem:[#allocation7 + $0x290] sm:$0xff] }
  0x5a   :  { %v6413_v4 = vpack.c.bf16 %v169_v61, %v161_v60  ;;  %v168_v5 = vld [vmem:[#allocation7 + $0x2d0] sm:$0xff]  ;;  %v175_v6 = vld [vmem:[#allocation7 + $0x308] sm:$0xff]  ;;  %v177_v8 = vld [vmem:[#allocation7 + $0x318] sm:$0xff]  ;;  %v6337_v10 = vpack.c.bf16 %v166_v2, %v158_v1 }
  0x5b   :  { %6330 = vmatpush1.bf16.msra.mxu0 %v6329_v50  ;;  %v183_v7 = vld [vmem:[#allocation7 + $0x348] sm:$0xff]  ;;  %v185_v9 = vld [vmem:[#allocation7 + $0x358] sm:$0xff]  ;;  %v6415_v11 = vpack.c.bf16 %v168_v5, %v160_v3  ;;  %v174_v13 = vld [vmem:[#allocation7 + $0x300] sm:$0xff] }
  0x5c   :  { %6408 = vmatpush1.bf16.msra.mxu1 %v6407_v51  ;;  %6332 = vmatprep.subr.bf16.mxu0 %v6331_v52  ;;  %v6339_v12 = vpack.c.bf16 %v183_v7, %v175_v6  ;;  %v182_v14 = vld [vmem:[#allocation7 + $0x340] sm:$0xff]  ;;  %v176_v15 = vld [vmem:[#allocation7 + $0x310] sm:$0xff]  ;;  %v6417_v16 = vpack.c.bf16 %v185_v9, %v177_v8  ;;  %v191_v18 = vld [vmem:[#allocation7 + $0x388] sm:$0xff] }
  0x5d   :  { %6410 = vmatprep.subr.bf16.mxu1 %v6409_v56  ;;  %v184_v17 = vld [vmem:[#allocation7 + $0x350] sm:$0xff]  ;;  %v199_v19 = vld [vmem:[#allocation7 + $0x3c8] sm:$0xff]  ;;  %v193_v20 = vld [vmem:[#allocation7 + $0x398] sm:$0xff]  ;;  %v6341_v22 = vpack.c.bf16 %v182_v14, %v174_v13 }
  0x5e   :  { %v201_v21 = vld [vmem:[#allocation7 + $0x3d8] sm:$0xff]  ;;  %v6419_v23 = vpack.c.bf16 %v184_v17, %v176_v15  ;;  %v6343_v24 = vpack.c.bf16 %v199_v19, %v191_v18  ;;  %v190_v25 = vld [vmem:[#allocation7 + $0x380] sm:$0xff]  ;;  %v192_v27 = vld [vmem:[#allocation7 + $0x390] sm:$0xff] }
  0x5f   :  { %6334 = vmatpush1.bf16.msra.mxu0 %v6333_v62  ;;  %v198_v26 = vld [vmem:[#allocation7 + $0x3c0] sm:$0xff]  ;;  %v6421_v28 = vpack.c.bf16 %v201_v21, %v193_v20  ;;  %v200_v29 = vld [vmem:[#allocation7 + $0x3d0] sm:$0xff]  ;;  %v207_v30 = vld [vmem:[#allocation7 + $0x408] sm:$0xff] }
  0x60   :  { %6412 = vmatpush1.bf16.msra.mxu1 %v6411_v63  ;;  %6336 = vmatprep.subr.bf16.mxu0 %v6335_v0  ;;  %v215_v31 = vld [vmem:[#allocation7 + $0x448] sm:$0xff]  ;;  %v209_v32 = vld [vmem:[#allocation7 + $0x418] sm:$0xff]  ;;  %v6345_v34 = vpack.c.bf16 %v198_v26, %v190_v25  ;;  %v6423_v35 = vpack.c.bf16 %v200_v29, %v192_v27  ;;  %v206_v37 = vld [vmem:[#allocation7 + $0x400] sm:$0xff] }
  0x61   :  { %6414 = vmatprep.subr.bf16.mxu1 %v6413_v4  ;;  %v217_v33 = vld [vmem:[#allocation7 + $0x458] sm:$0xff]  ;;  %v6347_v36 = vpack.c.bf16 %v215_v31, %v207_v30  ;;  %v214_v38 = vld [vmem:[#allocation7 + $0x440] sm:$0xff]  ;;  %v208_v39 = vld [vmem:[#allocation7 + $0x410] sm:$0xff] }
  0x62   :  { %v6425_v40 = vpack.c.bf16 %v217_v33, %v209_v32  ;;  %v216_v41 = vld [vmem:[#allocation7 + $0x450] sm:$0xff]  ;;  %v223_v42 = vld [vmem:[#allocation7 + $0x488] sm:$0xff]  ;;  %v225_v44 = vld [vmem:[#allocation7 + $0x498] sm:$0xff]  ;;  %v6349_v46 = vpack.c.bf16 %v214_v38, %v206_v37 }
  0x63   :  { %6338 = vmatpush1.bf16.msra.mxu0 %v6337_v10  ;;  %v231_v43 = vld [vmem:[#allocation7 + $0x4c8] sm:$0xff]  ;;  %v233_v45 = vld [vmem:[#allocation7 + $0x4d8] sm:$0xff]  ;;  %v6427_v47 = vpack.c.bf16 %v216_v41, %v208_v39  ;;  %v222_v49 = vld [vmem:[#allocation7 + $0x480] sm:$0xff] }
  0x64   :  { %6416 = vmatpush1.bf16.msra.mxu1 %v6415_v11  ;;  %6340 = vmatprep.subr.bf16.mxu0 %v6339_v12  ;;  %v6351_v48 = vpack.c.bf16 %v231_v43, %v223_v42  ;;  %v230_v50 = vld [vmem:[#allocation7 + $0x4c0] sm:$0xff]  ;;  %v224_v51 = vld [vmem:[#allocation7 + $0x490] sm:$0xff]  ;;  %v6429_v52 = vpack.c.bf16 %v233_v45, %v225_v44  ;;  %v239_v54 = vld [vmem:[#allocation7 + $0x508] sm:$0xff] }
  0x65   :  { %6418 = vmatprep.subr.bf16.mxu1 %v6417_v16  ;;  %v232_v53 = vld [vmem:[#allocation7 + $0x4d0] sm:$0xff]  ;;  %v247_v55 = vld [vmem:[#allocation7 + $0x548] sm:$0xff]  ;;  %v241_v56 = vld [vmem:[#allocation7 + $0x518] sm:$0xff]  ;;  %v6353_v58 = vpack.c.bf16 %v230_v50, %v222_v49 }
  0x66   :  { %v249_v57 = vld [vmem:[#allocation7 + $0x558] sm:$0xff]  ;;  %v6431_v59 = vpack.c.bf16 %v232_v53, %v224_v51  ;;  %v6355_v60 = vpack.c.bf16 %v247_v55, %v239_v54  ;;  %v238_v61 = vld [vmem:[#allocation7 + $0x500] sm:$0xff]  ;;  %v240_v63 = vld [vmem:[#allocation7 + $0x510] sm:$0xff] }
  0x67   :  { %6342 = vmatpush1.bf16.msra.mxu0 %v6341_v22  ;;  %v246_v62 = vld [vmem:[#allocation7 + $0x540] sm:$0xff]  ;;  %v6433_v0 = vpack.c.bf16 %v249_v57, %v241_v56  ;;  %v248_v1 = vld [vmem:[#allocation7 + $0x550] sm:$0xff]  ;;  %v255_v2 = vld [vmem:[#allocation7 + $0x588] sm:$0xff] }
  0x68   :  { %6420 = vmatpush1.bf16.msra.mxu1 %v6419_v23  ;;  %6344 = vmatprep.subr.bf16.mxu0 %v6343_v24  ;;  %v263_v3 = vld [vmem:[#allocation7 + $0x5c8] sm:$0xff]  ;;  %v257_v4 = vld [vmem:[#allocation7 + $0x598] sm:$0xff]  ;;  %v6357_v6 = vpack.c.bf16 %v246_v62, %v238_v61  ;;  %v254_v7 = vld [vmem:[#allocation7 + $0x580] sm:$0xff]  ;;  %v6435_v8 = vpack.c.bf16 %v248_v1, %v240_v63 }
  0x69   :  { %6422 = vmatprep.subr.bf16.mxu1 %v6421_v28  ;;  %v265_v5 = vld [vmem:[#allocation7 + $0x5d8] sm:$0xff]  ;;  %v6359_v9 = vpack.c.bf16 %v263_v3, %v255_v2  ;;  %v262_v10 = vld [vmem:[#allocation7 + $0x5c0] sm:$0xff]  ;;  %v256_v11 = vld [vmem:[#allocation7 + $0x590] sm:$0xff] }
  0x6a   :  { %v264_v12 = vld [vmem:[#allocation7 + $0x5d0] sm:$0xff]  ;;  %v6437_v13 = vpack.c.bf16 %v265_v5, %v257_v4  ;;  %v271_v14 = vld [vmem:[#allocation7 + $0x608] sm:$0xff]  ;;  %v273_v17 = vld [vmem:[#allocation7 + $0x618] sm:$0xff]  ;;  %v6361_v19 = vpack.c.bf16 %v262_v10, %v254_v7 }
  0x6b   :  { %6346 = vmatpush1.bf16.msra.mxu0 %v6345_v34  ;;  %v279_v15 = vld [vmem:[#allocation7 + $0x648] sm:$0xff]  ;;  %v8946_v16 = vld [vmem:[#allocation5 + $0x8] sm:$0xff]  ;;  %v281_v18 = vld [vmem:[#allocation7 + $0x658] sm:$0xff]  ;;  %v6439_v20 = vpack.c.bf16 %v264_v12, %v256_v11 }
  0x6c   :  { %6424 = vmatpush1.bf16.msra.mxu1 %v6423_v35  ;;  %6348 = vmatprep.subr.bf16.mxu0 %v6347_v36  ;;  %v6363_v21 = vpack.c.bf16 %v279_v15, %v271_v14  ;;  %v270_v22 = vld [vmem:[#allocation7 + $0x600] sm:$0xff]  ;;  %v272_v24 = vld [vmem:[#allocation7 + $0x610] sm:$0xff]  ;;  %v6441_v25 = vpack.c.bf16 %v281_v18, %v273_v17  ;;  %v287_v27 = vld [vmem:[#allocation7 + $0x688] sm:$0xff] }
  0x6d   :  { %6426 = vmatprep.subr.bf16.mxu1 %v6425_v40  ;;  %475 = vmatprep.mubr.f32.mxu0 %v8946_v16  ;;  %v278_v23 = vld [vmem:[#allocation7 + $0x640] sm:$0xff]  ;;  %v280_v26 = vld [vmem:[#allocation7 + $0x650] sm:$0xff]  ;;  %v295_v28 = vld [vmem:[#allocation7 + $0x6c8] sm:$0xff] }
  0x6e   :  { %617 = vmatprep.mubr.f32.mxu1 %v8946_v16  ;;  %v289_v29 = vld [vmem:[#allocation7 + $0x698] sm:$0xff]  ;;  %v6365_v31 = vpack.c.bf16 %v278_v23, %v270_v22  ;;  %v6443_v32 = vpack.c.bf16 %v280_v26, %v272_v24  ;;  %v6367_v33 = vpack.c.bf16 %v295_v28, %v287_v27  ;;  %v286_v34 = vld [vmem:[#allocation7 + $0x680] sm:$0xff]  ;;  %v288_v36 = vld [vmem:[#allocation7 + $0x690] sm:$0xff] }
  0x6f   :  { %6350 = vmatpush1.bf16.msra.mxu0 %v6349_v46  ;;  %v297_v30 = vld [vmem:[#allocation7 + $0x6d8] sm:$0xff]  ;;  %v294_v35 = vld [vmem:[#allocation7 + $0x6c0] sm:$0xff]  ;;  %v296_v38 = vld [vmem:[#allocation7 + $0x6d0] sm:$0xff] }
  0x70   :  { %6428 = vmatpush1.bf16.msra.mxu1 %v6427_v47  ;;  %6352 = vmatprep.subr.bf16.mxu0 %v6351_v48  ;;  %v6445_v37 = vpack.c.bf16 %v297_v30, %v289_v29  ;;  %v303_v39 = vld [vmem:[#allocation7 + $0x708] sm:$0xff]  ;;  %v305_v41 = vld [vmem:[#allocation7 + $0x718] sm:$0xff]  ;;  %v6369_v43 = vpack.c.bf16 %v294_v35, %v286_v34  ;;  %v6447_v44 = vpack.c.bf16 %v296_v38, %v288_v36  ;;  %v302_v46 = vld [vmem:[#allocation7 + $0x700] sm:$0xff]  ;;  %v8871_v38 = vmov 0.0  }
  0x71   :  { %6430 = vmatprep.subr.bf16.mxu1 %v6429_v52  ;;  %v311_v40 = vld [vmem:[#allocation7 + $0x748] sm:$0xff]  ;;  %v313_v42 = vld [vmem:[#allocation7 + $0x758] sm:$0xff]  ;;  %v310_v47 = vld [vmem:[#allocation7 + $0x740] sm:$0xff] }
  0x72   :  { %v6371_v45 = vpack.c.bf16 %v311_v40, %v303_v39  ;;  %v304_v48 = vld [vmem:[#allocation7 + $0x710] sm:$0xff]  ;;  %v6449_v49 = vpack.c.bf16 %v313_v42, %v305_v41  ;;  %v319_v51 = vld [vmem:[#allocation7 + $0x788] sm:$0xff]  ;;  %v321_v53 = vld [vmem:[#allocation7 + $0x798] sm:$0xff]  ;;  %v6373_v55 = vpack.c.bf16 %v310_v47, %v302_v46 }
  0x73   :  { %6354 = vmatpush1.bf16.msra.mxu0 %v6353_v58  ;;  %v312_v50 = vld [vmem:[#allocation7 + $0x750] sm:$0xff]  ;;  %v327_v52 = vld [vmem:[#allocation7 + $0x7c8] sm:$0xff]  ;;  %v329_v54 = vld [vmem:[#allocation7 + $0x7d8] sm:$0xff] }
  0x74   :  { %6432 = vmatpush1.bf16.msra.mxu1 %v6431_v59  ;;  %6356 = vmatprep.subr.bf16.mxu0 %v6355_v60  ;;  %v6451_v56 = vpack.c.bf16 %v312_v50, %v304_v48  ;;  %v6375_v57 = vpack.c.bf16 %v327_v52, %v319_v51  ;;  %v318_v58 = vld [vmem:[#allocation7 + $0x780] sm:$0xff]  ;;  %v320_v60 = vld [vmem:[#allocation7 + $0x790] sm:$0xff]  ;;  %v6453_v61 = vpack.c.bf16 %v329_v54, %v321_v53  ;;  %v335_v63 = vld [vmem:[#allocation7 + $0x808] sm:$0xff] }
  0x75   :  { %6434 = vmatprep.subr.bf16.mxu1 %v6433_v0  ;;  %v326_v59 = vld [vmem:[#allocation7 + $0x7c0] sm:$0xff]  ;;  %v328_v62 = vld [vmem:[#allocation7 + $0x7d0] sm:$0xff]  ;;  %v343_v0 = vld [vmem:[#allocation7 + $0x848] sm:$0xff] }
  0x76   :  { %v337_v1 = vld [vmem:[#allocation7 + $0x818] sm:$0xff]  ;;  %v6377_v3 = vpack.c.bf16 %v326_v59, %v318_v58  ;;  %v6455_v4 = vpack.c.bf16 %v328_v62, %v320_v60  ;;  %v6379_v5 = vpack.c.bf16 %v343_v0, %v335_v63  ;;  %v342_v7 = vld [vmem:[#allocation7 + $0x840] sm:$0xff]  ;;  %v344_v10 = vld [vmem:[#allocation7 + $0x850] sm:$0xff] }
  0x77   :  { %6358 = vmatpush1.bf16.msra.mxu0 %v6357_v6  ;;  %v345_v2 = vld [vmem:[#allocation7 + $0x858] sm:$0xff]  ;;  %v334_v6 = vld [vmem:[#allocation7 + $0x800] sm:$0xff]  ;;  %v351_v11 = vld [vmem:[#allocation7 + $0x888] sm:$0xff] }
  0x78   :  { %6436 = vmatpush1.bf16.msra.mxu1 %v6435_v8  ;;  %6360 = vmatprep.subr.bf16.mxu0 %v6359_v9  ;;  %v336_v8 = vld [vmem:[#allocation7 + $0x810] sm:$0xff]  ;;  %v6457_v9 = vpack.c.bf16 %v345_v2, %v337_v1  ;;  %v359_v12 = vld [vmem:[#allocation7 + $0x8c8] sm:$0xff]  ;;  %v361_v14 = vld [vmem:[#allocation7 + $0x8d8] sm:$0xff]  ;;  %v6381_v17 = vpack.c.bf16 %v342_v7, %v334_v6 }
  0x79   :  { %6438 = vmatprep.subr.bf16.mxu1 %v6437_v13  ;;  %v353_v13 = vld [vmem:[#allocation7 + $0x898] sm:$0xff]  ;;  %v8950_v15 = vld [vmem:[#allocation5] sm:$0xff]  ;;  %v6459_v18 = vpack.c.bf16 %v344_v10, %v336_v8  ;;  %v352_v22 = vld [vmem:[#allocation7 + $0x890] sm:$0xff] }
  0x7a   :  { %v6461_v23 = vpack.c.bf16 %v361_v14, %v353_v13  ;;  %v360_v24 = vld [vmem:[#allocation7 + $0x8d0] sm:$0xff]  ;;  %v375_v26 = vld [vmem:[#allocation7 + $0x948] sm:$0xf]  ;;  %v369_v27 = vld [vmem:[#allocation7 + $0x918] sm:$0xff] }
  0x7b   :  { %6362 = vmatpush1.bf16.msra.mxu0 %v6361_v19  ;;  %v6383_v19 = vpack.c.bf16 %v359_v12, %v351_v11  ;;  %v377_v28 = vld [vmem:[#allocation7 + $0x958] sm:$0xf]  ;;  %vm8954_vm2 = vmpackc.low %vm386_vm0, %vm8870_vm1  ;;  %v374_v34 = vld [vmem:[#allocation7 + $0x940] sm:$0xf] }
  0x7c   :  { %6440 = vmatpush1.bf16.msra.mxu1 %v6439_v20  ;;  %6364 = vmatprep.subr.bf16.mxu0 %v6363_v21  ;;  %v350_v20 = vld [vmem:[#allocation7 + $0x880] sm:$0xff]  ;;  %v368_v35 = vld [vmem:[#allocation7 + $0x910] sm:$0xff]  ;;  %v6465_v36 = vpack.c.bf16 %v377_v28, %v369_v27  ;;  %v83_v39 = vld [vmem:[#allocation7 + $0x28] sm:$0xff] }
  0x7d   :  { %6442 = vmatprep.subr.bf16.mxu1 %v6441_v25  ;;  %v358_v21 = vld [vmem:[#allocation7 + $0x8c0] sm:$0xff]  ;;  %v367_v25 = vld [vmem:[#allocation7 + $0x908] sm:$0xff]  ;;  %v85_v41 = vld [vmem:[#allocation7 + $0x38] sm:$0xff] }
  0x7e   :  { %v6385_v29 = vpack.c.bf16 %v358_v21, %v350_v20  ;;  %v91_v40 = vld [vmem:[#allocation7 + $0x68] sm:$0xff]  ;;  %v93_v42 = vld [vmem:[#allocation7 + $0x78] sm:$0xff]  ;;  %v82_v46 = vld [vmem:[#allocation7 + $0x20] sm:$0xff] }
  0x7f   :  { %6366 = vmatpush1.bf16.msra.mxu0 %v6365_v31  ;;  %v6463_v31 = vpack.c.bf16 %v360_v24, %v352_v22  ;;  %v90_v47 = vld [vmem:[#allocation7 + $0x60] sm:$0xff]  ;;  %v84_v48 = vld [vmem:[#allocation7 + $0x30] sm:$0xff]  ;;  %v99_v51 = vld [vmem:[#allocation7 + $0xa8] sm:$0xff] }
  0x80   :  { %6444 = vmatpush1.bf16.msra.mxu1 %v6443_v32  ;;  %6368 = vmatprep.subr.bf16.mxu0 %v6367_v33  ;;  %v6387_v32 = vpack.c.bf16 %v375_v26, %v367_v25  ;;  %v366_v33 = vld [vmem:[#allocation7 + $0x900] sm:$0xff]  ;;  %v92_v50 = vld [vmem:[#allocation7 + $0x70] sm:$0xff]  ;;  %v107_v52 = vld [vmem:[#allocation7 + $0xe8] sm:$0xff] }
  0x81   :  { %6446 = vmatprep.subr.bf16.mxu1 %v6445_v37  ;;  %v376_v37 = vld [vmem:[#allocation7 + $0x950] sm:$0xf]  ;;  %v101_v53 = vld [vmem:[#allocation7 + $0xb8] sm:$0xff]  ;;  %v6475_v58 = vpack.c.bf16 %v107_v52, %v99_v51  ;;  %v98_v59 = vld [vmem:[#allocation7 + $0xa0] sm:$0xff] }
  0x82   :  { %v109_v54 = vld [vmem:[#allocation7 + $0xf8] sm:$0xff]  ;;  %v106_v60 = vld [vmem:[#allocation7 + $0xe0] sm:$0xff]  ;;  %v108_v63 = vld [vmem:[#allocation7 + $0xf0] sm:$0xff] }
  0x83   :  { %6370 = vmatpush1.bf16.msra.mxu0 %v6369_v43  ;;  %v6390_v43 = vpack.c.bf16 %v374_v34, %v366_v33  ;;  %v6553_v62 = vpack.c.bf16 %v109_v54, %v101_v53  ;;  %v115_v0 = vld [vmem:[#allocation7 + $0x128] sm:$0xff]  ;;  %v117_v2 = vld [vmem:[#allocation7 + $0x138] sm:$0xff]  ;;  %v122_v8 = vld [vmem:[#allocation7 + $0x160] sm:$0xff] }
  0x84   :  { %6448 = vmatpush1.bf16.msra.mxu1 %v6447_v44  ;;  %6372 = vmatprep.subr.bf16.mxu0 %v6371_v45  ;;  %v6468_v44 = vpack.c.bf16 %v376_v37, %v368_v35  ;;  %v6471_v45 = vpack.c.bf16 %v91_v40, %v83_v39  ;;  %v123_v1 = vld [vmem:[#allocation7 + $0x168] sm:$0xff]  ;;  %v8974_v10 = vld [vmem:[#allocation2] sm:$0xff]  ;;  %v124_v12 = vld [vmem:[#allocation7 + $0x170] sm:$0xff] }
  0x85   :  { %6450 = vmatprep.subr.bf16.mxu1 %v6449_v49  ;;  %v6549_v49 = vpack.c.bf16 %v93_v42, %v85_v41  ;;  %v6479_v7 = vpack.c.bf16 %v123_v1, %v115_v0  ;;  %v131_v13 = vld [vmem:[#allocation7 + $0x1a8] sm:$0xff]  ;;  %v138_v24 = vld [vmem:[#allocation7 + $0x1e0] sm:$0xff]  ;;  %v132_v25 = vld [vmem:[#allocation7 + $0x1b0] sm:$0xff] }
  0x86   :  { %v139_v14 = vld [vmem:[#allocation7 + $0x1e8] sm:$0xff]  ;;  %v140_v27 = vld [vmem:[#allocation7 + $0x1f0] sm:$0xff]  ;;  %v146_v35 = vld [vmem:[#allocation7 + $0x220] sm:$0xff] }
  0x87   :  { %6374 = vmatpush1.bf16.msra.mxu0 %v6373_v55  ;;  %v8966_v55 = vld [vmem:[#allocation5 + $0x10] sm:$0xff]  ;;  %v6483_v22 = vpack.c.bf16 %v139_v14, %v131_v13  ;;  %v147_v28 = vld [vmem:[#allocation7 + $0x228] sm:$0xff]  ;;  %v148_v37 = vld [vmem:[#allocation7 + $0x230] sm:$0xff] }
  0x88   :  { %6452 = vmatpush1.bf16.msra.mxu1 %v6451_v56  ;;  %6376 = vmatprep.subr.bf16.mxu0 %v6375_v57  ;;  %v6473_v56 = vpack.c.bf16 %v90_v47, %v82_v46  ;;  %v6551_v57 = vpack.c.bf16 %v92_v50, %v84_v48  ;;  %v156_v40 = vld [vmem:[#allocation7 + $0x270] sm:$0xff]  ;;  %v163_v41 = vld [vmem:[#allocation7 + $0x2a8] sm:$0xff]  ;;  %v162_v48 = vld [vmem:[#allocation7 + $0x2a0] sm:$0xff] }
  0x89   :  { %6454 = vmatprep.subr.bf16.mxu1 %v6453_v61  ;;  %v100_v61 = vld [vmem:[#allocation7 + $0xb0] sm:$0xff]  ;;  %v171_v42 = vld [vmem:[#allocation7 + $0x2e8] sm:$0xff]  ;;  %v6567_v46 = vpack.c.bf16 %v156_v40, %v148_v37  ;;  %v234_v37 = vld [vmem:[#allocation7 + $0x4e0] sm:$0xff] }
  0x8a   :  { %v6555_v6 = vpack.c.bf16 %v108_v63, %v100_v61  ;;  %v6491_v47 = vpack.c.bf16 %v171_v42, %v163_v41  ;;  %v164_v50 = vld [vmem:[#allocation7 + $0x2b0] sm:$0xff]  ;;  %v179_v53 = vld [vmem:[#allocation7 + $0x328] sm:$0xff]  ;;  %v178_v61 = vld [vmem:[#allocation7 + $0x320] sm:$0xff] }
  0x8b   :  { %6378 = vmatpush1.bf16.msra.mxu0 %v6377_v3  ;;  %v125_v3 = vld [vmem:[#allocation7 + $0x178] sm:$0xff]  ;;  %v172_v52 = vld [vmem:[#allocation7 + $0x2f0] sm:$0xff]  ;;  %v187_v54 = vld [vmem:[#allocation7 + $0x368] sm:$0xff] }
  0x8c   :  { %6456 = vmatpush1.bf16.msra.mxu1 %v6455_v4  ;;  %6380 = vmatprep.subr.bf16.mxu0 %v6379_v5  ;;  %v6477_v4 = vpack.c.bf16 %v106_v60, %v98_v59  ;;  %v114_v5 = vld [vmem:[#allocation7 + $0x120] sm:$0xff]  ;;  %v6557_v11 = vpack.c.bf16 %v125_v3, %v117_v2  ;;  %v6571_v59 = vpack.c.bf16 %v172_v52, %v164_v50  ;;  %v180_v63 = vld [vmem:[#allocation7 + $0x330] sm:$0xff]  ;;  %v195_v2 = vld [vmem:[#allocation7 + $0x3a8] sm:$0xff] }
  0x8d   :  { %6458 = vmatprep.subr.bf16.mxu1 %v6457_v9  ;;  %v116_v9 = vld [vmem:[#allocation7 + $0x130] sm:$0xff]  ;;  %v6481_v20 = vpack.c.bf16 %v122_v8, %v114_v5  ;;  %v6495_v60 = vpack.c.bf16 %v187_v54, %v179_v53  ;;  %v203_v3 = vld [vmem:[#allocation7 + $0x3e8] sm:$0xff]  ;;  %v205_v5 = vld [vmem:[#allocation7 + $0x3f8] sm:$0xff] }
  0x8e   :  { %476 = vmatmul.mubr.f32.vlgmr.msra.gmra.mrb[0].mxu0 %v8950_v15  ;;  %v6559_v21 = vpack.c.bf16 %v124_v12, %v116_v9  ;;  %v188_v1 = vld [vmem:[#allocation7 + $0x370] sm:$0xff]  ;;  %v6499_v8 = vpack.c.bf16 %v203_v3, %v195_v2  ;;  %v194_v9 = vld [vmem:[#allocation7 + $0x3a0] sm:$0xff]  ;;  %v243_v42 = vld [vmem:[#allocation7 + $0x528] sm:$0xff] }
  0x8f   :  { %6382 = vmatpush1.bf16.msra.mxu0 %v6381_v17  ;;  %618 = vmatmul.mubr.f32.vlgmr.msra.gmra.mrb[0].mxu1 %v8950_v15  ;;  %v71_v17 = vsel %vm70_vm4, %v8974_v10, 0.0  ;;  %v196_v12 = vld [vmem:[#allocation7 + $0x3b0] sm:$0xff]  ;;  %v250_v50 = vld [vmem:[#allocation7 + $0x560] sm:$0xff]  ;;  %v259_v54 = vld [vmem:[#allocation7 + $0x5a8] sm:$0xff] }
  0x90   :  { %6460 = vmatpush1.bf16.msra.mxu1 %v6459_v18  ;;  %6384 = vmatprep.subr.bf16.mxu0 %v6383_v19  ;;  %v133_v18 = vld [vmem:[#allocation7 + $0x1b8] sm:$0xff]  ;;  %v204_v14 = vld [vmem:[#allocation7 + $0x3f0] sm:$0xff]  ;;  %v275_v3 = vld [vmem:[#allocation7 + $0x628] sm:$0xff] }
  0x91   :  { %6462 = vmatprep.subr.bf16.mxu1 %v6461_v23  ;;  %546 = vmatprep.mubr.f32.mxu0 %v8871_v38  ;;  %v141_v19 = vld [vmem:[#allocation7 + $0x1f8] sm:$0xff]  ;;  %v130_v23 = vld [vmem:[#allocation7 + $0x1a0] sm:$0xff]  ;;  %v236_v41 = vld [vmem:[#allocation7 + $0x4f0] sm:$0xff] }
  0x92   :  { %688 = vmatprep.mubr.f32.mxu1 %v8871_v38  ;;  %72 = vadd.xlane.f32.xlu0 %v71_v17  ;;  %v6561_v26 = vpack.c.bf16 %v141_v19, %v133_v18  ;;  %v6485_v33 = vpack.c.bf16 %v138_v24, %v130_v23  ;;  %v211_v17 = vld [vmem:[#allocation7 + $0x428] sm:$0xff]  ;;  %v213_v19 = vld [vmem:[#allocation7 + $0x438] sm:$0xff]  ;;  %v210_v24 = vld [vmem:[#allocation7 + $0x420] sm:$0xff] }
  0x93   :  { %6386 = vmatpush1.bf16.msra.mxu0 %v6385_v29  ;;  %v155_v29 = vld [vmem:[#allocation7 + $0x268] sm:$0xff]  ;;  %v252_v53 = vld [vmem:[#allocation7 + $0x570] sm:$0xff] }
  0x94   :  { %6464 = vmatpush1.bf16.msra.mxu1 %v6463_v31  ;;  %6389 = vmatprep.subr.msk.bf16.mxu0 %vm8954_vm2, %v6387_v32  ;;  %v149_v31 = vld [vmem:[#allocation7 + $0x238] sm:$0xff]  ;;  %v6487_v34 = vpack.c.bf16 %v155_v29, %v147_v28  ;;  %v219_v18 = vld [vmem:[#allocation7 + $0x468] sm:$0xff]  ;;  %v220_v28 = vld [vmem:[#allocation7 + $0x470] sm:$0xff] }
  0x95   :  { %6467 = vmatprep.subr.msk.bf16.mxu1 %vm8954_vm2, %v6465_v36  ;;  %v157_v32 = vld [vmem:[#allocation7 + $0x278] sm:$0xff]  ;;  %v154_v36 = vld [vmem:[#allocation7 + $0x260] sm:$0xff]  ;;  %v6503_v23 = vpack.c.bf16 %v219_v18, %v211_v17  ;;  %v227_v29 = vld [vmem:[#allocation7 + $0x4a8] sm:$0xff] }
  0x96   :  { %v6565_v39 = vpack.c.bf16 %v157_v32, %v149_v31  ;;  %v235_v31 = vld [vmem:[#allocation7 + $0x4e8] sm:$0xff]  ;;  %v229_v32 = vld [vmem:[#allocation7 + $0x4b8] sm:$0xff]  ;;  %v268_v2 = vld [vmem:[#allocation7 + $0x5f0] sm:$0xff] }
  0x97   :  { %6392 = vmatpush1.bf16.msk.msra.mxu0 %vm8954_vm2, %v6390_v43  ;;  %v165_v43 = vld [vmem:[#allocation7 + $0x2b8] sm:$0xff]  ;;  %v284_v17 = vld [vmem:[#allocation7 + $0x670] sm:$0xff]  ;;  %v291_v18 = vld [vmem:[#allocation7 + $0x6a8] sm:$0xff] }
  0x98   :  { %6470 = vmatpush1.bf16.msk.msra.mxu1 %vm8954_vm2, %v6468_v44  ;;  %6472 = vmatprep.subr.bf16.mxu0 %v6471_v45  ;;  %v173_v44 = vld [vmem:[#allocation7 + $0x2f8] sm:$0xff]  ;;  %v6489_v45 = vpack.c.bf16 %v154_v36, %v146_v35  ;;  %v6507_v35 = vpack.c.bf16 %v235_v31, %v227_v29  ;;  %v226_v36 = vld [vmem:[#allocation7 + $0x4a0] sm:$0xff]  ;;  %v300_v29 = vld [vmem:[#allocation7 + $0x6f0] sm:$0xff] }
  0x99   :  { %6550 = vmatprep.subr.bf16.mxu1 %v6549_v49  ;;  %v170_v49 = vld [vmem:[#allocation7 + $0x2e0] sm:$0xff]  ;;  %v6569_v51 = vpack.c.bf16 %v173_v44, %v165_v43  ;;  %v251_v43 = vld [vmem:[#allocation7 + $0x568] sm:$0xff]  ;;  %v245_v44 = vld [vmem:[#allocation7 + $0x538] sm:$0xff] }
  0x9a   :  { %6293 = vmatmul.mubr.msk.f32.vlgmr.msra.gmra.mrb[0].mxu0 %vm382_vm3, %v8966_v55  ;;  %v307_v31 = vld [vmem:[#allocation7 + $0x728] sm:$0xff] }
  0x9b   :  { %6296 = vmatmul.mubr.msk.f32.vlgmr.msra.gmra.mrb[0].mxu1 %vm382_vm3, %v8966_v55  ;;  %6474 = vmatpush1.bf16.msra.mxu0 %v6473_v56  ;;  %v181_v56 = vld [vmem:[#allocation7 + $0x338] sm:$0xff] }
  0x9c   :  { %6552 = vmatpush1.bf16.msra.mxu1 %v6551_v57  ;;  %6476 = vmatprep.subr.bf16.mxu0 %v6475_v58  ;;  %v189_v57 = vld [vmem:[#allocation7 + $0x378] sm:$0xff]  ;;  %v6493_v58 = vpack.c.bf16 %v170_v49, %v162_v48  ;;  %v6511_v48 = vpack.c.bf16 %v251_v43, %v243_v42  ;;  %v242_v49 = vld [vmem:[#allocation7 + $0x520] sm:$0xff]  ;;  %v316_v42 = vld [vmem:[#allocation7 + $0x770] sm:$0xff] }
  0x9d   :  { %6554 = vmatprep.subr.bf16.mxu1 %v6553_v62  ;;  %759 = vmatprep.mubr.f32.mxu0 %v8946_v16  ;;  %v186_v62 = vld [vmem:[#allocation7 + $0x360] sm:$0xff]  ;;  %v6573_v0 = vpack.c.bf16 %v189_v57, %v181_v56  ;;  %v267_v56 = vld [vmem:[#allocation7 + $0x5e8] sm:$0xff]  ;;  %v261_v57 = vld [vmem:[#allocation7 + $0x5b8] sm:$0xff] }
  0x9e   :  { %901 = vmatprep.mubr.f32.mxu1 %v8946_v16  ;;  %v6563_v16 = vpack.c.bf16 %v140_v27, %v132_v25  ;;  %v218_v25 = vld [vmem:[#allocation7 + $0x460] sm:$0xff]  ;;  %v323_v43 = vld [vmem:[#allocation7 + $0x7a8] sm:$0xff] }
  0x9f   :  { %6478 = vmatpush1.bf16.msra.mxu0 %v6477_v4  ;;  %v197_v4 = vld [vmem:[#allocation7 + $0x3b8] sm:$0xff] }
  0xa0   :  { %6556 = vmatpush1.bf16.msra.mxu1 %v6555_v6  ;;  %6480 = vmatprep.subr.bf16.mxu0 %v6479_v7  ;;  %v6497_v6 = vpack.c.bf16 %v186_v62, %v178_v61  ;;  %v6575_v7 = vpack.c.bf16 %v188_v1, %v180_v63  ;;  %v6577_v13 = vpack.c.bf16 %v205_v5, %v197_v4  ;;  %v258_v62 = vld [vmem:[#allocation7 + $0x5a0] sm:$0xff]  ;;  %v283_v4 = vld [vmem:[#allocation7 + $0x668] sm:$0xff]  ;;  %v277_v5 = vld [vmem:[#allocation7 + $0x638] sm:$0xff] }
  0xa1   :  { %6558 = vmatprep.subr.bf16.mxu1 %v6557_v11  ;;  %v202_v11 = vld [vmem:[#allocation7 + $0x3e0] sm:$0xff]  ;;  %v6515_v61 = vpack.c.bf16 %v267_v56, %v259_v54  ;;  %v339_v54 = vld [vmem:[#allocation7 + $0x828] sm:$0xff] }
  0xa2   :  { %v266_v63 = vld [vmem:[#allocation7 + $0x5e0] sm:$0xff]  ;;  %v347_v56 = vld [vmem:[#allocation7 + $0x868] sm:$0xff] }
  0xa3   :  { %6482 = vmatpush1.bf16.msra.mxu0 %v6481_v20  ;;  %v221_v20 = vld [vmem:[#allocation7 + $0x478] sm:$0xff] }
  0xa4   :  { %6560 = vmatpush1.bf16.msra.mxu1 %v6559_v21  ;;  %6484 = vmatprep.subr.bf16.mxu0 %v6483_v22  ;;  %v6501_v21 = vpack.c.bf16 %v202_v11, %v194_v9  ;;  %v6579_v22 = vpack.c.bf16 %v204_v14, %v196_v12  ;;  %v6581_v27 = vpack.c.bf16 %v221_v20, %v213_v19  ;;  %v274_v11 = vld [vmem:[#allocation7 + $0x620] sm:$0xff]  ;;  %v299_v19 = vld [vmem:[#allocation7 + $0x6e8] sm:$0xff]  ;;  %v293_v20 = vld [vmem:[#allocation7 + $0x6b8] sm:$0xff] }
  0xa5   :  { %6562 = vmatprep.subr.bf16.mxu1 %v6561_v26  ;;  %v212_v26 = vld [vmem:[#allocation7 + $0x430] sm:$0xff]  ;;  %v6519_v9 = vpack.c.bf16 %v283_v4, %v275_v3  ;;  %v282_v12 = vld [vmem:[#allocation7 + $0x660] sm:$0xff]  ;;  %v355_v3 = vld [vmem:[#allocation7 + $0x8a8] sm:$0xff] }
  0xa6   :  { %v363_v4 = vld [vmem:[#allocation7 + $0x8e8] sm:$0xff] }
  0xa7   :  { %6486 = vmatpush1.bf16.msra.mxu0 %v6485_v33  ;;  %v237_v33 = vld [vmem:[#allocation7 + $0x4f8] sm:$0xff] }
  0xa8   :  { %6564 = vmatpush1.bf16.msra.mxu1 %v6563_v16  ;;  %6488 = vmatprep.subr.bf16.mxu0 %v6487_v34  ;;  %v6505_v16 = vpack.c.bf16 %v218_v25, %v210_v24  ;;  %v6583_v34 = vpack.c.bf16 %v220_v28, %v212_v26  ;;  %v6585_v40 = vpack.c.bf16 %v237_v33, %v229_v32  ;;  %v290_v25 = vld [vmem:[#allocation7 + $0x6a0] sm:$0xff]  ;;  %v315_v32 = vld [vmem:[#allocation7 + $0x768] sm:$0xff]  ;;  %v309_v33 = vld [vmem:[#allocation7 + $0x738] sm:$0xff] }
  0xa9   :  { %6566 = vmatprep.subr.bf16.mxu1 %v6565_v39  ;;  %v228_v39 = vld [vmem:[#allocation7 + $0x4b0] sm:$0xff]  ;;  %v6523_v24 = vpack.c.bf16 %v299_v19, %v291_v18  ;;  %v298_v26 = vld [vmem:[#allocation7 + $0x6e0] sm:$0xff]  ;;  %v371_v18 = vld [vmem:[#allocation7 + $0x928] sm:$0xff] }
  0xaa   :  { %v379_v19 = vld [vmem:[#allocation7 + $0x968] sm:$0xf] }
  0xab   :  { %6490 = vmatpush1.bf16.msra.mxu0 %v6489_v45  ;;  %v253_v45 = vld [vmem:[#allocation7 + $0x578] sm:$0xff] }
  0xac   :  { %6568 = vmatpush1.bf16.msra.mxu1 %v6567_v46  ;;  %6492 = vmatprep.subr.bf16.mxu0 %v6491_v47  ;;  %v6509_v46 = vpack.c.bf16 %v234_v37, %v226_v36  ;;  %v6587_v47 = vpack.c.bf16 %v236_v41, %v228_v39  ;;  %v6589_v52 = vpack.c.bf16 %v253_v45, %v245_v44  ;;  %v306_v37 = vld [vmem:[#allocation7 + $0x720] sm:$0xff]  ;;  %v331_v44 = vld [vmem:[#allocation7 + $0x7e8] sm:$0xff]  ;;  %v325_v45 = vld [vmem:[#allocation7 + $0x7b8] sm:$0xff] }
  0xad   :  { %6570 = vmatprep.subr.bf16.mxu1 %v6569_v51  ;;  %v244_v51 = vld [vmem:[#allocation7 + $0x530] sm:$0xff]  ;;  %v6527_v36 = vpack.c.bf16 %v315_v32, %v307_v31  ;;  %v314_v39 = vld [vmem:[#allocation7 + $0x760] sm:$0xff] }
  0xaf   :  { %6494 = vmatpush1.bf16.msra.mxu0 %v6493_v58  ;;  %v269_v58 = vld [vmem:[#allocation7 + $0x5f8] sm:$0xff] }
  0xb0   :  { %6572 = vmatpush1.bf16.msra.mxu1 %v6571_v59  ;;  %6496 = vmatprep.subr.bf16.mxu0 %v6495_v60  ;;  %v6513_v59 = vpack.c.bf16 %v250_v50, %v242_v49  ;;  %v6591_v60 = vpack.c.bf16 %v252_v53, %v244_v51  ;;  %v6593_v1 = vpack.c.bf16 %v269_v58, %v261_v57  ;;  %v322_v49 = vld [vmem:[#allocation7 + $0x7a0] sm:$0xff]  ;;  %v324_v51 = vld [vmem:[#allocation7 + $0x7b0] sm:$0xff]  ;;  %v341_v57 = vld [vmem:[#allocation7 + $0x838] sm:$0xff] }
  0xb1   :  { %6574 = vmatprep.subr.bf16.mxu1 %v6573_v0  ;;  %v260_v0 = vld [vmem:[#allocation7 + $0x5b0] sm:$0xff]  ;;  %v330_v50 = vld [vmem:[#allocation7 + $0x7e0] sm:$0xff]  ;;  %v349_v58 = vld [vmem:[#allocation7 + $0x878] sm:$0xff] }
  0xb2   :  { %v332_v53 = vld [vmem:[#allocation7 + $0x7f0] sm:$0xff] }
  0xb3   :  { %6498 = vmatpush1.bf16.msra.mxu0 %v6497_v6  ;;  %v285_v6 = vld [vmem:[#allocation7 + $0x678] sm:$0xff] }
  0xb4   :  { %6576 = vmatpush1.bf16.msra.mxu1 %v6575_v7  ;;  %6500 = vmatprep.subr.bf16.mxu0 %v6499_v8  ;;  %v6517_v7 = vpack.c.bf16 %v266_v63, %v258_v62  ;;  %v6595_v8 = vpack.c.bf16 %v268_v2, %v260_v0  ;;  %v6597_v14 = vpack.c.bf16 %v285_v6, %v277_v5  ;;  %v338_v62 = vld [vmem:[#allocation7 + $0x820] sm:$0xff]  ;;  %v340_v0 = vld [vmem:[#allocation7 + $0x830] sm:$0xff]  ;;  %v357_v5 = vld [vmem:[#allocation7 + $0x8b8] sm:$0xff] }
  0xb5   :  { %6578 = vmatprep.subr.bf16.mxu1 %v6577_v13  ;;  %v276_v13 = vld [vmem:[#allocation7 + $0x630] sm:$0xff]  ;;  %v346_v63 = vld [vmem:[#allocation7 + $0x860] sm:$0xff]  ;;  %v365_v6 = vld [vmem:[#allocation7 + $0x8f8] sm:$0xff] }
  0xb6   :  { %v348_v2 = vld [vmem:[#allocation7 + $0x870] sm:$0xff] }
  0xb7   :  { %6502 = vmatpush1.bf16.msra.mxu0 %v6501_v21  ;;  %v301_v21 = vld [vmem:[#allocation7 + $0x6f8] sm:$0xff] }
  0xb8   :  { %6580 = vmatpush1.bf16.msra.mxu1 %v6579_v22  ;;  %6504 = vmatprep.subr.bf16.mxu0 %v6503_v23  ;;  %v6521_v22 = vpack.c.bf16 %v282_v12, %v274_v11  ;;  %v6599_v23 = vpack.c.bf16 %v284_v17, %v276_v13  ;;  %v6601_v28 = vpack.c.bf16 %v301_v21, %v293_v20  ;;  %v354_v11 = vld [vmem:[#allocation7 + $0x8a0] sm:$0xff]  ;;  %v356_v13 = vld [vmem:[#allocation7 + $0x8b0] sm:$0xff]  ;;  %v373_v20 = vld [vmem:[#allocation7 + $0x938] sm:$0xff] }
  0xb9   :  { %6582 = vmatprep.subr.bf16.mxu1 %v6581_v27  ;;  %v292_v27 = vld [vmem:[#allocation7 + $0x6b0] sm:$0xff]  ;;  %v362_v12 = vld [vmem:[#allocation7 + $0x8e0] sm:$0xff]  ;;  %v381_v21 = vld [vmem:[#allocation7 + $0x978] sm:$0xf] }
  0xba   :  { %v364_v17 = vld [vmem:[#allocation7 + $0x8f0] sm:$0xff] }
  0xbb   :  { %6506 = vmatpush1.bf16.msra.mxu0 %v6505_v16  ;;  %v317_v16 = vld [vmem:[#allocation7 + $0x778] sm:$0xff] }
  0xbc   :  { %6584 = vmatpush1.bf16.msra.mxu1 %v6583_v34  ;;  %6508 = vmatprep.subr.bf16.mxu0 %v6507_v35  ;;  %v6525_v34 = vpack.c.bf16 %v298_v26, %v290_v25  ;;  %v6603_v35 = vpack.c.bf16 %v300_v29, %v292_v27  ;;  %v6605_v41 = vpack.c.bf16 %v317_v16, %v309_v33  ;;  %v370_v25 = vld [vmem:[#allocation7 + $0x920] sm:$0xff]  ;;  %v380_v29 = vld [vmem:[#allocation7 + $0x970] sm:$0xf] }
  0xbd   :  { %6586 = vmatprep.subr.bf16.mxu1 %v6585_v40  ;;  %v308_v40 = vld [vmem:[#allocation7 + $0x730] sm:$0xff]  ;;  %v378_v26 = vld [vmem:[#allocation7 + $0x960] sm:$0xf]  ;;  %v6621_v27 = vpack.c.bf16 %v381_v21, %v373_v20 }
  0xbe   :  { %v6546_v31 = vpack.c.bf16 %v378_v26, %v370_v25  ;;  %v1420_v21 = vld [vmem:[#allocation8 + $0x290] sm:$0xff]  ;;  %v1453_v25 = vld [vmem:[#allocation8 + $0x398] sm:$0xff] }
  0xbf   :  { %6510 = vmatpush1.bf16.msra.mxu0 %v6509_v46  ;;  %987 = vxpose.xlu0.b32.start.end [1/1] (short) (narrow) %v8974_v10, 8  ;;  %v333_v46 = vld [vmem:[#allocation7 + $0x7f8] sm:$0xff]  ;;  %v6531_v10 = vpack.c.bf16 %v331_v44, %v323_v43  ;;  %v1355_v43 = vld [vmem:[#allocation8 + $0x88] sm:$0xff] }
  0xc0   :  { %6588 = vmatpush1.bf16.msra.mxu1 %v6587_v47  ;;  %6512 = vmatprep.subr.bf16.mxu0 %v6511_v48  ;;  %v6529_v47 = vpack.c.bf16 %v314_v39, %v306_v37  ;;  %v6607_v48 = vpack.c.bf16 %v316_v42, %v308_v40  ;;  %v1341_v44 = vld [vmem:[#allocation8 + $0x18] sm:$0xff] }
  0xc1   :  { %6590 = vmatprep.subr.bf16.mxu1 %v6589_v52  ;;  %v6609_v52 = vpack.c.bf16 %v333_v46, %v325_v45  ;;  %v1357_v45 = vld [vmem:[#allocation8 + $0x98] sm:$0xff] }
  0xc3   :  { %6514 = vmatpush1.bf16.msra.mxu0 %v6513_v59  ;;  %v6533_v59 = vpack.c.bf16 %v330_v50, %v322_v49  ;;  %v1340_v49 = vld [vmem:[#allocation8 + $0x10] sm:$0xff] }
  0xc4   :  { %6592 = vmatpush1.bf16.msra.mxu1 %v6591_v60  ;;  %6516 = vmatprep.subr.bf16.mxu0 %v6515_v61  ;;  %v6611_v60 = vpack.c.bf16 %v332_v53, %v324_v51  ;;  %v6535_v61 = vpack.c.bf16 %v347_v56, %v339_v54  ;;  %v1371_v53 = vld [vmem:[#allocation8 + $0x108] sm:$0xff] }
  0xc5   :  { %6594 = vmatprep.subr.bf16.mxu1 %v6593_v1  ;;  %v6613_v1 = vpack.c.bf16 %v349_v58, %v341_v57  ;;  %v1387_v54 = vld [vmem:[#allocation8 + $0x188] sm:$0xff] }
  0xc7   :  { %6518 = vmatpush1.bf16.msra.mxu0 %v6517_v7  ;;  %v6537_v7 = vpack.c.bf16 %v346_v63, %v338_v62  ;;  %v6883_v62 = vpack.c.bf16 %v1357_v45, %v1341_v44  ;;  %v1484_v45 = vld [vmem:[#allocation8 + $0x490] sm:$0xff] }
  0xc8   :  { %6596 = vmatpush1.bf16.msra.mxu1 %v6595_v8  ;;  %6520 = vmatprep.subr.bf16.mxu0 %v6519_v9  ;;  %v6615_v8 = vpack.c.bf16 %v348_v2, %v340_v0  ;;  %v6539_v9 = vpack.c.bf16 %v363_v4, %v355_v3  ;;  %v1370_v2 = vld [vmem:[#allocation8 + $0x100] sm:$0xff]  ;;  %v1372_v4 = vld [vmem:[#allocation8 + $0x110] sm:$0xff] }
  0xc9   :  { %6598 = vmatprep.subr.bf16.mxu1 %v6597_v14  ;;  %v6617_v14 = vpack.c.bf16 %v365_v6, %v357_v5  ;;  %v1386_v3 = vld [vmem:[#allocation8 + $0x180] sm:$0xff]  ;;  %v1388_v6 = vld [vmem:[#allocation8 + $0x190] sm:$0xff] }
  0xcb   :  { %6522 = vmatpush1.bf16.msra.mxu0 %v6521_v22  ;;  %v6541_v22 = vpack.c.bf16 %v362_v12, %v354_v11  ;;  %v1421_v11 = vld [vmem:[#allocation8 + $0x298] sm:$0xff]  ;;  %v6633_v12 = vpack.c.bf16 %v1386_v3, %v1370_v2  ;;  %v1546_v2 = vld [vmem:[#allocation8 + $0x680] sm:$0xff]  ;;  %v1532_v3 = vld [vmem:[#allocation8 + $0x610] sm:$0xff] }
  0xcc   :  { %6600 = vmatpush1.bf16.msra.mxu1 %v6599_v23  ;;  %6524 = vmatprep.subr.bf16.mxu0 %v6523_v24  ;;  %v6619_v23 = vpack.c.bf16 %v364_v17, %v356_v13  ;;  %v6543_v24 = vpack.c.bf16 %v379_v19, %v371_v18  ;;  %v6889_v13 = vpack.c.bf16 %v1388_v6, %v1372_v4  ;;  %v1402_v17 = vld [vmem:[#allocation8 + $0x200] sm:$0xff]  ;;  %v1404_v19 = vld [vmem:[#allocation8 + $0x210] sm:$0xff]  ;;  %v1563_v6 = vld [vmem:[#allocation8 + $0x708] sm:$0xff] }
  0xcd   :  { %6602 = vmatprep.subr.bf16.mxu1 %v6601_v28  ;;  %v372_v28 = vld [vmem:[#allocation7 + $0x930] sm:$0xff]  ;;  %v1418_v18 = vld [vmem:[#allocation8 + $0x280] sm:$0xff] }
  0xce   :  { %v6637_v26 = vpack.c.bf16 %v1418_v18, %v1402_v17  ;;  %v1578_v17 = vld [vmem:[#allocation8 + $0x780] sm:$0xff]  ;;  %v1564_v18 = vld [vmem:[#allocation8 + $0x710] sm:$0xff] }
  0xcf   :  { %6526 = vmatpush1.bf16.msra.mxu0 %v6525_v34 }
  0xd0   :  { %6604 = vmatpush1.bf16.msra.mxu1 %v6603_v35  ;;  %6528 = vmatprep.subr.bf16.mxu0 %v6527_v36 }
  0xd1   :  { %6606 = vmatprep.subr.bf16.mxu1 %v6605_v41  ;;  %v1339_v41 = vld [vmem:[#allocation8 + $0x8] sm:$0xff] }
  0xd2   :  { %v6627_v58 = vpack.c.bf16 %v1355_v43, %v1339_v41  ;;  %v1466_v41 = vld [vmem:[#allocation8 + $0x400] sm:$0xff]  ;;  %v1468_v43 = vld [vmem:[#allocation8 + $0x410] sm:$0xff] }
  0xd3   :  { %6530 = vmatpush1.bf16.msra.mxu0 %v6529_v47 }
  0xd4   :  { %6608 = vmatpush1.bf16.msra.mxu1 %v6607_v48  ;;  %6532 = vmatprep.subr.bf16.mxu0 %v6531_v10  ;;  %v1338_v48 = vld [vmem:[#allocation8] sm:$0xff] }
  0xd5   :  { %6610 = vmatprep.subr.bf16.mxu1 %v6609_v52  ;;  %v1354_v10 = vld [vmem:[#allocation8 + $0x80] sm:$0xff]  ;;  %v1356_v52 = vld [vmem:[#allocation8 + $0x90] sm:$0xff] }
  0xd6   :  { %v6629_v63 = vpack.c.bf16 %v1354_v10, %v1338_v48  ;;  %v6885_v0 = vpack.c.bf16 %v1356_v52, %v1340_v49  ;;  %v1501_v48 = vld [vmem:[#allocation8 + $0x518] sm:$0xff]  ;;  %v1498_v52 = vld [vmem:[#allocation8 + $0x500] sm:$0xff] }
  0xd7   :  { %6534 = vmatpush1.bf16.msra.mxu0 %v6533_v59  ;;  %v1373_v59 = vld [vmem:[#allocation8 + $0x118] sm:$0xff] }
  0xd8   :  { %6612 = vmatpush1.bf16.msra.mxu1 %v6611_v60  ;;  %6536 = vmatprep.subr.bf16.mxu0 %v6535_v61  ;;  %v1389_v60 = vld [vmem:[#allocation8 + $0x198] sm:$0xff] }
  0xd9   :  { %6614 = vmatprep.subr.bf16.mxu1 %v6613_v1  ;;  %v6631_v1 = vpack.c.bf16 %v1387_v54, %v1371_v53  ;;  %v6887_v5 = vpack.c.bf16 %v1389_v60, %v1373_v59  ;;  %v1517_v10 = vld [vmem:[#allocation8 + $0x598] sm:$0xff]  ;;  %v1514_v53 = vld [vmem:[#allocation8 + $0x580] sm:$0xff]  ;;  %v1500_v54 = vld [vmem:[#allocation8 + $0x510] sm:$0xff] }
  0xda   :  { %760 = vmatmul.mubr.f32.vlgmr.msra.gmra.mrb[2].mxu0 %v8950_v15  ;;  %v1547_v59 = vld [vmem:[#allocation8 + $0x688] sm:$0xff]  ;;  %v1533_v60 = vld [vmem:[#allocation8 + $0x618] sm:$0xff] }
  0xdb   :  { %6538 = vmatpush1.bf16.msra.mxu0 %v6537_v7  ;;  %902 = vmatmul.mubr.f32.vlgmr.msra.gmra.mrb[2].mxu1 %v8950_v15  ;;  %v6624_v15 = vpack.c.bf16 %v380_v29, %v372_v28  ;;  %v1403_v7 = vld [vmem:[#allocation8 + $0x208] sm:$0xff]  ;;  %v1434_v29 = vld [vmem:[#allocation8 + $0x300] sm:$0xff] }
  0xdc   :  { %6616 = vmatpush1.bf16.msra.mxu1 %v6615_v8  ;;  %6540 = vmatprep.subr.bf16.mxu0 %v6539_v9  ;;  %v1419_v8 = vld [vmem:[#allocation8 + $0x288] sm:$0xff]  ;;  %v1405_v9 = vld [vmem:[#allocation8 + $0x218] sm:$0xff] }
  0xdd   :  { %6618 = vmatprep.subr.bf16.mxu1 %v6617_v14  ;;  %830 = vmatprep.mubr.f32.mxu0 %v8871_v38  ;;  %v6635_v14 = vpack.c.bf16 %v1419_v8, %v1403_v7  ;;  %v6891_v20 = vpack.c.bf16 %v1421_v11, %v1405_v9  ;;  %v1579_v7 = vld [vmem:[#allocation8 + $0x788] sm:$0xff]  ;;  %v1565_v8 = vld [vmem:[#allocation8 + $0x718] sm:$0xff] }
  0xde   :  { %972 = vmatprep.mubr.f32.mxu1 %v8871_v38  ;;  %v1581_v9 = vld [vmem:[#allocation8 + $0x798] sm:$0xff] }
  0xdf   :  { %6542 = vmatpush1.bf16.msra.mxu0 %v6541_v22  ;;  %v1435_v22 = vld [vmem:[#allocation8 + $0x308] sm:$0xff] }
  0xe0   :  { %6620 = vmatpush1.bf16.msra.mxu1 %v6619_v23  ;;  %6545 = vmatprep.subr.msk.bf16.mxu0 %vm8954_vm2, %v6543_v24  ;;  %v1451_v23 = vld [vmem:[#allocation8 + $0x388] sm:$0xff]  ;;  %v1437_v24 = vld [vmem:[#allocation8 + $0x318] sm:$0xff] }
  0xe1   :  { %6623 = vmatprep.subr.msk.bf16.mxu1 %vm8954_vm2, %v6621_v27  ;;  %v6893_v27 = vpack.c.bf16 %v1420_v21, %v1404_v19  ;;  %v6639_v28 = vpack.c.bf16 %v1451_v23, %v1435_v22  ;;  %v6911_v19 = vpack.c.bf16 %v1581_v9, %v1565_v8  ;;  %v1595_v21 = vld [vmem:[#allocation8 + $0x808] sm:$0xff]  ;;  %v1597_v23 = vld [vmem:[#allocation8 + $0x818] sm:$0xff] }
  0xe2   :  { %v1611_v22 = vld [vmem:[#allocation8 + $0x888] sm:$0xff]  ;;  %v1741_v8 = vld [vmem:[#allocation8 + $0xc98] sm:$0xff] }
  0xe3   :  { %6548 = vmatpush1.bf16.msk.msra.mxu0 %vm8954_vm2, %v6546_v31  ;;  %v1450_v31 = vld [vmem:[#allocation8 + $0x380] sm:$0xff] }
  0xe4   :  { %6626 = vmatpush1.bf16.msk.msra.mxu1 %vm8954_vm2, %v6624_v15  ;;  %v1436_v15 = vld [vmem:[#allocation8 + $0x310] sm:$0xff] }
  0xe6   :  { %6299 = vmatmul.mubr.msk.f32.vlgmr.msra.gmra.mrb[2].mxu0 %vm382_vm3, %v8966_v55 }
  0xe7   :  { %6302 = vmatmul.mubr.msk.f32.vlgmr.msra.gmra.mrb[2].mxu1 %vm382_vm3, %v8966_v55  ;;  %1086 = vmatprep.mubr.f32.mxu0 %v8871_v38 }
  0xe8   :  { %1157 = vmatprep.mubr.f32.mxu1 %v8871_v38 }
 0x11f   :  { %v73_v32 = vpop.xlane.xlu0 %72 }
 0x120   :  { %8742 = vrsqrt.f32 %v73_v32  ;;  %v6895_v32 = vpack.c.bf16 %v1453_v25, %v1437_v24  ;;  %v1613_v24 = vld [vmem:[#allocation8 + $0x898] sm:$0xff] }
 0x12a   :  { %v8999_v16 = vpop.eup %8742 }
 0x13f   :  { %v9004_v40 = vpop.trf.xlu0 }
 0x16d   :  { %v548_v33 = vpop.f32.mrb[0].mxu0 }
 0x16e   :  { %v690_v34 = vpop.f32.mrb[0].mxu1  ;;  %v550_v35 = vpop.f32.mrb[1].mxu0  ;;  %v979_v37 = vmul.f32 %v8999_v16, %v548_v33  ;;  %v1452_v33 = vld [vmem:[#allocation8 + $0x390] sm:$0xff] }
 0x16f   :  { %v980_v30 = vmul.f32 %v8999_v16, %v550_v35  ;;  %v692_v36 = vpop.f32.mrb[1].mxu1  ;;  %v981_v55 = vmul.f32 %v8999_v16, %v690_v34  ;;  %v1467_v34 = vld [vmem:[#allocation8 + $0x408] sm:$0xff] }
 0x170   :  { %v982_v39 = vmul.f32 %v8999_v16, %v692_v36  ;;  %v1483_v35 = vld [vmem:[#allocation8 + $0x488] sm:$0xff]  ;;  %v1485_v36 = vld [vmem:[#allocation8 + $0x498] sm:$0xff] }
 0x171   :  { %1022 = vmatprep.subr.mxu0 %v980_v30  ;;  %v1469_v30 = vld [vmem:[#allocation8 + $0x418] sm:$0xff] }
 0x172   :  { %1093 = vmatprep.subr.mxu1 %v982_v39  ;;  %1023 = vmatpush1.msra.mxu0 %v979_v37  ;;  %v6641_v37 = vpack.c.bf16 %v1450_v31, %v1434_v29  ;;  %v6897_v39 = vpack.c.bf16 %v1452_v33, %v1436_v15  ;;  %v6899_v44 = vpack.c.bf16 %v1485_v36, %v1469_v30  ;;  %v1610_v29 = vld [vmem:[#allocation8 + $0x880] sm:$0xff]  ;;  %v1596_v31 = vld [vmem:[#allocation8 + $0x810] sm:$0xff]  ;;  %v1627_v33 = vld [vmem:[#allocation8 + $0x908] sm:$0xff] }
 0x173   :  { %1094 = vmatpush1.msra.mxu1 %v981_v55  ;;  %6303 = vmatmul.mubr.msk.f32.vlgmr.msra.gmra.mrb[4].mxu0 %vm70_vm4, %v9004_v40  ;;  %v6643_v55 = vpack.c.bf16 %v1483_v35, %v1467_v34  ;;  %v6915_v15 = vpack.c.bf16 %v1613_v24, %v1597_v23  ;;  %v1643_v34 = vld [vmem:[#allocation8 + $0x988] sm:$0xff]  ;;  %v1629_v35 = vld [vmem:[#allocation8 + $0x918] sm:$0xff] }
 0x174   :  { %6304 = vmatmul.mubr.msk.f32.vlgmr.msra.gmra.mrb[4].mxu1 %vm70_vm4, %v9004_v40  ;;  %1228 = vmatprep.mubr.f32.mxu0 %v8871_v38  ;;  %v1645_v30 = vld [vmem:[#allocation8 + $0x998] sm:$0xff] }
 0x175   :  { %1299 = vmatprep.mubr.f32.mxu1 %v8871_v38  ;;  %v1773_v23 = vld [vmem:[#allocation8 + $0xd98] sm:$0xff] }
 0x1b9   :  { %v832_v42 = vpop.f32.mrb[2].mxu0 }
 0x1ba   :  { %v974_v46 = vpop.f32.mrb[2].mxu1  ;;  %v834_v47 = vpop.f32.mrb[3].mxu0  ;;  %v983_v56 = vmul.f32 %v8999_v16, %v832_v42  ;;  %v1482_v42 = vld [vmem:[#allocation8 + $0x480] sm:$0xff] }
 0x1bb   :  { %v984_v50 = vmul.f32 %v8999_v16, %v834_v47  ;;  %v976_v51 = vpop.f32.mrb[3].mxu1  ;;  %v985_v61 = vmul.f32 %v8999_v16, %v974_v46  ;;  %v1499_v46 = vld [vmem:[#allocation8 + $0x508] sm:$0xff]  ;;  %v6645_v49 = vpack.c.bf16 %v1482_v42, %v1466_v41  ;;  %v1642_v41 = vld [vmem:[#allocation8 + $0x980] sm:$0xff]  ;;  %v1628_v42 = vld [vmem:[#allocation8 + $0x910] sm:$0xff] }
 0x1bc   :  { %v986_v57 = vmul.f32 %v8999_v16, %v976_v51  ;;  %v1515_v47 = vld [vmem:[#allocation8 + $0x588] sm:$0xff] }
 0x1bd   :  { %1164 = vmatprep.subr.mxu0 %v984_v50  ;;  %v6901_v50 = vpack.c.bf16 %v1484_v45, %v1468_v43  ;;  %v6647_v51 = vpack.c.bf16 %v1515_v47, %v1499_v46  ;;  %v6919_v43 = vpack.c.bf16 %v1645_v30, %v1629_v35  ;;  %v1659_v45 = vld [vmem:[#allocation8 + $0xa08] sm:$0xff]  ;;  %v1661_v47 = vld [vmem:[#allocation8 + $0xa18] sm:$0xff] }
 0x1be   :  { %1235 = vmatprep.subr.mxu1 %v986_v57  ;;  %1165 = vmatpush1.msra.mxu0 %v983_v56  ;;  %v6903_v56 = vpack.c.bf16 %v1517_v10, %v1501_v48  ;;  %v1516_v57 = vld [vmem:[#allocation8 + $0x590] sm:$0xff]  ;;  %v1675_v46 = vld [vmem:[#allocation8 + $0xa88] sm:$0xff]  ;;  %v1677_v48 = vld [vmem:[#allocation8 + $0xa98] sm:$0xff] }
 0x1bf   :  { %1236 = vmatpush1.msra.mxu1 %v985_v61  ;;  %6305 = vmatmul.mubr.msk.f32.vlgmr.msra.gmra.mrb[6].mxu0 %vm70_vm4, %v9004_v40  ;;  %v1549_v61 = vld [vmem:[#allocation8 + $0x698] sm:$0xff] }
 0x1c0   :  { %6306 = vmatmul.mubr.msk.f32.vlgmr.msra.gmra.mrb[6].mxu1 %vm70_vm4, %v9004_v40  ;;  %6628 = vmatprep.subr.bf16.mxu0 %v6627_v58  ;;  %v1531_v58 = vld [vmem:[#allocation8 + $0x608] sm:$0xff]  ;;  %v6907_v4 = vpack.c.bf16 %v1549_v61, %v1533_v60  ;;  %v1709_v60 = vld [vmem:[#allocation8 + $0xb98] sm:$0xff] }
 0x1c1   :  { %6884 = vmatprep.subr.bf16.mxu1 %v6883_v62  ;;  %6630 = vmatpush1.bf16.msra.mxu0 %v6629_v63  ;;  %v6649_v62 = vpack.c.bf16 %v1514_v53, %v1498_v52  ;;  %v6905_v63 = vpack.c.bf16 %v1516_v57, %v1500_v54  ;;  %v1674_v52 = vld [vmem:[#allocation8 + $0xa80] sm:$0xff]  ;;  %v1660_v53 = vld [vmem:[#allocation8 + $0xa10] sm:$0xff]  ;;  %v6923_v54 = vpack.c.bf16 %v1677_v48, %v1661_v47  ;;  %v1691_v57 = vld [vmem:[#allocation8 + $0xb08] sm:$0xff] }
 0x1c2   :  { %6886 = vmatpush1.bf16.msra.mxu1 %v6885_v0  ;;  %6632 = vmatprep.subr.bf16.mxu0 %v6631_v1  ;;  %v6651_v0 = vpack.c.bf16 %v1547_v59, %v1531_v58  ;;  %v1530_v1 = vld [vmem:[#allocation8 + $0x600] sm:$0xff]  ;;  %v1707_v58 = vld [vmem:[#allocation8 + $0xb88] sm:$0xff]  ;;  %v1693_v59 = vld [vmem:[#allocation8 + $0xb18] sm:$0xff] }
 0x1c3   :  { %6888 = vmatprep.subr.bf16.mxu1 %v6887_v5  ;;  %v1548_v5 = vld [vmem:[#allocation8 + $0x690] sm:$0xff]  ;;  %v6653_v11 = vpack.c.bf16 %v1546_v2, %v1530_v1  ;;  %v1706_v1 = vld [vmem:[#allocation8 + $0xb80] sm:$0xff]  ;;  %v1805_v35 = vld [vmem:[#allocation8 + $0xe98] sm:$0xff] }
 0x1c4   :  { %v1692_v2 = vld [vmem:[#allocation8 + $0xb10] sm:$0xff]  ;;  %v1837_v47 = vld [vmem:[#allocation8 + $0xf98] sm:$0xff] }
 0x1c5   :  { %6634 = vmatpush1.bf16.msra.mxu0 %v6633_v12  ;;  %v6909_v12 = vpack.c.bf16 %v1548_v5, %v1532_v3  ;;  %v6927_v3 = vpack.c.bf16 %v1709_v60, %v1693_v59  ;;  %v1723_v5 = vld [vmem:[#allocation8 + $0xc08] sm:$0xff]  ;;  %v1869_v59 = vld [vmem:[#allocation8 + $0x1098] sm:$0xff] }
 0x1c6   :  { %6890 = vmatpush1.bf16.msra.mxu1 %v6889_v13  ;;  %6636 = vmatprep.subr.bf16.mxu0 %v6635_v14  ;;  %v6655_v13 = vpack.c.bf16 %v1579_v7, %v1563_v6  ;;  %v1562_v14 = vld [vmem:[#allocation8 + $0x700] sm:$0xff]  ;;  %v1739_v6 = vld [vmem:[#allocation8 + $0xc88] sm:$0xff]  ;;  %v1725_v7 = vld [vmem:[#allocation8 + $0xc18] sm:$0xff] }
 0x1c7   :  { %6892 = vmatprep.subr.bf16.mxu1 %v6891_v20  ;;  %v1580_v20 = vld [vmem:[#allocation8 + $0x790] sm:$0xff]  ;;  %v6657_v25 = vpack.c.bf16 %v1578_v17, %v1562_v14  ;;  %v1738_v14 = vld [vmem:[#allocation8 + $0xc80] sm:$0xff] }
 0x1c8   :  { %v1724_v17 = vld [vmem:[#allocation8 + $0xc10] sm:$0xff] }
 0x1c9   :  { %6638 = vmatpush1.bf16.msra.mxu0 %v6637_v26  ;;  %v6913_v26 = vpack.c.bf16 %v1580_v20, %v1564_v18  ;;  %v6931_v18 = vpack.c.bf16 %v1741_v8, %v1725_v7  ;;  %v1755_v20 = vld [vmem:[#allocation8 + $0xd08] sm:$0xff]  ;;  %v1866_v7 = vld [vmem:[#allocation8 + $0x1080] sm:$0xff]  ;;  %v1852_v8 = vld [vmem:[#allocation8 + $0x1010] sm:$0xff] }
 0x1ca   :  { %6894 = vmatpush1.bf16.msra.mxu1 %v6893_v27  ;;  %6640 = vmatprep.subr.bf16.mxu0 %v6639_v28  ;;  %v6659_v27 = vpack.c.bf16 %v1611_v22, %v1595_v21  ;;  %v1594_v28 = vld [vmem:[#allocation8 + $0x800] sm:$0xff]  ;;  %v1771_v21 = vld [vmem:[#allocation8 + $0xd88] sm:$0xff]  ;;  %v1757_v22 = vld [vmem:[#allocation8 + $0xd18] sm:$0xff] }
 0x1cb   :  { %6896 = vmatprep.subr.bf16.mxu1 %v6895_v32  ;;  %v1612_v32 = vld [vmem:[#allocation8 + $0x890] sm:$0xff]  ;;  %v6661_v36 = vpack.c.bf16 %v1610_v29, %v1594_v28  ;;  %v1770_v28 = vld [vmem:[#allocation8 + $0xd80] sm:$0xff] }
 0x1cc   :  { %v1756_v29 = vld [vmem:[#allocation8 + $0xd10] sm:$0xff] }
 0x1cd   :  { %6642 = vmatpush1.bf16.msra.mxu0 %v6641_v37  ;;  %v6917_v37 = vpack.c.bf16 %v1612_v32, %v1596_v31  ;;  %v6935_v31 = vpack.c.bf16 %v1773_v23, %v1757_v22  ;;  %v1787_v32 = vld [vmem:[#allocation8 + $0xe08] sm:$0xff]  ;;  %v1882_v23 = vld [vmem:[#allocation8 + $0x1100] sm:$0xff] }
 0x1ce   :  { %6898 = vmatpush1.bf16.msra.mxu1 %v6897_v39  ;;  %6644 = vmatprep.subr.bf16.mxu0 %v6643_v55  ;;  %v6663_v39 = vpack.c.bf16 %v1643_v34, %v1627_v33  ;;  %v1626_v55 = vld [vmem:[#allocation8 + $0x900] sm:$0xff]  ;;  %v1803_v33 = vld [vmem:[#allocation8 + $0xe88] sm:$0xff]  ;;  %v1789_v34 = vld [vmem:[#allocation8 + $0xe18] sm:$0xff] }
 0x1cf   :  { %6900 = vmatprep.subr.bf16.mxu1 %v6899_v44  ;;  %v1644_v44 = vld [vmem:[#allocation8 + $0x990] sm:$0xff]  ;;  %v6665_v10 = vpack.c.bf16 %v1642_v41, %v1626_v55  ;;  %v1802_v55 = vld [vmem:[#allocation8 + $0xe80] sm:$0xff] }
 0x1d0   :  { %v1788_v41 = vld [vmem:[#allocation8 + $0xe10] sm:$0xff] }
 0x1d1   :  { %6646 = vmatpush1.bf16.msra.mxu0 %v6645_v49  ;;  %v6921_v49 = vpack.c.bf16 %v1644_v44, %v1628_v42  ;;  %v6939_v42 = vpack.c.bf16 %v1805_v35, %v1789_v34  ;;  %v1819_v44 = vld [vmem:[#allocation8 + $0xf08] sm:$0xff]  ;;  %v1933_v34 = vld [vmem:[#allocation8 + $0x1298] sm:$0xff] }
 0x1d2   :  { %6902 = vmatpush1.bf16.msra.mxu1 %v6901_v50  ;;  %6648 = vmatprep.subr.bf16.mxu0 %v6647_v51  ;;  %v6667_v50 = vpack.c.bf16 %v1675_v46, %v1659_v45  ;;  %v1658_v51 = vld [vmem:[#allocation8 + $0xa00] sm:$0xff]  ;;  %v1835_v45 = vld [vmem:[#allocation8 + $0xf88] sm:$0xff]  ;;  %v1821_v46 = vld [vmem:[#allocation8 + $0xf18] sm:$0xff] }
 0x1d3   :  { %6904 = vmatprep.subr.bf16.mxu1 %v6903_v56  ;;  %v1676_v56 = vld [vmem:[#allocation8 + $0xa90] sm:$0xff]  ;;  %v6669_v61 = vpack.c.bf16 %v1674_v52, %v1658_v51  ;;  %v1834_v51 = vld [vmem:[#allocation8 + $0xf80] sm:$0xff] }
 0x1d4   :  { %v1820_v52 = vld [vmem:[#allocation8 + $0xf10] sm:$0xff] }
 0x1d5   :  { %6650 = vmatpush1.bf16.msra.mxu0 %v6649_v62  ;;  %v6925_v62 = vpack.c.bf16 %v1676_v56, %v1660_v53  ;;  %v6943_v53 = vpack.c.bf16 %v1837_v47, %v1821_v46  ;;  %v1851_v56 = vld [vmem:[#allocation8 + $0x1008] sm:$0xff]  ;;  %v1949_v46 = vld [vmem:[#allocation8 + $0x1318] sm:$0xff] }
 0x1d6   :  { %6906 = vmatpush1.bf16.msra.mxu1 %v6905_v63  ;;  %6652 = vmatprep.subr.bf16.mxu0 %v6651_v0  ;;  %v6671_v63 = vpack.c.bf16 %v1707_v58, %v1691_v57  ;;  %v1690_v0 = vld [vmem:[#allocation8 + $0xb00] sm:$0xff]  ;;  %v1867_v57 = vld [vmem:[#allocation8 + $0x1088] sm:$0xff]  ;;  %v1853_v58 = vld [vmem:[#allocation8 + $0x1018] sm:$0xff] }
 0x1d7   :  { %6908 = vmatprep.subr.bf16.mxu1 %v6907_v4  ;;  %v1708_v4 = vld [vmem:[#allocation8 + $0xb90] sm:$0xff]  ;;  %v6673_v9 = vpack.c.bf16 %v1706_v1, %v1690_v0  ;;  %v1965_v47 = vld [vmem:[#allocation8 + $0x1398] sm:$0xff] }
 0x1d9   :  { %6654 = vmatpush1.bf16.msra.mxu0 %v6653_v11  ;;  %v6929_v11 = vpack.c.bf16 %v1708_v4, %v1692_v2  ;;  %v1850_v4 = vld [vmem:[#allocation8 + $0x1000] sm:$0xff] }
 0x1da   :  { %6910 = vmatpush1.bf16.msra.mxu1 %v6909_v12  ;;  %6656 = vmatprep.subr.bf16.mxu0 %v6655_v13  ;;  %v6675_v12 = vpack.c.bf16 %v1739_v6, %v1723_v5  ;;  %v1722_v13 = vld [vmem:[#allocation8 + $0xc00] sm:$0xff] }
 0x1db   :  { %6912 = vmatprep.subr.bf16.mxu1 %v6911_v19  ;;  %v1740_v19 = vld [vmem:[#allocation8 + $0xc90] sm:$0xff]  ;;  %v6677_v24 = vpack.c.bf16 %v1738_v14, %v1722_v13  ;;  %v1883_v13 = vld [vmem:[#allocation8 + $0x1108] sm:$0xff] }
 0x1dc   :  { %v1899_v14 = vld [vmem:[#allocation8 + $0x1188] sm:$0xff] }
 0x1dd   :  { %6658 = vmatpush1.bf16.msra.mxu0 %v6657_v25  ;;  %v6933_v25 = vpack.c.bf16 %v1740_v19, %v1724_v17  ;;  %v1901_v19 = vld [vmem:[#allocation8 + $0x1198] sm:$0xff] }
 0x1de   :  { %6914 = vmatpush1.bf16.msra.mxu1 %v6913_v26  ;;  %6660 = vmatprep.subr.bf16.mxu0 %v6659_v27  ;;  %v6679_v26 = vpack.c.bf16 %v1771_v21, %v1755_v20  ;;  %v1754_v27 = vld [vmem:[#allocation8 + $0xd00] sm:$0xff]  ;;  %v6693_v21 = vpack.c.bf16 %v1866_v7, %v1850_v4  ;;  %v1996_v4 = vld [vmem:[#allocation8 + $0x1490] sm:$0xff]  ;;  %v2013_v7 = vld [vmem:[#allocation8 + $0x1518] sm:$0xff] }
 0x1df   :  { %6916 = vmatprep.subr.bf16.mxu1 %v6915_v15  ;;  %v1772_v15 = vld [vmem:[#allocation8 + $0xd90] sm:$0xff]  ;;  %v6681_v30 = vpack.c.bf16 %v1770_v28, %v1754_v27  ;;  %v1915_v28 = vld [vmem:[#allocation8 + $0x1208] sm:$0xff] }
 0x1e0   :  { %v1900_v27 = vld [vmem:[#allocation8 + $0x1190] sm:$0xff] }
 0x1e1   :  { %6662 = vmatpush1.bf16.msra.mxu0 %v6661_v36  ;;  %v6937_v36 = vpack.c.bf16 %v1772_v15, %v1756_v29 }
 0x1e2   :  { %6918 = vmatpush1.bf16.msra.mxu1 %v6917_v37  ;;  %6664 = vmatprep.subr.bf16.mxu0 %v6663_v39  ;;  %v6683_v37 = vpack.c.bf16 %v1803_v33, %v1787_v32  ;;  %v1786_v39 = vld [vmem:[#allocation8 + $0xe00] sm:$0xff]  ;;  %v1931_v32 = vld [vmem:[#allocation8 + $0x1288] sm:$0xff]  ;;  %v1917_v33 = vld [vmem:[#allocation8 + $0x1218] sm:$0xff] }
 0x1e3   :  { %6920 = vmatprep.subr.bf16.mxu1 %v6919_v43  ;;  %v1804_v43 = vld [vmem:[#allocation8 + $0xe90] sm:$0xff]  ;;  %v6685_v48 = vpack.c.bf16 %v1802_v55, %v1786_v39  ;;  %v1930_v39 = vld [vmem:[#allocation8 + $0x1280] sm:$0xff]  ;;  %v6699_v55 = vpack.c.bf16 %v1931_v32, %v1915_v28 }
 0x1e4   :  { %v2058_v28 = vld [vmem:[#allocation8 + $0x1680] sm:$0xff]  ;;  %v2044_v32 = vld [vmem:[#allocation8 + $0x1610] sm:$0xff] }
 0x1e5   :  { %6666 = vmatpush1.bf16.msra.mxu0 %v6665_v10  ;;  %v6941_v10 = vpack.c.bf16 %v1804_v43, %v1788_v41  ;;  %v6955_v41 = vpack.c.bf16 %v1933_v34, %v1917_v33  ;;  %v1932_v43 = vld [vmem:[#allocation8 + $0x1290] sm:$0xff]  ;;  %v2075_v34 = vld [vmem:[#allocation8 + $0x1708] sm:$0xff] }
 0x1e6   :  { %6922 = vmatpush1.bf16.msra.mxu1 %v6921_v49  ;;  %6668 = vmatprep.subr.bf16.mxu0 %v6667_v50  ;;  %v6687_v49 = vpack.c.bf16 %v1835_v45, %v1819_v44  ;;  %v1818_v50 = vld [vmem:[#allocation8 + $0xf00] sm:$0xff]  ;;  %v1947_v44 = vld [vmem:[#allocation8 + $0x1308] sm:$0xff]  ;;  %v2060_v33 = vld [vmem:[#allocation8 + $0x1690] sm:$0xff] }
 0x1e7   :  { %6924 = vmatprep.subr.bf16.mxu1 %v6923_v54  ;;  %v1836_v54 = vld [vmem:[#allocation8 + $0xf90] sm:$0xff]  ;;  %v6689_v60 = vpack.c.bf16 %v1834_v51, %v1818_v50  ;;  %v1963_v45 = vld [vmem:[#allocation8 + $0x1388] sm:$0xff]  ;;  %v1962_v50 = vld [vmem:[#allocation8 + $0x1380] sm:$0xff] }
 0x1e8   :  { %v6703_v51 = vpack.c.bf16 %v1963_v45, %v1947_v44  ;;  %v2076_v45 = vld [vmem:[#allocation8 + $0x1710] sm:$0xff] }
 0x1e9   :  { %6670 = vmatpush1.bf16.msra.mxu0 %v6669_v61  ;;  %v6945_v61 = vpack.c.bf16 %v1836_v54, %v1820_v52  ;;  %v6959_v52 = vpack.c.bf16 %v1965_v47, %v1949_v46  ;;  %v1964_v54 = vld [vmem:[#allocation8 + $0x1390] sm:$0xff]  ;;  %v2107_v47 = vld [vmem:[#allocation8 + $0x1808] sm:$0xff] }
 0x1ea   :  { %6926 = vmatpush1.bf16.msra.mxu1 %v6925_v62  ;;  %6672 = vmatprep.subr.bf16.mxu0 %v6671_v63  ;;  %v6691_v62 = vpack.c.bf16 %v1867_v57, %v1851_v56  ;;  %v6947_v63 = vpack.c.bf16 %v1869_v59, %v1853_v58  ;;  %v1979_v56 = vld [vmem:[#allocation8 + $0x1408] sm:$0xff]  ;;  %v1981_v58 = vld [vmem:[#allocation8 + $0x1418] sm:$0xff]  ;;  %v2092_v46 = vld [vmem:[#allocation8 + $0x1790] sm:$0xff] }
 0x1eb   :  { %6928 = vmatprep.subr.bf16.mxu1 %v6927_v3  ;;  %v1995_v57 = vld [vmem:[#allocation8 + $0x1488] sm:$0xff]  ;;  %v1997_v59 = vld [vmem:[#allocation8 + $0x1498] sm:$0xff] }
 0x1ed   :  { %6674 = vmatpush1.bf16.msra.mxu0 %v6673_v9  ;;  %v1868_v9 = vld [vmem:[#allocation8 + $0x1090] sm:$0xff] }
 0x1ee   :  { %6930 = vmatpush1.bf16.msra.mxu1 %v6929_v11  ;;  %6676 = vmatprep.subr.bf16.mxu0 %v6675_v12  ;;  %v6949_v22 = vpack.c.bf16 %v1868_v9, %v1852_v8  ;;  %v2029_v8 = vld [vmem:[#allocation8 + $0x1598] sm:$0xff] }
 0x1ef   :  { %6932 = vmatprep.subr.bf16.mxu1 %v6931_v18  ;;  %v1885_v18 = vld [vmem:[#allocation8 + $0x1118] sm:$0xff] }
 0x1f0   :  { %v6951_v15 = vpack.c.bf16 %v1901_v19, %v1885_v18  ;;  %v2012_v18 = vld [vmem:[#allocation8 + $0x1510] sm:$0xff] }
 0x1f1   :  { %6678 = vmatpush1.bf16.msra.mxu0 %v6677_v24  ;;  %v1898_v24 = vld [vmem:[#allocation8 + $0x1180] sm:$0xff]  ;;  %v2028_v19 = vld [vmem:[#allocation8 + $0x1590] sm:$0xff] }
 0x1f2   :  { %6934 = vmatpush1.bf16.msra.mxu1 %v6933_v25  ;;  %6680 = vmatprep.subr.bf16.mxu0 %v6679_v26  ;;  %v1884_v26 = vld [vmem:[#allocation8 + $0x1110] sm:$0xff] }
 0x1f3   :  { %6936 = vmatprep.subr.bf16.mxu1 %v6935_v31  ;;  %v6695_v31 = vpack.c.bf16 %v1899_v14, %v1883_v13  ;;  %v2026_v13 = vld [vmem:[#allocation8 + $0x1580] sm:$0xff] }
 0x1f5   :  { %6682 = vmatpush1.bf16.msra.mxu0 %v6681_v30  ;;  %v6697_v30 = vpack.c.bf16 %v1898_v24, %v1882_v23  ;;  %v2061_v23 = vld [vmem:[#allocation8 + $0x1698] sm:$0xff] }
 0x1f6   :  { %6938 = vmatpush1.bf16.msra.mxu1 %v6937_v36  ;;  %6684 = vmatprep.subr.bf16.mxu0 %v6683_v37  ;;  %v6953_v36 = vpack.c.bf16 %v1900_v27, %v1884_v26  ;;  %v1914_v37 = vld [vmem:[#allocation8 + $0x1200] sm:$0xff]  ;;  %v6969_v26 = vpack.c.bf16 %v2028_v19, %v2012_v18 }
 0x1f7   :  { %6940 = vmatprep.subr.bf16.mxu1 %v6939_v42  ;;  %v1916_v42 = vld [vmem:[#allocation8 + $0x1210] sm:$0xff]  ;;  %v2042_v27 = vld [vmem:[#allocation8 + $0x1600] sm:$0xff] }
 0x1f8   :  { %v2186_v18 = vld [vmem:[#allocation8 + $0x1a80] sm:$0xff] }
 0x1f9   :  { %6686 = vmatpush1.bf16.msra.mxu0 %v6685_v48  ;;  %v6701_v48 = vpack.c.bf16 %v1930_v39, %v1914_v37  ;;  %v2093_v37 = vld [vmem:[#allocation8 + $0x1798] sm:$0xff]  ;;  %v6717_v39 = vpack.c.bf16 %v2058_v28, %v2042_v27 }
 0x1fa   :  { %6942 = vmatpush1.bf16.msra.mxu1 %v6941_v10  ;;  %6688 = vmatprep.subr.bf16.mxu0 %v6687_v49  ;;  %v6957_v10 = vpack.c.bf16 %v1932_v43, %v1916_v42  ;;  %v1946_v49 = vld [vmem:[#allocation8 + $0x1300] sm:$0xff]  ;;  %v2221_v27 = vld [vmem:[#allocation8 + $0x1b98] sm:$0xff] }
 0x1fb   :  { %6944 = vmatprep.subr.bf16.mxu1 %v6943_v53  ;;  %v1948_v53 = vld [vmem:[#allocation8 + $0x1310] sm:$0xff]  ;;  %v2090_v42 = vld [vmem:[#allocation8 + $0x1780] sm:$0xff] }
 0x1fd   :  { %6690 = vmatpush1.bf16.msra.mxu0 %v6689_v60  ;;  %v6705_v60 = vpack.c.bf16 %v1962_v50, %v1946_v49  ;;  %v2125_v49 = vld [vmem:[#allocation8 + $0x1898] sm:$0xff] }
 0x1fe   :  { %6946 = vmatpush1.bf16.msra.mxu1 %v6945_v61  ;;  %6692 = vmatprep.subr.bf16.mxu0 %v6691_v62  ;;  %v6961_v61 = vpack.c.bf16 %v1964_v54, %v1948_v53  ;;  %v1978_v62 = vld [vmem:[#allocation8 + $0x1400] sm:$0xff] }
 0x1ff   :  { %6948 = vmatprep.subr.bf16.mxu1 %v6947_v63  ;;  %v1994_v63 = vld [vmem:[#allocation8 + $0x1480] sm:$0xff] }
 0x200   :  { %v6709_v9 = vpack.c.bf16 %v1994_v63, %v1978_v62  ;;  %v2122_v53 = vld [vmem:[#allocation8 + $0x1880] sm:$0xff]  ;;  %v2157_v62 = vld [vmem:[#allocation8 + $0x1998] sm:$0xff] }
 0x246   :  { %v1088_v0 = vpop.f32.mrb[4].mxu0 }
 0x247   :  { %v1306_v1 = vmul.f32 %v8999_v16, %v1088_v0  ;;  %v9022_v2 = vpop.f32.mrb[4].mxu1  ;;  %v1090_v3 = vpop.f32.mrb[5].mxu0  ;;  %v6707_v0 = vpack.c.bf16 %v1995_v57, %v1979_v56  ;;  %v2108_v57 = vld [vmem:[#allocation8 + $0x1810] sm:$0xff] }
 0x248   :  { %v1307_v5 = vmul.f32 %v8999_v16, %v1090_v3  ;;  %v1161_v6 = vpop.f32.mrb[5].mxu1  ;;  %v1980_v3 = vld [vmem:[#allocation8 + $0x1410] sm:$0xff] }
 0x249   :  { %v1322_v11 = vmul.f32 0.2, %v1306_v1  ;;  %v1309_v12 = vmul.f32 %v8999_v16, %v1161_v6  ;;  %vm1314_vm5 = vcmp.gt.f32.partialorder %v1306_v1, 0.0  ;;  %v2027_v6 = vld [vmem:[#allocation8 + $0x1588] sm:$0xff] }
 0x24a   :  { %vm1315_vm6 = vcmp.gt.f32.partialorder %v1307_v5, 0.0  ;;  %v1323_v17 = vmul.f32 0.2, %v1307_v5 }
 0x24b   :  { %v1325_v20 = vmul.f32 0.2, %v1309_v12  ;;  %vm1317_vm7 = vcmp.gt.f32.partialorder %v1309_v12, 0.0  ;;  %v9028_v29 = vsel %vm1314_vm5, %v1306_v1, %v1322_v11  ;;  %v6963_v1 = vpack.c.bf16 %v1997_v59, %v1981_v58  ;;  %v2124_v58 = vld [vmem:[#allocation8 + $0x1890] sm:$0xff]  ;;  %v2139_v59 = vld [vmem:[#allocation8 + $0x1908] sm:$0xff] }
 0x24c   :  { %v9026_v25 = vsel %vm1315_vm6, %v1307_v5, %v1323_v17  ;;  %v2011_v5 = vld [vmem:[#allocation8 + $0x1508] sm:$0xff]  ;;  %v6965_v11 = vpack.c.bf16 %v1996_v4, %v1980_v3  ;;  %v6967_v17 = vpack.c.bf16 %v2029_v8, %v2013_v7  ;;  %v2154_v3 = vld [vmem:[#allocation8 + $0x1980] sm:$0xff]  ;;  %v2156_v7 = vld [vmem:[#allocation8 + $0x1990] sm:$0xff] }
 0x24d   :  { %3450 = vmatprep.mubr.f32.mxu0 %v9026_v25  ;;  %3734 = vmatprep.mubr.f32.mxu1 %v9026_v25  ;;  %v9034_v35 = vsel %vm1317_vm7, %v1309_v12, %v1325_v20  ;;  %v2010_v12 = vld [vmem:[#allocation8 + $0x1500] sm:$0xff]  ;;  %v6711_v14 = vpack.c.bf16 %v2027_v6, %v2011_v5  ;;  %v2043_v20 = vld [vmem:[#allocation8 + $0x1608] sm:$0xff]  ;;  %v2140_v6 = vld [vmem:[#allocation8 + $0x1910] sm:$0xff] }
 0x24e   :  { %3451 = vmatmul.mubr.f32.vlgmr.msra.gmra.mrb[8].mxu0 %v9028_v29  ;;  %3735 = vmatmul.mubr.f32.vlgmr.msra.gmra.mrb[8].mxu1 %v9028_v29  ;;  %v6713_v24 = vpack.c.bf16 %v2026_v13, %v2010_v12  ;;  %v2171_v8 = vld [vmem:[#allocation8 + $0x1a08] sm:$0xff]  ;;  %v2189_v12 = vld [vmem:[#allocation8 + $0x1a98] sm:$0xff] }
 0x24f   :  { %6694 = vmatpush1.bf16.msra.mxu0 %v6693_v21  ;;  %6950 = vmatpush1.bf16.msra.mxu1 %v6949_v22  ;;  %v2059_v21 = vld [vmem:[#allocation8 + $0x1688] sm:$0xff]  ;;  %v2045_v22 = vld [vmem:[#allocation8 + $0x1618] sm:$0xff] }
 0x250   :  { %3521 = vmatprep.mubr.f32.mxu0 %v9034_v35  ;;  %3805 = vmatprep.mubr.f32.mxu1 %v9034_v35 }
 0x251   :  { %6696 = vmatprep.subr.bf16.mxu0 %v6695_v31  ;;  %6952 = vmatprep.subr.bf16.mxu1 %v6951_v15  ;;  %v6715_v31 = vpack.c.bf16 %v2059_v21, %v2043_v20  ;;  %v6971_v15 = vpack.c.bf16 %v2061_v23, %v2045_v22  ;;  %v2172_v21 = vld [vmem:[#allocation8 + $0x1a10] sm:$0xff]  ;;  %v2203_v23 = vld [vmem:[#allocation8 + $0x1b08] sm:$0xff] }
 0x252   :  { %v2188_v22 = vld [vmem:[#allocation8 + $0x1a90] sm:$0xff] }
 0x253   :  { %6698 = vmatpush1.bf16.msra.mxu0 %v6697_v30  ;;  %6954 = vmatpush1.bf16.msra.mxu1 %v6953_v36  ;;  %v2091_v30 = vld [vmem:[#allocation8 + $0x1788] sm:$0xff]  ;;  %v2077_v36 = vld [vmem:[#allocation8 + $0x1718] sm:$0xff] }
 0x254   :  { %6700 = vmatprep.subr.bf16.mxu0 %v6699_v55  ;;  %6956 = vmatprep.subr.bf16.mxu1 %v6955_v41  ;;  %v6973_v55 = vpack.c.bf16 %v2060_v33, %v2044_v32  ;;  %v2074_v41 = vld [vmem:[#allocation8 + $0x1700] sm:$0xff]  ;;  %v6719_v43 = vpack.c.bf16 %v2091_v30, %v2075_v34  ;;  %v6975_v44 = vpack.c.bf16 %v2093_v37, %v2077_v36  ;;  %v2204_v30 = vld [vmem:[#allocation8 + $0x1b10] sm:$0xff]  ;;  %v2235_v37 = vld [vmem:[#allocation8 + $0x1c08] sm:$0xff] }
 0x255   :  { %v6721_v50 = vpack.c.bf16 %v2090_v42, %v2074_v41  ;;  %v2218_v32 = vld [vmem:[#allocation8 + $0x1b80] sm:$0xff]  ;;  %v2220_v36 = vld [vmem:[#allocation8 + $0x1b90] sm:$0xff]  ;;  %v2253_v41 = vld [vmem:[#allocation8 + $0x1c98] sm:$0xff] }
 0x257   :  { %6702 = vmatpush1.bf16.msra.mxu0 %v6701_v48  ;;  %6958 = vmatpush1.bf16.msra.mxu1 %v6957_v10  ;;  %v2123_v48 = vld [vmem:[#allocation8 + $0x1888] sm:$0xff]  ;;  %v2109_v10 = vld [vmem:[#allocation8 + $0x1818] sm:$0xff] }
 0x258   :  { %6704 = vmatprep.subr.bf16.mxu0 %v6703_v51  ;;  %6960 = vmatprep.subr.bf16.mxu1 %v6959_v52  ;;  %v6977_v51 = vpack.c.bf16 %v2092_v46, %v2076_v45  ;;  %v2106_v52 = vld [vmem:[#allocation8 + $0x1800] sm:$0xff]  ;;  %v6723_v54 = vpack.c.bf16 %v2123_v48, %v2107_v47  ;;  %v6979_v56 = vpack.c.bf16 %v2125_v49, %v2109_v10  ;;  %v2236_v48 = vld [vmem:[#allocation8 + $0x1c10] sm:$0xff]  ;;  %v2267_v49 = vld [vmem:[#allocation8 + $0x1d08] sm:$0xff] }
 0x259   :  { %v6725_v63 = vpack.c.bf16 %v2122_v53, %v2106_v52  ;;  %v2250_v45 = vld [vmem:[#allocation8 + $0x1c80] sm:$0xff]  ;;  %v2252_v10 = vld [vmem:[#allocation8 + $0x1c90] sm:$0xff]  ;;  %v2285_v52 = vld [vmem:[#allocation8 + $0x1d98] sm:$0xff] }
 0x25b   :  { %6706 = vmatpush1.bf16.msra.mxu0 %v6705_v60  ;;  %6962 = vmatpush1.bf16.msra.mxu1 %v6961_v61  ;;  %v2155_v60 = vld [vmem:[#allocation8 + $0x1988] sm:$0xff]  ;;  %v2141_v61 = vld [vmem:[#allocation8 + $0x1918] sm:$0xff] }
 0x25c   :  { %6708 = vmatprep.subr.bf16.mxu0 %v6707_v0  ;;  %6964 = vmatprep.subr.bf16.mxu1 %v6963_v1  ;;  %v6981_v0 = vpack.c.bf16 %v2124_v58, %v2108_v57  ;;  %v2138_v1 = vld [vmem:[#allocation8 + $0x1900] sm:$0xff]  ;;  %v6727_v4 = vpack.c.bf16 %v2155_v60, %v2139_v59  ;;  %v6983_v5 = vpack.c.bf16 %v2157_v62, %v2141_v61  ;;  %v2268_v60 = vld [vmem:[#allocation8 + $0x1d10] sm:$0xff]  ;;  %v2299_v62 = vld [vmem:[#allocation8 + $0x1e08] sm:$0xff] }
 0x25d   :  { %v6729_v13 = vpack.c.bf16 %v2154_v3, %v2138_v1  ;;  %v2282_v57 = vld [vmem:[#allocation8 + $0x1d80] sm:$0xff]  ;;  %v2284_v61 = vld [vmem:[#allocation8 + $0x1d90] sm:$0xff]  ;;  %v2317_v1 = vld [vmem:[#allocation8 + $0x1e98] sm:$0xff] }
 0x25f   :  { %6710 = vmatpush1.bf16.msra.mxu0 %v6709_v9  ;;  %6966 = vmatpush1.bf16.msra.mxu1 %v6965_v11  ;;  %v2187_v9 = vld [vmem:[#allocation8 + $0x1a88] sm:$0xff]  ;;  %v2173_v11 = vld [vmem:[#allocation8 + $0x1a18] sm:$0xff] }
 0x260   :  { %6712 = vmatprep.subr.bf16.mxu0 %v6711_v14  ;;  %6968 = vmatprep.subr.bf16.mxu1 %v6967_v17  ;;  %v6985_v14 = vpack.c.bf16 %v2156_v7, %v2140_v6  ;;  %v2170_v17 = vld [vmem:[#allocation8 + $0x1a00] sm:$0xff]  ;;  %v6731_v19 = vpack.c.bf16 %v2187_v9, %v2171_v8  ;;  %v6987_v20 = vpack.c.bf16 %v2189_v12, %v2173_v11  ;;  %v2300_v9 = vld [vmem:[#allocation8 + $0x1e10] sm:$0xff]  ;;  %v2331_v12 = vld [vmem:[#allocation8 + $0x1f08] sm:$0xff] }
 0x261   :  { %v6733_v28 = vpack.c.bf16 %v2186_v18, %v2170_v17  ;;  %v2314_v6 = vld [vmem:[#allocation8 + $0x1e80] sm:$0xff]  ;;  %v2316_v11 = vld [vmem:[#allocation8 + $0x1e90] sm:$0xff]  ;;  %v2349_v17 = vld [vmem:[#allocation8 + $0x1f98] sm:$0xff] }
 0x263   :  { %6714 = vmatpush1.bf16.msra.mxu0 %v6713_v24  ;;  %6970 = vmatpush1.bf16.msra.mxu1 %v6969_v26  ;;  %v2219_v24 = vld [vmem:[#allocation8 + $0x1b88] sm:$0xff]  ;;  %v2205_v26 = vld [vmem:[#allocation8 + $0x1b18] sm:$0xff] }
 0x264   :  { %6716 = vmatprep.subr.bf16.mxu0 %v6715_v31  ;;  %6972 = vmatprep.subr.bf16.mxu1 %v6971_v15  ;;  %v6989_v31 = vpack.c.bf16 %v2188_v22, %v2172_v21  ;;  %v2202_v15 = vld [vmem:[#allocation8 + $0x1b00] sm:$0xff]  ;;  %v6735_v33 = vpack.c.bf16 %v2219_v24, %v2203_v23  ;;  %v6991_v34 = vpack.c.bf16 %v2221_v27, %v2205_v26  ;;  %v2332_v24 = vld [vmem:[#allocation8 + $0x1f10] sm:$0xff]  ;;  %v2363_v27 = vld [vmem:[#allocation8 + $0x2008] sm:$0xff] }
 0x265   :  { %v6737_v42 = vpack.c.bf16 %v2218_v32, %v2202_v15  ;;  %v2346_v21 = vld [vmem:[#allocation8 + $0x1f80] sm:$0xff]  ;;  %v2348_v26 = vld [vmem:[#allocation8 + $0x1f90] sm:$0xff]  ;;  %v2365_v15 = vld [vmem:[#allocation8 + $0x2018] sm:$0xff] }
 0x266   :  { %v2381_v32 = vld [vmem:[#allocation8 + $0x2098] sm:$0xff] }
 0x267   :  { %6718 = vmatpush1.bf16.msra.mxu0 %v6717_v39  ;;  %6974 = vmatpush1.bf16.msra.mxu1 %v6973_v55  ;;  %v2251_v39 = vld [vmem:[#allocation8 + $0x1c88] sm:$0xff]  ;;  %v2237_v55 = vld [vmem:[#allocation8 + $0x1c18] sm:$0xff] }
 0x268   :  { %6720 = vmatprep.subr.bf16.mxu0 %v6719_v43  ;;  %6976 = vmatprep.subr.bf16.mxu1 %v6975_v44  ;;  %v6993_v43 = vpack.c.bf16 %v2220_v36, %v2204_v30  ;;  %v2234_v44 = vld [vmem:[#allocation8 + $0x1c00] sm:$0xff]  ;;  %v6739_v46 = vpack.c.bf16 %v2251_v39, %v2235_v37  ;;  %v6995_v47 = vpack.c.bf16 %v2253_v41, %v2237_v55  ;;  %v2364_v55 = vld [vmem:[#allocation8 + $0x2010] sm:$0xff] }
 0x269   :  { %v6741_v53 = vpack.c.bf16 %v2250_v45, %v2234_v44  ;;  %v2362_v30 = vld [vmem:[#allocation8 + $0x2000] sm:$0xff]  ;;  %v7011_v39 = vpack.c.bf16 %v2381_v32, %v2365_v15  ;;  %v2380_v41 = vld [vmem:[#allocation8 + $0x2090] sm:$0xff]  ;;  %v2411_v44 = vld [vmem:[#allocation8 + $0x2188] sm:$0xff] }
 0x26a   :  { %v2378_v36 = vld [vmem:[#allocation8 + $0x2080] sm:$0xff]  ;;  %v2397_v45 = vld [vmem:[#allocation8 + $0x2118] sm:$0xff] }
 0x26b   :  { %6722 = vmatpush1.bf16.msra.mxu0 %v6721_v50  ;;  %6978 = vmatpush1.bf16.msra.mxu1 %v6977_v51  ;;  %v2283_v50 = vld [vmem:[#allocation8 + $0x1d88] sm:$0xff]  ;;  %v2269_v51 = vld [vmem:[#allocation8 + $0x1d18] sm:$0xff] }
 0x26c   :  { %6724 = vmatprep.subr.bf16.mxu0 %v6723_v54  ;;  %6980 = vmatprep.subr.bf16.mxu1 %v6979_v56  ;;  %v6997_v54 = vpack.c.bf16 %v2252_v10, %v2236_v48  ;;  %v2266_v56 = vld [vmem:[#allocation8 + $0x1d00] sm:$0xff]  ;;  %v6743_v58 = vpack.c.bf16 %v2283_v50, %v2267_v49  ;;  %v6999_v59 = vpack.c.bf16 %v2285_v52, %v2269_v51  ;;  %v2396_v51 = vld [vmem:[#allocation8 + $0x2110] sm:$0xff] }
 0x26d   :  { %v6745_v3 = vpack.c.bf16 %v2282_v57, %v2266_v56  ;;  %v2394_v48 = vld [vmem:[#allocation8 + $0x2100] sm:$0xff]  ;;  %v2412_v52 = vld [vmem:[#allocation8 + $0x2190] sm:$0xff]  ;;  %v2443_v56 = vld [vmem:[#allocation8 + $0x2288] sm:$0xff] }
 0x26e   :  { %v2410_v10 = vld [vmem:[#allocation8 + $0x2180] sm:$0xff]  ;;  %v2429_v57 = vld [vmem:[#allocation8 + $0x2218] sm:$0xff] }
 0x26f   :  { %6726 = vmatpush1.bf16.msra.mxu0 %v6725_v63  ;;  %6982 = vmatpush1.bf16.msra.mxu1 %v6981_v0  ;;  %v2315_v63 = vld [vmem:[#allocation8 + $0x1e88] sm:$0xff]  ;;  %v2301_v0 = vld [vmem:[#allocation8 + $0x1e18] sm:$0xff] }
 0x270   :  { %6728 = vmatprep.subr.bf16.mxu0 %v6727_v4  ;;  %6984 = vmatprep.subr.bf16.mxu1 %v6983_v5  ;;  %v7001_v4 = vpack.c.bf16 %v2284_v61, %v2268_v60  ;;  %v2298_v5 = vld [vmem:[#allocation8 + $0x1e00] sm:$0xff]  ;;  %v6747_v7 = vpack.c.bf16 %v2315_v63, %v2299_v62  ;;  %v7003_v8 = vpack.c.bf16 %v2317_v1, %v2301_v0  ;;  %v2428_v1 = vld [vmem:[#allocation8 + $0x2210] sm:$0xff] }
 0x271   :  { %v6749_v18 = vpack.c.bf16 %v2314_v6, %v2298_v5  ;;  %v7017_v60 = vpack.c.bf16 %v2412_v52, %v2396_v51  ;;  %v2426_v61 = vld [vmem:[#allocation8 + $0x2200] sm:$0xff]  ;;  %v2475_v5 = vld [vmem:[#allocation8 + $0x2388] sm:$0xff]  ;;  %v2461_v6 = vld [vmem:[#allocation8 + $0x2318] sm:$0xff] }
 0x272   :  { %v2442_v62 = vld [vmem:[#allocation8 + $0x2280] sm:$0xff]  ;;  %v2555_v51 = vld [vmem:[#allocation8 + $0x2608] sm:$0xff] }
 0x273   :  { %6730 = vmatpush1.bf16.msra.mxu0 %v6729_v13  ;;  %6986 = vmatpush1.bf16.msra.mxu1 %v6985_v14  ;;  %v2347_v13 = vld [vmem:[#allocation8 + $0x1f88] sm:$0xff]  ;;  %v2333_v14 = vld [vmem:[#allocation8 + $0x1f18] sm:$0xff] }
 0x274   :  { %6732 = vmatprep.subr.bf16.mxu0 %v6731_v19  ;;  %6988 = vmatprep.subr.bf16.mxu1 %v6987_v20  ;;  %v7005_v19 = vpack.c.bf16 %v2316_v11, %v2300_v9  ;;  %v2330_v20 = vld [vmem:[#allocation8 + $0x1f00] sm:$0xff]  ;;  %v6751_v22 = vpack.c.bf16 %v2347_v13, %v2331_v12  ;;  %v7007_v23 = vpack.c.bf16 %v2349_v17, %v2333_v14  ;;  %v2571_v52 = vld [vmem:[#allocation8 + $0x2688] sm:$0xff] }
 0x275   :  { %v6765_v12 = vpack.c.bf16 %v2442_v62, %v2426_v61  ;;  %v2458_v14 = vld [vmem:[#allocation8 + $0x2300] sm:$0xff]  ;;  %v6779_v61 = vpack.c.bf16 %v2571_v52, %v2555_v51 }
 0x276   :  { %v2474_v17 = vld [vmem:[#allocation8 + $0x2380] sm:$0xff] }
 0x277   :  { %6734 = vmatpush1.bf16.msra.mxu0 %v6733_v28  ;;  %6990 = vmatpush1.bf16.msra.mxu1 %v6989_v31  ;;  %v1308_v28 = vmul.f32 %v8999_v16, %v9022_v2  ;;  %v2379_v31 = vld [vmem:[#allocation8 + $0x2088] sm:$0xff]  ;;  %v2413_v2 = vld [vmem:[#allocation8 + $0x2198] sm:$0xff]  ;;  %v6769_v15 = vpack.c.bf16 %v2474_v17, %v2458_v14  ;;  %v2588_v17 = vld [vmem:[#allocation8 + $0x2710] sm:$0xff] }
 0x278   :  { %6736 = vmatprep.subr.bf16.mxu0 %v6735_v33  ;;  %6992 = vmatprep.subr.bf16.mxu1 %v6991_v34  ;;  %v6753_v33 = vpack.c.bf16 %v2346_v21, %v2330_v20  ;;  %v7009_v34 = vpack.c.bf16 %v2348_v26, %v2332_v24  ;;  %v6755_v37 = vpack.c.bf16 %v2379_v31, %v2363_v27  ;;  %v2491_v24 = vld [vmem:[#allocation8 + $0x2408] sm:$0xff]  ;;  %v2493_v27 = vld [vmem:[#allocation8 + $0x2418] sm:$0xff]  ;;  %v2682_v52 = vld [vmem:[#allocation8 + $0x2a00] sm:$0xff] }
 0x279   :  { %vm1316_vm8 = vcmp.gt.f32.partialorder %v1308_v28, 0.0  ;;  %v7015_v50 = vpack.c.bf16 %v2413_v2, %v2397_v45  ;;  %v2507_v26 = vld [vmem:[#allocation8 + $0x2488] sm:$0xff] }
 0x27b   :  { %6738 = vmatpush1.bf16.msra.mxu0 %v6737_v42  ;;  %6994 = vmatpush1.bf16.msra.mxu1 %v6993_v43  ;;  %v2395_v42 = vld [vmem:[#allocation8 + $0x2108] sm:$0xff]  ;;  %v1324_v43 = vmul.f32 0.2, %v1308_v28 }
 0x27c   :  { %6740 = vmatprep.subr.bf16.mxu0 %v6739_v46  ;;  %6996 = vmatprep.subr.bf16.mxu1 %v6995_v47  ;;  %v6757_v46 = vpack.c.bf16 %v2378_v36, %v2362_v30  ;;  %v7013_v47 = vpack.c.bf16 %v2380_v41, %v2364_v55  ;;  %v6759_v49 = vpack.c.bf16 %v2411_v44, %v2395_v42  ;;  %v2508_v55 = vld [vmem:[#allocation8 + $0x2490] sm:$0xff]  ;;  %v2523_v41 = vld [vmem:[#allocation8 + $0x2508] sm:$0xff]  ;;  %v2541_v44 = vld [vmem:[#allocation8 + $0x2598] sm:$0xff] }
 0x27d   :  { %v6771_v36 = vpack.c.bf16 %v2507_v26, %v2491_v24  ;;  %v2539_v42 = vld [vmem:[#allocation8 + $0x2588] sm:$0xff] }
 0x27f   :  { %6742 = vmatpush1.bf16.msra.mxu0 %v6741_v53  ;;  %6998 = vmatpush1.bf16.msra.mxu1 %v6997_v54  ;;  %v2427_v53 = vld [vmem:[#allocation8 + $0x2208] sm:$0xff]  ;;  %v9040_v54 = vsel %vm1316_vm8, %v1308_v28, %v1324_v43  ;;  %v2509_v28 = vld [vmem:[#allocation8 + $0x2498] sm:$0xff] }
 0x280   :  { %6744 = vmatprep.subr.bf16.mxu0 %v6743_v58  ;;  %7000 = vmatprep.subr.bf16.mxu1 %v6999_v59  ;;  %v2445_v58 = vld [vmem:[#allocation8 + $0x2298] sm:$0xff]  ;;  %v6761_v59 = vpack.c.bf16 %v2410_v10, %v2394_v48  ;;  %v6763_v63 = vpack.c.bf16 %v2443_v56, %v2427_v53  ;;  %v6775_v48 = vpack.c.bf16 %v2539_v42, %v2523_v41  ;;  %v2650_v42 = vld [vmem:[#allocation8 + $0x2900] sm:$0xff] }
 0x281   :  { %v7019_v0 = vpack.c.bf16 %v2445_v58, %v2429_v57  ;;  %v2525_v43 = vld [vmem:[#allocation8 + $0x2518] sm:$0xff] }
 0x282   :  { %v7031_v10 = vpack.c.bf16 %v2541_v44, %v2525_v43  ;;  %v2557_v53 = vld [vmem:[#allocation8 + $0x2618] sm:$0xff]  ;;  %v2666_v43 = vld [vmem:[#allocation8 + $0x2980] sm:$0xff] }
 0x283   :  { %6746 = vmatpush1.bf16.msra.mxu0 %v6745_v3  ;;  %7002 = vmatpush1.bf16.msra.mxu1 %v7001_v4  ;;  %v2444_v3 = vld [vmem:[#allocation8 + $0x2290] sm:$0xff]  ;;  %v2459_v4 = vld [vmem:[#allocation8 + $0x2308] sm:$0xff]  ;;  %v2573_v56 = vld [vmem:[#allocation8 + $0x2698] sm:$0xff] }
 0x284   :  { %6748 = vmatprep.subr.bf16.mxu0 %v6747_v7  ;;  %7004 = vmatprep.subr.bf16.mxu1 %v7003_v8  ;;  %v2477_v7 = vld [vmem:[#allocation8 + $0x2398] sm:$0xff]  ;;  %v7021_v13 = vpack.c.bf16 %v2444_v3, %v2428_v1  ;;  %v6767_v20 = vpack.c.bf16 %v2475_v5, %v2459_v4  ;;  %v7035_v62 = vpack.c.bf16 %v2573_v56, %v2557_v53  ;;  %v2587_v1 = vld [vmem:[#allocation8 + $0x2708] sm:$0xff]  ;;  %v2698_v53 = vld [vmem:[#allocation8 + $0x2a80] sm:$0xff] }
 0x285   :  { %v7023_v21 = vpack.c.bf16 %v2477_v7, %v2461_v6  ;;  %v2603_v3 = vld [vmem:[#allocation8 + $0x2788] sm:$0xff]  ;;  %v2589_v4 = vld [vmem:[#allocation8 + $0x2718] sm:$0xff] }
 0x286   :  { %v2605_v5 = vld [vmem:[#allocation8 + $0x2798] sm:$0xff] }
 0x287   :  { %6750 = vmatpush1.bf16.msra.mxu0 %v6749_v18  ;;  %7006 = vmatpush1.bf16.msra.mxu1 %v7005_v19  ;;  %v7039_v14 = vpack.c.bf16 %v2605_v5, %v2589_v4  ;;  %v2730_v4 = vld [vmem:[#allocation8 + $0x2b80] sm:$0xff] }
 0x288   :  { %6752 = vmatprep.subr.bf16.mxu0 %v6751_v22  ;;  %7008 = vmatprep.subr.bf16.mxu1 %v7007_v23  ;;  %v2460_v22 = vld [vmem:[#allocation8 + $0x2310] sm:$0xff] }
 0x289   :  { %v2476_v23 = vld [vmem:[#allocation8 + $0x2390] sm:$0xff] }
 0x28a   :  { %v7025_v32 = vpack.c.bf16 %v2476_v23, %v2460_v22  ;;  %v2621_v22 = vld [vmem:[#allocation8 + $0x2818] sm:$0xff] }
 0x28b   :  { %6754 = vmatpush1.bf16.msra.mxu0 %v6753_v33  ;;  %7010 = vmatpush1.bf16.msra.mxu1 %v7009_v34  ;;  %v2490_v33 = vld [vmem:[#allocation8 + $0x2400] sm:$0xff]  ;;  %v2637_v23 = vld [vmem:[#allocation8 + $0x2898] sm:$0xff] }
 0x28c   :  { %6756 = vmatprep.subr.bf16.mxu0 %v6755_v37  ;;  %7012 = vmatprep.subr.bf16.mxu1 %v7011_v39  ;;  %v2506_v34 = vld [vmem:[#allocation8 + $0x2480] sm:$0xff]  ;;  %v7027_v37 = vpack.c.bf16 %v2509_v28, %v2493_v27  ;;  %v2492_v39 = vld [vmem:[#allocation8 + $0x2410] sm:$0xff] }
 0x28d   :  { %v6773_v45 = vpack.c.bf16 %v2506_v34, %v2490_v33  ;;  %v7029_v2 = vpack.c.bf16 %v2508_v55, %v2492_v39  ;;  %v2618_v27 = vld [vmem:[#allocation8 + $0x2800] sm:$0xff]  ;;  %v2636_v33 = vld [vmem:[#allocation8 + $0x2890] sm:$0xff]  ;;  %v2651_v34 = vld [vmem:[#allocation8 + $0x2908] sm:$0xff] }
 0x28e   :  { %3522 = vmatmul.mubr.f32.vlgmr.msra.gmra.mrb[8].mxu0 %v9040_v54  ;;  %3806 = vmatmul.mubr.f32.vlgmr.msra.gmra.mrb[8].mxu1 %v9040_v54  ;;  %v2634_v28 = vld [vmem:[#allocation8 + $0x2880] sm:$0xff]  ;;  %v2669_v39 = vld [vmem:[#allocation8 + $0x2998] sm:$0xff] }
 0x28f   :  { %6758 = vmatpush1.bf16.msra.mxu0 %v6757_v46  ;;  %7014 = vmatpush1.bf16.msra.mxu1 %v7013_v47  ;;  %v2522_v46 = vld [vmem:[#allocation8 + $0x2500] sm:$0xff]  ;;  %v6789_v55 = vpack.c.bf16 %v2634_v28, %v2618_v27  ;;  %v2764_v27 = vld [vmem:[#allocation8 + $0x2c90] sm:$0xff]  ;;  %v2779_v28 = vld [vmem:[#allocation8 + $0x2d08] sm:$0xff] }
 0x290   :  { %6760 = vmatprep.subr.bf16.mxu0 %v6759_v49  ;;  %7016 = vmatprep.subr.bf16.mxu1 %v7015_v50  ;;  %v2538_v47 = vld [vmem:[#allocation8 + $0x2580] sm:$0xff]  ;;  %v2524_v49 = vld [vmem:[#allocation8 + $0x2510] sm:$0xff] }
 0x291   :  { %v2540_v50 = vld [vmem:[#allocation8 + $0x2590] sm:$0xff]  ;;  %v6777_v57 = vpack.c.bf16 %v2538_v47, %v2522_v46  ;;  %v2683_v47 = vld [vmem:[#allocation8 + $0x2a08] sm:$0xff] }
 0x292   :  { %v9044_v8 = vpop.f32.mrb[6].mxu0  ;;  %v7033_v58 = vpack.c.bf16 %v2540_v50, %v2524_v49  ;;  %v2668_v46 = vld [vmem:[#allocation8 + $0x2990] sm:$0xff]  ;;  %v2701_v49 = vld [vmem:[#allocation8 + $0x2a98] sm:$0xff]  ;;  %v6793_v50 = vpack.c.bf16 %v2666_v43, %v2650_v42  ;;  %v2811_v43 = vld [vmem:[#allocation8 + $0x2e08] sm:$0xff] }
 0x293   :  { %v9046_v9 = vpop.f32.mrb[6].mxu1  ;;  %6762 = vmatpush1.bf16.msra.mxu0 %v6761_v59  ;;  %7018 = vmatpush1.bf16.msra.mxu1 %v7017_v60  ;;  %v1232_v11 = vpop.f32.mrb[7].mxu0  ;;  %v2554_v59 = vld [vmem:[#allocation8 + $0x2600] sm:$0xff]  ;;  %v2796_v42 = vld [vmem:[#allocation8 + $0x2d90] sm:$0xff] }
 0x294   :  { %v1311_v18 = vmul.f32 %v8999_v16, %v1232_v11  ;;  %v9049_v19 = vpop.f32.mrb[7].mxu1  ;;  %6764 = vmatprep.subr.bf16.mxu0 %v6763_v63  ;;  %7020 = vmatprep.subr.bf16.mxu1 %v7019_v0  ;;  %v2570_v60 = vld [vmem:[#allocation8 + $0x2680] sm:$0xff]  ;;  %v2556_v63 = vld [vmem:[#allocation8 + $0x2610] sm:$0xff] }
 0x295   :  { %v2572_v0 = vld [vmem:[#allocation8 + $0x2690] sm:$0xff]  ;;  %v6781_v6 = vpack.c.bf16 %v2570_v60, %v2554_v59  ;;  %v2586_v11 = vld [vmem:[#allocation8 + $0x2700] sm:$0xff]  ;;  %v2715_v60 = vld [vmem:[#allocation8 + $0x2b08] sm:$0xff] }
 0x296   :  { %vm1319_vm9 = vcmp.gt.f32.partialorder %v1311_v18, 0.0  ;;  %v1327_v31 = vmul.f32 0.2, %v1311_v18  ;;  %v7037_v7 = vpack.c.bf16 %v2572_v0, %v2556_v63  ;;  %v2700_v59 = vld [vmem:[#allocation8 + $0x2a90] sm:$0xff]  ;;  %v2733_v63 = vld [vmem:[#allocation8 + $0x2b98] sm:$0xff]  ;;  %v6797_v0 = vpack.c.bf16 %v2698_v53, %v2682_v52  ;;  %v2843_v53 = vld [vmem:[#allocation8 + $0x2f08] sm:$0xff] }
 0x297   :  { %6766 = vmatpush1.bf16.msra.mxu0 %v6765_v12  ;;  %7022 = vmatpush1.bf16.msra.mxu1 %v7021_v13  ;;  %v2602_v12 = vld [vmem:[#allocation8 + $0x2780] sm:$0xff]  ;;  %v6783_v13 = vpack.c.bf16 %v2603_v3, %v2587_v1  ;;  %v2828_v52 = vld [vmem:[#allocation8 + $0x2e90] sm:$0xff] }
 0x298   :  { %v9051_v30 = vsel %vm1319_vm9, %v1311_v18, %v1327_v31  ;;  %6768 = vmatprep.subr.bf16.mxu0 %v6767_v20  ;;  %7024 = vmatprep.subr.bf16.mxu1 %v7023_v21  ;;  %v2604_v18 = vld [vmem:[#allocation8 + $0x2790] sm:$0xff]  ;;  %v2619_v20 = vld [vmem:[#allocation8 + $0x2808] sm:$0xff]  ;;  %v6785_v24 = vpack.c.bf16 %v2602_v12, %v2586_v11  ;;  %v2714_v3 = vld [vmem:[#allocation8 + $0x2b00] sm:$0xff] }
 0x299   :  { %3592 = vmatprep.mubr.f32.mxu0 %v9051_v30  ;;  %3876 = vmatprep.mubr.f32.mxu1 %v9051_v30  ;;  %v2635_v21 = vld [vmem:[#allocation8 + $0x2888] sm:$0xff]  ;;  %v7041_v26 = vpack.c.bf16 %v2604_v18, %v2588_v17  ;;  %v2732_v11 = vld [vmem:[#allocation8 + $0x2b90] sm:$0xff]  ;;  %v2765_v17 = vld [vmem:[#allocation8 + $0x2c98] sm:$0xff]  ;;  %v6801_v18 = vpack.c.bf16 %v2730_v4, %v2714_v3 }
 0x29a   :  { %v6787_v31 = vpack.c.bf16 %v2635_v21, %v2619_v20  ;;  %v2747_v12 = vld [vmem:[#allocation8 + $0x2c08] sm:$0xff]  ;;  %v2746_v21 = vld [vmem:[#allocation8 + $0x2c00] sm:$0xff]  ;;  %v2860_v3 = vld [vmem:[#allocation8 + $0x2f90] sm:$0xff] }
 0x29b   :  { %6770 = vmatpush1.bf16.msra.mxu0 %v6769_v15  ;;  %7026 = vmatpush1.bf16.msra.mxu1 %v7025_v32  ;;  %v7043_v15 = vpack.c.bf16 %v2637_v23, %v2621_v22  ;;  %v2620_v32 = vld [vmem:[#allocation8 + $0x2810] sm:$0xff]  ;;  %v2762_v22 = vld [vmem:[#allocation8 + $0x2c80] sm:$0xff]  ;;  %v2875_v4 = vld [vmem:[#allocation8 + $0x3008] sm:$0xff] }
 0x29c   :  { %6772 = vmatprep.subr.bf16.mxu0 %v6771_v36  ;;  %7028 = vmatprep.subr.bf16.mxu1 %v7027_v37  ;;  %v2667_v36 = vld [vmem:[#allocation8 + $0x2988] sm:$0xff]  ;;  %v2653_v37 = vld [vmem:[#allocation8 + $0x2918] sm:$0xff]  ;;  %v7045_v41 = vpack.c.bf16 %v2636_v33, %v2620_v32  ;;  %v6805_v33 = vpack.c.bf16 %v2762_v22, %v2746_v21  ;;  %v2890_v21 = vld [vmem:[#allocation8 + $0x3080] sm:$0xff] }
 0x29d   :  { %v6791_v44 = vpack.c.bf16 %v2667_v36, %v2651_v34  ;;  %v2797_v32 = vld [vmem:[#allocation8 + $0x2d98] sm:$0xff]  ;;  %v2778_v36 = vld [vmem:[#allocation8 + $0x2d00] sm:$0xff] }
 0x29f   :  { %6774 = vmatpush1.bf16.msra.mxu0 %v6773_v45  ;;  %7030 = vmatpush1.bf16.msra.mxu1 %v7029_v2  ;;  %v7047_v45 = vpack.c.bf16 %v2669_v39, %v2653_v37  ;;  %v2652_v2 = vld [vmem:[#allocation8 + $0x2910] sm:$0xff]  ;;  %v2794_v37 = vld [vmem:[#allocation8 + $0x2d80] sm:$0xff] }
 0x2a0   :  { %6776 = vmatprep.subr.bf16.mxu0 %v6775_v48  ;;  %7032 = vmatprep.subr.bf16.mxu1 %v7031_v10  ;;  %v2699_v48 = vld [vmem:[#allocation8 + $0x2a88] sm:$0xff]  ;;  %v2685_v10 = vld [vmem:[#allocation8 + $0x2a18] sm:$0xff]  ;;  %v7049_v51 = vpack.c.bf16 %v2668_v46, %v2652_v2  ;;  %v6809_v46 = vpack.c.bf16 %v2794_v37, %v2778_v36 }
 0x2a1   :  { %v6795_v56 = vpack.c.bf16 %v2699_v48, %v2683_v47  ;;  %v2829_v2 = vld [vmem:[#allocation8 + $0x2e98] sm:$0xff]  ;;  %v2810_v48 = vld [vmem:[#allocation8 + $0x2e00] sm:$0xff] }
 0x2a3   :  { %6778 = vmatpush1.bf16.msra.mxu0 %v6777_v57  ;;  %7034 = vmatpush1.bf16.msra.mxu1 %v7033_v58  ;;  %v7051_v57 = vpack.c.bf16 %v2701_v49, %v2685_v10  ;;  %v2684_v58 = vld [vmem:[#allocation8 + $0x2a10] sm:$0xff]  ;;  %v2826_v10 = vld [vmem:[#allocation8 + $0x2e80] sm:$0xff] }
 0x2a4   :  { %6780 = vmatprep.subr.bf16.mxu0 %v6779_v61  ;;  %7036 = vmatprep.subr.bf16.mxu1 %v7035_v62  ;;  %v2731_v61 = vld [vmem:[#allocation8 + $0x2b88] sm:$0xff]  ;;  %v2717_v62 = vld [vmem:[#allocation8 + $0x2b18] sm:$0xff]  ;;  %v7053_v1 = vpack.c.bf16 %v2700_v59, %v2684_v58  ;;  %v6813_v59 = vpack.c.bf16 %v2826_v10, %v2810_v48  ;;  %v2938_v48 = vld [vmem:[#allocation8 + $0x3200] sm:$0xff] }
 0x2a5   :  { %v6799_v5 = vpack.c.bf16 %v2731_v61, %v2715_v60  ;;  %v2861_v58 = vld [vmem:[#allocation8 + $0x2f98] sm:$0xff]  ;;  %v2842_v61 = vld [vmem:[#allocation8 + $0x2f00] sm:$0xff] }
 0x2a6   :  { %v2954_v10 = vld [vmem:[#allocation8 + $0x3280] sm:$0xff] }
 0x2a7   :  { %6782 = vmatpush1.bf16.msra.mxu0 %v6781_v6  ;;  %7038 = vmatpush1.bf16.msra.mxu1 %v7037_v7  ;;  %v7055_v6 = vpack.c.bf16 %v2733_v63, %v2717_v62  ;;  %v2716_v7 = vld [vmem:[#allocation8 + $0x2b10] sm:$0xff]  ;;  %v2858_v62 = vld [vmem:[#allocation8 + $0x2f80] sm:$0xff] }
 0x2a8   :  { %6784 = vmatprep.subr.bf16.mxu0 %v6783_v13  ;;  %7040 = vmatprep.subr.bf16.mxu1 %v7039_v14  ;;  %v2763_v13 = vld [vmem:[#allocation8 + $0x2c88] sm:$0xff]  ;;  %v2749_v14 = vld [vmem:[#allocation8 + $0x2c18] sm:$0xff]  ;;  %v7057_v20 = vpack.c.bf16 %v2732_v11, %v2716_v7 }
 0x2a9   :  { %v6803_v23 = vpack.c.bf16 %v2763_v13, %v2747_v12  ;;  %v2877_v7 = vld [vmem:[#allocation8 + $0x3018] sm:$0xff]  ;;  %v1313_v12 = vmul.f32 %v8999_v16, %v9049_v19  ;;  %v6817_v13 = vpack.c.bf16 %v2858_v62, %v2842_v61  ;;  %v2970_v61 = vld [vmem:[#allocation8 + $0x3300] sm:$0xff] }
 0x2aa   :  { %v2893_v11 = vld [vmem:[#allocation8 + $0x3098] sm:$0xff]  ;;  %v2986_v62 = vld [vmem:[#allocation8 + $0x3380] sm:$0xff] }
 0x2ab   :  { %6786 = vmatpush1.bf16.msra.mxu0 %v6785_v24  ;;  %7042 = vmatpush1.bf16.msra.mxu1 %v7041_v26  ;;  %v7059_v24 = vpack.c.bf16 %v2765_v17, %v2749_v14  ;;  %v2748_v26 = vld [vmem:[#allocation8 + $0x2c10] sm:$0xff]  ;;  %vm1321_vm11 = vcmp.gt.f32.partialorder %v1313_v12, 0.0 }
 0x2ac   :  { %6788 = vmatprep.subr.bf16.mxu0 %v6787_v31  ;;  %7044 = vmatprep.subr.bf16.mxu1 %v7043_v15  ;;  %v2795_v31 = vld [vmem:[#allocation8 + $0x2d88] sm:$0xff]  ;;  %v2781_v15 = vld [vmem:[#allocation8 + $0x2d18] sm:$0xff]  ;;  %v7061_v34 = vpack.c.bf16 %v2764_v27, %v2748_v26  ;;  %v1329_v26 = vmul.f32 0.2, %v1313_v12 }
 0x2ad   :  { %v6807_v39 = vpack.c.bf16 %v2795_v31, %v2779_v28  ;;  %v2923_v27 = vld [vmem:[#allocation8 + $0x3188] sm:$0xff]  ;;  %v2909_v28 = vld [vmem:[#allocation8 + $0x3118] sm:$0xff] }
 0x2ae   :  { %v2925_v31 = vld [vmem:[#allocation8 + $0x3198] sm:$0xff] }
 0x2af   :  { %6790 = vmatpush1.bf16.msra.mxu0 %v6789_v55  ;;  %7046 = vmatpush1.bf16.msra.mxu1 %v7045_v41  ;;  %v7063_v55 = vpack.c.bf16 %v2797_v32, %v2781_v15  ;;  %v2780_v41 = vld [vmem:[#allocation8 + $0x2d10] sm:$0xff]  ;;  %v2906_v32 = vld [vmem:[#allocation8 + $0x3100] sm:$0xff] }
 0x2b0   :  { %6792 = vmatprep.subr.bf16.mxu0 %v6791_v44  ;;  %7048 = vmatprep.subr.bf16.mxu1 %v7047_v45  ;;  %v2827_v44 = vld [vmem:[#allocation8 + $0x2e88] sm:$0xff]  ;;  %v2813_v45 = vld [vmem:[#allocation8 + $0x2e18] sm:$0xff]  ;;  %v7065_v47 = vpack.c.bf16 %v2796_v42, %v2780_v41 }
 0x2b1   :  { %v6811_v49 = vpack.c.bf16 %v2827_v44, %v2811_v43  ;;  %v2939_v41 = vld [vmem:[#allocation8 + $0x3208] sm:$0xff]  ;;  %v9062_v43 = vsel %vm1321_vm11, %v1313_v12, %v1329_v26  ;;  %v2941_v44 = vld [vmem:[#allocation8 + $0x3218] sm:$0xff] }
 0x2b2   :  { %v2955_v42 = vld [vmem:[#allocation8 + $0x3288] sm:$0xff] }
 0x2b3   :  { %6794 = vmatpush1.bf16.msra.mxu0 %v6793_v50  ;;  %7050 = vmatpush1.bf16.msra.mxu1 %v7049_v51  ;;  %v7067_v50 = vpack.c.bf16 %v2829_v2, %v2813_v45  ;;  %v2812_v51 = vld [vmem:[#allocation8 + $0x2e10] sm:$0xff]  ;;  %v2957_v45 = vld [vmem:[#allocation8 + $0x3298] sm:$0xff] }
 0x2b4   :  { %6796 = vmatprep.subr.bf16.mxu0 %v6795_v56  ;;  %7052 = vmatprep.subr.bf16.mxu1 %v7051_v57  ;;  %v2859_v56 = vld [vmem:[#allocation8 + $0x2f88] sm:$0xff]  ;;  %v2845_v57 = vld [vmem:[#allocation8 + $0x2f18] sm:$0xff]  ;;  %v7069_v60 = vpack.c.bf16 %v2828_v52, %v2812_v51  ;;  %v2956_v51 = vld [vmem:[#allocation8 + $0x3290] sm:$0xff] }
 0x2b5   :  { %v6815_v63 = vpack.c.bf16 %v2859_v56, %v2843_v53  ;;  %v2971_v52 = vld [vmem:[#allocation8 + $0x3308] sm:$0xff]  ;;  %v2973_v56 = vld [vmem:[#allocation8 + $0x3318] sm:$0xff] }
 0x2b6   :  { %v2987_v53 = vld [vmem:[#allocation8 + $0x3388] sm:$0xff] }
 0x2b7   :  { %6798 = vmatpush1.bf16.msra.mxu0 %v6797_v0  ;;  %7054 = vmatpush1.bf16.msra.mxu1 %v7053_v1  ;;  %v7071_v0 = vpack.c.bf16 %v2861_v58, %v2845_v57  ;;  %v2844_v1 = vld [vmem:[#allocation8 + $0x2f10] sm:$0xff]  ;;  %v2989_v57 = vld [vmem:[#allocation8 + $0x3398] sm:$0xff]  ;;  %v6829_v58 = vpack.c.bf16 %v2954_v10, %v2938_v48  ;;  %v3099_v48 = vld [vmem:[#allocation8 + $0x3708] sm:$0xff] }
 0x2b8   :  { %6800 = vmatprep.subr.bf16.mxu0 %v6799_v5  ;;  %7056 = vmatprep.subr.bf16.mxu1 %v7055_v6  ;;  %v1310_v5 = vmul.f32 %v8999_v16, %v9044_v8  ;;  %v2891_v6 = vld [vmem:[#allocation8 + $0x3088] sm:$0xff]  ;;  %v7073_v14 = vpack.c.bf16 %v2860_v3, %v2844_v1  ;;  %v2988_v1 = vld [vmem:[#allocation8 + $0x3390] sm:$0xff] }
 0x2b9   :  { %v6819_v17 = vpack.c.bf16 %v2891_v6, %v2875_v4  ;;  %v2907_v8 = vld [vmem:[#allocation8 + $0x3108] sm:$0xff]  ;;  %v3021_v6 = vld [vmem:[#allocation8 + $0x3498] sm:$0xff] }
 0x2ba   :  { %v1326_v22 = vmul.f32 0.2, %v1310_v5  ;;  %vm1318_vm10 = vcmp.gt.f32.partialorder %v1310_v5, 0.0  ;;  %v6823_v37 = vpack.c.bf16 %v2923_v27, %v2907_v8  ;;  %v3003_v3 = vld [vmem:[#allocation8 + $0x3408] sm:$0xff] }
 0x2bb   :  { %6802 = vmatpush1.bf16.msra.mxu0 %v6801_v18  ;;  %7058 = vmatpush1.bf16.msra.mxu1 %v7057_v20  ;;  %v7075_v18 = vpack.c.bf16 %v2893_v11, %v2877_v7  ;;  %v2874_v20 = vld [vmem:[#allocation8 + $0x3000] sm:$0xff]  ;;  %v3019_v4 = vld [vmem:[#allocation8 + $0x3488] sm:$0xff]  ;;  %v6833_v7 = vpack.c.bf16 %v2986_v62, %v2970_v61 }
 0x2bc   :  { %6804 = vmatprep.subr.bf16.mxu0 %v6803_v23  ;;  %7060 = vmatprep.subr.bf16.mxu1 %v7059_v24  ;;  %v2876_v23 = vld [vmem:[#allocation8 + $0x3010] sm:$0xff]  ;;  %v6821_v19 = vpack.c.bf16 %v2890_v21, %v2874_v20  ;;  %v9059_v36 = vsel %vm1318_vm10, %v1310_v5, %v1326_v22  ;;  %v3005_v5 = vld [vmem:[#allocation8 + $0x3418] sm:$0xff]  ;;  %v6835_v12 = vpack.c.bf16 %v3019_v4, %v3003_v3  ;;  %v3035_v21 = vld [vmem:[#allocation8 + $0x3508] sm:$0xff] }
 0x2bd   :  { %v2892_v24 = vld [vmem:[#allocation8 + $0x3090] sm:$0xff]  ;;  %v3051_v22 = vld [vmem:[#allocation8 + $0x3588] sm:$0xff] }
 0x2be   :  { %v7077_v15 = vpack.c.bf16 %v2892_v24, %v2876_v23  ;;  %v3020_v20 = vld [vmem:[#allocation8 + $0x3490] sm:$0xff]  ;;  %v3037_v23 = vld [vmem:[#allocation8 + $0x3518] sm:$0xff]  ;;  %v6839_v27 = vpack.c.bf16 %v3051_v22, %v3035_v21  ;;  %v3115_v10 = vld [vmem:[#allocation8 + $0x3788] sm:$0xff] }
 0x2bf   :  { %6806 = vmatpush1.bf16.msra.mxu0 %v6805_v33  ;;  %7062 = vmatpush1.bf16.msra.mxu1 %v7061_v34  ;;  %v2922_v33 = vld [vmem:[#allocation8 + $0x3180] sm:$0xff]  ;;  %v2908_v34 = vld [vmem:[#allocation8 + $0x3110] sm:$0xff]  ;;  %v3053_v24 = vld [vmem:[#allocation8 + $0x3598] sm:$0xff] }
 0x2c0   :  { %6808 = vmatprep.subr.bf16.mxu0 %v6807_v39  ;;  %7064 = vmatprep.subr.bf16.mxu1 %v7063_v55  ;;  %v7079_v39 = vpack.c.bf16 %v2925_v31, %v2909_v28  ;;  %v2924_v55 = vld [vmem:[#allocation8 + $0x3190] sm:$0xff]  ;;  %v6825_v2 = vpack.c.bf16 %v2922_v33, %v2906_v32  ;;  %v3034_v28 = vld [vmem:[#allocation8 + $0x3500] sm:$0xff]  ;;  %v3067_v33 = vld [vmem:[#allocation8 + $0x3608] sm:$0xff] }
 0x2c1   :  { %v3050_v31 = vld [vmem:[#allocation8 + $0x3580] sm:$0xff]  ;;  %v3052_v32 = vld [vmem:[#allocation8 + $0x3590] sm:$0xff]  ;;  %v3131_v61 = vld [vmem:[#allocation8 + $0x3808] sm:$0xff] }
 0x2c2   :  { %v3147_v62 = vld [vmem:[#allocation8 + $0x3888] sm:$0xff] }
 0x2c3   :  { %6810 = vmatpush1.bf16.msra.mxu0 %v6809_v46  ;;  %7066 = vmatpush1.bf16.msra.mxu1 %v7065_v47  ;;  %v7081_v46 = vpack.c.bf16 %v2924_v55, %v2908_v34  ;;  %v6827_v47 = vpack.c.bf16 %v2955_v42, %v2939_v41  ;;  %v3083_v34 = vld [vmem:[#allocation8 + $0x3688] sm:$0xff]  ;;  %v6841_v55 = vpack.c.bf16 %v3050_v31, %v3034_v28 }
 0x2c4   :  { %6812 = vmatprep.subr.bf16.mxu0 %v6811_v49  ;;  %7068 = vmatprep.subr.bf16.mxu1 %v7067_v50  ;;  %v2940_v49 = vld [vmem:[#allocation8 + $0x3210] sm:$0xff]  ;;  %v7083_v50 = vpack.c.bf16 %v2957_v45, %v2941_v44  ;;  %v6843_v42 = vpack.c.bf16 %v3083_v34, %v3067_v33  ;;  %v3066_v44 = vld [vmem:[#allocation8 + $0x3600] sm:$0xff]  ;;  %v6851_v4 = vpack.c.bf16 %v3147_v62, %v3131_v61  ;;  %v3195_v28 = vld [vmem:[#allocation8 + $0x3a08] sm:$0xff] }
 0x2c5   :  { %v3082_v45 = vld [vmem:[#allocation8 + $0x3680] sm:$0xff]  ;;  %v3211_v31 = vld [vmem:[#allocation8 + $0x3a88] sm:$0xff] }
 0x2c6   :  { %v6859_v34 = vpack.c.bf16 %v3211_v31, %v3195_v28 }
 0x2c7   :  { %6814 = vmatpush1.bf16.msra.mxu0 %v6813_v59  ;;  %7070 = vmatpush1.bf16.msra.mxu1 %v7069_v60  ;;  %v7085_v59 = vpack.c.bf16 %v2956_v51, %v2940_v49  ;;  %v6831_v60 = vpack.c.bf16 %v2987_v53, %v2971_v52  ;;  %v3101_v49 = vld [vmem:[#allocation8 + $0x3718] sm:$0xff]  ;;  %v6845_v51 = vpack.c.bf16 %v3082_v45, %v3066_v44  ;;  %v3227_v44 = vld [vmem:[#allocation8 + $0x3b08] sm:$0xff] }
 0x2c8   :  { %6816 = vmatprep.subr.bf16.mxu0 %v6815_v63  ;;  %7072 = vmatprep.subr.bf16.mxu1 %v7071_v0  ;;  %v2972_v63 = vld [vmem:[#allocation8 + $0x3310] sm:$0xff]  ;;  %v7087_v0 = vpack.c.bf16 %v2989_v57, %v2973_v56  ;;  %v6847_v53 = vpack.c.bf16 %v3115_v10, %v3099_v48  ;;  %v3098_v56 = vld [vmem:[#allocation8 + $0x3700] sm:$0xff]  ;;  %v3243_v45 = vld [vmem:[#allocation8 + $0x3b88] sm:$0xff] }
 0x2c9   :  { %v7089_v11 = vpack.c.bf16 %v2988_v1, %v2972_v63  ;;  %v3114_v57 = vld [vmem:[#allocation8 + $0x3780] sm:$0xff]  ;;  %v3133_v63 = vld [vmem:[#allocation8 + $0x3818] sm:$0xff]  ;;  %v6863_v10 = vpack.c.bf16 %v3243_v45, %v3227_v44 }
 0x2ca   :  { %v6849_v1 = vpack.c.bf16 %v3114_v57, %v3098_v56  ;;  %v3259_v56 = vld [vmem:[#allocation8 + $0x3c08] sm:$0xff] }
 0x2cb   :  { %6818 = vmatpush1.bf16.msra.mxu0 %v6817_v13  ;;  %7074 = vmatpush1.bf16.msra.mxu1 %v7073_v14  ;;  %v3002_v13 = vld [vmem:[#allocation8 + $0x3400] sm:$0xff]  ;;  %v3275_v57 = vld [vmem:[#allocation8 + $0x3c88] sm:$0xff] }
 0x2cc   :  { %6820 = vmatprep.subr.bf16.mxu0 %v6819_v17  ;;  %7076 = vmatprep.subr.bf16.mxu1 %v7075_v18  ;;  %v3018_v14 = vld [vmem:[#allocation8 + $0x3480] sm:$0xff]  ;;  %v3004_v17 = vld [vmem:[#allocation8 + $0x3410] sm:$0xff]  ;;  %v7091_v18 = vpack.c.bf16 %v3021_v6, %v3005_v5  ;;  %v6867_v62 = vpack.c.bf16 %v3275_v57, %v3259_v56 }
 0x2cd   :  { %v6837_v8 = vpack.c.bf16 %v3018_v14, %v3002_v13  ;;  %v7093_v26 = vpack.c.bf16 %v3020_v20, %v3004_v17  ;;  %v3130_v5 = vld [vmem:[#allocation8 + $0x3800] sm:$0xff]  ;;  %v3163_v13 = vld [vmem:[#allocation8 + $0x3908] sm:$0xff]  ;;  %v3165_v17 = vld [vmem:[#allocation8 + $0x3918] sm:$0xff] }
 0x2ce   :  { %3593 = vmatmul.mubr.f32.vlgmr.msra.gmra.mrb[8].mxu0 %v9059_v36  ;;  %3877 = vmatmul.mubr.f32.vlgmr.msra.gmra.mrb[8].mxu1 %v9059_v36  ;;  %v3146_v6 = vld [vmem:[#allocation8 + $0x3880] sm:$0xff]  ;;  %v3179_v14 = vld [vmem:[#allocation8 + $0x3988] sm:$0xff] }
 0x2cf   :  { %6822 = vmatpush1.bf16.msra.mxu0 %v6821_v19  ;;  %3663 = vmatprep.mubr.f32.mxu0 %v9062_v43  ;;  %v3036_v19 = vld [vmem:[#allocation8 + $0x3510] sm:$0xff]  ;;  %v6853_v20 = vpack.c.bf16 %v3146_v6, %v3130_v5  ;;  %v6855_v22 = vpack.c.bf16 %v3179_v14, %v3163_v13  ;;  %v3291_v5 = vld [vmem:[#allocation8 + $0x3d08] sm:$0xff] }
 0x2d0   :  { %7078 = vmatpush1.bf16.msra.mxu1 %v7077_v15  ;;  %3947 = vmatprep.mubr.f32.mxu1 %v9062_v43  ;;  %v7095_v15 = vpack.c.bf16 %v3053_v24, %v3037_v23  ;;  %v7097_v41 = vpack.c.bf16 %v3052_v32, %v3036_v19  ;;  %v3162_v23 = vld [vmem:[#allocation8 + $0x3900] sm:$0xff]  ;;  %v3197_v19 = vld [vmem:[#allocation8 + $0x3a18] sm:$0xff]  ;;  %v3307_v6 = vld [vmem:[#allocation8 + $0x3d88] sm:$0xff] }
 0x2d1   :  { %6824 = vmatprep.subr.bf16.mxu0 %v6823_v37  ;;  %7080 = vmatprep.subr.bf16.mxu1 %v7079_v39  ;;  %v3069_v37 = vld [vmem:[#allocation8 + $0x3618] sm:$0xff]  ;;  %v3178_v24 = vld [vmem:[#allocation8 + $0x3980] sm:$0xff]  ;;  %v6871_v14 = vpack.c.bf16 %v3307_v6, %v3291_v5 }
 0x2d2   :  { %v3085_v39 = vld [vmem:[#allocation8 + $0x3698] sm:$0xff]  ;;  %v6857_v32 = vpack.c.bf16 %v3178_v24, %v3162_v23  ;;  %v3323_v23 = vld [vmem:[#allocation8 + $0x3e08] sm:$0xff] }
 0x2d3   :  { %6826 = vmatpush1.bf16.msra.mxu0 %v6825_v2  ;;  %v3068_v2 = vld [vmem:[#allocation8 + $0x3610] sm:$0xff]  ;;  %v3339_v24 = vld [vmem:[#allocation8 + $0x3e88] sm:$0xff]  ;;  %v1393_v5 = vld [vmem:[#allocation8 + $0x1b8] sm:$0xff] }
 0x2d4   :  { %7082 = vmatpush1.bf16.msra.mxu1 %v7081_v46  ;;  %6828 = vmatprep.subr.bf16.mxu0 %v6827_v47  ;;  %v7099_v46 = vpack.c.bf16 %v3085_v39, %v3069_v37  ;;  %v3084_v47 = vld [vmem:[#allocation8 + $0x3690] sm:$0xff]  ;;  %v3194_v37 = vld [vmem:[#allocation8 + $0x3a00] sm:$0xff]  ;;  %v6875_v31 = vpack.c.bf16 %v3339_v24, %v3323_v23  ;;  %v1425_v23 = vld [vmem:[#allocation8 + $0x2b8] sm:$0xff] }
 0x2d5   :  { %7084 = vmatprep.subr.bf16.mxu1 %v7083_v50  ;;  %v3117_v50 = vld [vmem:[#allocation8 + $0x3798] sm:$0xff]  ;;  %v7101_v52 = vpack.c.bf16 %v3084_v47, %v3068_v2  ;;  %v3210_v39 = vld [vmem:[#allocation8 + $0x3a80] sm:$0xff] }
 0x2d6   :  { %v3229_v2 = vld [vmem:[#allocation8 + $0x3b18] sm:$0xff]  ;;  %v6861_v47 = vpack.c.bf16 %v3210_v39, %v3194_v37  ;;  %v3355_v37 = vld [vmem:[#allocation8 + $0x3f08] sm:$0xff] }
 0x2d7   :  { %6830 = vmatpush1.bf16.msra.mxu0 %v6829_v58  ;;  %v3100_v58 = vld [vmem:[#allocation8 + $0x3710] sm:$0xff]  ;;  %v3371_v39 = vld [vmem:[#allocation8 + $0x3f88] sm:$0xff] }
 0x2d8   :  { %7086 = vmatpush1.bf16.msra.mxu1 %v7085_v59  ;;  %6832 = vmatprep.subr.bf16.mxu0 %v6831_v60  ;;  %v7103_v59 = vpack.c.bf16 %v3117_v50, %v3101_v49  ;;  %v3116_v60 = vld [vmem:[#allocation8 + $0x3790] sm:$0xff]  ;;  %v3226_v49 = vld [vmem:[#allocation8 + $0x3b00] sm:$0xff]  ;;  %v6879_v45 = vpack.c.bf16 %v3371_v39, %v3355_v37  ;;  %v1457_v37 = vld [vmem:[#allocation8 + $0x3b8] sm:$0xff] }
 0x2d9   :  { %7088 = vmatprep.subr.bf16.mxu1 %v7087_v0  ;;  %v3149_v0 = vld [vmem:[#allocation8 + $0x3898] sm:$0xff]  ;;  %v7105_v3 = vpack.c.bf16 %v3116_v60, %v3100_v58  ;;  %v3242_v50 = vld [vmem:[#allocation8 + $0x3b80] sm:$0xff] }
 0x2da   :  { %v3261_v58 = vld [vmem:[#allocation8 + $0x3c18] sm:$0xff]  ;;  %v6865_v60 = vpack.c.bf16 %v3242_v50, %v3226_v49  ;;  %v3372_v49 = vld [vmem:[#allocation8 + $0x3f90] sm:$0xff]  ;;  %v1343_v50 = vld [vmem:[#allocation8 + $0x28] sm:$0xff] }
 0x2db   :  { %6834 = vmatpush1.bf16.msra.mxu0 %v6833_v7  ;;  %v3132_v7 = vld [vmem:[#allocation8 + $0x3810] sm:$0xff] }
 0x2dc   :  { %7090 = vmatpush1.bf16.msra.mxu1 %v7089_v11  ;;  %6836 = vmatprep.subr.bf16.mxu0 %v6835_v12  ;;  %v7107_v11 = vpack.c.bf16 %v3149_v0, %v3133_v63  ;;  %v3148_v12 = vld [vmem:[#allocation8 + $0x3890] sm:$0xff]  ;;  %v3258_v63 = vld [vmem:[#allocation8 + $0x3c00] sm:$0xff] }
 0x2dd   :  { %7092 = vmatprep.subr.bf16.mxu1 %v7091_v18  ;;  %v3181_v18 = vld [vmem:[#allocation8 + $0x3998] sm:$0xff]  ;;  %v7109_v21 = vpack.c.bf16 %v3148_v12, %v3132_v7  ;;  %v3274_v0 = vld [vmem:[#allocation8 + $0x3c80] sm:$0xff] }
 0x2de   :  { %v3293_v7 = vld [vmem:[#allocation8 + $0x3d18] sm:$0xff]  ;;  %v6869_v12 = vpack.c.bf16 %v3274_v0, %v3258_v63  ;;  %v1344_v63 = vld [vmem:[#allocation8 + $0x30] sm:$0xff]  ;;  %v1375_v0 = vld [vmem:[#allocation8 + $0x128] sm:$0xff] }
 0x2df   :  { %6838 = vmatpush1.bf16.msra.mxu0 %v6837_v8  ;;  %v3164_v8 = vld [vmem:[#allocation8 + $0x3910] sm:$0xff] }
 0x2e0   :  { %7094 = vmatpush1.bf16.msra.mxu1 %v7093_v26  ;;  %6840 = vmatprep.subr.bf16.mxu0 %v6839_v27  ;;  %v7111_v26 = vpack.c.bf16 %v3181_v18, %v3165_v17  ;;  %v3180_v27 = vld [vmem:[#allocation8 + $0x3990] sm:$0xff]  ;;  %v3290_v17 = vld [vmem:[#allocation8 + $0x3d00] sm:$0xff] }
 0x2e1   :  { %7096 = vmatprep.subr.bf16.mxu1 %v7095_v15  ;;  %v3213_v15 = vld [vmem:[#allocation8 + $0x3a98] sm:$0xff]  ;;  %v7113_v33 = vpack.c.bf16 %v3180_v27, %v3164_v8  ;;  %v3306_v18 = vld [vmem:[#allocation8 + $0x3d80] sm:$0xff] }
 0x2e2   :  { %v3325_v8 = vld [vmem:[#allocation8 + $0x3e18] sm:$0xff]  ;;  %v6873_v27 = vpack.c.bf16 %v3306_v18, %v3290_v17  ;;  %v1392_v17 = vld [vmem:[#allocation8 + $0x1b0] sm:$0xff]  ;;  %v1407_v18 = vld [vmem:[#allocation8 + $0x228] sm:$0xff] }
 0x2e3   :  { %6842 = vmatpush1.bf16.msra.mxu0 %v6841_v55  ;;  %v3196_v55 = vld [vmem:[#allocation8 + $0x3a10] sm:$0xff] }
 0x2e4   :  { %7098 = vmatpush1.bf16.msra.mxu1 %v7097_v41  ;;  %6844 = vmatprep.subr.bf16.mxu0 %v6843_v42  ;;  %v7115_v41 = vpack.c.bf16 %v3213_v15, %v3197_v19  ;;  %v3212_v42 = vld [vmem:[#allocation8 + $0x3a90] sm:$0xff]  ;;  %v3322_v19 = vld [vmem:[#allocation8 + $0x3e00] sm:$0xff] }
 0x2e5   :  { %7100 = vmatprep.subr.bf16.mxu1 %v7099_v46  ;;  %v3245_v46 = vld [vmem:[#allocation8 + $0x3b98] sm:$0xff]  ;;  %v7117_v48 = vpack.c.bf16 %v3212_v42, %v3196_v55  ;;  %v3338_v15 = vld [vmem:[#allocation8 + $0x3e80] sm:$0xff] }
 0x2e6   :  { %v3357_v55 = vld [vmem:[#allocation8 + $0x3f18] sm:$0xff]  ;;  %v6877_v42 = vpack.c.bf16 %v3338_v15, %v3322_v19  ;;  %v1424_v15 = vld [vmem:[#allocation8 + $0x2b0] sm:$0xff] }
 0x2e7   :  { %6846 = vmatpush1.bf16.msra.mxu0 %v6845_v51  ;;  %v3228_v51 = vld [vmem:[#allocation8 + $0x3b10] sm:$0xff] }
 0x2e8   :  { %7102 = vmatpush1.bf16.msra.mxu1 %v7101_v52  ;;  %6848 = vmatprep.subr.bf16.mxu0 %v6847_v53  ;;  %v7119_v52 = vpack.c.bf16 %v3245_v46, %v3229_v2  ;;  %v3244_v53 = vld [vmem:[#allocation8 + $0x3b90] sm:$0xff]  ;;  %v3354_v2 = vld [vmem:[#allocation8 + $0x3f00] sm:$0xff] }
 0x2e9   :  { %7104 = vmatprep.subr.bf16.mxu1 %v7103_v59  ;;  %v3277_v59 = vld [vmem:[#allocation8 + $0x3c98] sm:$0xff]  ;;  %v7121_v61 = vpack.c.bf16 %v3244_v53, %v3228_v51  ;;  %v3370_v46 = vld [vmem:[#allocation8 + $0x3f80] sm:$0xff]  ;;  %v1359_v51 = vld [vmem:[#allocation8 + $0xa8] sm:$0xff] }
 0x2ea   :  { %v1361_v53 = vld [vmem:[#allocation8 + $0xb8] sm:$0xff]  ;;  %v6881_v56 = vpack.c.bf16 %v3370_v46, %v3354_v2  ;;  %v1456_v46 = vld [vmem:[#allocation8 + $0x3b0] sm:$0xff] }
 0x2eb   :  { %6850 = vmatpush1.bf16.msra.mxu0 %v6849_v1  ;;  %v3260_v1 = vld [vmem:[#allocation8 + $0x3c10] sm:$0xff] }
 0x2ec   :  { %7106 = vmatpush1.bf16.msra.mxu1 %v7105_v3  ;;  %6852 = vmatprep.subr.bf16.mxu0 %v6851_v4  ;;  %v7123_v3 = vpack.c.bf16 %v3277_v59, %v3261_v58  ;;  %v3276_v4 = vld [vmem:[#allocation8 + $0x3c90] sm:$0xff]  ;;  %v7139_v58 = vpack.c.bf16 %v1359_v51, %v1343_v50  ;;  %v1342_v59 = vld [vmem:[#allocation8 + $0x20] sm:$0xff] }
 0x2ed   :  { %7108 = vmatprep.subr.bf16.mxu1 %v7107_v11  ;;  %v3309_v11 = vld [vmem:[#allocation8 + $0x3d98] sm:$0xff]  ;;  %v7125_v13 = vpack.c.bf16 %v3276_v4, %v3260_v1  ;;  %v1391_v1 = vld [vmem:[#allocation8 + $0x1a8] sm:$0xff] }
 0x2ee   :  { %v1377_v4 = vld [vmem:[#allocation8 + $0x138] sm:$0xff] }
 0x2ef   :  { %6854 = vmatpush1.bf16.msra.mxu0 %v6853_v20  ;;  %v3292_v20 = vld [vmem:[#allocation8 + $0x3d10] sm:$0xff] }
 0x2f0   :  { %7110 = vmatpush1.bf16.msra.mxu1 %v7109_v21  ;;  %6856 = vmatprep.subr.bf16.mxu0 %v6855_v22  ;;  %v7127_v21 = vpack.c.bf16 %v3309_v11, %v3293_v7  ;;  %v3308_v22 = vld [vmem:[#allocation8 + $0x3d90] sm:$0xff]  ;;  %v1374_v7 = vld [vmem:[#allocation8 + $0x120] sm:$0xff] }
 0x2f1   :  { %7112 = vmatprep.subr.bf16.mxu1 %v7111_v26  ;;  %v3341_v26 = vld [vmem:[#allocation8 + $0x3e98] sm:$0xff]  ;;  %v7129_v28 = vpack.c.bf16 %v3308_v22, %v3292_v20  ;;  %v1390_v11 = vld [vmem:[#allocation8 + $0x1a0] sm:$0xff]  ;;  %v1423_v20 = vld [vmem:[#allocation8 + $0x2a8] sm:$0xff] }
 0x2f2   :  { %v1409_v22 = vld [vmem:[#allocation8 + $0x238] sm:$0xff]  ;;  %v7145_v24 = vpack.c.bf16 %v1390_v11, %v1374_v7  ;;  %v1520_v7 = vld [vmem:[#allocation8 + $0x5b0] sm:$0xff]  ;;  %v1535_v11 = vld [vmem:[#allocation8 + $0x628] sm:$0xff] }
 0x2f3   :  { %6858 = vmatpush1.bf16.msra.mxu0 %v6857_v32  ;;  %v3324_v32 = vld [vmem:[#allocation8 + $0x3e10] sm:$0xff]  ;;  %v7403_v19 = vpack.c.bf16 %v1425_v23, %v1409_v22  ;;  %v1534_v22 = vld [vmem:[#allocation8 + $0x620] sm:$0xff] }
 0x2f4   :  { %7114 = vmatpush1.bf16.msra.mxu1 %v7113_v33  ;;  %6860 = vmatprep.subr.bf16.mxu0 %v6859_v34  ;;  %v7131_v33 = vpack.c.bf16 %v3341_v26, %v3325_v8  ;;  %v3340_v34 = vld [vmem:[#allocation8 + $0x3e90] sm:$0xff]  ;;  %v7147_v26 = vpack.c.bf16 %v1423_v20, %v1407_v18  ;;  %v1550_v23 = vld [vmem:[#allocation8 + $0x6a0] sm:$0xff] }
 0x2f5   :  { %7116 = vmatprep.subr.bf16.mxu1 %v7115_v41  ;;  %v3373_v41 = vld [vmem:[#allocation8 + $0x3f98] sm:$0xff]  ;;  %v7133_v44 = vpack.c.bf16 %v3340_v34, %v3324_v32  ;;  %v1439_v32 = vld [vmem:[#allocation8 + $0x328] sm:$0xff] }
 0x2f6   :  { %v1441_v34 = vld [vmem:[#allocation8 + $0x338] sm:$0xff] }
 0x2f7   :  { %6862 = vmatpush1.bf16.msra.mxu0 %v6861_v47  ;;  %v3356_v47 = vld [vmem:[#allocation8 + $0x3f10] sm:$0xff]  ;;  %v7407_v2 = vpack.c.bf16 %v1457_v37, %v1441_v34  ;;  %v1566_v34 = vld [vmem:[#allocation8 + $0x720] sm:$0xff] }
 0x2f8   :  { %7118 = vmatpush1.bf16.msra.mxu1 %v7117_v48  ;;  %6864 = vmatprep.subr.bf16.mxu0 %v6863_v10  ;;  %v1312_v48 = vmul.f32 %v8999_v16, %v9046_v9  ;;  %v7135_v10 = vpack.c.bf16 %v3373_v41, %v3357_v55  ;;  %v7137_v57 = vpack.c.bf16 %v3372_v49, %v3356_v47  ;;  %v1360_v9 = vld [vmem:[#allocation8 + $0xb0] sm:$0xff]  ;;  %v1471_v47 = vld [vmem:[#allocation8 + $0x428] sm:$0xff]  ;;  %v1489_v49 = vld [vmem:[#allocation8 + $0x4b8] sm:$0xff] }
 0x2f9   :  { %7120 = vmatprep.subr.bf16.mxu1 %v7119_v52  ;;  %v1345_v52 = vld [vmem:[#allocation8 + $0x38] sm:$0xff]  ;;  %v7397_v6 = vpack.c.bf16 %v1360_v9, %v1344_v63  ;;  %v1582_v37 = vld [vmem:[#allocation8 + $0x7a0] sm:$0xff] }
 0x2fa   :  { %vm1320_vm12 = vcmp.gt.f32.partialorder %v1312_v48, 0.0  ;;  %v1521_v63 = vld [vmem:[#allocation8 + $0x5b8] sm:$0xff] }
 0x2fb   :  { %6866 = vmatpush1.bf16.msra.mxu0 %v6865_v60  ;;  %v1358_v60 = vld [vmem:[#allocation8 + $0xa0] sm:$0xff] }
 0x2fc   :  { %7122 = vmatpush1.bf16.msra.mxu1 %v7121_v61  ;;  %6868 = vmatprep.subr.bf16.mxu0 %v6867_v62  ;;  %v1328_v61 = vmul.f32 0.2, %v1312_v48  ;;  %v7395_v62 = vpack.c.bf16 %v1361_v53, %v1345_v52  ;;  %v1470_v53 = vld [vmem:[#allocation8 + $0x420] sm:$0xff] }
 0x2fd   :  { %7124 = vmatprep.subr.bf16.mxu1 %v7123_v3  ;;  %v7141_v3 = vpack.c.bf16 %v1358_v60, %v1342_v59  ;;  %v1488_v59 = vld [vmem:[#allocation8 + $0x4b0] sm:$0xff]  ;;  %v1503_v60 = vld [vmem:[#allocation8 + $0x528] sm:$0xff] }
 0x2ff   :  { %6870 = vmatpush1.bf16.msra.mxu0 %v6869_v12  ;;  %v1376_v12 = vld [vmem:[#allocation8 + $0x130] sm:$0xff] }
 0x300   :  { %7126 = vmatpush1.bf16.msra.mxu1 %v7125_v13  ;;  %6872 = vmatprep.subr.bf16.mxu0 %v6871_v14  ;;  %v9070_v13 = vsel %vm1320_vm12, %v1312_v48, %v1328_v61  ;;  %v7143_v14 = vpack.c.bf16 %v1391_v1, %v1375_v0  ;;  %v7401_v8 = vpack.c.bf16 %v1392_v17, %v1376_v12  ;;  %v1487_v48 = vld [vmem:[#allocation8 + $0x4a8] sm:$0xff]  ;;  %v1553_v17 = vld [vmem:[#allocation8 + $0x6b8] sm:$0xff] }
 0x301   :  { %7128 = vmatprep.subr.bf16.mxu1 %v7127_v21  ;;  %v7399_v21 = vpack.c.bf16 %v1393_v5, %v1377_v4  ;;  %v7155_v52 = vpack.c.bf16 %v1487_v48, %v1471_v47  ;;  %v1519_v61 = vld [vmem:[#allocation8 + $0x5a8] sm:$0xff]  ;;  %v1518_v4 = vld [vmem:[#allocation8 + $0x5a0] sm:$0xff]  ;;  %v1504_v5 = vld [vmem:[#allocation8 + $0x530] sm:$0xff] }
 0x302   :  { %v7159_v1 = vpack.c.bf16 %v1519_v61, %v1503_v60  ;;  %v1551_v12 = vld [vmem:[#allocation8 + $0x6a8] sm:$0xff]  ;;  %v7417_v20 = vpack.c.bf16 %v1520_v7, %v1504_v5  ;;  %v1665_v5 = vld [vmem:[#allocation8 + $0xa38] sm:$0xff] }
 0x303   :  { %6874 = vmatpush1.bf16.msra.mxu0 %v6873_v27  ;;  %v1406_v27 = vld [vmem:[#allocation8 + $0x220] sm:$0xff] }
 0x304   :  { %7130 = vmatpush1.bf16.msra.mxu1 %v7129_v28  ;;  %6876 = vmatprep.subr.bf16.mxu0 %v6875_v31  ;;  %v1422_v28 = vld [vmem:[#allocation8 + $0x2a0] sm:$0xff]  ;;  %v1408_v31 = vld [vmem:[#allocation8 + $0x230] sm:$0xff] }
 0x305   :  { %7132 = vmatprep.subr.bf16.mxu1 %v7131_v33  ;;  %v1455_v33 = vld [vmem:[#allocation8 + $0x3a8] sm:$0xff]  ;;  %v7149_v39 = vpack.c.bf16 %v1422_v28, %v1406_v27  ;;  %v7405_v55 = vpack.c.bf16 %v1424_v15, %v1408_v31  ;;  %v1569_v31 = vld [vmem:[#allocation8 + $0x738] sm:$0xff]  ;;  %v7165_v15 = vpack.c.bf16 %v1550_v23, %v1534_v22 }
 0x306   :  { %v7151_v41 = vpack.c.bf16 %v1455_v33, %v1439_v32  ;;  %v1567_v27 = vld [vmem:[#allocation8 + $0x728] sm:$0xff] }
 0x307   :  { %6878 = vmatpush1.bf16.msra.mxu0 %v6877_v42  ;;  %v1438_v42 = vld [vmem:[#allocation8 + $0x320] sm:$0xff]  ;;  %v1583_v28 = vld [vmem:[#allocation8 + $0x7a8] sm:$0xff] }
 0x308   :  { %7134 = vmatpush1.bf16.msra.mxu1 %v7133_v44  ;;  %6880 = vmatprep.subr.bf16.mxu0 %v6879_v45  ;;  %v1454_v44 = vld [vmem:[#allocation8 + $0x3a0] sm:$0xff]  ;;  %v1440_v45 = vld [vmem:[#allocation8 + $0x330] sm:$0xff]  ;;  %v7167_v33 = vpack.c.bf16 %v1583_v28, %v1567_v27  ;;  %v1695_v22 = vld [vmem:[#allocation8 + $0xb28] sm:$0xff] }
 0x309   :  { %7136 = vmatprep.subr.bf16.mxu1 %v7135_v10  ;;  %v1473_v10 = vld [vmem:[#allocation8 + $0x438] sm:$0xff]  ;;  %v7153_v50 = vpack.c.bf16 %v1454_v44, %v1438_v42  ;;  %v7409_v51 = vpack.c.bf16 %v1456_v46, %v1440_v45  ;;  %v1599_v42 = vld [vmem:[#allocation8 + $0x828] sm:$0xff]  ;;  %v7169_v46 = vpack.c.bf16 %v1582_v37, %v1566_v34 }
 0x30a   :  { %v1615_v44 = vld [vmem:[#allocation8 + $0x8a8] sm:$0xff]  ;;  %v1601_v45 = vld [vmem:[#allocation8 + $0x838] sm:$0xff] }
 0x30b   :  { %6882 = vmatpush1.bf16.msra.mxu0 %v6881_v56  ;;  %v1486_v56 = vld [vmem:[#allocation8 + $0x4a0] sm:$0xff]  ;;  %v7171_v48 = vpack.c.bf16 %v1615_v44, %v1599_v42  ;;  %v1711_v23 = vld [vmem:[#allocation8 + $0xba8] sm:$0xff] }
 0x30c   :  { %7138 = vmatpush1.bf16.msra.mxu1 %v7137_v57  ;;  %7140 = vmatprep.subr.bf16.mxu0 %v7139_v58  ;;  %v1472_v57 = vld [vmem:[#allocation8 + $0x430] sm:$0xff]  ;;  %v7411_v58 = vpack.c.bf16 %v1489_v49, %v1473_v10  ;;  %v7157_v9 = vpack.c.bf16 %v1486_v56, %v1470_v53  ;;  %v1598_v10 = vld [vmem:[#allocation8 + $0x820] sm:$0xff]  ;;  %v1631_v53 = vld [vmem:[#allocation8 + $0x928] sm:$0xff]  ;;  %v7183_v28 = vpack.c.bf16 %v1711_v23, %v1695_v22 }
 0x30d   :  { %7396 = vmatprep.subr.bf16.mxu1 %v7395_v62  ;;  %v1505_v62 = vld [vmem:[#allocation8 + $0x538] sm:$0xff]  ;;  %v7413_v0 = vpack.c.bf16 %v1488_v59, %v1472_v57  ;;  %v1614_v49 = vld [vmem:[#allocation8 + $0x8a0] sm:$0xff]  ;;  %v1647_v56 = vld [vmem:[#allocation8 + $0x9a8] sm:$0xff] }
 0x30e   :  { %3664 = vmatmul.mubr.f32.vlgmr.msra.gmra.mrb[8].mxu0 %v9070_v13  ;;  %v1633_v57 = vld [vmem:[#allocation8 + $0x938] sm:$0xff]  ;;  %v7173_v59 = vpack.c.bf16 %v1614_v49, %v1598_v10  ;;  %v7175_v61 = vpack.c.bf16 %v1647_v56, %v1631_v53  ;;  %v1727_v34 = vld [vmem:[#allocation8 + $0xc28] sm:$0xff] }
 0x30f   :  { %3948 = vmatmul.mubr.f32.vlgmr.msra.gmra.mrb[8].mxu1 %v9070_v13  ;;  %7142 = vmatpush1.bf16.msra.mxu0 %v7141_v3  ;;  %v1502_v3 = vld [vmem:[#allocation8 + $0x520] sm:$0xff]  ;;  %v1743_v37 = vld [vmem:[#allocation8 + $0xca8] sm:$0xff] }
 0x310   :  { %4018 = vmatprep.mubr.f32.mxu0 %v9026_v25  ;;  %7398 = vmatpush1.bf16.msra.mxu1 %v7397_v6  ;;  %v7415_v6 = vpack.c.bf16 %v1521_v63, %v1505_v62  ;;  %v7161_v18 = vpack.c.bf16 %v1518_v4, %v1502_v3  ;;  %v1630_v62 = vld [vmem:[#allocation8 + $0x920] sm:$0xff]  ;;  %v1663_v3 = vld [vmem:[#allocation8 + $0xa28] sm:$0xff]  ;;  %v7187_v44 = vpack.c.bf16 %v1743_v37, %v1727_v34 }
 0x311   :  { %4302 = vmatprep.mubr.f32.mxu1 %v9026_v25  ;;  %7144 = vmatprep.subr.bf16.mxu0 %v7143_v14  ;;  %v1537_v14 = vld [vmem:[#allocation8 + $0x638] sm:$0xff]  ;;  %v1646_v63 = vld [vmem:[#allocation8 + $0x9a0] sm:$0xff]  ;;  %v1679_v4 = vld [vmem:[#allocation8 + $0xaa8] sm:$0xff] }
 0x312   :  { %7400 = vmatprep.subr.bf16.mxu1 %v7399_v21  ;;  %v7163_v21 = vpack.c.bf16 %v1551_v12, %v1535_v11  ;;  %v7177_v7 = vpack.c.bf16 %v1646_v63, %v1630_v62  ;;  %v7179_v12 = vpack.c.bf16 %v1679_v4, %v1663_v3  ;;  %v1759_v10 = vld [vmem:[#allocation8 + $0xd28] sm:$0xff] }
 0x313   :  { %7146 = vmatpush1.bf16.msra.mxu0 %v7145_v24  ;;  %v1536_v24 = vld [vmem:[#allocation8 + $0x630] sm:$0xff]  ;;  %v1775_v49 = vld [vmem:[#allocation8 + $0xda8] sm:$0xff] }
 0x314   :  { %7402 = vmatpush1.bf16.msra.mxu1 %v7401_v8  ;;  %7148 = vmatprep.subr.bf16.mxu0 %v7147_v26  ;;  %v7419_v8 = vpack.c.bf16 %v1553_v17, %v1537_v14  ;;  %v1552_v26 = vld [vmem:[#allocation8 + $0x6b0] sm:$0xff]  ;;  %v1662_v14 = vld [vmem:[#allocation8 + $0xa20] sm:$0xff]  ;;  %v7191_v56 = vpack.c.bf16 %v1775_v49, %v1759_v10  ;;  %v1791_v62 = vld [vmem:[#allocation8 + $0xe28] sm:$0xff] }
 0x315   :  { %7404 = vmatprep.subr.bf16.mxu1 %v7403_v19  ;;  %v1585_v19 = vld [vmem:[#allocation8 + $0x7b8] sm:$0xff]  ;;  %v7421_v32 = vpack.c.bf16 %v1552_v26, %v1536_v24  ;;  %v1678_v17 = vld [vmem:[#allocation8 + $0xaa0] sm:$0xff]  ;;  %v1807_v63 = vld [vmem:[#allocation8 + $0xea8] sm:$0xff] }
 0x316   :  { %v1697_v24 = vld [vmem:[#allocation8 + $0xb38] sm:$0xff]  ;;  %v7181_v26 = vpack.c.bf16 %v1678_v17, %v1662_v14  ;;  %v7195_v4 = vpack.c.bf16 %v1807_v63, %v1791_v62  ;;  %v1823_v14 = vld [vmem:[#allocation8 + $0xf28] sm:$0xff]  ;;  %v1886_v49 = vld [vmem:[#allocation8 + $0x1120] sm:$0xff] }
 0x317   :  { %7150 = vmatpush1.bf16.msra.mxu0 %v7149_v39  ;;  %v1568_v39 = vld [vmem:[#allocation8 + $0x730] sm:$0xff]  ;;  %v1839_v17 = vld [vmem:[#allocation8 + $0xfa8] sm:$0xff] }
 0x318   :  { %7406 = vmatpush1.bf16.msra.mxu1 %v7405_v55  ;;  %7152 = vmatprep.subr.bf16.mxu0 %v7151_v41  ;;  %v7423_v55 = vpack.c.bf16 %v1585_v19, %v1569_v31  ;;  %v1584_v41 = vld [vmem:[#allocation8 + $0x7b0] sm:$0xff]  ;;  %v1694_v31 = vld [vmem:[#allocation8 + $0xb20] sm:$0xff]  ;;  %v7199_v23 = vpack.c.bf16 %v1839_v17, %v1823_v14 }
 0x319   :  { %7408 = vmatprep.subr.bf16.mxu1 %v7407_v2  ;;  %v1617_v2 = vld [vmem:[#allocation8 + $0x8b8] sm:$0xff]  ;;  %v7425_v47 = vpack.c.bf16 %v1584_v41, %v1568_v39  ;;  %v1710_v19 = vld [vmem:[#allocation8 + $0xba0] sm:$0xff] }
 0x31a   :  { %v1729_v39 = vld [vmem:[#allocation8 + $0xc38] sm:$0xff]  ;;  %v7185_v41 = vpack.c.bf16 %v1710_v19, %v1694_v31  ;;  %v1855_v31 = vld [vmem:[#allocation8 + $0x1028] sm:$0xff] }
 0x31b   :  { %7154 = vmatpush1.bf16.msra.mxu0 %v7153_v50  ;;  %v1600_v50 = vld [vmem:[#allocation8 + $0x830] sm:$0xff]  ;;  %v1871_v19 = vld [vmem:[#allocation8 + $0x10a8] sm:$0xff] }
 0x31c   :  { %7410 = vmatpush1.bf16.msra.mxu1 %v7409_v51  ;;  %7156 = vmatprep.subr.bf16.mxu0 %v7155_v52  ;;  %v7427_v51 = vpack.c.bf16 %v1617_v2, %v1601_v45  ;;  %v1616_v52 = vld [vmem:[#allocation8 + $0x8b0] sm:$0xff]  ;;  %v1726_v45 = vld [vmem:[#allocation8 + $0xc20] sm:$0xff]  ;;  %v7203_v37 = vpack.c.bf16 %v1871_v19, %v1855_v31 }
 0x31d   :  { %7412 = vmatprep.subr.bf16.mxu1 %v7411_v58  ;;  %v1649_v58 = vld [vmem:[#allocation8 + $0x9b8] sm:$0xff]  ;;  %v7429_v60 = vpack.c.bf16 %v1616_v52, %v1600_v50  ;;  %v1742_v2 = vld [vmem:[#allocation8 + $0xca0] sm:$0xff] }
 0x31e   :  { %v1761_v50 = vld [vmem:[#allocation8 + $0xd38] sm:$0xff]  ;;  %v7189_v52 = vpack.c.bf16 %v1742_v2, %v1726_v45  ;;  %v1887_v45 = vld [vmem:[#allocation8 + $0x1128] sm:$0xff] }
 0x31f   :  { %7158 = vmatpush1.bf16.msra.mxu0 %v7157_v9  ;;  %v1632_v9 = vld [vmem:[#allocation8 + $0x930] sm:$0xff]  ;;  %v1903_v2 = vld [vmem:[#allocation8 + $0x11a8] sm:$0xff] }
 0x320   :  { %7414 = vmatpush1.bf16.msra.mxu1 %v7413_v0  ;;  %7160 = vmatprep.subr.bf16.mxu0 %v7159_v1  ;;  %v7431_v0 = vpack.c.bf16 %v1649_v58, %v1633_v57  ;;  %v1648_v1 = vld [vmem:[#allocation8 + $0x9b0] sm:$0xff]  ;;  %v1758_v57 = vld [vmem:[#allocation8 + $0xd20] sm:$0xff] }
 0x321   :  { %7416 = vmatprep.subr.bf16.mxu1 %v7415_v6  ;;  %v1681_v6 = vld [vmem:[#allocation8 + $0xab8] sm:$0xff]  ;;  %v7433_v11 = vpack.c.bf16 %v1648_v1, %v1632_v9  ;;  %v1774_v58 = vld [vmem:[#allocation8 + $0xda0] sm:$0xff] }
 0x322   :  { %v1793_v9 = vld [vmem:[#allocation8 + $0xe38] sm:$0xff]  ;;  %v7193_v1 = vpack.c.bf16 %v1774_v58, %v1758_v57  ;;  %v1935_v57 = vld [vmem:[#allocation8 + $0x12a8] sm:$0xff] }
 0x323   :  { %7162 = vmatpush1.bf16.msra.mxu0 %v7161_v18  ;;  %v1664_v18 = vld [vmem:[#allocation8 + $0xa30] sm:$0xff] }
 0x324   :  { %7418 = vmatpush1.bf16.msra.mxu1 %v7417_v20  ;;  %7164 = vmatprep.subr.bf16.mxu0 %v7163_v21  ;;  %v7435_v20 = vpack.c.bf16 %v1681_v6, %v1665_v5  ;;  %v1680_v21 = vld [vmem:[#allocation8 + $0xab0] sm:$0xff]  ;;  %v1790_v5 = vld [vmem:[#allocation8 + $0xe20] sm:$0xff] }
 0x325   :  { %7420 = vmatprep.subr.bf16.mxu1 %v7419_v8  ;;  %v1713_v8 = vld [vmem:[#allocation8 + $0xbb8] sm:$0xff]  ;;  %v7437_v27 = vpack.c.bf16 %v1680_v21, %v1664_v18  ;;  %v1806_v6 = vld [vmem:[#allocation8 + $0xea0] sm:$0xff] }
 0x326   :  { %v1825_v18 = vld [vmem:[#allocation8 + $0xf38] sm:$0xff]  ;;  %v7197_v21 = vpack.c.bf16 %v1806_v6, %v1790_v5  ;;  %v1951_v5 = vld [vmem:[#allocation8 + $0x1328] sm:$0xff] }
 0x327   :  { %7166 = vmatpush1.bf16.msra.mxu0 %v7165_v15  ;;  %v1696_v15 = vld [vmem:[#allocation8 + $0xb30] sm:$0xff]  ;;  %v1967_v6 = vld [vmem:[#allocation8 + $0x13a8] sm:$0xff] }
 0x328   :  { %7422 = vmatpush1.bf16.msra.mxu1 %v7421_v32  ;;  %7168 = vmatprep.subr.bf16.mxu0 %v7167_v33  ;;  %v7439_v32 = vpack.c.bf16 %v1713_v8, %v1697_v24  ;;  %v1712_v33 = vld [vmem:[#allocation8 + $0xbb0] sm:$0xff]  ;;  %v1822_v24 = vld [vmem:[#allocation8 + $0xf20] sm:$0xff]  ;;  %v7215_v17 = vpack.c.bf16 %v1967_v6, %v1951_v5 }
 0x329   :  { %7424 = vmatprep.subr.bf16.mxu1 %v7423_v55  ;;  %v1745_v55 = vld [vmem:[#allocation8 + $0xcb8] sm:$0xff]  ;;  %v7441_v42 = vpack.c.bf16 %v1712_v33, %v1696_v15  ;;  %v1838_v8 = vld [vmem:[#allocation8 + $0xfa0] sm:$0xff] }
 0x32a   :  { %v1857_v15 = vld [vmem:[#allocation8 + $0x1038] sm:$0xff]  ;;  %v7201_v33 = vpack.c.bf16 %v1838_v8, %v1822_v24  ;;  %v1983_v24 = vld [vmem:[#allocation8 + $0x1428] sm:$0xff] }
 0x32b   :  { %7170 = vmatpush1.bf16.msra.mxu0 %v7169_v46  ;;  %v1728_v46 = vld [vmem:[#allocation8 + $0xc30] sm:$0xff]  ;;  %v1999_v8 = vld [vmem:[#allocation8 + $0x14a8] sm:$0xff] }
 0x32c   :  { %7426 = vmatpush1.bf16.msra.mxu1 %v7425_v47  ;;  %7172 = vmatprep.subr.bf16.mxu0 %v7171_v48  ;;  %v7443_v47 = vpack.c.bf16 %v1745_v55, %v1729_v39  ;;  %v1744_v48 = vld [vmem:[#allocation8 + $0xcb0] sm:$0xff]  ;;  %v1854_v39 = vld [vmem:[#allocation8 + $0x1020] sm:$0xff]  ;;  %v7219_v19 = vpack.c.bf16 %v1999_v8, %v1983_v24 }
 0x32d   :  { %7428 = vmatprep.subr.bf16.mxu1 %v7427_v51  ;;  %v1777_v51 = vld [vmem:[#allocation8 + $0xdb8] sm:$0xff]  ;;  %v7445_v53 = vpack.c.bf16 %v1744_v48, %v1728_v46  ;;  %v1870_v55 = vld [vmem:[#allocation8 + $0x10a0] sm:$0xff] }
 0x32e   :  { %v7205_v46 = vpack.c.bf16 %v1870_v55, %v1854_v39  ;;  %v1905_v48 = vld [vmem:[#allocation8 + $0x11b8] sm:$0xff]  ;;  %v2015_v39 = vld [vmem:[#allocation8 + $0x1528] sm:$0xff] }
 0x32f   :  { %7174 = vmatpush1.bf16.msra.mxu0 %v7173_v59  ;;  %v1760_v59 = vld [vmem:[#allocation8 + $0xd30] sm:$0xff]  ;;  %v2031_v55 = vld [vmem:[#allocation8 + $0x15a8] sm:$0xff] }
 0x330   :  { %7430 = vmatpush1.bf16.msra.mxu1 %v7429_v60  ;;  %7176 = vmatprep.subr.bf16.mxu0 %v7175_v61  ;;  %v7447_v60 = vpack.c.bf16 %v1777_v51, %v1761_v50  ;;  %v1776_v61 = vld [vmem:[#allocation8 + $0xdb0] sm:$0xff]  ;;  %v1902_v50 = vld [vmem:[#allocation8 + $0x11a0] sm:$0xff] }
 0x331   :  { %7432 = vmatprep.subr.bf16.mxu1 %v7431_v0  ;;  %v1809_v0 = vld [vmem:[#allocation8 + $0xeb8] sm:$0xff]  ;;  %v7449_v3 = vpack.c.bf16 %v1776_v61, %v1760_v59  ;;  %v1888_v51 = vld [vmem:[#allocation8 + $0x1130] sm:$0xff]  ;;  %v7209_v61 = vpack.c.bf16 %v1902_v50, %v1886_v49  ;;  %v2047_v50 = vld [vmem:[#allocation8 + $0x1628] sm:$0xff] }
 0x332   :  { %v1921_v59 = vld [vmem:[#allocation8 + $0x1238] sm:$0xff]  ;;  %v2032_v49 = vld [vmem:[#allocation8 + $0x15b0] sm:$0xff] }
 0x333   :  { %7178 = vmatpush1.bf16.msra.mxu0 %v7177_v7  ;;  %v1792_v7 = vld [vmem:[#allocation8 + $0xe30] sm:$0xff] }
 0x334   :  { %7434 = vmatpush1.bf16.msra.mxu1 %v7433_v11  ;;  %7180 = vmatprep.subr.bf16.mxu0 %v7179_v12  ;;  %v7451_v11 = vpack.c.bf16 %v1809_v0, %v1793_v9  ;;  %v1808_v12 = vld [vmem:[#allocation8 + $0xeb0] sm:$0xff]  ;;  %v1918_v9 = vld [vmem:[#allocation8 + $0x1220] sm:$0xff] }
 0x335   :  { %7436 = vmatprep.subr.bf16.mxu1 %v7435_v20  ;;  %v1841_v20 = vld [vmem:[#allocation8 + $0xfb8] sm:$0xff]  ;;  %v7453_v22 = vpack.c.bf16 %v1808_v12, %v1792_v7  ;;  %v1934_v0 = vld [vmem:[#allocation8 + $0x12a0] sm:$0xff] }
 0x336   :  { %v1953_v7 = vld [vmem:[#allocation8 + $0x1338] sm:$0xff]  ;;  %v7213_v12 = vpack.c.bf16 %v1934_v0, %v1918_v9  ;;  %v2079_v9 = vld [vmem:[#allocation8 + $0x1728] sm:$0xff] }
 0x337   :  { %7182 = vmatpush1.bf16.msra.mxu0 %v7181_v26  ;;  %v1824_v26 = vld [vmem:[#allocation8 + $0xf30] sm:$0xff]  ;;  %v2095_v0 = vld [vmem:[#allocation8 + $0x17a8] sm:$0xff] }
 0x338   :  { %7438 = vmatpush1.bf16.msra.mxu1 %v7437_v27  ;;  %7184 = vmatprep.subr.bf16.mxu0 %v7183_v28  ;;  %v7455_v27 = vpack.c.bf16 %v1841_v20, %v1825_v18  ;;  %v1840_v28 = vld [vmem:[#allocation8 + $0xfb0] sm:$0xff]  ;;  %v1950_v18 = vld [vmem:[#allocation8 + $0x1320] sm:$0xff]  ;;  %v7231_v6 = vpack.c.bf16 %v2095_v0, %v2079_v9 }
 0x339   :  { %7440 = vmatprep.subr.bf16.mxu1 %v7439_v32  ;;  %v1873_v32 = vld [vmem:[#allocation8 + $0x10b8] sm:$0xff]  ;;  %v7457_v34 = vpack.c.bf16 %v1840_v28, %v1824_v26  ;;  %v1966_v20 = vld [vmem:[#allocation8 + $0x13a0] sm:$0xff] }
 0x33a   :  { %v1985_v26 = vld [vmem:[#allocation8 + $0x1438] sm:$0xff]  ;;  %v7217_v28 = vpack.c.bf16 %v1966_v20, %v1950_v18  ;;  %v2111_v18 = vld [vmem:[#allocation8 + $0x1828] sm:$0xff] }
 0x33b   :  { %7186 = vmatpush1.bf16.msra.mxu0 %v7185_v41  ;;  %v7459_v41 = vpack.c.bf16 %v1873_v32, %v1857_v15  ;;  %v1982_v15 = vld [vmem:[#allocation8 + $0x1420] sm:$0xff]  ;;  %v2127_v20 = vld [vmem:[#allocation8 + $0x18a8] sm:$0xff] }
 0x33c   :  { %7442 = vmatpush1.bf16.msra.mxu1 %v7441_v42  ;;  %7188 = vmatprep.subr.bf16.mxu0 %v7187_v44  ;;  %v1856_v42 = vld [vmem:[#allocation8 + $0x1030] sm:$0xff]  ;;  %v1998_v32 = vld [vmem:[#allocation8 + $0x14a0] sm:$0xff]  ;;  %v7235_v8 = vpack.c.bf16 %v2127_v20, %v2111_v18 }
 0x33d   :  { %7444 = vmatprep.subr.bf16.mxu1 %v7443_v47  ;;  %v1872_v44 = vld [vmem:[#allocation8 + $0x10b0] sm:$0xff]  ;;  %v1889_v47 = vld [vmem:[#allocation8 + $0x1138] sm:$0xff] }
 0x33e   :  { %v7461_v10 = vpack.c.bf16 %v1872_v44, %v1856_v42  ;;  %v7463_v58 = vpack.c.bf16 %v1905_v48, %v1889_v47  ;;  %v2033_v42 = vld [vmem:[#allocation8 + $0x15b8] sm:$0xff]  ;;  %v7221_v44 = vpack.c.bf16 %v1998_v32, %v1982_v15  ;;  %v2030_v47 = vld [vmem:[#allocation8 + $0x15a0] sm:$0xff]  ;;  %v2016_v48 = vld [vmem:[#allocation8 + $0x1530] sm:$0xff] }
 0x33f   :  { %7190 = vmatpush1.bf16.msra.mxu0 %v7189_v52  ;;  %v7207_v52 = vpack.c.bf16 %v1903_v2, %v1887_v45  ;;  %v7223_v2 = vpack.c.bf16 %v2031_v55, %v2015_v39  ;;  %v2143_v15 = vld [vmem:[#allocation8 + $0x1928] sm:$0xff] }
 0x340   :  { %7446 = vmatpush1.bf16.msra.mxu1 %v7445_v53  ;;  %7192 = vmatprep.subr.bf16.mxu0 %v7191_v56  ;;  %v1904_v53 = vld [vmem:[#allocation8 + $0x11b0] sm:$0xff]  ;;  %v1919_v56 = vld [vmem:[#allocation8 + $0x1228] sm:$0xff] }
 0x341   :  { %7448 = vmatprep.subr.bf16.mxu1 %v7447_v60  ;;  %v1937_v60 = vld [vmem:[#allocation8 + $0x12b8] sm:$0xff]  ;;  %v7465_v62 = vpack.c.bf16 %v1904_v53, %v1888_v51  ;;  %v7211_v63 = vpack.c.bf16 %v1935_v57, %v1919_v56  ;;  %v2063_v51 = vld [vmem:[#allocation8 + $0x16a8] sm:$0xff]  ;;  %v7481_v57 = vpack.c.bf16 %v2032_v49, %v2016_v48 }
 0x342   :  { %v2065_v53 = vld [vmem:[#allocation8 + $0x16b8] sm:$0xff]  ;;  %v2159_v32 = vld [vmem:[#allocation8 + $0x19a8] sm:$0xff] }
 0x343   :  { %7194 = vmatpush1.bf16.msra.mxu0 %v7193_v1  ;;  %v1920_v1 = vld [vmem:[#allocation8 + $0x1230] sm:$0xff]  ;;  %v7239_v55 = vpack.c.bf16 %v2159_v32, %v2143_v15  ;;  %v2177_v48 = vld [vmem:[#allocation8 + $0x1a38] sm:$0xff] }
 0x344   :  { %7450 = vmatpush1.bf16.msra.mxu1 %v7449_v3  ;;  %7196 = vmatprep.subr.bf16.mxu0 %v7195_v4  ;;  %v7467_v3 = vpack.c.bf16 %v1937_v60, %v1921_v59  ;;  %v1936_v4 = vld [vmem:[#allocation8 + $0x12b0] sm:$0xff]  ;;  %v2046_v59 = vld [vmem:[#allocation8 + $0x1620] sm:$0xff] }
 0x345   :  { %7452 = vmatprep.subr.bf16.mxu1 %v7451_v11  ;;  %v1969_v11 = vld [vmem:[#allocation8 + $0x13b8] sm:$0xff]  ;;  %v7469_v14 = vpack.c.bf16 %v1936_v4, %v1920_v1  ;;  %v2062_v60 = vld [vmem:[#allocation8 + $0x16a0] sm:$0xff] }
 0x346   :  { %v2081_v1 = vld [vmem:[#allocation8 + $0x1738] sm:$0xff]  ;;  %v7229_v4 = vpack.c.bf16 %v2062_v60, %v2046_v59  ;;  %v2207_v59 = vld [vmem:[#allocation8 + $0x1b28] sm:$0xff] }
 0x347   :  { %7198 = vmatpush1.bf16.msra.mxu0 %v7197_v21  ;;  %v1952_v21 = vld [vmem:[#allocation8 + $0x1330] sm:$0xff]  ;;  %v2223_v60 = vld [vmem:[#allocation8 + $0x1ba8] sm:$0xff] }
 0x348   :  { %7454 = vmatpush1.bf16.msra.mxu1 %v7453_v22  ;;  %7200 = vmatprep.subr.bf16.mxu0 %v7199_v23  ;;  %v7471_v22 = vpack.c.bf16 %v1969_v11, %v1953_v7  ;;  %v1968_v23 = vld [vmem:[#allocation8 + $0x13b0] sm:$0xff]  ;;  %v2078_v7 = vld [vmem:[#allocation8 + $0x1720] sm:$0xff]  ;;  %v7247_v0 = vpack.c.bf16 %v2223_v60, %v2207_v59 }
 0x349   :  { %7456 = vmatprep.subr.bf16.mxu1 %v7455_v27  ;;  %v2001_v27 = vld [vmem:[#allocation8 + $0x14b8] sm:$0xff]  ;;  %v7473_v31 = vpack.c.bf16 %v1968_v23, %v1952_v21  ;;  %v2094_v11 = vld [vmem:[#allocation8 + $0x17a0] sm:$0xff] }
 0x34a   :  { %v2113_v21 = vld [vmem:[#allocation8 + $0x1838] sm:$0xff]  ;;  %v7233_v23 = vpack.c.bf16 %v2094_v11, %v2078_v7  ;;  %v2239_v7 = vld [vmem:[#allocation8 + $0x1c28] sm:$0xff] }
 0x34b   :  { %7202 = vmatpush1.bf16.msra.mxu0 %v7201_v33  ;;  %v1984_v33 = vld [vmem:[#allocation8 + $0x1430] sm:$0xff]  ;;  %v2255_v11 = vld [vmem:[#allocation8 + $0x1ca8] sm:$0xff] }
 0x34c   :  { %7458 = vmatpush1.bf16.msra.mxu1 %v7457_v34  ;;  %7204 = vmatprep.subr.bf16.mxu0 %v7203_v37  ;;  %v7475_v34 = vpack.c.bf16 %v2001_v27, %v1985_v26  ;;  %v2000_v37 = vld [vmem:[#allocation8 + $0x14b0] sm:$0xff]  ;;  %v2110_v26 = vld [vmem:[#allocation8 + $0x1820] sm:$0xff]  ;;  %v7251_v20 = vpack.c.bf16 %v2255_v11, %v2239_v7 }
 0x34d   :  { %7460 = vmatprep.subr.bf16.mxu1 %v7459_v41  ;;  %v2017_v41 = vld [vmem:[#allocation8 + $0x1538] sm:$0xff]  ;;  %v7477_v45 = vpack.c.bf16 %v2000_v37, %v1984_v33  ;;  %v2126_v27 = vld [vmem:[#allocation8 + $0x18a0] sm:$0xff] }
 0x34e   :  { %4019 = vmatmul.mubr.f32.vlgmr.msra.gmra.mrb[10].mxu0 %v9028_v29  ;;  %v2145_v33 = vld [vmem:[#allocation8 + $0x1938] sm:$0xff]  ;;  %v7237_v37 = vpack.c.bf16 %v2126_v27, %v2110_v26  ;;  %v2271_v26 = vld [vmem:[#allocation8 + $0x1d28] sm:$0xff] }
 0x34f   :  { %4303 = vmatmul.mubr.f32.vlgmr.msra.gmra.mrb[10].mxu1 %v9028_v29  ;;  %7206 = vmatpush1.bf16.msra.mxu0 %v7205_v46  ;;  %v2014_v46 = vld [vmem:[#allocation8 + $0x1520] sm:$0xff]  ;;  %v2287_v27 = vld [vmem:[#allocation8 + $0x1da8] sm:$0xff] }
 0x350   :  { %4089 = vmatprep.mubr.f32.mxu0 %v9034_v35  ;;  %7462 = vmatpush1.bf16.msra.mxu1 %v7461_v10  ;;  %v7479_v10 = vpack.c.bf16 %v2033_v42, %v2017_v41  ;;  %v7225_v56 = vpack.c.bf16 %v2030_v47, %v2014_v46  ;;  %v2142_v41 = vld [vmem:[#allocation8 + $0x1920] sm:$0xff]  ;;  %v2175_v46 = vld [vmem:[#allocation8 + $0x1a28] sm:$0xff]  ;;  %v7255_v32 = vpack.c.bf16 %v2287_v27, %v2271_v26 }
 0x351   :  { %4373 = vmatprep.mubr.f32.mxu1 %v9034_v35  ;;  %7208 = vmatprep.subr.bf16.mxu0 %v7207_v52  ;;  %v2049_v52 = vld [vmem:[#allocation8 + $0x1638] sm:$0xff]  ;;  %v2158_v42 = vld [vmem:[#allocation8 + $0x19a0] sm:$0xff]  ;;  %v2191_v47 = vld [vmem:[#allocation8 + $0x1aa8] sm:$0xff] }
 0x352   :  { %7464 = vmatprep.subr.bf16.mxu1 %v7463_v58  ;;  %v7227_v58 = vpack.c.bf16 %v2063_v51, %v2047_v50  ;;  %v7241_v49 = vpack.c.bf16 %v2158_v42, %v2142_v41  ;;  %v7243_v51 = vpack.c.bf16 %v2191_v47, %v2175_v46  ;;  %v2303_v41 = vld [vmem:[#allocation8 + $0x1e28] sm:$0xff]  ;;  %v2398_v27 = vld [vmem:[#allocation8 + $0x2120] sm:$0xff] }
 0x353   :  { %7210 = vmatpush1.bf16.msra.mxu0 %v7209_v61  ;;  %v2048_v61 = vld [vmem:[#allocation8 + $0x1630] sm:$0xff]  ;;  %v2319_v42 = vld [vmem:[#allocation8 + $0x1ea8] sm:$0xff] }
 0x354   :  { %7466 = vmatpush1.bf16.msra.mxu1 %v7465_v62  ;;  %7212 = vmatprep.subr.bf16.mxu0 %v7211_v63  ;;  %v7483_v62 = vpack.c.bf16 %v2065_v53, %v2049_v52  ;;  %v2064_v63 = vld [vmem:[#allocation8 + $0x16b0] sm:$0xff]  ;;  %v2174_v52 = vld [vmem:[#allocation8 + $0x1a20] sm:$0xff]  ;;  %v7259_v47 = vpack.c.bf16 %v2319_v42, %v2303_v41 }
 0x355   :  { %7468 = vmatprep.subr.bf16.mxu1 %v7467_v3  ;;  %v2097_v3 = vld [vmem:[#allocation8 + $0x17b8] sm:$0xff]  ;;  %v7485_v5 = vpack.c.bf16 %v2064_v63, %v2048_v61  ;;  %v2190_v53 = vld [vmem:[#allocation8 + $0x1aa0] sm:$0xff] }
 0x356   :  { %v2209_v61 = vld [vmem:[#allocation8 + $0x1b38] sm:$0xff]  ;;  %v7245_v63 = vpack.c.bf16 %v2190_v53, %v2174_v52  ;;  %v2335_v52 = vld [vmem:[#allocation8 + $0x1f28] sm:$0xff] }
 0x357   :  { %7214 = vmatpush1.bf16.msra.mxu0 %v7213_v12  ;;  %v2080_v12 = vld [vmem:[#allocation8 + $0x1730] sm:$0xff]  ;;  %v2351_v53 = vld [vmem:[#allocation8 + $0x1fa8] sm:$0xff] }
 0x358   :  { %7470 = vmatpush1.bf16.msra.mxu1 %v7469_v14  ;;  %7216 = vmatprep.subr.bf16.mxu0 %v7215_v17  ;;  %v7487_v14 = vpack.c.bf16 %v2097_v3, %v2081_v1  ;;  %v2096_v17 = vld [vmem:[#allocation8 + $0x17b0] sm:$0xff]  ;;  %v2206_v1 = vld [vmem:[#allocation8 + $0x1b20] sm:$0xff]  ;;  %v7263_v60 = vpack.c.bf16 %v2351_v53, %v2335_v52 }
 0x359   :  { %7472 = vmatprep.subr.bf16.mxu1 %v7471_v22  ;;  %v2129_v22 = vld [vmem:[#allocation8 + $0x18b8] sm:$0xff]  ;;  %v7489_v24 = vpack.c.bf16 %v2096_v17, %v2080_v12  ;;  %v2222_v3 = vld [vmem:[#allocation8 + $0x1ba0] sm:$0xff] }
 0x35a   :  { %v2241_v12 = vld [vmem:[#allocation8 + $0x1c38] sm:$0xff]  ;;  %v7249_v17 = vpack.c.bf16 %v2222_v3, %v2206_v1  ;;  %v2367_v1 = vld [vmem:[#allocation8 + $0x2028] sm:$0xff] }
 0x35b   :  { %7218 = vmatpush1.bf16.msra.mxu0 %v7217_v28  ;;  %v2112_v28 = vld [vmem:[#allocation8 + $0x1830] sm:$0xff]  ;;  %v2383_v3 = vld [vmem:[#allocation8 + $0x20a8] sm:$0xff] }
 0x35c   :  { %7474 = vmatpush1.bf16.msra.mxu1 %v7473_v31  ;;  %7220 = vmatprep.subr.bf16.mxu0 %v7219_v19  ;;  %v7491_v31 = vpack.c.bf16 %v2129_v22, %v2113_v21  ;;  %v2128_v19 = vld [vmem:[#allocation8 + $0x18b0] sm:$0xff]  ;;  %v2238_v21 = vld [vmem:[#allocation8 + $0x1c20] sm:$0xff]  ;;  %v7267_v11 = vpack.c.bf16 %v2383_v3, %v2367_v1 }
 0x35d   :  { %7476 = vmatprep.subr.bf16.mxu1 %v7475_v34  ;;  %v2161_v34 = vld [vmem:[#allocation8 + $0x19b8] sm:$0xff]  ;;  %v7493_v39 = vpack.c.bf16 %v2128_v19, %v2112_v28  ;;  %v2254_v22 = vld [vmem:[#allocation8 + $0x1ca0] sm:$0xff] }
 0x35e   :  { %v2273_v28 = vld [vmem:[#allocation8 + $0x1d38] sm:$0xff]  ;;  %v7253_v19 = vpack.c.bf16 %v2254_v22, %v2238_v21  ;;  %v2399_v21 = vld [vmem:[#allocation8 + $0x2128] sm:$0xff] }
 0x35f   :  { %7222 = vmatpush1.bf16.msra.mxu0 %v7221_v44  ;;  %v2144_v44 = vld [vmem:[#allocation8 + $0x1930] sm:$0xff]  ;;  %v2415_v22 = vld [vmem:[#allocation8 + $0x21a8] sm:$0xff] }
 0x360   :  { %7478 = vmatpush1.bf16.msra.mxu1 %v7477_v45  ;;  %7224 = vmatprep.subr.bf16.mxu0 %v7223_v2  ;;  %v7495_v45 = vpack.c.bf16 %v2161_v34, %v2145_v33  ;;  %v2160_v2 = vld [vmem:[#allocation8 + $0x19b0] sm:$0xff]  ;;  %v2270_v33 = vld [vmem:[#allocation8 + $0x1d20] sm:$0xff] }
 0x361   :  { %7480 = vmatprep.subr.bf16.mxu1 %v7479_v10  ;;  %v2193_v10 = vld [vmem:[#allocation8 + $0x1ab8] sm:$0xff]  ;;  %v7497_v50 = vpack.c.bf16 %v2160_v2, %v2144_v44  ;;  %v2286_v34 = vld [vmem:[#allocation8 + $0x1da0] sm:$0xff] }
 0x362   :  { %v2305_v44 = vld [vmem:[#allocation8 + $0x1e38] sm:$0xff]  ;;  %v7257_v2 = vpack.c.bf16 %v2286_v34, %v2270_v33  ;;  %v2447_v33 = vld [vmem:[#allocation8 + $0x22a8] sm:$0xff] }
 0x363   :  { %7226 = vmatpush1.bf16.msra.mxu0 %v7225_v56  ;;  %v2176_v56 = vld [vmem:[#allocation8 + $0x1a30] sm:$0xff] }
 0x364   :  { %7482 = vmatpush1.bf16.msra.mxu1 %v7481_v57  ;;  %7228 = vmatprep.subr.bf16.mxu0 %v7227_v58  ;;  %v7499_v57 = vpack.c.bf16 %v2193_v10, %v2177_v48  ;;  %v2192_v58 = vld [vmem:[#allocation8 + $0x1ab0] sm:$0xff]  ;;  %v2302_v48 = vld [vmem:[#allocation8 + $0x1e20] sm:$0xff] }
 0x365   :  { %7484 = vmatprep.subr.bf16.mxu1 %v7483_v62  ;;  %v2225_v62 = vld [vmem:[#allocation8 + $0x1bb8] sm:$0xff]  ;;  %v7501_v9 = vpack.c.bf16 %v2192_v58, %v2176_v56  ;;  %v2318_v10 = vld [vmem:[#allocation8 + $0x1ea0] sm:$0xff] }
 0x366   :  { %v2337_v56 = vld [vmem:[#allocation8 + $0x1f38] sm:$0xff]  ;;  %v7261_v58 = vpack.c.bf16 %v2318_v10, %v2302_v48  ;;  %v2463_v48 = vld [vmem:[#allocation8 + $0x2328] sm:$0xff] }
 0x367   :  { %7230 = vmatpush1.bf16.msra.mxu0 %v7229_v4  ;;  %v2208_v4 = vld [vmem:[#allocation8 + $0x1b30] sm:$0xff]  ;;  %v2479_v10 = vld [vmem:[#allocation8 + $0x23a8] sm:$0xff] }
 0x368   :  { %7486 = vmatpush1.bf16.msra.mxu1 %v7485_v5  ;;  %7232 = vmatprep.subr.bf16.mxu0 %v7231_v6  ;;  %v7503_v5 = vpack.c.bf16 %v2225_v62, %v2209_v61  ;;  %v2224_v6 = vld [vmem:[#allocation8 + $0x1bb0] sm:$0xff]  ;;  %v2334_v61 = vld [vmem:[#allocation8 + $0x1f20] sm:$0xff]  ;;  %v7279_v53 = vpack.c.bf16 %v2479_v10, %v2463_v48 }
 0x369   :  { %7488 = vmatprep.subr.bf16.mxu1 %v7487_v14  ;;  %v2257_v14 = vld [vmem:[#allocation8 + $0x1cb8] sm:$0xff]  ;;  %v7505_v18 = vpack.c.bf16 %v2224_v6, %v2208_v4  ;;  %v2350_v62 = vld [vmem:[#allocation8 + $0x1fa0] sm:$0xff] }
 0x36a   :  { %v2369_v4 = vld [vmem:[#allocation8 + $0x2038] sm:$0xff]  ;;  %v7265_v6 = vpack.c.bf16 %v2350_v62, %v2334_v61  ;;  %v2495_v61 = vld [vmem:[#allocation8 + $0x2428] sm:$0xff] }
 0x36b   :  { %7234 = vmatpush1.bf16.msra.mxu0 %v7233_v23  ;;  %v2240_v23 = vld [vmem:[#allocation8 + $0x1c30] sm:$0xff]  ;;  %v2511_v62 = vld [vmem:[#allocation8 + $0x24a8] sm:$0xff] }
 0x36c   :  { %7490 = vmatpush1.bf16.msra.mxu1 %v7489_v24  ;;  %7236 = vmatprep.subr.bf16.mxu0 %v7235_v8  ;;  %v7507_v24 = vpack.c.bf16 %v2257_v14, %v2241_v12  ;;  %v2256_v8 = vld [vmem:[#allocation8 + $0x1cb0] sm:$0xff]  ;;  %v2366_v12 = vld [vmem:[#allocation8 + $0x2020] sm:$0xff]  ;;  %v7283_v3 = vpack.c.bf16 %v2511_v62, %v2495_v61 }
 0x36d   :  { %7492 = vmatprep.subr.bf16.mxu1 %v7491_v31  ;;  %v2289_v31 = vld [vmem:[#allocation8 + $0x1db8] sm:$0xff]  ;;  %v7509_v15 = vpack.c.bf16 %v2256_v8, %v2240_v23  ;;  %v2382_v14 = vld [vmem:[#allocation8 + $0x20a0] sm:$0xff] }
 0x36e   :  { %v7269_v23 = vpack.c.bf16 %v2382_v14, %v2366_v12  ;;  %v2417_v8 = vld [vmem:[#allocation8 + $0x21b8] sm:$0xff]  ;;  %v2527_v12 = vld [vmem:[#allocation8 + $0x2528] sm:$0xff] }
 0x36f   :  { %7238 = vmatpush1.bf16.msra.mxu0 %v7237_v37  ;;  %v2272_v37 = vld [vmem:[#allocation8 + $0x1d30] sm:$0xff]  ;;  %v2543_v14 = vld [vmem:[#allocation8 + $0x25a8] sm:$0xff] }
 0x370   :  { %7494 = vmatpush1.bf16.msra.mxu1 %v7493_v39  ;;  %7240 = vmatprep.subr.bf16.mxu0 %v7239_v55  ;;  %v7511_v39 = vpack.c.bf16 %v2289_v31, %v2273_v28  ;;  %v2288_v55 = vld [vmem:[#allocation8 + $0x1db0] sm:$0xff]  ;;  %v2414_v28 = vld [vmem:[#allocation8 + $0x21a0] sm:$0xff] }
 0x371   :  { %7496 = vmatprep.subr.bf16.mxu1 %v7495_v45  ;;  %v2321_v45 = vld [vmem:[#allocation8 + $0x1eb8] sm:$0xff]  ;;  %v7513_v46 = vpack.c.bf16 %v2288_v55, %v2272_v37  ;;  %v2400_v31 = vld [vmem:[#allocation8 + $0x2130] sm:$0xff]  ;;  %v7273_v55 = vpack.c.bf16 %v2414_v28, %v2398_v27  ;;  %v2559_v28 = vld [vmem:[#allocation8 + $0x2628] sm:$0xff] }
 0x372   :  { %v2433_v37 = vld [vmem:[#allocation8 + $0x2238] sm:$0xff]  ;;  %v2544_v27 = vld [vmem:[#allocation8 + $0x25b0] sm:$0xff] }
 0x373   :  { %7242 = vmatpush1.bf16.msra.mxu0 %v7241_v49  ;;  %v2304_v49 = vld [vmem:[#allocation8 + $0x1e30] sm:$0xff] }
 0x374   :  { %7498 = vmatpush1.bf16.msra.mxu1 %v7497_v50  ;;  %7244 = vmatprep.subr.bf16.mxu0 %v7243_v51  ;;  %v7515_v50 = vpack.c.bf16 %v2321_v45, %v2305_v44  ;;  %v2320_v51 = vld [vmem:[#allocation8 + $0x1eb0] sm:$0xff]  ;;  %v2430_v44 = vld [vmem:[#allocation8 + $0x2220] sm:$0xff] }
 0x375   :  { %7500 = vmatprep.subr.bf16.mxu1 %v7499_v57  ;;  %v2353_v57 = vld [vmem:[#allocation8 + $0x1fb8] sm:$0xff]  ;;  %v7517_v59 = vpack.c.bf16 %v2320_v51, %v2304_v49  ;;  %v2446_v45 = vld [vmem:[#allocation8 + $0x22a0] sm:$0xff] }
 0x376   :  { %v2465_v49 = vld [vmem:[#allocation8 + $0x2338] sm:$0xff]  ;;  %v7277_v51 = vpack.c.bf16 %v2446_v45, %v2430_v44  ;;  %v2591_v44 = vld [vmem:[#allocation8 + $0x2728] sm:$0xff] }
 0x377   :  { %7246 = vmatpush1.bf16.msra.mxu0 %v7245_v63  ;;  %v2336_v63 = vld [vmem:[#allocation8 + $0x1f30] sm:$0xff]  ;;  %v2607_v45 = vld [vmem:[#allocation8 + $0x27a8] sm:$0xff] }
 0x378   :  { %7502 = vmatpush1.bf16.msra.mxu1 %v7501_v9  ;;  %7248 = vmatprep.subr.bf16.mxu0 %v7247_v0  ;;  %v7519_v9 = vpack.c.bf16 %v2353_v57, %v2337_v56  ;;  %v2352_v0 = vld [vmem:[#allocation8 + $0x1fb0] sm:$0xff]  ;;  %v2462_v56 = vld [vmem:[#allocation8 + $0x2320] sm:$0xff]  ;;  %v7295_v10 = vpack.c.bf16 %v2607_v45, %v2591_v44 }
 0x379   :  { %7504 = vmatprep.subr.bf16.mxu1 %v7503_v5  ;;  %v2385_v5 = vld [vmem:[#allocation8 + $0x20b8] sm:$0xff]  ;;  %v7521_v7 = vpack.c.bf16 %v2352_v0, %v2336_v63  ;;  %v2478_v57 = vld [vmem:[#allocation8 + $0x23a0] sm:$0xff] }
 0x37a   :  { %v2497_v63 = vld [vmem:[#allocation8 + $0x2438] sm:$0xff]  ;;  %v7281_v0 = vpack.c.bf16 %v2478_v57, %v2462_v56  ;;  %v2623_v56 = vld [vmem:[#allocation8 + $0x2828] sm:$0xff] }
 0x37b   :  { %7250 = vmatpush1.bf16.msra.mxu0 %v7249_v17  ;;  %v7523_v17 = vpack.c.bf16 %v2385_v5, %v2369_v4  ;;  %v2494_v4 = vld [vmem:[#allocation8 + $0x2420] sm:$0xff]  ;;  %v2639_v57 = vld [vmem:[#allocation8 + $0x28a8] sm:$0xff] }
 0x37c   :  { %7506 = vmatpush1.bf16.msra.mxu1 %v7505_v18  ;;  %7252 = vmatprep.subr.bf16.mxu0 %v7251_v20  ;;  %v2368_v18 = vld [vmem:[#allocation8 + $0x2030] sm:$0xff]  ;;  %v2510_v5 = vld [vmem:[#allocation8 + $0x24a0] sm:$0xff]  ;;  %v7299_v62 = vpack.c.bf16 %v2639_v57, %v2623_v56 }
 0x37d   :  { %7508 = vmatprep.subr.bf16.mxu1 %v7507_v24  ;;  %v2384_v20 = vld [vmem:[#allocation8 + $0x20b0] sm:$0xff]  ;;  %v2401_v24 = vld [vmem:[#allocation8 + $0x2138] sm:$0xff] }
 0x37e   :  { %v7525_v26 = vpack.c.bf16 %v2384_v20, %v2368_v18  ;;  %v7527_v34 = vpack.c.bf16 %v2417_v8, %v2401_v24  ;;  %v2545_v18 = vld [vmem:[#allocation8 + $0x25b8] sm:$0xff]  ;;  %v7285_v20 = vpack.c.bf16 %v2510_v5, %v2494_v4  ;;  %v2542_v24 = vld [vmem:[#allocation8 + $0x25a0] sm:$0xff]  ;;  %v2528_v8 = vld [vmem:[#allocation8 + $0x2530] sm:$0xff] }
 0x37f   :  { %7254 = vmatpush1.bf16.msra.mxu0 %v7253_v19  ;;  %v7271_v19 = vpack.c.bf16 %v2415_v22, %v2399_v21  ;;  %v7287_v22 = vpack.c.bf16 %v2543_v14, %v2527_v12  ;;  %v2655_v4 = vld [vmem:[#allocation8 + $0x2928] sm:$0xff] }
 0x380   :  { %7510 = vmatpush1.bf16.msra.mxu1 %v7509_v15  ;;  %7256 = vmatprep.subr.bf16.mxu0 %v7255_v32  ;;  %v2416_v15 = vld [vmem:[#allocation8 + $0x21b0] sm:$0xff]  ;;  %v2431_v32 = vld [vmem:[#allocation8 + $0x2228] sm:$0xff] }
 0x381   :  { %7512 = vmatprep.subr.bf16.mxu1 %v7511_v39  ;;  %v2449_v39 = vld [vmem:[#allocation8 + $0x22b8] sm:$0xff]  ;;  %v7529_v41 = vpack.c.bf16 %v2416_v15, %v2400_v31  ;;  %v7275_v42 = vpack.c.bf16 %v2447_v33, %v2431_v32  ;;  %v2575_v31 = vld [vmem:[#allocation8 + $0x26a8] sm:$0xff]  ;;  %v7545_v33 = vpack.c.bf16 %v2544_v27, %v2528_v8 }
 0x382   :  { %v2577_v15 = vld [vmem:[#allocation8 + $0x26b8] sm:$0xff]  ;;  %v2671_v5 = vld [vmem:[#allocation8 + $0x29a8] sm:$0xff] }
 0x383   :  { %7258 = vmatpush1.bf16.msra.mxu0 %v7257_v2  ;;  %v2432_v2 = vld [vmem:[#allocation8 + $0x2230] sm:$0xff]  ;;  %v7303_v14 = vpack.c.bf16 %v2671_v5, %v2655_v4  ;;  %v2689_v8 = vld [vmem:[#allocation8 + $0x2a38] sm:$0xff] }
 0x384   :  { %7514 = vmatpush1.bf16.msra.mxu1 %v7513_v46  ;;  %7260 = vmatprep.subr.bf16.mxu0 %v7259_v47  ;;  %v7531_v46 = vpack.c.bf16 %v2449_v39, %v2433_v37  ;;  %v2448_v47 = vld [vmem:[#allocation8 + $0x22b0] sm:$0xff]  ;;  %v2558_v37 = vld [vmem:[#allocation8 + $0x2620] sm:$0xff] }
 0x385   :  { %7516 = vmatprep.subr.bf16.mxu1 %v7515_v50  ;;  %v2481_v50 = vld [vmem:[#allocation8 + $0x23b8] sm:$0xff]  ;;  %v7533_v52 = vpack.c.bf16 %v2448_v47, %v2432_v2  ;;  %v2574_v39 = vld [vmem:[#allocation8 + $0x26a0] sm:$0xff] }
 0x386   :  { %v2593_v2 = vld [vmem:[#allocation8 + $0x2738] sm:$0xff]  ;;  %v7293_v47 = vpack.c.bf16 %v2574_v39, %v2558_v37  ;;  %v2719_v37 = vld [vmem:[#allocation8 + $0x2b28] sm:$0xff] }
 0x387   :  { %7262 = vmatpush1.bf16.msra.mxu0 %v7261_v58  ;;  %v2464_v58 = vld [vmem:[#allocation8 + $0x2330] sm:$0xff]  ;;  %v2735_v39 = vld [vmem:[#allocation8 + $0x2ba8] sm:$0xff] }
 0x388   :  { %7518 = vmatpush1.bf16.msra.mxu1 %v7517_v59  ;;  %7264 = vmatprep.subr.bf16.mxu0 %v7263_v60  ;;  %v7535_v59 = vpack.c.bf16 %v2481_v50, %v2465_v49  ;;  %v2480_v60 = vld [vmem:[#allocation8 + $0x23b0] sm:$0xff]  ;;  %v2590_v49 = vld [vmem:[#allocation8 + $0x2720] sm:$0xff]  ;;  %v7311_v45 = vpack.c.bf16 %v2735_v39, %v2719_v37 }
 0x389   :  { %7520 = vmatprep.subr.bf16.mxu1 %v7519_v9  ;;  %v2513_v9 = vld [vmem:[#allocation8 + $0x24b8] sm:$0xff]  ;;  %v7537_v1 = vpack.c.bf16 %v2480_v60, %v2464_v58  ;;  %v2606_v50 = vld [vmem:[#allocation8 + $0x27a0] sm:$0xff] }
 0x38a   :  { %v2625_v58 = vld [vmem:[#allocation8 + $0x2838] sm:$0xff]  ;;  %v7297_v60 = vpack.c.bf16 %v2606_v50, %v2590_v49  ;;  %v2751_v49 = vld [vmem:[#allocation8 + $0x2c28] sm:$0xff] }
 0x38b   :  { %7266 = vmatpush1.bf16.msra.mxu0 %v7265_v6  ;;  %v2496_v6 = vld [vmem:[#allocation8 + $0x2430] sm:$0xff]  ;;  %v2767_v50 = vld [vmem:[#allocation8 + $0x2ca8] sm:$0xff] }
 0x38c   :  { %7522 = vmatpush1.bf16.msra.mxu1 %v7521_v7  ;;  %7268 = vmatprep.subr.bf16.mxu0 %v7267_v11  ;;  %v7539_v7 = vpack.c.bf16 %v2513_v9, %v2497_v63  ;;  %v2512_v11 = vld [vmem:[#allocation8 + $0x24b0] sm:$0xff]  ;;  %v2622_v63 = vld [vmem:[#allocation8 + $0x2820] sm:$0xff]  ;;  %v7315_v57 = vpack.c.bf16 %v2767_v50, %v2751_v49 }
 0x38d   :  { %7524 = vmatprep.subr.bf16.mxu1 %v7523_v17  ;;  %v2529_v17 = vld [vmem:[#allocation8 + $0x2538] sm:$0xff]  ;;  %v7541_v21 = vpack.c.bf16 %v2512_v11, %v2496_v6  ;;  %v2638_v9 = vld [vmem:[#allocation8 + $0x28a0] sm:$0xff] }
 0x38e   :  { %4090 = vmatmul.mubr.f32.vlgmr.msra.gmra.mrb[10].mxu0 %v9040_v54  ;;  %v2657_v6 = vld [vmem:[#allocation8 + $0x2938] sm:$0xff]  ;;  %v7301_v11 = vpack.c.bf16 %v2638_v9, %v2622_v63  ;;  %v2783_v63 = vld [vmem:[#allocation8 + $0x2d28] sm:$0xff] }
 0x38f   :  { %4374 = vmatmul.mubr.f32.vlgmr.msra.gmra.mrb[10].mxu1 %v9040_v54  ;;  %7270 = vmatpush1.bf16.msra.mxu0 %v7269_v23  ;;  %v2526_v23 = vld [vmem:[#allocation8 + $0x2520] sm:$0xff]  ;;  %v2799_v9 = vld [vmem:[#allocation8 + $0x2da8] sm:$0xff] }
 0x390   :  { %4160 = vmatprep.mubr.f32.mxu0 %v9051_v30  ;;  %7526 = vmatpush1.bf16.msra.mxu1 %v7525_v26  ;;  %v7543_v26 = vpack.c.bf16 %v2545_v18, %v2529_v17  ;;  %v7289_v32 = vpack.c.bf16 %v2542_v24, %v2526_v23  ;;  %v2654_v17 = vld [vmem:[#allocation8 + $0x2920] sm:$0xff]  ;;  %v2687_v23 = vld [vmem:[#allocation8 + $0x2a28] sm:$0xff]  ;;  %v7319_v5 = vpack.c.bf16 %v2799_v9, %v2783_v63 }
 0x391   :  { %4444 = vmatprep.mubr.f32.mxu1 %v9051_v30  ;;  %7272 = vmatprep.subr.bf16.mxu0 %v7271_v19  ;;  %v2561_v19 = vld [vmem:[#allocation8 + $0x2638] sm:$0xff]  ;;  %v2670_v18 = vld [vmem:[#allocation8 + $0x29a0] sm:$0xff]  ;;  %v2703_v24 = vld [vmem:[#allocation8 + $0x2aa8] sm:$0xff] }
 0x392   :  { %7528 = vmatprep.subr.bf16.mxu1 %v7527_v34  ;;  %v7291_v34 = vpack.c.bf16 %v2575_v31, %v2559_v28  ;;  %v7305_v27 = vpack.c.bf16 %v2670_v18, %v2654_v17  ;;  %v7307_v31 = vpack.c.bf16 %v2703_v24, %v2687_v23  ;;  %v2815_v17 = vld [vmem:[#allocation8 + $0x2e28] sm:$0xff]  ;;  %v2910_v9 = vld [vmem:[#allocation8 + $0x3120] sm:$0xff] }
 0x393   :  { %7274 = vmatpush1.bf16.msra.mxu0 %v7273_v55  ;;  %v2560_v55 = vld [vmem:[#allocation8 + $0x2630] sm:$0xff]  ;;  %v2831_v18 = vld [vmem:[#allocation8 + $0x2ea8] sm:$0xff] }
 0x394   :  { %7530 = vmatpush1.bf16.msra.mxu1 %v7529_v41  ;;  %7276 = vmatprep.subr.bf16.mxu0 %v7275_v42  ;;  %v7547_v41 = vpack.c.bf16 %v2577_v15, %v2561_v19  ;;  %v2576_v42 = vld [vmem:[#allocation8 + $0x26b0] sm:$0xff]  ;;  %v2686_v19 = vld [vmem:[#allocation8 + $0x2a20] sm:$0xff]  ;;  %v7323_v24 = vpack.c.bf16 %v2831_v18, %v2815_v17 }
 0x395   :  { %7532 = vmatprep.subr.bf16.mxu1 %v7531_v46  ;;  %v2609_v46 = vld [vmem:[#allocation8 + $0x27b8] sm:$0xff]  ;;  %v7549_v48 = vpack.c.bf16 %v2576_v42, %v2560_v55  ;;  %v2702_v15 = vld [vmem:[#allocation8 + $0x2aa0] sm:$0xff] }
 0x396   :  { %v2721_v55 = vld [vmem:[#allocation8 + $0x2b38] sm:$0xff]  ;;  %v7309_v42 = vpack.c.bf16 %v2702_v15, %v2686_v19  ;;  %v2847_v19 = vld [vmem:[#allocation8 + $0x2f28] sm:$0xff] }
 0x397   :  { %7278 = vmatpush1.bf16.msra.mxu0 %v7277_v51  ;;  %v2592_v51 = vld [vmem:[#allocation8 + $0x2730] sm:$0xff]  ;;  %v2863_v15 = vld [vmem:[#allocation8 + $0x2fa8] sm:$0xff] }
 0x398   :  { %7534 = vmatpush1.bf16.msra.mxu1 %v7533_v52  ;;  %7280 = vmatprep.subr.bf16.mxu0 %v7279_v53  ;;  %v7551_v52 = vpack.c.bf16 %v2609_v46, %v2593_v2  ;;  %v2608_v53 = vld [vmem:[#allocation8 + $0x27b0] sm:$0xff]  ;;  %v2718_v2 = vld [vmem:[#allocation8 + $0x2b20] sm:$0xff]  ;;  %v7327_v39 = vpack.c.bf16 %v2863_v15, %v2847_v19 }
 0x399   :  { %7536 = vmatprep.subr.bf16.mxu1 %v7535_v59  ;;  %v2641_v59 = vld [vmem:[#allocation8 + $0x28b8] sm:$0xff]  ;;  %v7553_v61 = vpack.c.bf16 %v2608_v53, %v2592_v51  ;;  %v2734_v46 = vld [vmem:[#allocation8 + $0x2ba0] sm:$0xff] }
 0x39a   :  { %v2753_v51 = vld [vmem:[#allocation8 + $0x2c38] sm:$0xff]  ;;  %v7313_v53 = vpack.c.bf16 %v2734_v46, %v2718_v2  ;;  %v2879_v2 = vld [vmem:[#allocation8 + $0x3028] sm:$0xff] }
 0x39b   :  { %7282 = vmatpush1.bf16.msra.mxu0 %v7281_v0  ;;  %v2624_v0 = vld [vmem:[#allocation8 + $0x2830] sm:$0xff]  ;;  %v2895_v46 = vld [vmem:[#allocation8 + $0x30a8] sm:$0xff] }
 0x39c   :  { %7538 = vmatpush1.bf16.msra.mxu1 %v7537_v1  ;;  %7284 = vmatprep.subr.bf16.mxu0 %v7283_v3  ;;  %v7555_v1 = vpack.c.bf16 %v2641_v59, %v2625_v58  ;;  %v2640_v3 = vld [vmem:[#allocation8 + $0x28b0] sm:$0xff]  ;;  %v2750_v58 = vld [vmem:[#allocation8 + $0x2c20] sm:$0xff]  ;;  %v7331_v50 = vpack.c.bf16 %v2895_v46, %v2879_v2 }
 0x39d   :  { %7540 = vmatprep.subr.bf16.mxu1 %v7539_v7  ;;  %v2673_v7 = vld [vmem:[#allocation8 + $0x29b8] sm:$0xff]  ;;  %v7557_v12 = vpack.c.bf16 %v2640_v3, %v2624_v0  ;;  %v2766_v59 = vld [vmem:[#allocation8 + $0x2ca0] sm:$0xff] }
 0x39e   :  { %v2785_v0 = vld [vmem:[#allocation8 + $0x2d38] sm:$0xff]  ;;  %v7317_v3 = vpack.c.bf16 %v2766_v59, %v2750_v58  ;;  %v2911_v58 = vld [vmem:[#allocation8 + $0x3128] sm:$0xff] }
 0x39f   :  { %7286 = vmatpush1.bf16.msra.mxu0 %v7285_v20  ;;  %v2656_v20 = vld [vmem:[#allocation8 + $0x2930] sm:$0xff]  ;;  %v2927_v59 = vld [vmem:[#allocation8 + $0x31a8] sm:$0xff] }
 0x3a0   :  { %7542 = vmatpush1.bf16.msra.mxu1 %v7541_v21  ;;  %7288 = vmatprep.subr.bf16.mxu0 %v7287_v22  ;;  %v7559_v21 = vpack.c.bf16 %v2673_v7, %v2657_v6  ;;  %v2672_v22 = vld [vmem:[#allocation8 + $0x29b0] sm:$0xff]  ;;  %v2782_v6 = vld [vmem:[#allocation8 + $0x2d20] sm:$0xff] }
 0x3a1   :  { %7544 = vmatprep.subr.bf16.mxu1 %v7543_v26  ;;  %v2705_v26 = vld [vmem:[#allocation8 + $0x2ab8] sm:$0xff]  ;;  %v7561_v28 = vpack.c.bf16 %v2672_v22, %v2656_v20  ;;  %v2798_v7 = vld [vmem:[#allocation8 + $0x2da0] sm:$0xff] }
 0x3a2   :  { %v2817_v20 = vld [vmem:[#allocation8 + $0x2e38] sm:$0xff]  ;;  %v7321_v22 = vpack.c.bf16 %v2798_v7, %v2782_v6  ;;  %v2959_v6 = vld [vmem:[#allocation8 + $0x32a8] sm:$0xff] }
 0x3a3   :  { %7290 = vmatpush1.bf16.msra.mxu0 %v7289_v32  ;;  %v2688_v32 = vld [vmem:[#allocation8 + $0x2a30] sm:$0xff] }
 0x3a4   :  { %7546 = vmatpush1.bf16.msra.mxu1 %v7545_v33  ;;  %7292 = vmatprep.subr.bf16.mxu0 %v7291_v34  ;;  %v7563_v33 = vpack.c.bf16 %v2705_v26, %v2689_v8  ;;  %v2704_v34 = vld [vmem:[#allocation8 + $0x2ab0] sm:$0xff]  ;;  %v2814_v8 = vld [vmem:[#allocation8 + $0x2e20] sm:$0xff] }
 0x3a5   :  { %7548 = vmatprep.subr.bf16.mxu1 %v7547_v41  ;;  %v2737_v41 = vld [vmem:[#allocation8 + $0x2bb8] sm:$0xff]  ;;  %v7565_v44 = vpack.c.bf16 %v2704_v34, %v2688_v32  ;;  %v2830_v26 = vld [vmem:[#allocation8 + $0x2ea0] sm:$0xff] }
 0x3a6   :  { %v2849_v32 = vld [vmem:[#allocation8 + $0x2f38] sm:$0xff]  ;;  %v7325_v34 = vpack.c.bf16 %v2830_v26, %v2814_v8  ;;  %v2975_v8 = vld [vmem:[#allocation8 + $0x3328] sm:$0xff] }
 0x3a7   :  { %7294 = vmatpush1.bf16.msra.mxu0 %v7293_v47  ;;  %v2720_v47 = vld [vmem:[#allocation8 + $0x2b30] sm:$0xff]  ;;  %v2991_v26 = vld [vmem:[#allocation8 + $0x33a8] sm:$0xff] }
 0x3a8   :  { %7550 = vmatpush1.bf16.msra.mxu1 %v7549_v48  ;;  %7296 = vmatprep.subr.bf16.mxu0 %v7295_v10  ;;  %v7567_v48 = vpack.c.bf16 %v2737_v41, %v2721_v55  ;;  %v2736_v10 = vld [vmem:[#allocation8 + $0x2bb0] sm:$0xff]  ;;  %v2846_v55 = vld [vmem:[#allocation8 + $0x2f20] sm:$0xff]  ;;  %v7343_v15 = vpack.c.bf16 %v2991_v26, %v2975_v8  ;;  %v3105_v8 = vld [vmem:[#allocation8 + $0x3738] sm:$0xff] }
 0x3a9   :  { %7552 = vmatprep.subr.bf16.mxu1 %v7551_v52  ;;  %v2769_v52 = vld [vmem:[#allocation8 + $0x2cb8] sm:$0xff]  ;;  %v7569_v56 = vpack.c.bf16 %v2736_v10, %v2720_v47  ;;  %v2862_v41 = vld [vmem:[#allocation8 + $0x2fa0] sm:$0xff] }
 0x3aa   :  { %v2881_v47 = vld [vmem:[#allocation8 + $0x3038] sm:$0xff]  ;;  %v7329_v10 = vpack.c.bf16 %v2862_v41, %v2846_v55  ;;  %v3007_v55 = vld [vmem:[#allocation8 + $0x3428] sm:$0xff] }
 0x3ab   :  { %7298 = vmatpush1.bf16.msra.mxu0 %v7297_v60  ;;  %v2752_v60 = vld [vmem:[#allocation8 + $0x2c30] sm:$0xff]  ;;  %v3023_v41 = vld [vmem:[#allocation8 + $0x34a8] sm:$0xff]  ;;  %v3121_v26 = vld [vmem:[#allocation8 + $0x37b8] sm:$0xff] }
 0x3ac   :  { %7554 = vmatpush1.bf16.msra.mxu1 %v7553_v61  ;;  %7300 = vmatprep.subr.bf16.mxu0 %v7299_v62  ;;  %v7571_v61 = vpack.c.bf16 %v2769_v52, %v2753_v51  ;;  %v2768_v62 = vld [vmem:[#allocation8 + $0x2cb0] sm:$0xff]  ;;  %v2878_v51 = vld [vmem:[#allocation8 + $0x3020] sm:$0xff]  ;;  %v7347_v46 = vpack.c.bf16 %v3023_v41, %v3007_v55  ;;  %v3151_v55 = vld [vmem:[#allocation8 + $0x38a8] sm:$0xff] }
 0x3ad   :  { %7556 = vmatprep.subr.bf16.mxu1 %v7555_v1  ;;  %v2801_v1 = vld [vmem:[#allocation8 + $0x2db8] sm:$0xff]  ;;  %v7573_v4 = vpack.c.bf16 %v2768_v62, %v2752_v60  ;;  %v2894_v52 = vld [vmem:[#allocation8 + $0x30a0] sm:$0xff] }
 0x3ae   :  { %v7333_v60 = vpack.c.bf16 %v2894_v52, %v2878_v51  ;;  %v2929_v62 = vld [vmem:[#allocation8 + $0x31b8] sm:$0xff]  ;;  %v3039_v51 = vld [vmem:[#allocation8 + $0x3528] sm:$0xff] }
 0x3af   :  { %7302 = vmatpush1.bf16.msra.mxu0 %v7301_v11  ;;  %v2784_v11 = vld [vmem:[#allocation8 + $0x2d30] sm:$0xff]  ;;  %v3055_v52 = vld [vmem:[#allocation8 + $0x35a8] sm:$0xff]  ;;  %v3137_v41 = vld [vmem:[#allocation8 + $0x3838] sm:$0xff] }
 0x3b0   :  { %7558 = vmatpush1.bf16.msra.mxu1 %v7557_v12  ;;  %7304 = vmatprep.subr.bf16.mxu0 %v7303_v14  ;;  %v7575_v12 = vpack.c.bf16 %v2801_v1, %v2785_v0  ;;  %v2800_v14 = vld [vmem:[#allocation8 + $0x2db0] sm:$0xff]  ;;  %v2926_v0 = vld [vmem:[#allocation8 + $0x31a0] sm:$0xff] }
 0x3b1   :  { %7560 = vmatprep.subr.bf16.mxu1 %v7559_v21  ;;  %v2833_v21 = vld [vmem:[#allocation8 + $0x2eb8] sm:$0xff]  ;;  %v7577_v23 = vpack.c.bf16 %v2800_v14, %v2784_v11  ;;  %v2912_v1 = vld [vmem:[#allocation8 + $0x3130] sm:$0xff]  ;;  %v7337_v14 = vpack.c.bf16 %v2926_v0, %v2910_v9  ;;  %v3071_v0 = vld [vmem:[#allocation8 + $0x3628] sm:$0xff] }
 0x3b2   :  { %v2945_v11 = vld [vmem:[#allocation8 + $0x3238] sm:$0xff]  ;;  %v3056_v9 = vld [vmem:[#allocation8 + $0x35b0] sm:$0xff] }
 0x3b3   :  { %7306 = vmatpush1.bf16.msra.mxu0 %v7305_v27  ;;  %v2816_v27 = vld [vmem:[#allocation8 + $0x2e30] sm:$0xff] }
 0x3b4   :  { %7562 = vmatpush1.bf16.msra.mxu1 %v7561_v28  ;;  %7308 = vmatprep.subr.bf16.mxu0 %v7307_v31  ;;  %v7579_v28 = vpack.c.bf16 %v2833_v21, %v2817_v20  ;;  %v2832_v31 = vld [vmem:[#allocation8 + $0x2eb0] sm:$0xff]  ;;  %v2942_v20 = vld [vmem:[#allocation8 + $0x3220] sm:$0xff] }
 0x3b5   :  { %7564 = vmatprep.subr.bf16.mxu1 %v7563_v33  ;;  %v2865_v33 = vld [vmem:[#allocation8 + $0x2fb8] sm:$0xff]  ;;  %v7581_v37 = vpack.c.bf16 %v2832_v31, %v2816_v27  ;;  %v2958_v21 = vld [vmem:[#allocation8 + $0x32a0] sm:$0xff] }
 0x3b6   :  { %v2977_v27 = vld [vmem:[#allocation8 + $0x3338] sm:$0xff]  ;;  %v7341_v31 = vpack.c.bf16 %v2958_v21, %v2942_v20  ;;  %v3088_v20 = vld [vmem:[#allocation8 + $0x36b0] sm:$0xff]  ;;  %v3103_v21 = vld [vmem:[#allocation8 + $0x3728] sm:$0xff] }
 0x3b7   :  { %7310 = vmatpush1.bf16.msra.mxu0 %v7309_v42  ;;  %v2848_v42 = vld [vmem:[#allocation8 + $0x2f30] sm:$0xff] }
 0x3b8   :  { %7566 = vmatpush1.bf16.msra.mxu1 %v7565_v44  ;;  %7312 = vmatprep.subr.bf16.mxu0 %v7311_v45  ;;  %v7583_v44 = vpack.c.bf16 %v2865_v33, %v2849_v32  ;;  %v2864_v45 = vld [vmem:[#allocation8 + $0x2fb0] sm:$0xff]  ;;  %v2974_v32 = vld [vmem:[#allocation8 + $0x3320] sm:$0xff] }
 0x3b9   :  { %7568 = vmatprep.subr.bf16.mxu1 %v7567_v48  ;;  %v2897_v48 = vld [vmem:[#allocation8 + $0x30b8] sm:$0xff]  ;;  %v7585_v49 = vpack.c.bf16 %v2864_v45, %v2848_v42  ;;  %v2990_v33 = vld [vmem:[#allocation8 + $0x33a0] sm:$0xff] }
 0x3ba   :  { %v3009_v42 = vld [vmem:[#allocation8 + $0x3438] sm:$0xff]  ;;  %v7345_v45 = vpack.c.bf16 %v2990_v33, %v2974_v32  ;;  %v3118_v32 = vld [vmem:[#allocation8 + $0x37a0] sm:$0xff]  ;;  %v3104_v33 = vld [vmem:[#allocation8 + $0x3730] sm:$0xff] }
 0x3bb   :  { %7314 = vmatpush1.bf16.msra.mxu0 %v7313_v53  ;;  %v7587_v53 = vpack.c.bf16 %v2897_v48, %v2881_v47  ;;  %v3006_v47 = vld [vmem:[#allocation8 + $0x3420] sm:$0xff] }
 0x3bc   :  { %7570 = vmatpush1.bf16.msra.mxu1 %v7569_v56  ;;  %7316 = vmatprep.subr.bf16.mxu0 %v7315_v57  ;;  %v2880_v56 = vld [vmem:[#allocation8 + $0x3030] sm:$0xff]  ;;  %v3022_v48 = vld [vmem:[#allocation8 + $0x34a0] sm:$0xff] }
 0x3bd   :  { %7572 = vmatprep.subr.bf16.mxu1 %v7571_v61  ;;  %v2896_v57 = vld [vmem:[#allocation8 + $0x30b0] sm:$0xff]  ;;  %v2913_v61 = vld [vmem:[#allocation8 + $0x3138] sm:$0xff] }
 0x3be   :  { %v7589_v63 = vpack.c.bf16 %v2896_v57, %v2880_v56  ;;  %v7591_v7 = vpack.c.bf16 %v2929_v62, %v2913_v61  ;;  %v3057_v56 = vld [vmem:[#allocation8 + $0x35b8] sm:$0xff]  ;;  %v7349_v57 = vpack.c.bf16 %v3022_v48, %v3006_v47  ;;  %v3054_v61 = vld [vmem:[#allocation8 + $0x35a0] sm:$0xff]  ;;  %v3040_v62 = vld [vmem:[#allocation8 + $0x3530] sm:$0xff] }
 0x3bf   :  { %7318 = vmatpush1.bf16.msra.mxu0 %v7317_v3  ;;  %v7335_v3 = vpack.c.bf16 %v2927_v59, %v2911_v58  ;;  %v7351_v59 = vpack.c.bf16 %v3055_v52, %v3039_v51  ;;  %v3150_v47 = vld [vmem:[#allocation8 + $0x38a0] sm:$0xff]  ;;  %v3136_v48 = vld [vmem:[#allocation8 + $0x3830] sm:$0xff]  ;;  %v3183_v51 = vld [vmem:[#allocation8 + $0x39a8] sm:$0xff] }
 0x3c0   :  { %7574 = vmatpush1.bf16.msra.mxu1 %v7573_v4  ;;  %7320 = vmatprep.subr.bf16.mxu0 %v7319_v5  ;;  %v2928_v4 = vld [vmem:[#allocation8 + $0x31b0] sm:$0xff]  ;;  %v2943_v5 = vld [vmem:[#allocation8 + $0x3228] sm:$0xff]  ;;  %v3169_v52 = vld [vmem:[#allocation8 + $0x3938] sm:$0xff] }
 0x3c1   :  { %7576 = vmatprep.subr.bf16.mxu1 %v7575_v12  ;;  %v2961_v12 = vld [vmem:[#allocation8 + $0x32b8] sm:$0xff]  ;;  %v7593_v17 = vpack.c.bf16 %v2928_v4, %v2912_v1  ;;  %v7339_v18 = vpack.c.bf16 %v2959_v6, %v2943_v5  ;;  %v3087_v1 = vld [vmem:[#allocation8 + $0x36a8] sm:$0xff]  ;;  %v7609_v6 = vpack.c.bf16 %v3056_v9, %v3040_v62 }
 0x3c2   :  { %v3089_v4 = vld [vmem:[#allocation8 + $0x36b8] sm:$0xff]  ;;  %v3199_v9 = vld [vmem:[#allocation8 + $0x3a28] sm:$0xff] }
 0x3c3   :  { %7322 = vmatpush1.bf16.msra.mxu0 %v7321_v22  ;;  %v2944_v22 = vld [vmem:[#allocation8 + $0x3230] sm:$0xff] }
 0x3c4   :  { %7578 = vmatpush1.bf16.msra.mxu1 %v7577_v23  ;;  %7324 = vmatprep.subr.bf16.mxu0 %v7323_v24  ;;  %v7595_v23 = vpack.c.bf16 %v2961_v12, %v2945_v11  ;;  %v2960_v24 = vld [vmem:[#allocation8 + $0x32b0] sm:$0xff]  ;;  %v3070_v11 = vld [vmem:[#allocation8 + $0x3620] sm:$0xff] }
 0x3c5   :  { %7580 = vmatprep.subr.bf16.mxu1 %v7579_v28  ;;  %v2993_v28 = vld [vmem:[#allocation8 + $0x33b8] sm:$0xff]  ;;  %v7597_v19 = vpack.c.bf16 %v2960_v24, %v2944_v22  ;;  %v3086_v12 = vld [vmem:[#allocation8 + $0x36a0] sm:$0xff]  ;;  %v3119_v22 = vld [vmem:[#allocation8 + $0x37a8] sm:$0xff] }
 0x3c7   :  { %7326 = vmatpush1.bf16.msra.mxu0 %v7325_v34  ;;  %v2976_v34 = vld [vmem:[#allocation8 + $0x3330] sm:$0xff] }
 0x3c8   :  { %7582 = vmatpush1.bf16.msra.mxu1 %v7581_v37  ;;  %7328 = vmatprep.subr.bf16.mxu0 %v7327_v39  ;;  %v7599_v37 = vpack.c.bf16 %v2993_v28, %v2977_v27  ;;  %v2992_v39 = vld [vmem:[#allocation8 + $0x33b0] sm:$0xff]  ;;  %v7357_v28 = vpack.c.bf16 %v3086_v12, %v3070_v11  ;;  %v3214_v11 = vld [vmem:[#allocation8 + $0x3aa0] sm:$0xff] }
 0x3c9   :  { %7584 = vmatprep.subr.bf16.mxu1 %v7583_v44  ;;  %v3025_v44 = vld [vmem:[#allocation8 + $0x34b8] sm:$0xff]  ;;  %v7601_v2 = vpack.c.bf16 %v2992_v39, %v2976_v34  ;;  %v7615_v34 = vpack.c.bf16 %v3121_v26, %v3105_v8  ;;  %v3135_v39 = vld [vmem:[#allocation8 + $0x3828] sm:$0xff]  ;;  %v3200_v12 = vld [vmem:[#allocation8 + $0x3a30] sm:$0xff] }
 0x3ca   :  { %v3249_v8 = vld [vmem:[#allocation8 + $0x3bb8] sm:$0xff] }
 0x3cb   :  { %7330 = vmatpush1.bf16.msra.mxu0 %v7329_v10  ;;  %v3008_v10 = vld [vmem:[#allocation8 + $0x3430] sm:$0xff] }
 0x3cc   :  { %7586 = vmatpush1.bf16.msra.mxu1 %v7585_v49  ;;  %7332 = vmatprep.subr.bf16.mxu0 %v7331_v50  ;;  %v7603_v49 = vpack.c.bf16 %v3025_v44, %v3009_v42  ;;  %v3024_v50 = vld [vmem:[#allocation8 + $0x34b0] sm:$0xff]  ;;  %v3153_v42 = vld [vmem:[#allocation8 + $0x38b8] sm:$0xff] }
 0x3cd   :  { %7588 = vmatprep.subr.bf16.mxu1 %v7587_v53  ;;  %v3041_v53 = vld [vmem:[#allocation8 + $0x3538] sm:$0xff]  ;;  %v7605_v58 = vpack.c.bf16 %v3024_v50, %v3008_v10  ;;  %v7619_v10 = vpack.c.bf16 %v3153_v42, %v3137_v41  ;;  %v3167_v50 = vld [vmem:[#allocation8 + $0x3928] sm:$0xff] }
 0x3ce   :  { %4161 = vmatmul.mubr.f32.vlgmr.msra.gmra.mrb[10].mxu0 %v9059_v36  ;;  %v3281_v41 = vld [vmem:[#allocation8 + $0x3cb8] sm:$0xff] }
 0x3cf   :  { %4445 = vmatmul.mubr.f32.vlgmr.msra.gmra.mrb[10].mxu1 %v9059_v36  ;;  %7334 = vmatpush1.bf16.msra.mxu0 %v7333_v60  ;;  %v3038_v60 = vld [vmem:[#allocation8 + $0x3520] sm:$0xff] }
 0x3d0   :  { %4231 = vmatprep.mubr.f32.mxu0 %v9062_v43  ;;  %7590 = vmatpush1.bf16.msra.mxu1 %v7589_v63  ;;  %v7607_v63 = vpack.c.bf16 %v3057_v56, %v3041_v53  ;;  %v7353_v5 = vpack.c.bf16 %v3054_v61, %v3038_v60  ;;  %v3185_v53 = vld [vmem:[#allocation8 + $0x39b8] sm:$0xff]  ;;  %v3182_v60 = vld [vmem:[#allocation8 + $0x39a0] sm:$0xff]  ;;  %v3168_v61 = vld [vmem:[#allocation8 + $0x3930] sm:$0xff] }
 0x3d1   :  { %4515 = vmatprep.mubr.f32.mxu1 %v9062_v43  ;;  %7336 = vmatprep.subr.bf16.mxu0 %v7335_v3  ;;  %v3073_v3 = vld [vmem:[#allocation8 + $0x3638] sm:$0xff]  ;;  %v7623_v62 = vpack.c.bf16 %v3185_v53, %v3169_v52 }
 0x3d2   :  { %7592 = vmatprep.subr.bf16.mxu1 %v7591_v7  ;;  %v7355_v7 = vpack.c.bf16 %v3087_v1, %v3071_v0  ;;  %v3215_v0 = vld [vmem:[#allocation8 + $0x3aa8] sm:$0xff]  ;;  %v3201_v1 = vld [vmem:[#allocation8 + $0x3a38] sm:$0xff] }
 0x3d3   :  { %7338 = vmatpush1.bf16.msra.mxu0 %v7337_v14  ;;  %v3072_v14 = vld [vmem:[#allocation8 + $0x3630] sm:$0xff]  ;;  %v3313_v52 = vld [vmem:[#allocation8 + $0x3db8] sm:$0xff] }
 0x3d4   :  { %7594 = vmatpush1.bf16.msra.mxu1 %v7593_v17  ;;  %7340 = vmatprep.subr.bf16.mxu0 %v7339_v18  ;;  %v7611_v18 = vpack.c.bf16 %v3089_v4, %v3073_v3  ;;  %v3217_v3 = vld [vmem:[#allocation8 + $0x3ab8] sm:$0xff] }
 0x3d5   :  { %7596 = vmatprep.subr.bf16.mxu1 %v7595_v23 }
 0x3d7   :  { %7342 = vmatpush1.bf16.msra.mxu0 %v7341_v31  ;;  %v7613_v31 = vpack.c.bf16 %v3088_v20, %v3072_v14  ;;  %v7627_v14 = vpack.c.bf16 %v3217_v3, %v3201_v1  ;;  %v3231_v20 = vld [vmem:[#allocation8 + $0x3b28] sm:$0xff]  ;;  %v3345_v1 = vld [vmem:[#allocation8 + $0x3eb8] sm:$0xff] }
 0x3d8   :  { %7598 = vmatpush1.bf16.msra.mxu1 %v7597_v19  ;;  %7344 = vmatprep.subr.bf16.mxu0 %v7343_v15  ;;  %v7359_v19 = vpack.c.bf16 %v3119_v22, %v3103_v21  ;;  %v3102_v15 = vld [vmem:[#allocation8 + $0x3720] sm:$0xff]  ;;  %v3247_v21 = vld [vmem:[#allocation8 + $0x3ba8] sm:$0xff]  ;;  %v3233_v22 = vld [vmem:[#allocation8 + $0x3b38] sm:$0xff] }
 0x3d9   :  { %7600 = vmatprep.subr.bf16.mxu1 %v7599_v37  ;;  %v3120_v37 = vld [vmem:[#allocation8 + $0x37b0] sm:$0xff]  ;;  %v7361_v44 = vpack.c.bf16 %v3118_v32, %v3102_v15  ;;  %v3246_v15 = vld [vmem:[#allocation8 + $0x3ba0] sm:$0xff] }
 0x3da   :  { %v3232_v32 = vld [vmem:[#allocation8 + $0x3b30] sm:$0xff] }
 0x3db   :  { %7346 = vmatpush1.bf16.msra.mxu0 %v7345_v45  ;;  %v7617_v45 = vpack.c.bf16 %v3120_v37, %v3104_v33  ;;  %v7631_v33 = vpack.c.bf16 %v3249_v8, %v3233_v22  ;;  %v3263_v37 = vld [vmem:[#allocation8 + $0x3c28] sm:$0xff]  ;;  %v3377_v22 = vld [vmem:[#allocation8 + $0x3fb8] sm:$0xff] }
 0x3dc   :  { %7602 = vmatpush1.bf16.msra.mxu1 %v7601_v2  ;;  %7348 = vmatprep.subr.bf16.mxu0 %v7347_v46  ;;  %v7363_v2 = vpack.c.bf16 %v3151_v55, %v3135_v39  ;;  %v3134_v46 = vld [vmem:[#allocation8 + $0x3820] sm:$0xff]  ;;  %v3279_v39 = vld [vmem:[#allocation8 + $0x3ca8] sm:$0xff]  ;;  %v3265_v55 = vld [vmem:[#allocation8 + $0x3c38] sm:$0xff] }
 0x3dd   :  { %7604 = vmatprep.subr.bf16.mxu1 %v7603_v49  ;;  %v3152_v49 = vld [vmem:[#allocation8 + $0x38b0] sm:$0xff]  ;;  %v7365_v56 = vpack.c.bf16 %v3150_v47, %v3134_v46  ;;  %v3278_v46 = vld [vmem:[#allocation8 + $0x3ca0] sm:$0xff] }
 0x3de   :  { %v3264_v47 = vld [vmem:[#allocation8 + $0x3c30] sm:$0xff] }
 0x3df   :  { %7350 = vmatpush1.bf16.msra.mxu0 %v7349_v57  ;;  %v7621_v57 = vpack.c.bf16 %v3152_v49, %v3136_v48  ;;  %v7635_v48 = vpack.c.bf16 %v3281_v41, %v3265_v55  ;;  %v3295_v49 = vld [vmem:[#allocation8 + $0x3d28] sm:$0xff]  ;;  %v1365_v55 = vld [vmem:[#allocation8 + $0xd8] sm:$0xff] }
 0x3e0   :  { %7606 = vmatpush1.bf16.msra.mxu1 %v7605_v58  ;;  %7352 = vmatprep.subr.bf16.mxu0 %v7351_v59  ;;  %v7367_v58 = vpack.c.bf16 %v3183_v51, %v3167_v50  ;;  %v3166_v59 = vld [vmem:[#allocation8 + $0x3920] sm:$0xff]  ;;  %v3311_v50 = vld [vmem:[#allocation8 + $0x3da8] sm:$0xff]  ;;  %v3297_v51 = vld [vmem:[#allocation8 + $0x3d38] sm:$0xff] }
 0x3e1   :  { %v9088_v17 = vpop.f32.mrb[8].mxu0  ;;  %7608 = vmatprep.subr.bf16.mxu1 %v7607_v63  ;;  %v3184_v63 = vld [vmem:[#allocation8 + $0x39b0] sm:$0xff]  ;;  %v7369_v4 = vpack.c.bf16 %v3182_v60, %v3166_v59  ;;  %v3310_v59 = vld [vmem:[#allocation8 + $0x3da0] sm:$0xff] }
 0x3e2   :  { %v9090_v23 = vpop.f32.mrb[8].mxu1  ;;  %v9092_v24 = vpop.f32.mrb[9].mxu0  ;;  %v3296_v60 = vld [vmem:[#allocation8 + $0x3d30] sm:$0xff] }
 0x3e3   :  { %v9094_v27 = vpop.f32.mrb[9].mxu1  ;;  %7354 = vmatpush1.bf16.msra.mxu0 %v7353_v5  ;;  %v7625_v5 = vpack.c.bf16 %v3184_v63, %v3168_v61  ;;  %v7639_v61 = vpack.c.bf16 %v3313_v52, %v3297_v51  ;;  %v3327_v63 = vld [vmem:[#allocation8 + $0x3e28] sm:$0xff]  ;;  %v1381_v51 = vld [vmem:[#allocation8 + $0x158] sm:$0xff] }
 0x3e4   :  { %7610 = vmatpush1.bf16.msra.mxu1 %v7609_v6  ;;  %7356 = vmatprep.subr.bf16.mxu0 %v7355_v7  ;;  %v7371_v6 = vpack.c.bf16 %v3215_v0, %v3199_v9  ;;  %v3198_v7 = vld [vmem:[#allocation8 + $0x3a20] sm:$0xff]  ;;  %v3343_v9 = vld [vmem:[#allocation8 + $0x3ea8] sm:$0xff]  ;;  %v3329_v0 = vld [vmem:[#allocation8 + $0x3e38] sm:$0xff] }
 0x3e5   :  { %7612 = vmatprep.subr.bf16.mxu1 %v7611_v18  ;;  %v3216_v18 = vld [vmem:[#allocation8 + $0x3ab0] sm:$0xff]  ;;  %v7373_v26 = vpack.c.bf16 %v3214_v11, %v3198_v7  ;;  %v3342_v7 = vld [vmem:[#allocation8 + $0x3ea0] sm:$0xff]  ;;  %v1397_v52 = vld [vmem:[#allocation8 + $0x1d8] sm:$0xff] }
 0x3e6   :  { %v3328_v11 = vld [vmem:[#allocation8 + $0x3e30] sm:$0xff] }
 0x3e7   :  { %7358 = vmatpush1.bf16.msra.mxu0 %v7357_v28  ;;  %v7629_v28 = vpack.c.bf16 %v3216_v18, %v3200_v12  ;;  %v7643_v12 = vpack.c.bf16 %v3345_v1, %v3329_v0  ;;  %v3359_v18 = vld [vmem:[#allocation8 + $0x3f28] sm:$0xff]  ;;  %v1429_v0 = vld [vmem:[#allocation8 + $0x2d8] sm:$0xff] }
 0x3e8   :  { %7614 = vmatpush1.bf16.msra.mxu1 %v7613_v31  ;;  %7360 = vmatprep.subr.bf16.mxu0 %v7359_v19  ;;  %v7375_v31 = vpack.c.bf16 %v3247_v21, %v3231_v20  ;;  %v3230_v19 = vld [vmem:[#allocation8 + $0x3b20] sm:$0xff]  ;;  %v3375_v20 = vld [vmem:[#allocation8 + $0x3fa8] sm:$0xff]  ;;  %v3361_v21 = vld [vmem:[#allocation8 + $0x3f38] sm:$0xff] }
 0x3e9   :  { %7616 = vmatprep.subr.bf16.mxu1 %v7615_v34  ;;  %v3248_v34 = vld [vmem:[#allocation8 + $0x3bb0] sm:$0xff]  ;;  %v7377_v42 = vpack.c.bf16 %v3246_v15, %v3230_v19  ;;  %v3374_v19 = vld [vmem:[#allocation8 + $0x3fa0] sm:$0xff] }
 0x3ea   :  { %v3360_v15 = vld [vmem:[#allocation8 + $0x3f30] sm:$0xff] }
 0x3eb   :  { %7362 = vmatpush1.bf16.msra.mxu0 %v7361_v44  ;;  %v7633_v44 = vpack.c.bf16 %v3248_v34, %v3232_v32  ;;  %v7647_v32 = vpack.c.bf16 %v3377_v22, %v3361_v21  ;;  %v1347_v34 = vld [vmem:[#allocation8 + $0x48] sm:$0xff]  ;;  %v1461_v21 = vld [vmem:[#allocation8 + $0x3d8] sm:$0xff] }
 0x3ec   :  { %7618 = vmatpush1.bf16.msra.mxu1 %v7617_v45  ;;  %7364 = vmatprep.subr.bf16.mxu0 %v7363_v2  ;;  %v7379_v45 = vpack.c.bf16 %v3279_v39, %v3263_v37  ;;  %v3262_v2 = vld [vmem:[#allocation8 + $0x3c20] sm:$0xff]  ;;  %v1363_v37 = vld [vmem:[#allocation8 + $0xc8] sm:$0xff]  ;;  %v1349_v39 = vld [vmem:[#allocation8 + $0x58] sm:$0xff] }
 0x3ed   :  { %7620 = vmatprep.subr.bf16.mxu1 %v7619_v10  ;;  %v3280_v10 = vld [vmem:[#allocation8 + $0x3cb0] sm:$0xff]  ;;  %v7381_v53 = vpack.c.bf16 %v3278_v46, %v3262_v2  ;;  %v1362_v2 = vld [vmem:[#allocation8 + $0xc0] sm:$0xff]  ;;  %v7907_v46 = vpack.c.bf16 %v1365_v55, %v1349_v39  ;;  %v1493_v39 = vld [vmem:[#allocation8 + $0x4d8] sm:$0xff] }
 0x3ef   :  { %7366 = vmatpush1.bf16.msra.mxu0 %v7365_v56  ;;  %v7637_v56 = vpack.c.bf16 %v3280_v10, %v3264_v47  ;;  %v1348_v47 = vld [vmem:[#allocation8 + $0x50] sm:$0xff]  ;;  %v1379_v10 = vld [vmem:[#allocation8 + $0x148] sm:$0xff] }
 0x3f0   :  { %7622 = vmatpush1.bf16.msra.mxu1 %v7621_v57  ;;  %7368 = vmatprep.subr.bf16.mxu0 %v7367_v58  ;;  %v7383_v57 = vpack.c.bf16 %v3311_v50, %v3295_v49  ;;  %v3294_v58 = vld [vmem:[#allocation8 + $0x3d20] sm:$0xff]  ;;  %v1395_v49 = vld [vmem:[#allocation8 + $0x1c8] sm:$0xff] }
 0x3f1   :  { %7624 = vmatprep.subr.bf16.mxu1 %v7623_v62  ;;  %v3312_v62 = vld [vmem:[#allocation8 + $0x3db0] sm:$0xff]  ;;  %v7385_v3 = vpack.c.bf16 %v3310_v59, %v3294_v58  ;;  %v7655_v59 = vpack.c.bf16 %v1395_v49, %v1379_v10  ;;  %v1523_v10 = vld [vmem:[#allocation8 + $0x5c8] sm:$0xff]  ;;  %v1509_v49 = vld [vmem:[#allocation8 + $0x558] sm:$0xff] }
 0x3f2   :  { %v1380_v58 = vld [vmem:[#allocation8 + $0x150] sm:$0xff] }
 0x3f3   :  { %7370 = vmatpush1.bf16.msra.mxu0 %v7369_v4  ;;  %v7641_v4 = vpack.c.bf16 %v3312_v62, %v3296_v60  ;;  %v1396_v60 = vld [vmem:[#allocation8 + $0x1d0] sm:$0xff]  ;;  %v1427_v62 = vld [vmem:[#allocation8 + $0x2c8] sm:$0xff] }
 0x3f4   :  { %7626 = vmatpush1.bf16.msra.mxu1 %v7625_v5  ;;  %7372 = vmatprep.subr.bf16.mxu0 %v7371_v6  ;;  %v7387_v5 = vpack.c.bf16 %v3343_v9, %v3327_v63  ;;  %v3326_v6 = vld [vmem:[#allocation8 + $0x3e20] sm:$0xff]  ;;  %v7911_v63 = vpack.c.bf16 %v1397_v52, %v1381_v51  ;;  %v1413_v9 = vld [vmem:[#allocation8 + $0x258] sm:$0xff] }
 0x3f5   :  { %7628 = vmatprep.subr.bf16.mxu1 %v7627_v14  ;;  %v3344_v14 = vld [vmem:[#allocation8 + $0x3eb0] sm:$0xff]  ;;  %v7389_v8 = vpack.c.bf16 %v3342_v7, %v3326_v6  ;;  %v1426_v6 = vld [vmem:[#allocation8 + $0x2c0] sm:$0xff] }
 0x3f6   :  { %v1412_v7 = vld [vmem:[#allocation8 + $0x250] sm:$0xff] }
 0x3f7   :  { %7374 = vmatpush1.bf16.msra.mxu0 %v7373_v26  ;;  %v7645_v26 = vpack.c.bf16 %v3344_v14, %v3328_v11  ;;  %v7915_v11 = vpack.c.bf16 %v1429_v0, %v1413_v9  ;;  %v1443_v14 = vld [vmem:[#allocation8 + $0x348] sm:$0xff]  ;;  %v1557_v9 = vld [vmem:[#allocation8 + $0x6d8] sm:$0xff] }
 0x3f8   :  { %7630 = vmatpush1.bf16.msra.mxu1 %v7629_v28  ;;  %7376 = vmatprep.subr.bf16.mxu0 %v7375_v31  ;;  %v7391_v28 = vpack.c.bf16 %v3375_v20, %v3359_v18  ;;  %v3358_v31 = vld [vmem:[#allocation8 + $0x3f20] sm:$0xff]  ;;  %v1459_v18 = vld [vmem:[#allocation8 + $0x3c8] sm:$0xff]  ;;  %v1445_v20 = vld [vmem:[#allocation8 + $0x358] sm:$0xff] }
 0x3f9   :  { %7632 = vmatprep.subr.bf16.mxu1 %v7631_v33  ;;  %v3376_v33 = vld [vmem:[#allocation8 + $0x3fb0] sm:$0xff]  ;;  %v7393_v41 = vpack.c.bf16 %v3374_v19, %v3358_v31  ;;  %v1458_v31 = vld [vmem:[#allocation8 + $0x3c0] sm:$0xff] }
 0x3fa   :  { %v1444_v19 = vld [vmem:[#allocation8 + $0x350] sm:$0xff] }
 0x3fb   :  { %7378 = vmatpush1.bf16.msra.mxu0 %v7377_v42  ;;  %v7649_v42 = vpack.c.bf16 %v3376_v33, %v3360_v15  ;;  %v7919_v15 = vpack.c.bf16 %v1461_v21, %v1445_v20  ;;  %v1475_v33 = vld [vmem:[#allocation8 + $0x448] sm:$0xff]  ;;  %v1589_v20 = vld [vmem:[#allocation8 + $0x7d8] sm:$0xff] }
 0x3fc   :  { %7634 = vmatpush1.bf16.msra.mxu1 %v7633_v44  ;;  %7380 = vmatprep.subr.bf16.mxu0 %v7379_v45  ;;  %v7651_v44 = vpack.c.bf16 %v1363_v37, %v1347_v34  ;;  %v1346_v45 = vld [vmem:[#allocation8 + $0x40] sm:$0xff]  ;;  %v1491_v34 = vld [vmem:[#allocation8 + $0x4c8] sm:$0xff]  ;;  %v1477_v37 = vld [vmem:[#allocation8 + $0x458] sm:$0xff] }
 0x3fd   :  { %7636 = vmatprep.subr.bf16.mxu1 %v7635_v48  ;;  %v1364_v48 = vld [vmem:[#allocation8 + $0xd0] sm:$0xff]  ;;  %v7653_v50 = vpack.c.bf16 %v1362_v2, %v1346_v45  ;;  %v1490_v45 = vld [vmem:[#allocation8 + $0x4c0] sm:$0xff] }
 0x3fe   :  { %v1476_v2 = vld [vmem:[#allocation8 + $0x450] sm:$0xff] }
 0x3ff   :  { %7382 = vmatpush1.bf16.msra.mxu0 %v7381_v53  ;;  %v7909_v53 = vpack.c.bf16 %v1364_v48, %v1348_v47  ;;  %v1492_v47 = vld [vmem:[#allocation8 + $0x4d0] sm:$0xff]  ;;  %v1507_v48 = vld [vmem:[#allocation8 + $0x548] sm:$0xff] }
 0x400   :  { %7638 = vmatpush1.bf16.msra.mxu1 %v7637_v56  ;;  %7384 = vmatprep.subr.bf16.mxu0 %v7383_v57  ;;  %v1378_v56 = vld [vmem:[#allocation8 + $0x140] sm:$0xff]  ;;  %v7925_v52 = vpack.c.bf16 %v1492_v47, %v1476_v2  ;;  %v1635_v47 = vld [vmem:[#allocation8 + $0x948] sm:$0xff] }
 0x401   :  { %7640 = vmatprep.subr.bf16.mxu1 %v7639_v61  ;;  %v1394_v57 = vld [vmem:[#allocation8 + $0x1c0] sm:$0xff]  ;;  %v1411_v61 = vld [vmem:[#allocation8 + $0x248] sm:$0xff] }
 0x402   :  { %v7657_v1 = vpack.c.bf16 %v1394_v57, %v1378_v56  ;;  %v1506_v56 = vld [vmem:[#allocation8 + $0x540] sm:$0xff] }
 0x403   :  { %7386 = vmatpush1.bf16.msra.mxu0 %v7385_v3  ;;  %v7913_v3 = vpack.c.bf16 %v1396_v60, %v1380_v58  ;;  %v1522_v57 = vld [vmem:[#allocation8 + $0x5c0] sm:$0xff]  ;;  %v1508_v58 = vld [vmem:[#allocation8 + $0x550] sm:$0xff] }
 0x404   :  { %7642 = vmatpush1.bf16.msra.mxu1 %v7641_v4  ;;  %7388 = vmatprep.subr.bf16.mxu0 %v7387_v5  ;;  %v7659_v4 = vpack.c.bf16 %v1427_v62, %v1411_v61  ;;  %v1410_v5 = vld [vmem:[#allocation8 + $0x240] sm:$0xff]  ;;  %v1524_v60 = vld [vmem:[#allocation8 + $0x5d0] sm:$0xff]  ;;  %v1539_v61 = vld [vmem:[#allocation8 + $0x648] sm:$0xff]  ;;  %v7673_v0 = vpack.c.bf16 %v1522_v57, %v1506_v56 }
 0x405   :  { %7644 = vmatprep.subr.bf16.mxu1 %v7643_v12  ;;  %v1428_v12 = vld [vmem:[#allocation8 + $0x2d0] sm:$0xff]  ;;  %v7661_v22 = vpack.c.bf16 %v1426_v6, %v1410_v5  ;;  %v1555_v62 = vld [vmem:[#allocation8 + $0x6c8] sm:$0xff]  ;;  %v1554_v5 = vld [vmem:[#allocation8 + $0x6c0] sm:$0xff] }
 0x406   :  { %v1540_v6 = vld [vmem:[#allocation8 + $0x650] sm:$0xff]  ;;  %v1650_v56 = vld [vmem:[#allocation8 + $0x9c0] sm:$0xff] }
 0x407   :  { %7390 = vmatpush1.bf16.msra.mxu0 %v7389_v8  ;;  %v7917_v8 = vpack.c.bf16 %v1428_v12, %v1412_v7  ;;  %v1571_v12 = vld [vmem:[#allocation8 + $0x748] sm:$0xff]  ;;  %v1636_v57 = vld [vmem:[#allocation8 + $0x950] sm:$0xff] }
 0x408   :  { %7646 = vmatpush1.bf16.msra.mxu1 %v7645_v26  ;;  %7392 = vmatprep.subr.bf16.mxu0 %v7391_v28  ;;  %v7663_v26 = vpack.c.bf16 %v1459_v18, %v1443_v14  ;;  %v1442_v28 = vld [vmem:[#allocation8 + $0x340] sm:$0xff]  ;;  %v1587_v14 = vld [vmem:[#allocation8 + $0x7c8] sm:$0xff]  ;;  %v1573_v18 = vld [vmem:[#allocation8 + $0x758] sm:$0xff] }
 0x409   :  { %7648 = vmatprep.subr.bf16.mxu1 %v7647_v32  ;;  %v1460_v32 = vld [vmem:[#allocation8 + $0x3d0] sm:$0xff]  ;;  %v7665_v55 = vpack.c.bf16 %v1458_v31, %v1442_v28  ;;  %v1586_v28 = vld [vmem:[#allocation8 + $0x7c0] sm:$0xff] }
 0x40a   :  { %v1572_v31 = vld [vmem:[#allocation8 + $0x750] sm:$0xff] }
 0x40b   :  { %7394 = vmatpush1.bf16.msra.mxu0 %v7393_v41  ;;  %v7921_v41 = vpack.c.bf16 %v1460_v32, %v1444_v19  ;;  %v7935_v19 = vpack.c.bf16 %v1589_v20, %v1573_v18  ;;  %v1603_v32 = vld [vmem:[#allocation8 + $0x848] sm:$0xff]  ;;  %v1717_v18 = vld [vmem:[#allocation8 + $0xbd8] sm:$0xff] }
 0x40c   :  { %7650 = vmatpush1.bf16.msra.mxu1 %v7649_v42  ;;  %7652 = vmatprep.subr.bf16.mxu0 %v7651_v44  ;;  %v7667_v42 = vpack.c.bf16 %v1491_v34, %v1475_v33  ;;  %v1474_v44 = vld [vmem:[#allocation8 + $0x440] sm:$0xff]  ;;  %v1619_v33 = vld [vmem:[#allocation8 + $0x8c8] sm:$0xff]  ;;  %v1605_v34 = vld [vmem:[#allocation8 + $0x858] sm:$0xff] }
 0x40d   :  { %7908 = vmatprep.subr.bf16.mxu1 %v7907_v46  ;;  %v7923_v46 = vpack.c.bf16 %v1493_v39, %v1477_v37  ;;  %v7669_v51 = vpack.c.bf16 %v1490_v45, %v1474_v44  ;;  %v1621_v37 = vld [vmem:[#allocation8 + $0x8d8] sm:$0xff]  ;;  %v1618_v44 = vld [vmem:[#allocation8 + $0x8c0] sm:$0xff]  ;;  %v1604_v45 = vld [vmem:[#allocation8 + $0x850] sm:$0xff] }
 0x40e   :  { %4232 = vmatmul.mubr.f32.vlgmr.msra.gmra.mrb[10].mxu0 %v9070_v13  ;;  %v7939_v2 = vpack.c.bf16 %v1621_v37, %v1605_v34  ;;  %v1749_v34 = vld [vmem:[#allocation8 + $0xcd8] sm:$0xff] }
 0x40f   :  { %4516 = vmatmul.mubr.f32.vlgmr.msra.gmra.mrb[10].mxu1 %v9070_v13  ;;  %7654 = vmatpush1.bf16.msra.mxu0 %v7653_v50  ;;  %v1525_v50 = vld [vmem:[#allocation8 + $0x5d8] sm:$0xff] }
 0x410   :  { %4586 = vmatprep.mubr.f32.mxu0 %v9026_v25  ;;  %7910 = vmatpush1.bf16.msra.mxu1 %v7909_v53  ;;  %v7671_v53 = vpack.c.bf16 %v1523_v10, %v1507_v48  ;;  %v1651_v48 = vld [vmem:[#allocation8 + $0x9c8] sm:$0xff]  ;;  %v1637_v10 = vld [vmem:[#allocation8 + $0x958] sm:$0xff] }
 0x411   :  { %4870 = vmatprep.mubr.f32.mxu1 %v9026_v25  ;;  %7656 = vmatprep.subr.bf16.mxu0 %v7655_v59  ;;  %v7927_v59 = vpack.c.bf16 %v1525_v50, %v1509_v49  ;;  %v1653_v49 = vld [vmem:[#allocation8 + $0x9d8] sm:$0xff] }
 0x412   :  { %7912 = vmatprep.subr.bf16.mxu1 %v7911_v63  ;;  %v1541_v63 = vld [vmem:[#allocation8 + $0x658] sm:$0xff] }
 0x413   :  { %7658 = vmatpush1.bf16.msra.mxu0 %v7657_v1  ;;  %v7929_v1 = vpack.c.bf16 %v1524_v60, %v1508_v58  ;;  %v7931_v7 = vpack.c.bf16 %v1557_v9, %v1541_v63  ;;  %v7943_v58 = vpack.c.bf16 %v1653_v49, %v1637_v10  ;;  %v1667_v60 = vld [vmem:[#allocation8 + $0xa48] sm:$0xff]  ;;  %v1685_v63 = vld [vmem:[#allocation8 + $0xad8] sm:$0xff] }
 0x414   :  { %7914 = vmatpush1.bf16.msra.mxu1 %v7913_v3  ;;  %7660 = vmatprep.subr.bf16.mxu0 %v7659_v4  ;;  %v7675_v3 = vpack.c.bf16 %v1555_v62, %v1539_v61  ;;  %v1538_v4 = vld [vmem:[#allocation8 + $0x640] sm:$0xff]  ;;  %v1683_v61 = vld [vmem:[#allocation8 + $0xac8] sm:$0xff]  ;;  %v1669_v62 = vld [vmem:[#allocation8 + $0xa58] sm:$0xff] }
 0x415   :  { %7916 = vmatprep.subr.bf16.mxu1 %v7915_v11  ;;  %v1556_v11 = vld [vmem:[#allocation8 + $0x6d0] sm:$0xff]  ;;  %v7677_v21 = vpack.c.bf16 %v1554_v5, %v1538_v4  ;;  %v1682_v4 = vld [vmem:[#allocation8 + $0xac0] sm:$0xff]  ;;  %v1781_v10 = vld [vmem:[#allocation8 + $0xdd8] sm:$0xff] }
 0x416   :  { %v1668_v5 = vld [vmem:[#allocation8 + $0xa50] sm:$0xff] }
 0x417   :  { %7662 = vmatpush1.bf16.msra.mxu0 %v7661_v22  ;;  %v7933_v22 = vpack.c.bf16 %v1556_v11, %v1540_v6  ;;  %v7947_v6 = vpack.c.bf16 %v1685_v63, %v1669_v62  ;;  %v1699_v11 = vld [vmem:[#allocation8 + $0xb48] sm:$0xff]  ;;  %v1813_v62 = vld [vmem:[#allocation8 + $0xed8] sm:$0xff] }
 0x418   :  { %7918 = vmatpush1.bf16.msra.mxu1 %v7917_v8  ;;  %7664 = vmatprep.subr.bf16.mxu0 %v7663_v26  ;;  %v7679_v8 = vpack.c.bf16 %v1587_v14, %v1571_v12  ;;  %v1570_v26 = vld [vmem:[#allocation8 + $0x740] sm:$0xff]  ;;  %v1715_v12 = vld [vmem:[#allocation8 + $0xbc8] sm:$0xff]  ;;  %v1701_v14 = vld [vmem:[#allocation8 + $0xb58] sm:$0xff] }
 0x419   :  { %7920 = vmatprep.subr.bf16.mxu1 %v7919_v15  ;;  %v1588_v15 = vld [vmem:[#allocation8 + $0x7d0] sm:$0xff]  ;;  %v7681_v39 = vpack.c.bf16 %v1586_v28, %v1570_v26  ;;  %v1714_v26 = vld [vmem:[#allocation8 + $0xbc0] sm:$0xff] }
 0x41a   :  { %v1700_v28 = vld [vmem:[#allocation8 + $0xb50] sm:$0xff] }
 0x41b   :  { %7666 = vmatpush1.bf16.msra.mxu0 %v7665_v55  ;;  %v7937_v55 = vpack.c.bf16 %v1588_v15, %v1572_v31  ;;  %v7951_v31 = vpack.c.bf16 %v1717_v18, %v1701_v14  ;;  %v1731_v15 = vld [vmem:[#allocation8 + $0xc48] sm:$0xff]  ;;  %v1845_v14 = vld [vmem:[#allocation8 + $0xfd8] sm:$0xff] }
 0x41c   :  { %7922 = vmatpush1.bf16.msra.mxu1 %v7921_v41  ;;  %7668 = vmatprep.subr.bf16.mxu0 %v7667_v42  ;;  %v7683_v41 = vpack.c.bf16 %v1619_v33, %v1603_v32  ;;  %v1602_v42 = vld [vmem:[#allocation8 + $0x840] sm:$0xff]  ;;  %v1747_v32 = vld [vmem:[#allocation8 + $0xcc8] sm:$0xff]  ;;  %v1733_v33 = vld [vmem:[#allocation8 + $0xc58] sm:$0xff] }
 0x41d   :  { %7924 = vmatprep.subr.bf16.mxu1 %v7923_v46  ;;  %v1620_v46 = vld [vmem:[#allocation8 + $0x8d0] sm:$0xff]  ;;  %v7685_v50 = vpack.c.bf16 %v1618_v44, %v1602_v42  ;;  %v1746_v42 = vld [vmem:[#allocation8 + $0xcc0] sm:$0xff] }
 0x41e   :  { %v1732_v44 = vld [vmem:[#allocation8 + $0xc50] sm:$0xff] }
 0x41f   :  { %7670 = vmatpush1.bf16.msra.mxu0 %v7669_v51  ;;  %v7941_v51 = vpack.c.bf16 %v1620_v46, %v1604_v45  ;;  %v7955_v45 = vpack.c.bf16 %v1749_v34, %v1733_v33  ;;  %v1763_v46 = vld [vmem:[#allocation8 + $0xd48] sm:$0xff]  ;;  %v1877_v33 = vld [vmem:[#allocation8 + $0x10d8] sm:$0xff] }
 0x420   :  { %7926 = vmatpush1.bf16.msra.mxu1 %v7925_v52  ;;  %7672 = vmatprep.subr.bf16.mxu0 %v7671_v53  ;;  %v7687_v52 = vpack.c.bf16 %v1651_v48, %v1635_v47  ;;  %v1634_v53 = vld [vmem:[#allocation8 + $0x940] sm:$0xff]  ;;  %v1779_v47 = vld [vmem:[#allocation8 + $0xdc8] sm:$0xff]  ;;  %v1765_v48 = vld [vmem:[#allocation8 + $0xd58] sm:$0xff] }
 0x421   :  { %7928 = vmatprep.subr.bf16.mxu1 %v7927_v59  ;;  %v1652_v59 = vld [vmem:[#allocation8 + $0x9d0] sm:$0xff]  ;;  %v7689_v9 = vpack.c.bf16 %v1650_v56, %v1634_v53  ;;  %v1778_v53 = vld [vmem:[#allocation8 + $0xdc0] sm:$0xff] }
 0x422   :  { %v1764_v56 = vld [vmem:[#allocation8 + $0xd50] sm:$0xff] }
 0x423   :  { %7674 = vmatpush1.bf16.msra.mxu0 %v7673_v0  ;;  %v7945_v0 = vpack.c.bf16 %v1652_v59, %v1636_v57  ;;  %v7959_v57 = vpack.c.bf16 %v1781_v10, %v1765_v48  ;;  %v1795_v59 = vld [vmem:[#allocation8 + $0xe48] sm:$0xff]  ;;  %v1893_v48 = vld [vmem:[#allocation8 + $0x1158] sm:$0xff] }
 0x424   :  { %7930 = vmatpush1.bf16.msra.mxu1 %v7929_v1  ;;  %7676 = vmatprep.subr.bf16.mxu0 %v7675_v3  ;;  %v7691_v1 = vpack.c.bf16 %v1683_v61, %v1667_v60  ;;  %v1666_v3 = vld [vmem:[#allocation8 + $0xa40] sm:$0xff]  ;;  %v1811_v60 = vld [vmem:[#allocation8 + $0xec8] sm:$0xff]  ;;  %v1797_v61 = vld [vmem:[#allocation8 + $0xe58] sm:$0xff] }
 0x425   :  { %7932 = vmatprep.subr.bf16.mxu1 %v7931_v7  ;;  %v1684_v7 = vld [vmem:[#allocation8 + $0xad0] sm:$0xff]  ;;  %v7693_v20 = vpack.c.bf16 %v1682_v4, %v1666_v3  ;;  %v1810_v3 = vld [vmem:[#allocation8 + $0xec0] sm:$0xff]  ;;  %v1909_v10 = vld [vmem:[#allocation8 + $0x11d8] sm:$0xff] }
 0x426   :  { %v1796_v4 = vld [vmem:[#allocation8 + $0xe50] sm:$0xff] }
 0x427   :  { %7678 = vmatpush1.bf16.msra.mxu0 %v7677_v21  ;;  %v7949_v21 = vpack.c.bf16 %v1684_v7, %v1668_v5  ;;  %v7963_v5 = vpack.c.bf16 %v1813_v62, %v1797_v61  ;;  %v1827_v7 = vld [vmem:[#allocation8 + $0xf48] sm:$0xff]  ;;  %v1941_v61 = vld [vmem:[#allocation8 + $0x12d8] sm:$0xff] }
 0x428   :  { %7934 = vmatpush1.bf16.msra.mxu1 %v7933_v22  ;;  %7680 = vmatprep.subr.bf16.mxu0 %v7679_v8  ;;  %v7695_v22 = vpack.c.bf16 %v1715_v12, %v1699_v11  ;;  %v1698_v8 = vld [vmem:[#allocation8 + $0xb40] sm:$0xff]  ;;  %v1843_v11 = vld [vmem:[#allocation8 + $0xfc8] sm:$0xff]  ;;  %v1829_v12 = vld [vmem:[#allocation8 + $0xf58] sm:$0xff] }
 0x429   :  { %7936 = vmatprep.subr.bf16.mxu1 %v7935_v19  ;;  %v1716_v19 = vld [vmem:[#allocation8 + $0xbd0] sm:$0xff]  ;;  %v7697_v37 = vpack.c.bf16 %v1714_v26, %v1698_v8  ;;  %v1842_v8 = vld [vmem:[#allocation8 + $0xfc0] sm:$0xff] }
 0x42a   :  { %v1828_v26 = vld [vmem:[#allocation8 + $0xf50] sm:$0xff] }
 0x42b   :  { %7682 = vmatpush1.bf16.msra.mxu0 %v7681_v39  ;;  %v7953_v39 = vpack.c.bf16 %v1716_v19, %v1700_v28  ;;  %v7967_v28 = vpack.c.bf16 %v1845_v14, %v1829_v12  ;;  %v1859_v19 = vld [vmem:[#allocation8 + $0x1048] sm:$0xff]  ;;  %v1973_v12 = vld [vmem:[#allocation8 + $0x13d8] sm:$0xff] }
 0x42c   :  { %7938 = vmatpush1.bf16.msra.mxu1 %v7937_v55  ;;  %7684 = vmatprep.subr.bf16.mxu0 %v7683_v41  ;;  %v7699_v55 = vpack.c.bf16 %v1747_v32, %v1731_v15  ;;  %v1730_v41 = vld [vmem:[#allocation8 + $0xc40] sm:$0xff]  ;;  %v1875_v15 = vld [vmem:[#allocation8 + $0x10c8] sm:$0xff]  ;;  %v1861_v32 = vld [vmem:[#allocation8 + $0x1058] sm:$0xff] }
 0x42d   :  { %7940 = vmatprep.subr.bf16.mxu1 %v7939_v2  ;;  %v1748_v2 = vld [vmem:[#allocation8 + $0xcd0] sm:$0xff]  ;;  %v7701_v49 = vpack.c.bf16 %v1746_v42, %v1730_v41  ;;  %v1874_v41 = vld [vmem:[#allocation8 + $0x10c0] sm:$0xff]  ;;  %v7971_v42 = vpack.c.bf16 %v1877_v33, %v1861_v32  ;;  %v2005_v32 = vld [vmem:[#allocation8 + $0x14d8] sm:$0xff] }
 0x42f   :  { %7686 = vmatpush1.bf16.msra.mxu0 %v7685_v50  ;;  %v7957_v50 = vpack.c.bf16 %v1748_v2, %v1732_v44  ;;  %v1860_v44 = vld [vmem:[#allocation8 + $0x1050] sm:$0xff]  ;;  %v1891_v2 = vld [vmem:[#allocation8 + $0x1148] sm:$0xff] }
 0x430   :  { %7942 = vmatpush1.bf16.msra.mxu1 %v7941_v51  ;;  %7688 = vmatprep.subr.bf16.mxu0 %v7687_v52  ;;  %v7703_v51 = vpack.c.bf16 %v1779_v47, %v1763_v46  ;;  %v1762_v52 = vld [vmem:[#allocation8 + $0xd40] sm:$0xff]  ;;  %v1907_v46 = vld [vmem:[#allocation8 + $0x11c8] sm:$0xff] }
 0x431   :  { %7944 = vmatprep.subr.bf16.mxu1 %v7943_v58  ;;  %v1780_v58 = vld [vmem:[#allocation8 + $0xdd0] sm:$0xff]  ;;  %v7705_v63 = vpack.c.bf16 %v1778_v53, %v1762_v52  ;;  %v7719_v53 = vpack.c.bf16 %v1907_v46, %v1891_v2  ;;  %v2035_v2 = vld [vmem:[#allocation8 + $0x15c8] sm:$0xff]  ;;  %v2021_v46 = vld [vmem:[#allocation8 + $0x1558] sm:$0xff] }
 0x432   :  { %v1892_v52 = vld [vmem:[#allocation8 + $0x1150] sm:$0xff] }
 0x433   :  { %7690 = vmatpush1.bf16.msra.mxu0 %v7689_v9  ;;  %v7961_v9 = vpack.c.bf16 %v1780_v58, %v1764_v56  ;;  %v1908_v56 = vld [vmem:[#allocation8 + $0x11d0] sm:$0xff]  ;;  %v1939_v58 = vld [vmem:[#allocation8 + $0x12c8] sm:$0xff] }
 0x434   :  { %7946 = vmatpush1.bf16.msra.mxu1 %v7945_v0  ;;  %7692 = vmatprep.subr.bf16.mxu0 %v7691_v1  ;;  %v7707_v0 = vpack.c.bf16 %v1811_v60, %v1795_v59  ;;  %v1794_v1 = vld [vmem:[#allocation8 + $0xe40] sm:$0xff]  ;;  %v7975_v59 = vpack.c.bf16 %v1909_v10, %v1893_v48  ;;  %v1925_v60 = vld [vmem:[#allocation8 + $0x1258] sm:$0xff] }
 0x435   :  { %7948 = vmatprep.subr.bf16.mxu1 %v7947_v6  ;;  %v1812_v6 = vld [vmem:[#allocation8 + $0xed0] sm:$0xff]  ;;  %v7709_v18 = vpack.c.bf16 %v1810_v3, %v1794_v1  ;;  %v1938_v1 = vld [vmem:[#allocation8 + $0x12c0] sm:$0xff] }
 0x436   :  { %v1924_v3 = vld [vmem:[#allocation8 + $0x1250] sm:$0xff] }
 0x437   :  { %7694 = vmatpush1.bf16.msra.mxu0 %v7693_v20  ;;  %v7965_v20 = vpack.c.bf16 %v1812_v6, %v1796_v4  ;;  %v7979_v4 = vpack.c.bf16 %v1941_v61, %v1925_v60  ;;  %v1955_v6 = vld [vmem:[#allocation8 + $0x1348] sm:$0xff]  ;;  %v2069_v60 = vld [vmem:[#allocation8 + $0x16d8] sm:$0xff] }
 0x438   :  { %7950 = vmatpush1.bf16.msra.mxu1 %v7949_v21  ;;  %7696 = vmatprep.subr.bf16.mxu0 %v7695_v22  ;;  %v7711_v21 = vpack.c.bf16 %v1843_v11, %v1827_v7  ;;  %v1826_v22 = vld [vmem:[#allocation8 + $0xf40] sm:$0xff]  ;;  %v1971_v7 = vld [vmem:[#allocation8 + $0x13c8] sm:$0xff]  ;;  %v1957_v11 = vld [vmem:[#allocation8 + $0x1358] sm:$0xff] }
 0x439   :  { %7952 = vmatprep.subr.bf16.mxu1 %v7951_v31  ;;  %v1844_v31 = vld [vmem:[#allocation8 + $0xfd0] sm:$0xff]  ;;  %v7713_v34 = vpack.c.bf16 %v1842_v8, %v1826_v22  ;;  %v1970_v22 = vld [vmem:[#allocation8 + $0x13c0] sm:$0xff] }
 0x43a   :  { %v1956_v8 = vld [vmem:[#allocation8 + $0x1350] sm:$0xff] }
 0x43b   :  { %7698 = vmatpush1.bf16.msra.mxu0 %v7697_v37  ;;  %v7969_v37 = vpack.c.bf16 %v1844_v31, %v1828_v26  ;;  %v7983_v26 = vpack.c.bf16 %v1973_v12, %v1957_v11  ;;  %v1987_v31 = vld [vmem:[#allocation8 + $0x1448] sm:$0xff]  ;;  %v2101_v11 = vld [vmem:[#allocation8 + $0x17d8] sm:$0xff] }
 0x43c   :  { %7954 = vmatpush1.bf16.msra.mxu1 %v7953_v39  ;;  %7700 = vmatprep.subr.bf16.mxu0 %v7699_v55  ;;  %v7715_v39 = vpack.c.bf16 %v1875_v15, %v1859_v19  ;;  %v1858_v55 = vld [vmem:[#allocation8 + $0x1040] sm:$0xff]  ;;  %v2003_v19 = vld [vmem:[#allocation8 + $0x14c8] sm:$0xff]  ;;  %v1989_v15 = vld [vmem:[#allocation8 + $0x1458] sm:$0xff] }
 0x43d   :  { %7956 = vmatprep.subr.bf16.mxu1 %v7955_v45  ;;  %v1876_v45 = vld [vmem:[#allocation8 + $0x10d0] sm:$0xff]  ;;  %v7717_v47 = vpack.c.bf16 %v1874_v41, %v1858_v55  ;;  %v2002_v55 = vld [vmem:[#allocation8 + $0x14c0] sm:$0xff] }
 0x43e   :  { %v1988_v41 = vld [vmem:[#allocation8 + $0x1450] sm:$0xff] }
 0x43f   :  { %7702 = vmatpush1.bf16.msra.mxu0 %v7701_v49  ;;  %v7973_v49 = vpack.c.bf16 %v1876_v45, %v1860_v44  ;;  %v2004_v44 = vld [vmem:[#allocation8 + $0x14d0] sm:$0xff]  ;;  %v2019_v45 = vld [vmem:[#allocation8 + $0x1548] sm:$0xff] }
 0x440   :  { %7958 = vmatpush1.bf16.msra.mxu1 %v7957_v50  ;;  %7704 = vmatprep.subr.bf16.mxu0 %v7703_v51  ;;  %v1890_v50 = vld [vmem:[#allocation8 + $0x1140] sm:$0xff]  ;;  %v7989_v10 = vpack.c.bf16 %v2004_v44, %v1988_v41  ;;  %v2147_v44 = vld [vmem:[#allocation8 + $0x1948] sm:$0xff] }
 0x441   :  { %7960 = vmatprep.subr.bf16.mxu1 %v7959_v57  ;;  %v1906_v51 = vld [vmem:[#allocation8 + $0x11c0] sm:$0xff]  ;;  %v1923_v57 = vld [vmem:[#allocation8 + $0x1248] sm:$0xff] }
 0x442   :  { %v7721_v62 = vpack.c.bf16 %v1906_v51, %v1890_v50  ;;  %v2018_v50 = vld [vmem:[#allocation8 + $0x1540] sm:$0xff] }
 0x443   :  { %7706 = vmatpush1.bf16.msra.mxu0 %v7705_v63  ;;  %v7977_v63 = vpack.c.bf16 %v1908_v56, %v1892_v52  ;;  %v2034_v51 = vld [vmem:[#allocation8 + $0x15c0] sm:$0xff]  ;;  %v2020_v52 = vld [vmem:[#allocation8 + $0x1550] sm:$0xff] }
 0x444   :  { %7962 = vmatpush1.bf16.msra.mxu1 %v7961_v9  ;;  %7708 = vmatprep.subr.bf16.mxu0 %v7707_v0  ;;  %v7723_v9 = vpack.c.bf16 %v1939_v58, %v1923_v57  ;;  %v1922_v0 = vld [vmem:[#allocation8 + $0x1240] sm:$0xff]  ;;  %v2036_v56 = vld [vmem:[#allocation8 + $0x15d0] sm:$0xff]  ;;  %v2051_v57 = vld [vmem:[#allocation8 + $0x1648] sm:$0xff]  ;;  %v7737_v61 = vpack.c.bf16 %v2034_v51, %v2018_v50 }
 0x445   :  { %7964 = vmatprep.subr.bf16.mxu1 %v7963_v5  ;;  %v1940_v5 = vld [vmem:[#allocation8 + $0x12d0] sm:$0xff]  ;;  %v7725_v14 = vpack.c.bf16 %v1938_v1, %v1922_v0  ;;  %v2067_v58 = vld [vmem:[#allocation8 + $0x16c8] sm:$0xff]  ;;  %v2066_v0 = vld [vmem:[#allocation8 + $0x16c0] sm:$0xff] }
 0x446   :  { %v2052_v1 = vld [vmem:[#allocation8 + $0x1650] sm:$0xff]  ;;  %v2162_v50 = vld [vmem:[#allocation8 + $0x19c0] sm:$0xff] }
 0x447   :  { %7710 = vmatpush1.bf16.msra.mxu0 %v7709_v18  ;;  %v7981_v18 = vpack.c.bf16 %v1940_v5, %v1924_v3  ;;  %v2083_v5 = vld [vmem:[#allocation8 + $0x1748] sm:$0xff]  ;;  %v2148_v51 = vld [vmem:[#allocation8 + $0x1950] sm:$0xff] }
 0x448   :  { %7966 = vmatpush1.bf16.msra.mxu1 %v7965_v20  ;;  %7712 = vmatprep.subr.bf16.mxu0 %v7711_v21  ;;  %v7727_v20 = vpack.c.bf16 %v1971_v7, %v1955_v6  ;;  %v1954_v21 = vld [vmem:[#allocation8 + $0x1340] sm:$0xff]  ;;  %v2099_v6 = vld [vmem:[#allocation8 + $0x17c8] sm:$0xff]  ;;  %v2085_v7 = vld [vmem:[#allocation8 + $0x1758] sm:$0xff] }
 0x449   :  { %7968 = vmatprep.subr.bf16.mxu1 %v7967_v28  ;;  %v1972_v28 = vld [vmem:[#allocation8 + $0x13d0] sm:$0xff]  ;;  %v7729_v33 = vpack.c.bf16 %v1970_v22, %v1954_v21  ;;  %v2098_v21 = vld [vmem:[#allocation8 + $0x17c0] sm:$0xff] }
 0x44a   :  { %v2084_v22 = vld [vmem:[#allocation8 + $0x1750] sm:$0xff] }
 0x44b   :  { %7714 = vmatpush1.bf16.msra.mxu0 %v7713_v34  ;;  %v7985_v34 = vpack.c.bf16 %v1972_v28, %v1956_v8  ;;  %v7999_v8 = vpack.c.bf16 %v2101_v11, %v2085_v7  ;;  %v2115_v28 = vld [vmem:[#allocation8 + $0x1848] sm:$0xff]  ;;  %v2229_v7 = vld [vmem:[#allocation8 + $0x1bd8] sm:$0xff] }
 0x44c   :  { %7970 = vmatpush1.bf16.msra.mxu1 %v7969_v37  ;;  %7716 = vmatprep.subr.bf16.mxu0 %v7715_v39  ;;  %v7731_v37 = vpack.c.bf16 %v2003_v19, %v1987_v31  ;;  %v1986_v39 = vld [vmem:[#allocation8 + $0x1440] sm:$0xff]  ;;  %v2131_v31 = vld [vmem:[#allocation8 + $0x18c8] sm:$0xff]  ;;  %v2117_v19 = vld [vmem:[#allocation8 + $0x1858] sm:$0xff] }
 0x44d   :  { %7972 = vmatprep.subr.bf16.mxu1 %v7971_v42  ;;  %v7987_v42 = vpack.c.bf16 %v2005_v32, %v1989_v15  ;;  %v7733_v48 = vpack.c.bf16 %v2002_v55, %v1986_v39  ;;  %v2133_v15 = vld [vmem:[#allocation8 + $0x18d8] sm:$0xff]  ;;  %v2130_v39 = vld [vmem:[#allocation8 + $0x18c0] sm:$0xff]  ;;  %v2116_v55 = vld [vmem:[#allocation8 + $0x1850] sm:$0xff] }
 0x44e   :  { %4587 = vmatmul.mubr.f32.vlgmr.msra.gmra.mrb[12].mxu0 %v9028_v29  ;;  %v8003_v41 = vpack.c.bf16 %v2133_v15, %v2117_v19  ;;  %v2261_v19 = vld [vmem:[#allocation8 + $0x1cd8] sm:$0xff] }
 0x44f   :  { %4871 = vmatmul.mubr.f32.vlgmr.msra.gmra.mrb[12].mxu1 %v9028_v29  ;;  %7718 = vmatpush1.bf16.msra.mxu0 %v7717_v47  ;;  %v2037_v47 = vld [vmem:[#allocation8 + $0x15d8] sm:$0xff] }
 0x450   :  { %4657 = vmatprep.mubr.f32.mxu0 %v9034_v35  ;;  %7974 = vmatpush1.bf16.msra.mxu1 %v7973_v49  ;;  %v7735_v49 = vpack.c.bf16 %v2035_v2, %v2019_v45  ;;  %v2163_v45 = vld [vmem:[#allocation8 + $0x19c8] sm:$0xff]  ;;  %v2149_v2 = vld [vmem:[#allocation8 + $0x1958] sm:$0xff] }
 0x451   :  { %4941 = vmatprep.mubr.f32.mxu1 %v9034_v35  ;;  %7720 = vmatprep.subr.bf16.mxu0 %v7719_v53  ;;  %v7991_v53 = vpack.c.bf16 %v2037_v47, %v2021_v46  ;;  %v2165_v46 = vld [vmem:[#allocation8 + $0x19d8] sm:$0xff] }
 0x452   :  { %7976 = vmatprep.subr.bf16.mxu1 %v7975_v59  ;;  %v2053_v59 = vld [vmem:[#allocation8 + $0x1658] sm:$0xff] }
 0x453   :  { %7722 = vmatpush1.bf16.msra.mxu0 %v7721_v62  ;;  %v7993_v62 = vpack.c.bf16 %v2036_v56, %v2020_v52  ;;  %v7995_v3 = vpack.c.bf16 %v2069_v60, %v2053_v59  ;;  %v8007_v52 = vpack.c.bf16 %v2165_v46, %v2149_v2  ;;  %v2179_v56 = vld [vmem:[#allocation8 + $0x1a48] sm:$0xff]  ;;  %v2197_v59 = vld [vmem:[#allocation8 + $0x1ad8] sm:$0xff] }
 0x454   :  { %7978 = vmatpush1.bf16.msra.mxu1 %v7977_v63  ;;  %7724 = vmatprep.subr.bf16.mxu0 %v7723_v9  ;;  %v7739_v63 = vpack.c.bf16 %v2067_v58, %v2051_v57  ;;  %v2050_v9 = vld [vmem:[#allocation8 + $0x1640] sm:$0xff]  ;;  %v2195_v57 = vld [vmem:[#allocation8 + $0x1ac8] sm:$0xff]  ;;  %v2181_v58 = vld [vmem:[#allocation8 + $0x1a58] sm:$0xff] }
 0x455   :  { %7980 = vmatprep.subr.bf16.mxu1 %v7979_v4  ;;  %v2068_v4 = vld [vmem:[#allocation8 + $0x16d0] sm:$0xff]  ;;  %v7741_v12 = vpack.c.bf16 %v2066_v0, %v2050_v9  ;;  %v2194_v9 = vld [vmem:[#allocation8 + $0x1ac0] sm:$0xff]  ;;  %v2293_v2 = vld [vmem:[#allocation8 + $0x1dd8] sm:$0xff] }
 0x456   :  { %v2180_v0 = vld [vmem:[#allocation8 + $0x1a50] sm:$0xff] }
 0x457   :  { %7726 = vmatpush1.bf16.msra.mxu0 %v7725_v14  ;;  %v7997_v14 = vpack.c.bf16 %v2068_v4, %v2052_v1  ;;  %v8011_v1 = vpack.c.bf16 %v2197_v59, %v2181_v58  ;;  %v2211_v4 = vld [vmem:[#allocation8 + $0x1b48] sm:$0xff]  ;;  %v2325_v58 = vld [vmem:[#allocation8 + $0x1ed8] sm:$0xff] }
 0x458   :  { %7982 = vmatpush1.bf16.msra.mxu1 %v7981_v18  ;;  %7728 = vmatprep.subr.bf16.mxu0 %v7727_v20  ;;  %v7743_v18 = vpack.c.bf16 %v2099_v6, %v2083_v5  ;;  %v2082_v20 = vld [vmem:[#allocation8 + $0x1740] sm:$0xff]  ;;  %v2227_v5 = vld [vmem:[#allocation8 + $0x1bc8] sm:$0xff]  ;;  %v2213_v6 = vld [vmem:[#allocation8 + $0x1b58] sm:$0xff] }
 0x459   :  { %7984 = vmatprep.subr.bf16.mxu1 %v7983_v26  ;;  %v2100_v26 = vld [vmem:[#allocation8 + $0x17d0] sm:$0xff]  ;;  %v7745_v32 = vpack.c.bf16 %v2098_v21, %v2082_v20  ;;  %v2226_v20 = vld [vmem:[#allocation8 + $0x1bc0] sm:$0xff] }
 0x45a   :  { %v2212_v21 = vld [vmem:[#allocation8 + $0x1b50] sm:$0xff] }
 0x45b   :  { %7730 = vmatpush1.bf16.msra.mxu0 %v7729_v33  ;;  %v8001_v33 = vpack.c.bf16 %v2100_v26, %v2084_v22  ;;  %v8015_v22 = vpack.c.bf16 %v2229_v7, %v2213_v6  ;;  %v2243_v26 = vld [vmem:[#allocation8 + $0x1c48] sm:$0xff]  ;;  %v2357_v6 = vld [vmem:[#allocation8 + $0x1fd8] sm:$0xff] }
 0x45c   :  { %7986 = vmatpush1.bf16.msra.mxu1 %v7985_v34  ;;  %7732 = vmatprep.subr.bf16.mxu0 %v7731_v37  ;;  %v7747_v34 = vpack.c.bf16 %v2131_v31, %v2115_v28  ;;  %v2114_v37 = vld [vmem:[#allocation8 + $0x1840] sm:$0xff]  ;;  %v2259_v28 = vld [vmem:[#allocation8 + $0x1cc8] sm:$0xff]  ;;  %v2245_v31 = vld [vmem:[#allocation8 + $0x1c58] sm:$0xff] }
 0x45d   :  { %7988 = vmatprep.subr.bf16.mxu1 %v7987_v42  ;;  %v2132_v42 = vld [vmem:[#allocation8 + $0x18d0] sm:$0xff]  ;;  %v7749_v47 = vpack.c.bf16 %v2130_v39, %v2114_v37  ;;  %v2258_v37 = vld [vmem:[#allocation8 + $0x1cc0] sm:$0xff] }
 0x45e   :  { %v2244_v39 = vld [vmem:[#allocation8 + $0x1c50] sm:$0xff] }
 0x45f   :  { %7734 = vmatpush1.bf16.msra.mxu0 %v7733_v48  ;;  %v8005_v48 = vpack.c.bf16 %v2132_v42, %v2116_v55  ;;  %v8019_v55 = vpack.c.bf16 %v2261_v19, %v2245_v31  ;;  %v2275_v42 = vld [vmem:[#allocation8 + $0x1d48] sm:$0xff]  ;;  %v2389_v31 = vld [vmem:[#allocation8 + $0x20d8] sm:$0xff] }
 0x460   :  { %7990 = vmatpush1.bf16.msra.mxu1 %v7989_v10  ;;  %7736 = vmatprep.subr.bf16.mxu0 %v7735_v49  ;;  %v7751_v10 = vpack.c.bf16 %v2163_v45, %v2147_v44  ;;  %v2146_v49 = vld [vmem:[#allocation8 + $0x1940] sm:$0xff]  ;;  %v2291_v44 = vld [vmem:[#allocation8 + $0x1dc8] sm:$0xff]  ;;  %v2277_v45 = vld [vmem:[#allocation8 + $0x1d58] sm:$0xff] }
 0x461   :  { %7992 = vmatprep.subr.bf16.mxu1 %v7991_v53  ;;  %v2164_v53 = vld [vmem:[#allocation8 + $0x19d0] sm:$0xff]  ;;  %v7753_v60 = vpack.c.bf16 %v2162_v50, %v2146_v49  ;;  %v2290_v49 = vld [vmem:[#allocation8 + $0x1dc0] sm:$0xff] }
 0x462   :  { %v2276_v50 = vld [vmem:[#allocation8 + $0x1d50] sm:$0xff] }
 0x463   :  { %7738 = vmatpush1.bf16.msra.mxu0 %v7737_v61  ;;  %v8009_v61 = vpack.c.bf16 %v2164_v53, %v2148_v51  ;;  %v8023_v51 = vpack.c.bf16 %v2293_v2, %v2277_v45  ;;  %v2307_v53 = vld [vmem:[#allocation8 + $0x1e48] sm:$0xff]  ;;  %v2405_v45 = vld [vmem:[#allocation8 + $0x2158] sm:$0xff] }
 0x464   :  { %7994 = vmatpush1.bf16.msra.mxu1 %v7993_v62  ;;  %7740 = vmatprep.subr.bf16.mxu0 %v7739_v63  ;;  %v7755_v62 = vpack.c.bf16 %v2195_v57, %v2179_v56  ;;  %v2178_v63 = vld [vmem:[#allocation8 + $0x1a40] sm:$0xff]  ;;  %v2323_v56 = vld [vmem:[#allocation8 + $0x1ec8] sm:$0xff]  ;;  %v2309_v57 = vld [vmem:[#allocation8 + $0x1e58] sm:$0xff] }
 0x465   :  { %7996 = vmatprep.subr.bf16.mxu1 %v7995_v3  ;;  %v2196_v3 = vld [vmem:[#allocation8 + $0x1ad0] sm:$0xff]  ;;  %v7757_v11 = vpack.c.bf16 %v2194_v9, %v2178_v63  ;;  %v2322_v63 = vld [vmem:[#allocation8 + $0x1ec0] sm:$0xff]  ;;  %v2421_v2 = vld [vmem:[#allocation8 + $0x21d8] sm:$0xff] }
 0x466   :  { %v2308_v9 = vld [vmem:[#allocation8 + $0x1e50] sm:$0xff] }
 0x467   :  { %7742 = vmatpush1.bf16.msra.mxu0 %v7741_v12  ;;  %v8013_v12 = vpack.c.bf16 %v2196_v3, %v2180_v0  ;;  %v8027_v0 = vpack.c.bf16 %v2325_v58, %v2309_v57  ;;  %v2339_v3 = vld [vmem:[#allocation8 + $0x1f48] sm:$0xff]  ;;  %v2453_v57 = vld [vmem:[#allocation8 + $0x22d8] sm:$0xff] }
 0x468   :  { %7998 = vmatpush1.bf16.msra.mxu1 %v7997_v14  ;;  %7744 = vmatprep.subr.bf16.mxu0 %v7743_v18  ;;  %v7759_v14 = vpack.c.bf16 %v2227_v5, %v2211_v4  ;;  %v2210_v18 = vld [vmem:[#allocation8 + $0x1b40] sm:$0xff]  ;;  %v2355_v4 = vld [vmem:[#allocation8 + $0x1fc8] sm:$0xff]  ;;  %v2341_v5 = vld [vmem:[#allocation8 + $0x1f58] sm:$0xff] }
 0x469   :  { %8000 = vmatprep.subr.bf16.mxu1 %v7999_v8  ;;  %v2228_v8 = vld [vmem:[#allocation8 + $0x1bd0] sm:$0xff]  ;;  %v7761_v15 = vpack.c.bf16 %v2226_v20, %v2210_v18  ;;  %v2354_v18 = vld [vmem:[#allocation8 + $0x1fc0] sm:$0xff] }
 0x46a   :  { %v2340_v20 = vld [vmem:[#allocation8 + $0x1f50] sm:$0xff] }
 0x46b   :  { %7746 = vmatpush1.bf16.msra.mxu0 %v7745_v32  ;;  %v8017_v32 = vpack.c.bf16 %v2228_v8, %v2212_v21  ;;  %v8031_v21 = vpack.c.bf16 %v2357_v6, %v2341_v5  ;;  %v2371_v8 = vld [vmem:[#allocation8 + $0x2048] sm:$0xff]  ;;  %v2485_v5 = vld [vmem:[#allocation8 + $0x23d8] sm:$0xff] }
 0x46c   :  { %8002 = vmatpush1.bf16.msra.mxu1 %v8001_v33  ;;  %7748 = vmatprep.subr.bf16.mxu0 %v7747_v34  ;;  %v7763_v33 = vpack.c.bf16 %v2259_v28, %v2243_v26  ;;  %v2242_v34 = vld [vmem:[#allocation8 + $0x1c40] sm:$0xff]  ;;  %v2387_v26 = vld [vmem:[#allocation8 + $0x20c8] sm:$0xff]  ;;  %v2373_v28 = vld [vmem:[#allocation8 + $0x2058] sm:$0xff] }
 0x46d   :  { %8004 = vmatprep.subr.bf16.mxu1 %v8003_v41  ;;  %v2260_v41 = vld [vmem:[#allocation8 + $0x1cd0] sm:$0xff]  ;;  %v7765_v46 = vpack.c.bf16 %v2258_v37, %v2242_v34  ;;  %v2386_v34 = vld [vmem:[#allocation8 + $0x20c0] sm:$0xff]  ;;  %v8035_v37 = vpack.c.bf16 %v2389_v31, %v2373_v28  ;;  %v2517_v28 = vld [vmem:[#allocation8 + $0x24d8] sm:$0xff] }
 0x46f   :  { %7750 = vmatpush1.bf16.msra.mxu0 %v7749_v47  ;;  %v8021_v47 = vpack.c.bf16 %v2260_v41, %v2244_v39  ;;  %v2372_v39 = vld [vmem:[#allocation8 + $0x2050] sm:$0xff]  ;;  %v2403_v41 = vld [vmem:[#allocation8 + $0x2148] sm:$0xff] }
 0x470   :  { %8006 = vmatpush1.bf16.msra.mxu1 %v8005_v48  ;;  %7752 = vmatprep.subr.bf16.mxu0 %v7751_v10  ;;  %v7767_v48 = vpack.c.bf16 %v2291_v44, %v2275_v42  ;;  %v2274_v10 = vld [vmem:[#allocation8 + $0x1d40] sm:$0xff]  ;;  %v2419_v42 = vld [vmem:[#allocation8 + $0x21c8] sm:$0xff] }
 0x471   :  { %8008 = vmatprep.subr.bf16.mxu1 %v8007_v52  ;;  %v2292_v52 = vld [vmem:[#allocation8 + $0x1dd0] sm:$0xff]  ;;  %v7769_v59 = vpack.c.bf16 %v2290_v49, %v2274_v10  ;;  %v7783_v49 = vpack.c.bf16 %v2419_v42, %v2403_v41  ;;  %v2547_v41 = vld [vmem:[#allocation8 + $0x25c8] sm:$0xff]  ;;  %v2533_v42 = vld [vmem:[#allocation8 + $0x2558] sm:$0xff] }
 0x472   :  { %v2404_v10 = vld [vmem:[#allocation8 + $0x2150] sm:$0xff] }
 0x473   :  { %7754 = vmatpush1.bf16.msra.mxu0 %v7753_v60  ;;  %v8025_v60 = vpack.c.bf16 %v2292_v52, %v2276_v50  ;;  %v2420_v50 = vld [vmem:[#allocation8 + $0x21d0] sm:$0xff]  ;;  %v2451_v52 = vld [vmem:[#allocation8 + $0x22c8] sm:$0xff] }
 0x474   :  { %8010 = vmatpush1.bf16.msra.mxu1 %v8009_v61  ;;  %7756 = vmatprep.subr.bf16.mxu0 %v7755_v62  ;;  %v7771_v61 = vpack.c.bf16 %v2323_v56, %v2307_v53  ;;  %v2306_v62 = vld [vmem:[#allocation8 + $0x1e40] sm:$0xff]  ;;  %v8039_v53 = vpack.c.bf16 %v2421_v2, %v2405_v45  ;;  %v2437_v56 = vld [vmem:[#allocation8 + $0x2258] sm:$0xff] }
 0x475   :  { %8012 = vmatprep.subr.bf16.mxu1 %v8011_v1  ;;  %v2324_v1 = vld [vmem:[#allocation8 + $0x1ed0] sm:$0xff]  ;;  %v7773_v7 = vpack.c.bf16 %v2322_v63, %v2306_v62  ;;  %v2450_v62 = vld [vmem:[#allocation8 + $0x22c0] sm:$0xff] }
 0x476   :  { %v2436_v63 = vld [vmem:[#allocation8 + $0x2250] sm:$0xff] }
 0x477   :  { %7758 = vmatpush1.bf16.msra.mxu0 %v7757_v11  ;;  %v8029_v11 = vpack.c.bf16 %v2324_v1, %v2308_v9  ;;  %v8043_v9 = vpack.c.bf16 %v2453_v57, %v2437_v56  ;;  %v2467_v1 = vld [vmem:[#allocation8 + $0x2348] sm:$0xff]  ;;  %v2581_v56 = vld [vmem:[#allocation8 + $0x26d8] sm:$0xff] }
 0x478   :  { %8014 = vmatpush1.bf16.msra.mxu1 %v8013_v12  ;;  %7760 = vmatprep.subr.bf16.mxu0 %v7759_v14  ;;  %v7775_v12 = vpack.c.bf16 %v2355_v4, %v2339_v3  ;;  %v2338_v14 = vld [vmem:[#allocation8 + $0x1f40] sm:$0xff]  ;;  %v2483_v3 = vld [vmem:[#allocation8 + $0x23c8] sm:$0xff]  ;;  %v2469_v4 = vld [vmem:[#allocation8 + $0x2358] sm:$0xff] }
 0x479   :  { %8016 = vmatprep.subr.bf16.mxu1 %v8015_v22  ;;  %v2356_v22 = vld [vmem:[#allocation8 + $0x1fd0] sm:$0xff]  ;;  %v7777_v19 = vpack.c.bf16 %v2354_v18, %v2338_v14  ;;  %v2482_v14 = vld [vmem:[#allocation8 + $0x23c0] sm:$0xff] }
 0x47a   :  { %v2468_v18 = vld [vmem:[#allocation8 + $0x2350] sm:$0xff] }
 0x47b   :  { %7762 = vmatpush1.bf16.msra.mxu0 %v7761_v15  ;;  %v8033_v15 = vpack.c.bf16 %v2356_v22, %v2340_v20  ;;  %v8047_v20 = vpack.c.bf16 %v2485_v5, %v2469_v4  ;;  %v2499_v22 = vld [vmem:[#allocation8 + $0x2448] sm:$0xff]  ;;  %v2613_v4 = vld [vmem:[#allocation8 + $0x27d8] sm:$0xff] }
 0x47c   :  { %8018 = vmatpush1.bf16.msra.mxu1 %v8017_v32  ;;  %7764 = vmatprep.subr.bf16.mxu0 %v7763_v33  ;;  %v7779_v32 = vpack.c.bf16 %v2387_v26, %v2371_v8  ;;  %v2370_v33 = vld [vmem:[#allocation8 + $0x2040] sm:$0xff]  ;;  %v2515_v8 = vld [vmem:[#allocation8 + $0x24c8] sm:$0xff]  ;;  %v2501_v26 = vld [vmem:[#allocation8 + $0x2458] sm:$0xff] }
 0x47d   :  { %8020 = vmatprep.subr.bf16.mxu1 %v8019_v55  ;;  %v2388_v55 = vld [vmem:[#allocation8 + $0x20d0] sm:$0xff]  ;;  %v7781_v44 = vpack.c.bf16 %v2386_v34, %v2370_v33  ;;  %v2514_v33 = vld [vmem:[#allocation8 + $0x24c0] sm:$0xff] }
 0x47e   :  { %v2500_v34 = vld [vmem:[#allocation8 + $0x2450] sm:$0xff] }
 0x47f   :  { %7766 = vmatpush1.bf16.msra.mxu0 %v7765_v46  ;;  %v8037_v46 = vpack.c.bf16 %v2388_v55, %v2372_v39  ;;  %v2516_v39 = vld [vmem:[#allocation8 + $0x24d0] sm:$0xff]  ;;  %v2531_v55 = vld [vmem:[#allocation8 + $0x2548] sm:$0xff] }
 0x480   :  { %8022 = vmatpush1.bf16.msra.mxu1 %v8021_v47  ;;  %7768 = vmatprep.subr.bf16.mxu0 %v7767_v48  ;;  %v2402_v47 = vld [vmem:[#allocation8 + $0x2140] sm:$0xff]  ;;  %v8053_v2 = vpack.c.bf16 %v2516_v39, %v2500_v34  ;;  %v2659_v39 = vld [vmem:[#allocation8 + $0x2948] sm:$0xff] }
 0x481   :  { %8024 = vmatprep.subr.bf16.mxu1 %v8023_v51  ;;  %v2418_v48 = vld [vmem:[#allocation8 + $0x21c0] sm:$0xff]  ;;  %v2435_v51 = vld [vmem:[#allocation8 + $0x2248] sm:$0xff] }
 0x482   :  { %v7785_v58 = vpack.c.bf16 %v2418_v48, %v2402_v47  ;;  %v2530_v47 = vld [vmem:[#allocation8 + $0x2540] sm:$0xff] }
 0x483   :  { %7770 = vmatpush1.bf16.msra.mxu0 %v7769_v59  ;;  %v8041_v59 = vpack.c.bf16 %v2420_v50, %v2404_v10  ;;  %v2546_v48 = vld [vmem:[#allocation8 + $0x25c0] sm:$0xff]  ;;  %v2532_v10 = vld [vmem:[#allocation8 + $0x2550] sm:$0xff] }
 0x484   :  { %8026 = vmatpush1.bf16.msra.mxu1 %v8025_v60  ;;  %7772 = vmatprep.subr.bf16.mxu0 %v7771_v61  ;;  %v7787_v60 = vpack.c.bf16 %v2451_v52, %v2435_v51  ;;  %v2434_v61 = vld [vmem:[#allocation8 + $0x2240] sm:$0xff]  ;;  %v2548_v50 = vld [vmem:[#allocation8 + $0x25d0] sm:$0xff]  ;;  %v2563_v51 = vld [vmem:[#allocation8 + $0x2648] sm:$0xff]  ;;  %v7801_v57 = vpack.c.bf16 %v2546_v48, %v2530_v47 }
 0x485   :  { %8028 = vmatprep.subr.bf16.mxu1 %v8027_v0  ;;  %v2452_v0 = vld [vmem:[#allocation8 + $0x22d0] sm:$0xff]  ;;  %v7789_v6 = vpack.c.bf16 %v2450_v62, %v2434_v61  ;;  %v2579_v52 = vld [vmem:[#allocation8 + $0x26c8] sm:$0xff]  ;;  %v2578_v61 = vld [vmem:[#allocation8 + $0x26c0] sm:$0xff] }
 0x486   :  { %v2564_v62 = vld [vmem:[#allocation8 + $0x2650] sm:$0xff]  ;;  %v2674_v47 = vld [vmem:[#allocation8 + $0x29c0] sm:$0xff] }
 0x487   :  { %7774 = vmatpush1.bf16.msra.mxu0 %v7773_v7  ;;  %v8045_v7 = vpack.c.bf16 %v2452_v0, %v2436_v63  ;;  %v2595_v0 = vld [vmem:[#allocation8 + $0x2748] sm:$0xff]  ;;  %v2660_v48 = vld [vmem:[#allocation8 + $0x2950] sm:$0xff] }
 0x488   :  { %8030 = vmatpush1.bf16.msra.mxu1 %v8029_v11  ;;  %7776 = vmatprep.subr.bf16.mxu0 %v7775_v12  ;;  %v7791_v11 = vpack.c.bf16 %v2483_v3, %v2467_v1  ;;  %v2466_v12 = vld [vmem:[#allocation8 + $0x2340] sm:$0xff]  ;;  %v2611_v1 = vld [vmem:[#allocation8 + $0x27c8] sm:$0xff]  ;;  %v2597_v3 = vld [vmem:[#allocation8 + $0x2758] sm:$0xff] }
 0x489   :  { %8032 = vmatprep.subr.bf16.mxu1 %v8031_v21  ;;  %v2484_v21 = vld [vmem:[#allocation8 + $0x23d0] sm:$0xff]  ;;  %v7793_v31 = vpack.c.bf16 %v2482_v14, %v2466_v12  ;;  %v2610_v12 = vld [vmem:[#allocation8 + $0x27c0] sm:$0xff] }
 0x48a   :  { %v2596_v14 = vld [vmem:[#allocation8 + $0x2750] sm:$0xff] }
 0x48b   :  { %7778 = vmatpush1.bf16.msra.mxu0 %v7777_v19  ;;  %v8049_v19 = vpack.c.bf16 %v2484_v21, %v2468_v18  ;;  %v8063_v18 = vpack.c.bf16 %v2613_v4, %v2597_v3  ;;  %v2627_v21 = vld [vmem:[#allocation8 + $0x2848] sm:$0xff]  ;;  %v2741_v3 = vld [vmem:[#allocation8 + $0x2bd8] sm:$0xff] }
 0x48c   :  { %8034 = vmatpush1.bf16.msra.mxu1 %v8033_v15  ;;  %7780 = vmatprep.subr.bf16.mxu0 %v7779_v32  ;;  %v7795_v15 = vpack.c.bf16 %v2515_v8, %v2499_v22  ;;  %v2498_v32 = vld [vmem:[#allocation8 + $0x2440] sm:$0xff]  ;;  %v2643_v22 = vld [vmem:[#allocation8 + $0x28c8] sm:$0xff]  ;;  %v2629_v8 = vld [vmem:[#allocation8 + $0x2858] sm:$0xff] }
 0x48d   :  { %8036 = vmatprep.subr.bf16.mxu1 %v8035_v37  ;;  %v8051_v37 = vpack.c.bf16 %v2517_v28, %v2501_v26  ;;  %v7797_v45 = vpack.c.bf16 %v2514_v33, %v2498_v32  ;;  %v2645_v26 = vld [vmem:[#allocation8 + $0x28d8] sm:$0xff]  ;;  %v2642_v32 = vld [vmem:[#allocation8 + $0x28c0] sm:$0xff]  ;;  %v2628_v33 = vld [vmem:[#allocation8 + $0x2850] sm:$0xff] }
 0x48e   :  { %4658 = vmatmul.mubr.f32.vlgmr.msra.gmra.mrb[12].mxu0 %v9040_v54  ;;  %v8067_v34 = vpack.c.bf16 %v2645_v26, %v2629_v8  ;;  %v2773_v8 = vld [vmem:[#allocation8 + $0x2cd8] sm:$0xff] }
 0x48f   :  { %4942 = vmatmul.mubr.f32.vlgmr.msra.gmra.mrb[12].mxu1 %v9040_v54  ;;  %7782 = vmatpush1.bf16.msra.mxu0 %v7781_v44  ;;  %v2549_v44 = vld [vmem:[#allocation8 + $0x25d8] sm:$0xff] }
 0x490   :  { %4728 = vmatprep.mubr.f32.mxu0 %v9051_v30  ;;  %8038 = vmatpush1.bf16.msra.mxu1 %v8037_v46  ;;  %v7799_v46 = vpack.c.bf16 %v2547_v41, %v2531_v55  ;;  %v2675_v55 = vld [vmem:[#allocation8 + $0x29c8] sm:$0xff]  ;;  %v2661_v41 = vld [vmem:[#allocation8 + $0x2958] sm:$0xff] }
 0x491   :  { %5012 = vmatprep.mubr.f32.mxu1 %v9051_v30  ;;  %7784 = vmatprep.subr.bf16.mxu0 %v7783_v49  ;;  %v8055_v49 = vpack.c.bf16 %v2549_v44, %v2533_v42  ;;  %v2677_v42 = vld [vmem:[#allocation8 + $0x29d8] sm:$0xff] }
 0x492   :  { %8040 = vmatprep.subr.bf16.mxu1 %v8039_v53  ;;  %v2565_v53 = vld [vmem:[#allocation8 + $0x2658] sm:$0xff] }
 0x493   :  { %7786 = vmatpush1.bf16.msra.mxu0 %v7785_v58  ;;  %v8057_v58 = vpack.c.bf16 %v2548_v50, %v2532_v10  ;;  %v8059_v63 = vpack.c.bf16 %v2581_v56, %v2565_v53  ;;  %v8071_v10 = vpack.c.bf16 %v2677_v42, %v2661_v41  ;;  %v2691_v50 = vld [vmem:[#allocation8 + $0x2a48] sm:$0xff]  ;;  %v2709_v53 = vld [vmem:[#allocation8 + $0x2ad8] sm:$0xff] }
 0x494   :  { %8042 = vmatpush1.bf16.msra.mxu1 %v8041_v59  ;;  %7788 = vmatprep.subr.bf16.mxu0 %v7787_v60  ;;  %v7803_v59 = vpack.c.bf16 %v2579_v52, %v2563_v51  ;;  %v2562_v60 = vld [vmem:[#allocation8 + $0x2640] sm:$0xff]  ;;  %v2707_v51 = vld [vmem:[#allocation8 + $0x2ac8] sm:$0xff]  ;;  %v2693_v52 = vld [vmem:[#allocation8 + $0x2a58] sm:$0xff] }
 0x495   :  { %8044 = vmatprep.subr.bf16.mxu1 %v8043_v9  ;;  %v2580_v9 = vld [vmem:[#allocation8 + $0x26d0] sm:$0xff]  ;;  %v7805_v5 = vpack.c.bf16 %v2578_v61, %v2562_v60  ;;  %v2706_v60 = vld [vmem:[#allocation8 + $0x2ac0] sm:$0xff]  ;;  %v2805_v41 = vld [vmem:[#allocation8 + $0x2dd8] sm:$0xff] }
 0x496   :  { %v2692_v61 = vld [vmem:[#allocation8 + $0x2a50] sm:$0xff] }
 0x497   :  { %7790 = vmatpush1.bf16.msra.mxu0 %v7789_v6  ;;  %v8061_v6 = vpack.c.bf16 %v2580_v9, %v2564_v62  ;;  %v8075_v62 = vpack.c.bf16 %v2709_v53, %v2693_v52  ;;  %v2723_v9 = vld [vmem:[#allocation8 + $0x2b48] sm:$0xff]  ;;  %v2837_v52 = vld [vmem:[#allocation8 + $0x2ed8] sm:$0xff] }
 0x498   :  { %8046 = vmatpush1.bf16.msra.mxu1 %v8045_v7  ;;  %7792 = vmatprep.subr.bf16.mxu0 %v7791_v11  ;;  %v7807_v7 = vpack.c.bf16 %v2611_v1, %v2595_v0  ;;  %v2594_v11 = vld [vmem:[#allocation8 + $0x2740] sm:$0xff]  ;;  %v2739_v0 = vld [vmem:[#allocation8 + $0x2bc8] sm:$0xff]  ;;  %v2725_v1 = vld [vmem:[#allocation8 + $0x2b58] sm:$0xff] }
 0x499   :  { %8048 = vmatprep.subr.bf16.mxu1 %v8047_v20  ;;  %v2612_v20 = vld [vmem:[#allocation8 + $0x27d0] sm:$0xff]  ;;  %v7809_v28 = vpack.c.bf16 %v2610_v12, %v2594_v11  ;;  %v2738_v11 = vld [vmem:[#allocation8 + $0x2bc0] sm:$0xff] }
 0x49a   :  { %v2724_v12 = vld [vmem:[#allocation8 + $0x2b50] sm:$0xff] }
 0x49b   :  { %7794 = vmatpush1.bf16.msra.mxu0 %v7793_v31  ;;  %v8065_v31 = vpack.c.bf16 %v2612_v20, %v2596_v14  ;;  %v8079_v14 = vpack.c.bf16 %v2741_v3, %v2725_v1  ;;  %v2755_v20 = vld [vmem:[#allocation8 + $0x2c48] sm:$0xff]  ;;  %v2869_v1 = vld [vmem:[#allocation8 + $0x2fd8] sm:$0xff] }
 0x49c   :  { %8050 = vmatpush1.bf16.msra.mxu1 %v8049_v19  ;;  %7796 = vmatprep.subr.bf16.mxu0 %v7795_v15  ;;  %v7811_v19 = vpack.c.bf16 %v2643_v22, %v2627_v21  ;;  %v2626_v15 = vld [vmem:[#allocation8 + $0x2840] sm:$0xff]  ;;  %v2771_v21 = vld [vmem:[#allocation8 + $0x2cc8] sm:$0xff]  ;;  %v2757_v22 = vld [vmem:[#allocation8 + $0x2c58] sm:$0xff] }
 0x49d   :  { %8052 = vmatprep.subr.bf16.mxu1 %v8051_v37  ;;  %v2644_v37 = vld [vmem:[#allocation8 + $0x28d0] sm:$0xff]  ;;  %v7813_v44 = vpack.c.bf16 %v2642_v32, %v2626_v15  ;;  %v2770_v15 = vld [vmem:[#allocation8 + $0x2cc0] sm:$0xff] }
 0x49e   :  { %v2756_v32 = vld [vmem:[#allocation8 + $0x2c50] sm:$0xff] }
 0x49f   :  { %7798 = vmatpush1.bf16.msra.mxu0 %v7797_v45  ;;  %v8069_v45 = vpack.c.bf16 %v2644_v37, %v2628_v33  ;;  %v8083_v33 = vpack.c.bf16 %v2773_v8, %v2757_v22  ;;  %v2787_v37 = vld [vmem:[#allocation8 + $0x2d48] sm:$0xff]  ;;  %v2901_v22 = vld [vmem:[#allocation8 + $0x30d8] sm:$0xff] }
 0x4a0   :  { %8054 = vmatpush1.bf16.msra.mxu1 %v8053_v2  ;;  %7800 = vmatprep.subr.bf16.mxu0 %v7799_v46  ;;  %v7815_v2 = vpack.c.bf16 %v2675_v55, %v2659_v39  ;;  %v2658_v46 = vld [vmem:[#allocation8 + $0x2940] sm:$0xff]  ;;  %v2803_v39 = vld [vmem:[#allocation8 + $0x2dc8] sm:$0xff]  ;;  %v2789_v55 = vld [vmem:[#allocation8 + $0x2d58] sm:$0xff] }
 0x4a1   :  { %8056 = vmatprep.subr.bf16.mxu1 %v8055_v49  ;;  %v2676_v49 = vld [vmem:[#allocation8 + $0x29d0] sm:$0xff]  ;;  %v7817_v56 = vpack.c.bf16 %v2674_v47, %v2658_v46  ;;  %v2802_v46 = vld [vmem:[#allocation8 + $0x2dc0] sm:$0xff] }
 0x4a2   :  { %v2788_v47 = vld [vmem:[#allocation8 + $0x2d50] sm:$0xff] }
 0x4a3   :  { %7802 = vmatpush1.bf16.msra.mxu0 %v7801_v57  ;;  %v8073_v57 = vpack.c.bf16 %v2676_v49, %v2660_v48  ;;  %v8087_v48 = vpack.c.bf16 %v2805_v41, %v2789_v55  ;;  %v2819_v49 = vld [vmem:[#allocation8 + $0x2e48] sm:$0xff]  ;;  %v2917_v55 = vld [vmem:[#allocation8 + $0x3158] sm:$0xff] }
 0x4a4   :  { %8058 = vmatpush1.bf16.msra.mxu1 %v8057_v58  ;;  %7804 = vmatprep.subr.bf16.mxu0 %v7803_v59  ;;  %v7819_v58 = vpack.c.bf16 %v2707_v51, %v2691_v50  ;;  %v2690_v59 = vld [vmem:[#allocation8 + $0x2a40] sm:$0xff]  ;;  %v2835_v50 = vld [vmem:[#allocation8 + $0x2ec8] sm:$0xff]  ;;  %v2821_v51 = vld [vmem:[#allocation8 + $0x2e58] sm:$0xff] }
 0x4a5   :  { %8060 = vmatprep.subr.bf16.mxu1 %v8059_v63  ;;  %v2708_v63 = vld [vmem:[#allocation8 + $0x2ad0] sm:$0xff]  ;;  %v7821_v4 = vpack.c.bf16 %v2706_v60, %v2690_v59  ;;  %v2834_v59 = vld [vmem:[#allocation8 + $0x2ec0] sm:$0xff]  ;;  %v2933_v41 = vld [vmem:[#allocation8 + $0x31d8] sm:$0xff] }
 0x4a6   :  { %v2820_v60 = vld [vmem:[#allocation8 + $0x2e50] sm:$0xff] }
 0x4a7   :  { %7806 = vmatpush1.bf16.msra.mxu0 %v7805_v5  ;;  %v8077_v5 = vpack.c.bf16 %v2708_v63, %v2692_v61  ;;  %v8091_v61 = vpack.c.bf16 %v2837_v52, %v2821_v51  ;;  %v2851_v63 = vld [vmem:[#allocation8 + $0x2f48] sm:$0xff]  ;;  %v2965_v51 = vld [vmem:[#allocation8 + $0x32d8] sm:$0xff] }
 0x4a8   :  { %8062 = vmatpush1.bf16.msra.mxu1 %v8061_v6  ;;  %7808 = vmatprep.subr.bf16.mxu0 %v7807_v7  ;;  %v7823_v6 = vpack.c.bf16 %v2739_v0, %v2723_v9  ;;  %v2722_v7 = vld [vmem:[#allocation8 + $0x2b40] sm:$0xff]  ;;  %v2867_v9 = vld [vmem:[#allocation8 + $0x2fc8] sm:$0xff]  ;;  %v2853_v0 = vld [vmem:[#allocation8 + $0x2f58] sm:$0xff] }
 0x4a9   :  { %8064 = vmatprep.subr.bf16.mxu1 %v8063_v18  ;;  %v2740_v18 = vld [vmem:[#allocation8 + $0x2bd0] sm:$0xff]  ;;  %v7825_v26 = vpack.c.bf16 %v2738_v11, %v2722_v7  ;;  %v2866_v7 = vld [vmem:[#allocation8 + $0x2fc0] sm:$0xff] }
 0x4aa   :  { %v2852_v11 = vld [vmem:[#allocation8 + $0x2f50] sm:$0xff] }
 0x4ab   :  { %7810 = vmatpush1.bf16.msra.mxu0 %v7809_v28  ;;  %v8081_v28 = vpack.c.bf16 %v2740_v18, %v2724_v12  ;;  %v8095_v12 = vpack.c.bf16 %v2869_v1, %v2853_v0  ;;  %v2883_v18 = vld [vmem:[#allocation8 + $0x3048] sm:$0xff]  ;;  %v2997_v0 = vld [vmem:[#allocation8 + $0x33d8] sm:$0xff] }
 0x4ac   :  { %8066 = vmatpush1.bf16.msra.mxu1 %v8065_v31  ;;  %7812 = vmatprep.subr.bf16.mxu0 %v7811_v19  ;;  %v7827_v31 = vpack.c.bf16 %v2771_v21, %v2755_v20  ;;  %v2754_v19 = vld [vmem:[#allocation8 + $0x2c40] sm:$0xff]  ;;  %v2899_v20 = vld [vmem:[#allocation8 + $0x30c8] sm:$0xff]  ;;  %v2885_v21 = vld [vmem:[#allocation8 + $0x3058] sm:$0xff] }
 0x4ad   :  { %8068 = vmatprep.subr.bf16.mxu1 %v8067_v34  ;;  %v2772_v34 = vld [vmem:[#allocation8 + $0x2cd0] sm:$0xff]  ;;  %v7829_v42 = vpack.c.bf16 %v2770_v15, %v2754_v19  ;;  %v2898_v19 = vld [vmem:[#allocation8 + $0x30c0] sm:$0xff]  ;;  %v8099_v15 = vpack.c.bf16 %v2901_v22, %v2885_v21  ;;  %v3029_v21 = vld [vmem:[#allocation8 + $0x34d8] sm:$0xff] }
 0x4af   :  { %7814 = vmatpush1.bf16.msra.mxu0 %v7813_v44  ;;  %v8085_v44 = vpack.c.bf16 %v2772_v34, %v2756_v32  ;;  %v2884_v32 = vld [vmem:[#allocation8 + $0x3050] sm:$0xff]  ;;  %v2915_v34 = vld [vmem:[#allocation8 + $0x3148] sm:$0xff] }
 0x4b0   :  { %8070 = vmatpush1.bf16.msra.mxu1 %v8069_v45  ;;  %7816 = vmatprep.subr.bf16.mxu0 %v7815_v2  ;;  %v7831_v45 = vpack.c.bf16 %v2803_v39, %v2787_v37  ;;  %v2786_v2 = vld [vmem:[#allocation8 + $0x2d40] sm:$0xff]  ;;  %v2931_v37 = vld [vmem:[#allocation8 + $0x31c8] sm:$0xff] }
 0x4b1   :  { %8072 = vmatprep.subr.bf16.mxu1 %v8071_v10  ;;  %v2804_v10 = vld [vmem:[#allocation8 + $0x2dd0] sm:$0xff]  ;;  %v7833_v53 = vpack.c.bf16 %v2802_v46, %v2786_v2  ;;  %v7847_v46 = vpack.c.bf16 %v2931_v37, %v2915_v34  ;;  %v3059_v34 = vld [vmem:[#allocation8 + $0x35c8] sm:$0xff]  ;;  %v3045_v37 = vld [vmem:[#allocation8 + $0x3558] sm:$0xff] }
 0x4b2   :  { %v2916_v2 = vld [vmem:[#allocation8 + $0x3150] sm:$0xff] }
 0x4b3   :  { %7818 = vmatpush1.bf16.msra.mxu0 %v7817_v56  ;;  %v8089_v56 = vpack.c.bf16 %v2804_v10, %v2788_v47  ;;  %v2932_v47 = vld [vmem:[#allocation8 + $0x31d0] sm:$0xff]  ;;  %v2963_v10 = vld [vmem:[#allocation8 + $0x32c8] sm:$0xff] }
 0x4b4   :  { %8074 = vmatpush1.bf16.msra.mxu1 %v8073_v57  ;;  %7820 = vmatprep.subr.bf16.mxu0 %v7819_v58  ;;  %v7835_v57 = vpack.c.bf16 %v2835_v50, %v2819_v49  ;;  %v2818_v58 = vld [vmem:[#allocation8 + $0x2e40] sm:$0xff]  ;;  %v8103_v49 = vpack.c.bf16 %v2933_v41, %v2917_v55  ;;  %v2949_v50 = vld [vmem:[#allocation8 + $0x3258] sm:$0xff] }
 0x4b5   :  { %8076 = vmatprep.subr.bf16.mxu1 %v8075_v62  ;;  %v2836_v62 = vld [vmem:[#allocation8 + $0x2ed0] sm:$0xff]  ;;  %v7837_v3 = vpack.c.bf16 %v2834_v59, %v2818_v58  ;;  %v2962_v58 = vld [vmem:[#allocation8 + $0x32c0] sm:$0xff] }
 0x4b6   :  { %v2948_v59 = vld [vmem:[#allocation8 + $0x3250] sm:$0xff] }
 0x4b7   :  { %7822 = vmatpush1.bf16.msra.mxu0 %v7821_v4  ;;  %v8093_v4 = vpack.c.bf16 %v2836_v62, %v2820_v60  ;;  %v8107_v60 = vpack.c.bf16 %v2965_v51, %v2949_v50  ;;  %v2979_v62 = vld [vmem:[#allocation8 + $0x3348] sm:$0xff]  ;;  %v3093_v50 = vld [vmem:[#allocation8 + $0x36d8] sm:$0xff] }
 0x4b8   :  { %8078 = vmatpush1.bf16.msra.mxu1 %v8077_v5  ;;  %7824 = vmatprep.subr.bf16.mxu0 %v7823_v6  ;;  %v7839_v5 = vpack.c.bf16 %v2867_v9, %v2851_v63  ;;  %v2850_v6 = vld [vmem:[#allocation8 + $0x2f40] sm:$0xff]  ;;  %v2995_v63 = vld [vmem:[#allocation8 + $0x33c8] sm:$0xff]  ;;  %v2981_v9 = vld [vmem:[#allocation8 + $0x3358] sm:$0xff] }
 0x4b9   :  { %8080 = vmatprep.subr.bf16.mxu1 %v8079_v14  ;;  %v2868_v14 = vld [vmem:[#allocation8 + $0x2fd0] sm:$0xff]  ;;  %v7841_v8 = vpack.c.bf16 %v2866_v7, %v2850_v6  ;;  %v2994_v6 = vld [vmem:[#allocation8 + $0x33c0] sm:$0xff] }
 0x4ba   :  { %v2980_v7 = vld [vmem:[#allocation8 + $0x3350] sm:$0xff] }
 0x4bb   :  { %7826 = vmatpush1.bf16.msra.mxu0 %v7825_v26  ;;  %v8097_v26 = vpack.c.bf16 %v2868_v14, %v2852_v11  ;;  %v8111_v11 = vpack.c.bf16 %v2997_v0, %v2981_v9  ;;  %v3011_v14 = vld [vmem:[#allocation8 + $0x3448] sm:$0xff] }
 0x4bc   :  { %8082 = vmatpush1.bf16.msra.mxu1 %v8081_v28  ;;  %7828 = vmatprep.subr.bf16.mxu0 %v7827_v31  ;;  %v7843_v28 = vpack.c.bf16 %v2899_v20, %v2883_v18  ;;  %v2882_v31 = vld [vmem:[#allocation8 + $0x3040] sm:$0xff]  ;;  %v3027_v18 = vld [vmem:[#allocation8 + $0x34c8] sm:$0xff]  ;;  %v3013_v20 = vld [vmem:[#allocation8 + $0x3458] sm:$0xff] }
 0x4bd   :  { %8084 = vmatprep.subr.bf16.mxu1 %v8083_v33  ;;  %v2900_v33 = vld [vmem:[#allocation8 + $0x30d0] sm:$0xff]  ;;  %v7845_v39 = vpack.c.bf16 %v2898_v19, %v2882_v31  ;;  %v3026_v31 = vld [vmem:[#allocation8 + $0x34c0] sm:$0xff] }
 0x4be   :  { %v3012_v19 = vld [vmem:[#allocation8 + $0x3450] sm:$0xff] }
 0x4bf   :  { %7830 = vmatpush1.bf16.msra.mxu0 %v7829_v42  ;;  %v8101_v42 = vpack.c.bf16 %v2900_v33, %v2884_v32  ;;  %v3028_v32 = vld [vmem:[#allocation8 + $0x34d0] sm:$0xff]  ;;  %v3043_v33 = vld [vmem:[#allocation8 + $0x3548] sm:$0xff] }
 0x4c0   :  { %8086 = vmatpush1.bf16.msra.mxu1 %v8085_v44  ;;  %7832 = vmatprep.subr.bf16.mxu0 %v7831_v45  ;;  %v2914_v44 = vld [vmem:[#allocation8 + $0x3140] sm:$0xff]  ;;  %v8117_v41 = vpack.c.bf16 %v3028_v32, %v3012_v19 }
 0x4c1   :  { %8088 = vmatprep.subr.bf16.mxu1 %v8087_v48  ;;  %v2930_v45 = vld [vmem:[#allocation8 + $0x31c0] sm:$0xff]  ;;  %v2947_v48 = vld [vmem:[#allocation8 + $0x3248] sm:$0xff] }
 0x4c2   :  { %v7849_v52 = vpack.c.bf16 %v2930_v45, %v2914_v44  ;;  %v3042_v44 = vld [vmem:[#allocation8 + $0x3540] sm:$0xff] }
 0x4c3   :  { %7834 = vmatpush1.bf16.msra.mxu0 %v7833_v53  ;;  %v8105_v53 = vpack.c.bf16 %v2932_v47, %v2916_v2  ;;  %v3058_v45 = vld [vmem:[#allocation8 + $0x35c0] sm:$0xff]  ;;  %v3044_v2 = vld [vmem:[#allocation8 + $0x3550] sm:$0xff] }
 0x4c4   :  { %8090 = vmatpush1.bf16.msra.mxu1 %v8089_v56  ;;  %7836 = vmatprep.subr.bf16.mxu0 %v7835_v57  ;;  %v7851_v56 = vpack.c.bf16 %v2963_v10, %v2947_v48  ;;  %v2946_v57 = vld [vmem:[#allocation8 + $0x3240] sm:$0xff]  ;;  %v3060_v47 = vld [vmem:[#allocation8 + $0x35d0] sm:$0xff]  ;;  %v3075_v48 = vld [vmem:[#allocation8 + $0x3648] sm:$0xff]  ;;  %v7865_v51 = vpack.c.bf16 %v3058_v45, %v3042_v44 }
 0x4c5   :  { %8092 = vmatprep.subr.bf16.mxu1 %v8091_v61  ;;  %v2964_v61 = vld [vmem:[#allocation8 + $0x32d0] sm:$0xff]  ;;  %v7853_v1 = vpack.c.bf16 %v2962_v58, %v2946_v57  ;;  %v3091_v10 = vld [vmem:[#allocation8 + $0x36c8] sm:$0xff]  ;;  %v3090_v57 = vld [vmem:[#allocation8 + $0x36c0] sm:$0xff] }
 0x4c6   :  { %v3076_v58 = vld [vmem:[#allocation8 + $0x3650] sm:$0xff]  ;;  %v3154_v32 = vld [vmem:[#allocation8 + $0x38c0] sm:$0xff] }
 0x4c7   :  { %7838 = vmatpush1.bf16.msra.mxu0 %v7837_v3  ;;  %v8109_v3 = vpack.c.bf16 %v2964_v61, %v2948_v59  ;;  %v3092_v61 = vld [vmem:[#allocation8 + $0x36d0] sm:$0xff] }
 0x4c8   :  { %8094 = vmatpush1.bf16.msra.mxu1 %v8093_v4  ;;  %7840 = vmatprep.subr.bf16.mxu0 %v7839_v5  ;;  %v7855_v4 = vpack.c.bf16 %v2995_v63, %v2979_v62  ;;  %v2978_v5 = vld [vmem:[#allocation8 + $0x3340] sm:$0xff]  ;;  %v3107_v62 = vld [vmem:[#allocation8 + $0x3748] sm:$0xff] }
 0x4c9   :  { %8096 = vmatprep.subr.bf16.mxu1 %v8095_v12  ;;  %v2996_v12 = vld [vmem:[#allocation8 + $0x33d0] sm:$0xff]  ;;  %v7857_v22 = vpack.c.bf16 %v2994_v6, %v2978_v5  ;;  %v3123_v63 = vld [vmem:[#allocation8 + $0x37c8] sm:$0xff]  ;;  %v8125_v6 = vpack.c.bf16 %v3092_v61, %v3076_v58  ;;  %v3218_v61 = vld [vmem:[#allocation8 + $0x3ac0] sm:$0xff] }
 0x4cb   :  { %7842 = vmatpush1.bf16.msra.mxu0 %v7841_v8  ;;  %v8113_v8 = vpack.c.bf16 %v2996_v12, %v2980_v7  ;;  %v7871_v7 = vpack.c.bf16 %v3123_v63, %v3107_v62  ;;  %v3122_v12 = vld [vmem:[#allocation8 + $0x37c0] sm:$0xff]  ;;  %v3204_v62 = vld [vmem:[#allocation8 + $0x3a50] sm:$0xff] }
 0x4cc   :  { %8098 = vmatpush1.bf16.msra.mxu1 %v8097_v26  ;;  %7844 = vmatprep.subr.bf16.mxu0 %v7843_v28  ;;  %v7859_v26 = vpack.c.bf16 %v3027_v18, %v3011_v14  ;;  %v3010_v28 = vld [vmem:[#allocation8 + $0x3440] sm:$0xff]  ;;  %v3108_v14 = vld [vmem:[#allocation8 + $0x3750] sm:$0xff] }
 0x4cd   :  { %8100 = vmatprep.subr.bf16.mxu1 %v8099_v15  ;;  %v8115_v15 = vpack.c.bf16 %v3029_v21, %v3013_v20  ;;  %v7861_v55 = vpack.c.bf16 %v3026_v31, %v3010_v28  ;;  %v3124_v20 = vld [vmem:[#allocation8 + $0x37d0] sm:$0xff]  ;;  %v3139_v21 = vld [vmem:[#allocation8 + $0x3848] sm:$0xff] }
 0x4ce   :  { %4729 = vmatmul.mubr.f32.vlgmr.msra.gmra.mrb[12].mxu0 %v9059_v36  ;;  %v8129_v31 = vpack.c.bf16 %v3124_v20, %v3108_v14  ;;  %v3250_v20 = vld [vmem:[#allocation8 + $0x3bc0] sm:$0xff] }
 0x4cf   :  { %5013 = vmatmul.mubr.f32.vlgmr.msra.gmra.mrb[12].mxu1 %v9059_v36  ;;  %7846 = vmatpush1.bf16.msra.mxu0 %v7845_v39  ;;  %v3061_v39 = vld [vmem:[#allocation8 + $0x35d8] sm:$0xff] }
 0x4d0   :  { %4799 = vmatprep.mubr.f32.mxu0 %v9062_v43  ;;  %8102 = vmatpush1.bf16.msra.mxu1 %v8101_v42  ;;  %v7863_v42 = vpack.c.bf16 %v3059_v34, %v3043_v33  ;;  %v3140_v33 = vld [vmem:[#allocation8 + $0x3850] sm:$0xff] }
 0x4d1   :  { %5083 = vmatprep.mubr.f32.mxu1 %v9062_v43  ;;  %7848 = vmatprep.subr.bf16.mxu0 %v7847_v46  ;;  %v8119_v46 = vpack.c.bf16 %v3061_v39, %v3045_v37  ;;  %v3156_v37 = vld [vmem:[#allocation8 + $0x38d0] sm:$0xff]  ;;  %v3171_v39 = vld [vmem:[#allocation8 + $0x3948] sm:$0xff] }
 0x4d2   :  { %8104 = vmatprep.subr.bf16.mxu1 %v8103_v49  ;;  %v3077_v49 = vld [vmem:[#allocation8 + $0x3658] sm:$0xff]  ;;  %v8133_v45 = vpack.c.bf16 %v3156_v37, %v3140_v33  ;;  %v3282_v37 = vld [vmem:[#allocation8 + $0x3cc0] sm:$0xff] }
 0x4d3   :  { %7850 = vmatpush1.bf16.msra.mxu0 %v7849_v52  ;;  %v8121_v52 = vpack.c.bf16 %v3060_v47, %v3044_v2  ;;  %v3186_v47 = vld [vmem:[#allocation8 + $0x39c0] sm:$0xff] }
 0x4d4   :  { %8106 = vmatpush1.bf16.msra.mxu1 %v8105_v53  ;;  %7852 = vmatprep.subr.bf16.mxu0 %v7851_v56  ;;  %v7867_v53 = vpack.c.bf16 %v3091_v10, %v3075_v48  ;;  %v3074_v56 = vld [vmem:[#allocation8 + $0x3640] sm:$0xff]  ;;  %v3172_v48 = vld [vmem:[#allocation8 + $0x3950] sm:$0xff] }
 0x4d5   :  { %8108 = vmatprep.subr.bf16.mxu1 %v8107_v60  ;;  %v8123_v60 = vpack.c.bf16 %v3093_v50, %v3077_v49  ;;  %v7869_v5 = vpack.c.bf16 %v3090_v57, %v3074_v56  ;;  %v3188_v49 = vld [vmem:[#allocation8 + $0x39d0] sm:$0xff]  ;;  %v3203_v50 = vld [vmem:[#allocation8 + $0x3a48] sm:$0xff] }
 0x4d6   :  { %v8137_v57 = vpack.c.bf16 %v3188_v49, %v3172_v48  ;;  %v3314_v49 = vld [vmem:[#allocation8 + $0x3dc0] sm:$0xff] }
 0x4d7   :  { %7854 = vmatpush1.bf16.msra.mxu0 %v7853_v1  ;;  %v3109_v1 = vld [vmem:[#allocation8 + $0x3758] sm:$0xff] }
 0x4d8   :  { %8110 = vmatpush1.bf16.msra.mxu1 %v8109_v3  ;;  %7856 = vmatprep.subr.bf16.mxu0 %v7855_v4  ;;  %v3125_v3 = vld [vmem:[#allocation8 + $0x37d8] sm:$0xff] }
 0x4d9   :  { %8112 = vmatprep.subr.bf16.mxu1 %v8111_v11  ;;  %v3106_v11 = vld [vmem:[#allocation8 + $0x3740] sm:$0xff]  ;;  %v8127_v18 = vpack.c.bf16 %v3125_v3, %v3109_v1  ;;  %v3220_v1 = vld [vmem:[#allocation8 + $0x3ad0] sm:$0xff]  ;;  %v3235_v3 = vld [vmem:[#allocation8 + $0x3b48] sm:$0xff] }
 0x4da   :  { %v7873_v28 = vpack.c.bf16 %v3122_v12, %v3106_v11  ;;  %v8141_v12 = vpack.c.bf16 %v3220_v1, %v3204_v62  ;;  %v3346_v1 = vld [vmem:[#allocation8 + $0x3ec0] sm:$0xff] }
 0x4db   :  { %7858 = vmatpush1.bf16.msra.mxu0 %v7857_v22  ;;  %v3155_v22 = vld [vmem:[#allocation8 + $0x38c8] sm:$0xff] }
 0x4dc   :  { %8114 = vmatpush1.bf16.msra.mxu1 %v8113_v8  ;;  %7860 = vmatprep.subr.bf16.mxu0 %v7859_v26  ;;  %v3141_v8 = vld [vmem:[#allocation8 + $0x3858] sm:$0xff]  ;;  %v7875_v19 = vpack.c.bf16 %v3155_v22, %v3139_v21  ;;  %v3236_v21 = vld [vmem:[#allocation8 + $0x3b50] sm:$0xff] }
 0x4dd   :  { %8116 = vmatprep.subr.bf16.mxu1 %v8115_v15  ;;  %v3157_v26 = vld [vmem:[#allocation8 + $0x38d8] sm:$0xff]  ;;  %v3138_v15 = vld [vmem:[#allocation8 + $0x3840] sm:$0xff] }
 0x4de   :  { %v8131_v34 = vpack.c.bf16 %v3157_v26, %v3141_v8  ;;  %v7877_v44 = vpack.c.bf16 %v3154_v32, %v3138_v15  ;;  %v3252_v8 = vld [vmem:[#allocation8 + $0x3bd0] sm:$0xff]  ;;  %v3267_v26 = vld [vmem:[#allocation8 + $0x3c48] sm:$0xff] }
 0x4df   :  { %7862 = vmatpush1.bf16.msra.mxu0 %v7861_v55  ;;  %v3187_v55 = vld [vmem:[#allocation8 + $0x39c8] sm:$0xff]  ;;  %v8145_v32 = vpack.c.bf16 %v3252_v8, %v3236_v21  ;;  %v3378_v8 = vld [vmem:[#allocation8 + $0x3fc0] sm:$0xff] }
 0x4e0   :  { %8118 = vmatpush1.bf16.msra.mxu1 %v8117_v41  ;;  %7864 = vmatprep.subr.bf16.mxu0 %v7863_v42  ;;  %v3173_v41 = vld [vmem:[#allocation8 + $0x3958] sm:$0xff]  ;;  %v7879_v2 = vpack.c.bf16 %v3187_v55, %v3171_v39  ;;  %v3268_v39 = vld [vmem:[#allocation8 + $0x3c50] sm:$0xff] }
 0x4e1   :  { %v9112_v59 = vpop.f32.mrb[10].mxu0  ;;  %8120 = vmatprep.subr.bf16.mxu1 %v8119_v46  ;;  %v3189_v42 = vld [vmem:[#allocation8 + $0x39d8] sm:$0xff]  ;;  %v3170_v46 = vld [vmem:[#allocation8 + $0x3940] sm:$0xff] }
 0x4e2   :  { %v9114_v9 = vpop.f32.mrb[10].mxu1  ;;  %v9116_v0 = vpop.f32.mrb[11].mxu0  ;;  %v8135_v10 = vpack.c.bf16 %v3189_v42, %v3173_v41  ;;  %v7881_v56 = vpack.c.bf16 %v3186_v47, %v3170_v46  ;;  %v3284_v41 = vld [vmem:[#allocation8 + $0x3cd0] sm:$0xff]  ;;  %v3299_v42 = vld [vmem:[#allocation8 + $0x3d48] sm:$0xff] }
 0x4e3   :  { %v9118_v4 = vpop.f32.mrb[11].mxu1  ;;  %7866 = vmatpush1.bf16.msra.mxu0 %v7865_v51  ;;  %v3219_v51 = vld [vmem:[#allocation8 + $0x3ac8] sm:$0xff]  ;;  %v8149_v47 = vpack.c.bf16 %v3284_v41, %v3268_v39  ;;  %v1366_v41 = vld [vmem:[#allocation8 + $0xe0] sm:$0xff] }
 0x4e4   :  { %8122 = vmatpush1.bf16.msra.mxu1 %v8121_v52  ;;  %7868 = vmatprep.subr.bf16.mxu0 %v7867_v53  ;;  %v3205_v52 = vld [vmem:[#allocation8 + $0x3a58] sm:$0xff]  ;;  %v7883_v58 = vpack.c.bf16 %v3219_v51, %v3203_v50  ;;  %v3300_v50 = vld [vmem:[#allocation8 + $0x3d50] sm:$0xff] }
 0x4e5   :  { %8124 = vmatprep.subr.bf16.mxu1 %v8123_v60  ;;  %v3221_v53 = vld [vmem:[#allocation8 + $0x3ad8] sm:$0xff]  ;;  %v3202_v60 = vld [vmem:[#allocation8 + $0x3a40] sm:$0xff] }
 0x4e6   :  { %v8139_v63 = vpack.c.bf16 %v3221_v53, %v3205_v52  ;;  %v7885_v11 = vpack.c.bf16 %v3218_v61, %v3202_v60  ;;  %v3316_v52 = vld [vmem:[#allocation8 + $0x3dd0] sm:$0xff]  ;;  %v3331_v53 = vld [vmem:[#allocation8 + $0x3e48] sm:$0xff] }
 0x4e7   :  { %7870 = vmatpush1.bf16.msra.mxu0 %v7869_v5  ;;  %v3251_v5 = vld [vmem:[#allocation8 + $0x3bc8] sm:$0xff]  ;;  %v8153_v61 = vpack.c.bf16 %v3316_v52, %v3300_v50  ;;  %v1382_v50 = vld [vmem:[#allocation8 + $0x160] sm:$0xff]  ;;  %v1384_v52 = vld [vmem:[#allocation8 + $0x170] sm:$0xff] }
 0x4e8   :  { %8126 = vmatpush1.bf16.msra.mxu1 %v8125_v6  ;;  %7872 = vmatprep.subr.bf16.mxu0 %v7871_v7  ;;  %v3237_v6 = vld [vmem:[#allocation8 + $0x3b58] sm:$0xff]  ;;  %v7887_v14 = vpack.c.bf16 %v3251_v5, %v3235_v3  ;;  %v3332_v3 = vld [vmem:[#allocation8 + $0x3e50] sm:$0xff] }
 0x4e9   :  { %8128 = vmatprep.subr.bf16.mxu1 %v8127_v18  ;;  %v3253_v7 = vld [vmem:[#allocation8 + $0x3bd8] sm:$0xff]  ;;  %v3234_v18 = vld [vmem:[#allocation8 + $0x3b40] sm:$0xff] }
 0x4ea   :  { %v8143_v22 = vpack.c.bf16 %v3253_v7, %v3237_v6  ;;  %v7889_v15 = vpack.c.bf16 %v3250_v20, %v3234_v18  ;;  %v3348_v6 = vld [vmem:[#allocation8 + $0x3ed0] sm:$0xff]  ;;  %v3363_v7 = vld [vmem:[#allocation8 + $0x3f48] sm:$0xff] }
 0x4eb   :  { %7874 = vmatpush1.bf16.msra.mxu0 %v7873_v28  ;;  %v3283_v28 = vld [vmem:[#allocation8 + $0x3cc8] sm:$0xff]  ;;  %v8157_v20 = vpack.c.bf16 %v3348_v6, %v3332_v3  ;;  %v1430_v6 = vld [vmem:[#allocation8 + $0x2e0] sm:$0xff] }
 0x4ec   :  { %8130 = vmatpush1.bf16.msra.mxu1 %v8129_v31  ;;  %7876 = vmatprep.subr.bf16.mxu0 %v7875_v19  ;;  %v3269_v31 = vld [vmem:[#allocation8 + $0x3c58] sm:$0xff]  ;;  %v7891_v33 = vpack.c.bf16 %v3283_v28, %v3267_v26  ;;  %v3364_v26 = vld [vmem:[#allocation8 + $0x3f50] sm:$0xff] }
 0x4ed   :  { %8132 = vmatprep.subr.bf16.mxu1 %v8131_v34  ;;  %v3285_v19 = vld [vmem:[#allocation8 + $0x3cd8] sm:$0xff]  ;;  %v3266_v34 = vld [vmem:[#allocation8 + $0x3c40] sm:$0xff] }
 0x4ee   :  { %v8147_v55 = vpack.c.bf16 %v3285_v19, %v3269_v31  ;;  %v7893_v46 = vpack.c.bf16 %v3282_v37, %v3266_v34  ;;  %v3380_v31 = vld [vmem:[#allocation8 + $0x3fd0] sm:$0xff]  ;;  %v1351_v19 = vld [vmem:[#allocation8 + $0x68] sm:$0xff] }
 0x4ef   :  { %7878 = vmatpush1.bf16.msra.mxu0 %v7877_v44  ;;  %v3315_v44 = vld [vmem:[#allocation8 + $0x3dc8] sm:$0xff]  ;;  %v8161_v37 = vpack.c.bf16 %v3380_v31, %v3364_v26  ;;  %v1462_v31 = vld [vmem:[#allocation8 + $0x3e0] sm:$0xff] }
 0x4f0   :  { %8134 = vmatpush1.bf16.msra.mxu1 %v8133_v45  ;;  %7880 = vmatprep.subr.bf16.mxu0 %v7879_v2  ;;  %v3301_v45 = vld [vmem:[#allocation8 + $0x3d58] sm:$0xff]  ;;  %v7895_v48 = vpack.c.bf16 %v3315_v44, %v3299_v42  ;;  %v1352_v44 = vld [vmem:[#allocation8 + $0x70] sm:$0xff] }
 0x4f1   :  { %8136 = vmatprep.subr.bf16.mxu1 %v8135_v10  ;;  %v3317_v2 = vld [vmem:[#allocation8 + $0x3dd8] sm:$0xff]  ;;  %v3298_v10 = vld [vmem:[#allocation8 + $0x3d40] sm:$0xff] }
 0x4f2   :  { %v8151_v51 = vpack.c.bf16 %v3317_v2, %v3301_v45  ;;  %v7897_v60 = vpack.c.bf16 %v3314_v49, %v3298_v10  ;;  %v1368_v45 = vld [vmem:[#allocation8 + $0xf0] sm:$0xff]  ;;  %v1383_v2 = vld [vmem:[#allocation8 + $0x168] sm:$0xff]  ;;  %v1401_v10 = vld [vmem:[#allocation8 + $0x1f8] sm:$0xff] }
 0x4f3   :  { %7882 = vmatpush1.bf16.msra.mxu0 %v7881_v56  ;;  %v3347_v56 = vld [vmem:[#allocation8 + $0x3ec8] sm:$0xff]  ;;  %v8421_v49 = vpack.c.bf16 %v1368_v45, %v1352_v44  ;;  %v1494_v44 = vld [vmem:[#allocation8 + $0x4e0] sm:$0xff]  ;;  %v1480_v45 = vld [vmem:[#allocation8 + $0x470] sm:$0xff] }
 0x4f4   :  { %8138 = vmatpush1.bf16.msra.mxu1 %v8137_v57  ;;  %7884 = vmatprep.subr.bf16.mxu0 %v7883_v58  ;;  %v3333_v57 = vld [vmem:[#allocation8 + $0x3e58] sm:$0xff]  ;;  %v7899_v62 = vpack.c.bf16 %v3347_v56, %v3331_v53  ;;  %v1400_v56 = vld [vmem:[#allocation8 + $0x1f0] sm:$0xff] }
 0x4f5   :  { %8140 = vmatprep.subr.bf16.mxu1 %v8139_v63  ;;  %v3349_v58 = vld [vmem:[#allocation8 + $0x3ed8] sm:$0xff]  ;;  %v3330_v63 = vld [vmem:[#allocation8 + $0x3e40] sm:$0xff] }
 0x4f6   :  { %v8155_v5 = vpack.c.bf16 %v3349_v58, %v3333_v57  ;;  %v7901_v18 = vpack.c.bf16 %v3346_v1, %v3330_v63  ;;  %v1415_v57 = vld [vmem:[#allocation8 + $0x268] sm:$0xff]  ;;  %v8425_v1 = vpack.c.bf16 %v1400_v56, %v1384_v52  ;;  %v1526_v56 = vld [vmem:[#allocation8 + $0x5e0] sm:$0xff] }
 0x4f7   :  { %7886 = vmatpush1.bf16.msra.mxu0 %v7885_v11  ;;  %v3379_v11 = vld [vmem:[#allocation8 + $0x3fc8] sm:$0xff] }
 0x4f8   :  { %8142 = vmatpush1.bf16.msra.mxu1 %v8141_v12  ;;  %7888 = vmatprep.subr.bf16.mxu0 %v7887_v14  ;;  %v3365_v12 = vld [vmem:[#allocation8 + $0x3f58] sm:$0xff]  ;;  %v7903_v21 = vpack.c.bf16 %v3379_v11, %v3363_v7  ;;  %v1431_v58 = vld [vmem:[#allocation8 + $0x2e8] sm:$0xff]  ;;  %v1416_v7 = vld [vmem:[#allocation8 + $0x270] sm:$0xff] }
 0x4f9   :  { %8144 = vmatprep.subr.bf16.mxu1 %v8143_v22  ;;  %v3381_v14 = vld [vmem:[#allocation8 + $0x3fd8] sm:$0xff]  ;;  %v3362_v22 = vld [vmem:[#allocation8 + $0x3f40] sm:$0xff]  ;;  %v8171_v3 = vpack.c.bf16 %v1431_v58, %v1415_v57  ;;  %v1512_v57 = vld [vmem:[#allocation8 + $0x570] sm:$0xff] }
 0x4fa   :  { %v8159_v28 = vpack.c.bf16 %v3381_v14, %v3365_v12  ;;  %v7905_v34 = vpack.c.bf16 %v3378_v8, %v3362_v22  ;;  %v1432_v12 = vld [vmem:[#allocation8 + $0x2f0] sm:$0xff]  ;;  %v1447_v14 = vld [vmem:[#allocation8 + $0x368] sm:$0xff] }
 0x4fb   :  { %7890 = vmatpush1.bf16.msra.mxu0 %v7889_v15  ;;  %v1367_v15 = vld [vmem:[#allocation8 + $0xe8] sm:$0xff]  ;;  %v8429_v8 = vpack.c.bf16 %v1432_v12, %v1416_v7  ;;  %v1542_v7 = vld [vmem:[#allocation8 + $0x660] sm:$0xff]  ;;  %v1544_v12 = vld [vmem:[#allocation8 + $0x670] sm:$0xff] }
 0x4fc   :  { %8146 = vmatpush1.bf16.msra.mxu1 %v8145_v32  ;;  %7892 = vmatprep.subr.bf16.mxu0 %v7891_v33  ;;  %v1353_v32 = vld [vmem:[#allocation8 + $0x78] sm:$0xff]  ;;  %v8163_v39 = vpack.c.bf16 %v1367_v15, %v1351_v19  ;;  %v1448_v19 = vld [vmem:[#allocation8 + $0x370] sm:$0xff] }
 0x4fd   :  { %8148 = vmatprep.subr.bf16.mxu1 %v8147_v55  ;;  %v1369_v33 = vld [vmem:[#allocation8 + $0xf8] sm:$0xff]  ;;  %v1350_v55 = vld [vmem:[#allocation8 + $0x60] sm:$0xff] }
 0x4fe   :  { %v8419_v42 = vpack.c.bf16 %v1369_v33, %v1353_v32  ;;  %v1479_v32 = vld [vmem:[#allocation8 + $0x468] sm:$0xff] }
 0x4ff   :  { %7894 = vmatpush1.bf16.msra.mxu0 %v7893_v46  ;;  %v1399_v46 = vld [vmem:[#allocation8 + $0x1e8] sm:$0xff] }
 0x500   :  { %8150 = vmatpush1.bf16.msra.mxu1 %v8149_v47  ;;  %7896 = vmatprep.subr.bf16.mxu0 %v7895_v48  ;;  %v8165_v47 = vpack.c.bf16 %v1366_v41, %v1350_v55  ;;  %v1385_v48 = vld [vmem:[#allocation8 + $0x178] sm:$0xff]  ;;  %v8167_v53 = vpack.c.bf16 %v1399_v46, %v1383_v2  ;;  %v1495_v33 = vld [vmem:[#allocation8 + $0x4e8] sm:$0xff]  ;;  %v1496_v46 = vld [vmem:[#allocation8 + $0x4f0] sm:$0xff] }
 0x501   :  { %8152 = vmatprep.subr.bf16.mxu1 %v8151_v51  ;;  %v1398_v51 = vld [vmem:[#allocation8 + $0x1e0] sm:$0xff]  ;;  %v8179_v41 = vpack.c.bf16 %v1495_v33, %v1479_v32  ;;  %v1592_v33 = vld [vmem:[#allocation8 + $0x7f0] sm:$0xff] }
 0x502   :  { %v8169_v63 = vpack.c.bf16 %v1398_v51, %v1382_v50  ;;  %v8437_v51 = vpack.c.bf16 %v1496_v46, %v1480_v45  ;;  %v1606_v45 = vld [vmem:[#allocation8 + $0x860] sm:$0xff]  ;;  %v1608_v46 = vld [vmem:[#allocation8 + $0x870] sm:$0xff] }
 0x503   :  { %7898 = vmatpush1.bf16.msra.mxu0 %v7897_v60  ;;  %v8423_v60 = vpack.c.bf16 %v1401_v10, %v1385_v48  ;;  %v1527_v48 = vld [vmem:[#allocation8 + $0x5e8] sm:$0xff]  ;;  %v1513_v10 = vld [vmem:[#allocation8 + $0x578] sm:$0xff] }
 0x504   :  { %8154 = vmatpush1.bf16.msra.mxu1 %v8153_v61  ;;  %7900 = vmatprep.subr.bf16.mxu0 %v7899_v62  ;;  %v1417_v61 = vld [vmem:[#allocation8 + $0x278] sm:$0xff] }
 0x505   :  { %8156 = vmatprep.subr.bf16.mxu1 %v8155_v5  ;;  %v1433_v62 = vld [vmem:[#allocation8 + $0x2f8] sm:$0xff]  ;;  %v1414_v5 = vld [vmem:[#allocation8 + $0x260] sm:$0xff] }
 0x506   :  { %v8427_v11 = vpack.c.bf16 %v1433_v62, %v1417_v61  ;;  %v8173_v22 = vpack.c.bf16 %v1430_v6, %v1414_v5  ;;  %v1543_v61 = vld [vmem:[#allocation8 + $0x668] sm:$0xff] }
 0x507   :  { %7902 = vmatpush1.bf16.msra.mxu0 %v7901_v18  ;;  %v1463_v18 = vld [vmem:[#allocation8 + $0x3e8] sm:$0xff] }
 0x508   :  { %8158 = vmatpush1.bf16.msra.mxu1 %v8157_v20  ;;  %7904 = vmatprep.subr.bf16.mxu0 %v7903_v21  ;;  %v1449_v20 = vld [vmem:[#allocation8 + $0x378] sm:$0xff]  ;;  %v8175_v26 = vpack.c.bf16 %v1463_v18, %v1447_v14  ;;  %v1559_v62 = vld [vmem:[#allocation8 + $0x6e8] sm:$0xff]  ;;  %v1560_v18 = vld [vmem:[#allocation8 + $0x6f0] sm:$0xff] }
 0x509   :  { %8160 = vmatprep.subr.bf16.mxu1 %v8159_v28  ;;  %v1465_v21 = vld [vmem:[#allocation8 + $0x3f8] sm:$0xff]  ;;  %v1446_v28 = vld [vmem:[#allocation8 + $0x360] sm:$0xff]  ;;  %v8187_v6 = vpack.c.bf16 %v1559_v62, %v1543_v61  ;;  %v1656_v62 = vld [vmem:[#allocation8 + $0x9f0] sm:$0xff] }
 0x50a   :  { %v8431_v15 = vpack.c.bf16 %v1465_v21, %v1449_v20  ;;  %v1575_v20 = vld [vmem:[#allocation8 + $0x768] sm:$0xff] }
 0x50b   :  { %7906 = vmatpush1.bf16.msra.mxu0 %v7905_v34  ;;  %v1481_v34 = vld [vmem:[#allocation8 + $0x478] sm:$0xff]  ;;  %v1591_v21 = vld [vmem:[#allocation8 + $0x7e8] sm:$0xff] }
 0x50c   :  { %8162 = vmatpush1.bf16.msra.mxu1 %v8161_v37  ;;  %8164 = vmatprep.subr.bf16.mxu0 %v8163_v39  ;;  %v1497_v37 = vld [vmem:[#allocation8 + $0x4f8] sm:$0xff]  ;;  %v8177_v39 = vpack.c.bf16 %v1462_v31, %v1446_v28  ;;  %v8445_v28 = vpack.c.bf16 %v1560_v18, %v1544_v12  ;;  %v8191_v31 = vpack.c.bf16 %v1591_v21, %v1575_v20  ;;  %v1670_v12 = vld [vmem:[#allocation8 + $0xa60] sm:$0xff]  ;;  %v1672_v18 = vld [vmem:[#allocation8 + $0xa70] sm:$0xff] }
 0x50d   :  { %8420 = vmatprep.subr.bf16.mxu1 %v8419_v42  ;;  %v1478_v42 = vld [vmem:[#allocation8 + $0x460] sm:$0xff]  ;;  %v8435_v2 = vpack.c.bf16 %v1497_v37, %v1481_v34  ;;  %v1607_v34 = vld [vmem:[#allocation8 + $0x868] sm:$0xff]  ;;  %v1688_v21 = vld [vmem:[#allocation8 + $0xaf0] sm:$0xff] }
 0x50e   :  { %4800 = vmatmul.mubr.f32.vlgmr.msra.gmra.mrb[12].mxu0 %v9070_v13  ;;  %v8181_v50 = vpack.c.bf16 %v1494_v44, %v1478_v42  ;;  %v1623_v37 = vld [vmem:[#allocation8 + $0x8e8] sm:$0xff] }
 0x50f   :  { %5084 = vmatmul.mubr.f32.vlgmr.msra.gmra.mrb[12].mxu1 %v9070_v13  ;;  %8166 = vmatpush1.bf16.msra.mxu0 %v8165_v47  ;;  %v1511_v47 = vld [vmem:[#allocation8 + $0x568] sm:$0xff]  ;;  %v8195_v44 = vpack.c.bf16 %v1623_v37, %v1607_v34  ;;  %v1720_v37 = vld [vmem:[#allocation8 + $0xbf0] sm:$0xff] }
 0x510   :  { %5154 = vmatprep.mubr.f32.mxu0 %v9026_v25  ;;  %8422 = vmatpush1.bf16.msra.mxu1 %v8421_v49  ;;  %v1529_v49 = vld [vmem:[#allocation8 + $0x5f8] sm:$0xff]  ;;  %v8183_v52 = vpack.c.bf16 %v1527_v48, %v1511_v47  ;;  %v1624_v48 = vld [vmem:[#allocation8 + $0x8f0] sm:$0xff] }
 0x511   :  { %5438 = vmatprep.mubr.f32.mxu1 %v9026_v25  ;;  %8168 = vmatprep.subr.bf16.mxu0 %v8167_v53  ;;  %v1464_v25 = vld [vmem:[#allocation8 + $0x3f0] sm:$0xff]  ;;  %v1510_v53 = vld [vmem:[#allocation8 + $0x560] sm:$0xff]  ;;  %v8439_v58 = vpack.c.bf16 %v1529_v49, %v1513_v10  ;;  %v1639_v10 = vld [vmem:[#allocation8 + $0x968] sm:$0xff] }
 0x512   :  { %8424 = vmatprep.subr.bf16.mxu1 %v8423_v60  ;;  %v8433_v55 = vpack.c.bf16 %v1464_v25, %v1448_v19  ;;  %v1528_v60 = vld [vmem:[#allocation8 + $0x5f0] sm:$0xff]  ;;  %v1574_v19 = vld [vmem:[#allocation8 + $0x760] sm:$0xff]  ;;  %v1655_v49 = vld [vmem:[#allocation8 + $0x9e8] sm:$0xff] }
 0x513   :  { %8170 = vmatpush1.bf16.msra.mxu0 %v8169_v63  ;;  %v1545_v63 = vld [vmem:[#allocation8 + $0x678] sm:$0xff]  ;;  %v8441_v5 = vpack.c.bf16 %v1528_v60, %v1512_v57  ;;  %v1576_v25 = vld [vmem:[#allocation8 + $0x770] sm:$0xff]  ;;  %v1638_v57 = vld [vmem:[#allocation8 + $0x960] sm:$0xff] }
 0x514   :  { %8426 = vmatpush1.bf16.msra.mxu1 %v8425_v1  ;;  %8172 = vmatprep.subr.bf16.mxu0 %v8171_v3  ;;  %v1561_v1 = vld [vmem:[#allocation8 + $0x6f8] sm:$0xff]  ;;  %v8185_v3 = vpack.c.bf16 %v1526_v56, %v1510_v53  ;;  %v8449_v42 = vpack.c.bf16 %v1592_v33, %v1576_v25  ;;  %v8453_v53 = vpack.c.bf16 %v1624_v48, %v1608_v46  ;;  %v1640_v60 = vld [vmem:[#allocation8 + $0x970] sm:$0xff]  ;;  %v1702_v25 = vld [vmem:[#allocation8 + $0xb60] sm:$0xff] }
 0x515   :  { %8428 = vmatprep.subr.bf16.mxu1 %v8427_v11  ;;  %v1558_v11 = vld [vmem:[#allocation8 + $0x6e0] sm:$0xff]  ;;  %v8443_v14 = vpack.c.bf16 %v1561_v1, %v1545_v63  ;;  %v8199_v56 = vpack.c.bf16 %v1655_v49, %v1639_v10  ;;  %v1671_v63 = vld [vmem:[#allocation8 + $0xa68] sm:$0xff]  ;;  %v1704_v33 = vld [vmem:[#allocation8 + $0xb70] sm:$0xff] }
 0x516   :  { %v1687_v1 = vld [vmem:[#allocation8 + $0xae8] sm:$0xff]  ;;  %v1734_v46 = vld [vmem:[#allocation8 + $0xc60] sm:$0xff]  ;;  %v1736_v48 = vld [vmem:[#allocation8 + $0xc70] sm:$0xff] }
 0x517   :  { %8174 = vmatpush1.bf16.msra.mxu0 %v8173_v22  ;;  %v1577_v22 = vld [vmem:[#allocation8 + $0x778] sm:$0xff]  ;;  %v1752_v49 = vld [vmem:[#allocation8 + $0xcf0] sm:$0xff] }
 0x518   :  { %8430 = vmatpush1.bf16.msra.mxu1 %v8429_v8  ;;  %8176 = vmatprep.subr.bf16.mxu0 %v8175_v26  ;;  %v1593_v8 = vld [vmem:[#allocation8 + $0x7f8] sm:$0xff]  ;;  %v8189_v26 = vpack.c.bf16 %v1558_v11, %v1542_v7  ;;  %v8457_v7 = vpack.c.bf16 %v1656_v62, %v1640_v60  ;;  %v8203_v11 = vpack.c.bf16 %v1687_v1, %v1671_v63  ;;  %v1766_v60 = vld [vmem:[#allocation8 + $0xd60] sm:$0xff]  ;;  %v1768_v62 = vld [vmem:[#allocation8 + $0xd70] sm:$0xff] }
 0x519   :  { %8432 = vmatprep.subr.bf16.mxu1 %v8431_v15  ;;  %v1590_v15 = vld [vmem:[#allocation8 + $0x7e0] sm:$0xff]  ;;  %v8447_v32 = vpack.c.bf16 %v1593_v8, %v1577_v22  ;;  %v1703_v22 = vld [vmem:[#allocation8 + $0xb68] sm:$0xff]  ;;  %v1784_v1 = vld [vmem:[#allocation8 + $0xdf0] sm:$0xff] }
 0x51a   :  { %v1719_v8 = vld [vmem:[#allocation8 + $0xbe8] sm:$0xff] }
 0x51b   :  { %8178 = vmatpush1.bf16.msra.mxu0 %v8177_v39  ;;  %v1609_v39 = vld [vmem:[#allocation8 + $0x878] sm:$0xff] }
 0x51c   :  { %8434 = vmatpush1.bf16.msra.mxu1 %v8433_v55  ;;  %8180 = vmatprep.subr.bf16.mxu0 %v8179_v41  ;;  %v1625_v55 = vld [vmem:[#allocation8 + $0x8f8] sm:$0xff]  ;;  %v8193_v41 = vpack.c.bf16 %v1590_v15, %v1574_v19  ;;  %v8461_v19 = vpack.c.bf16 %v1688_v21, %v1672_v18  ;;  %v8207_v15 = vpack.c.bf16 %v1719_v8, %v1703_v22  ;;  %v1798_v18 = vld [vmem:[#allocation8 + $0xe60] sm:$0xff]  ;;  %v1800_v21 = vld [vmem:[#allocation8 + $0xe70] sm:$0xff] }
 0x51d   :  { %8436 = vmatprep.subr.bf16.mxu1 %v8435_v2  ;;  %v1622_v2 = vld [vmem:[#allocation8 + $0x8e0] sm:$0xff]  ;;  %v8451_v47 = vpack.c.bf16 %v1625_v55, %v1609_v39  ;;  %v1735_v39 = vld [vmem:[#allocation8 + $0xc68] sm:$0xff]  ;;  %v1816_v8 = vld [vmem:[#allocation8 + $0xef0] sm:$0xff] }
 0x51e   :  { %v1751_v55 = vld [vmem:[#allocation8 + $0xce8] sm:$0xff] }
 0x51f   :  { %8182 = vmatpush1.bf16.msra.mxu0 %v8181_v50  ;;  %v1641_v50 = vld [vmem:[#allocation8 + $0x978] sm:$0xff] }
 0x520   :  { %8438 = vmatpush1.bf16.msra.mxu1 %v8437_v51  ;;  %8184 = vmatprep.subr.bf16.mxu0 %v8183_v52  ;;  %v1657_v51 = vld [vmem:[#allocation8 + $0x9f8] sm:$0xff]  ;;  %v8197_v52 = vpack.c.bf16 %v1622_v2, %v1606_v45  ;;  %v8465_v45 = vpack.c.bf16 %v1720_v37, %v1704_v33  ;;  %v8211_v2 = vpack.c.bf16 %v1751_v55, %v1735_v39  ;;  %v1830_v33 = vld [vmem:[#allocation8 + $0xf60] sm:$0xff]  ;;  %v1832_v37 = vld [vmem:[#allocation8 + $0xf70] sm:$0xff] }
 0x521   :  { %8440 = vmatprep.subr.bf16.mxu1 %v8439_v58  ;;  %v1654_v58 = vld [vmem:[#allocation8 + $0x9e0] sm:$0xff]  ;;  %v8455_v61 = vpack.c.bf16 %v1657_v51, %v1641_v50  ;;  %v1767_v50 = vld [vmem:[#allocation8 + $0xd68] sm:$0xff]  ;;  %v1848_v55 = vld [vmem:[#allocation8 + $0xff0] sm:$0xff] }
 0x522   :  { %v1783_v51 = vld [vmem:[#allocation8 + $0xde8] sm:$0xff] }
 0x523   :  { %8186 = vmatpush1.bf16.msra.mxu0 %v8185_v3  ;;  %v1673_v3 = vld [vmem:[#allocation8 + $0xa78] sm:$0xff] }
 0x524   :  { %8442 = vmatpush1.bf16.msra.mxu1 %v8441_v5  ;;  %8188 = vmatprep.subr.bf16.mxu0 %v8187_v6  ;;  %v1689_v5 = vld [vmem:[#allocation8 + $0xaf8] sm:$0xff]  ;;  %v8201_v6 = vpack.c.bf16 %v1654_v58, %v1638_v57  ;;  %v8469_v57 = vpack.c.bf16 %v1752_v49, %v1736_v48  ;;  %v8215_v58 = vpack.c.bf16 %v1783_v51, %v1767_v50  ;;  %v1862_v48 = vld [vmem:[#allocation8 + $0x1060] sm:$0xff]  ;;  %v1864_v50 = vld [vmem:[#allocation8 + $0x1070] sm:$0xff] }
 0x525   :  { %8444 = vmatprep.subr.bf16.mxu1 %v8443_v14  ;;  %v1686_v14 = vld [vmem:[#allocation8 + $0xae0] sm:$0xff]  ;;  %v8459_v20 = vpack.c.bf16 %v1689_v5, %v1673_v3  ;;  %v1799_v3 = vld [vmem:[#allocation8 + $0xe68] sm:$0xff]  ;;  %v1880_v51 = vld [vmem:[#allocation8 + $0x10f0] sm:$0xff] }
 0x526   :  { %v1815_v5 = vld [vmem:[#allocation8 + $0xee8] sm:$0xff] }
 0x527   :  { %8190 = vmatpush1.bf16.msra.mxu0 %v8189_v26  ;;  %v1705_v26 = vld [vmem:[#allocation8 + $0xb78] sm:$0xff] }
 0x528   :  { %8446 = vmatpush1.bf16.msra.mxu1 %v8445_v28  ;;  %8192 = vmatprep.subr.bf16.mxu0 %v8191_v31  ;;  %v1721_v28 = vld [vmem:[#allocation8 + $0xbf8] sm:$0xff]  ;;  %v8205_v31 = vpack.c.bf16 %v1686_v14, %v1670_v12  ;;  %v8473_v12 = vpack.c.bf16 %v1784_v1, %v1768_v62  ;;  %v8219_v14 = vpack.c.bf16 %v1815_v5, %v1799_v3  ;;  %v1910_v62 = vld [vmem:[#allocation8 + $0x11e0] sm:$0xff]  ;;  %v1912_v3 = vld [vmem:[#allocation8 + $0x11f0] sm:$0xff] }
 0x529   :  { %8448 = vmatprep.subr.bf16.mxu1 %v8447_v32  ;;  %v1718_v32 = vld [vmem:[#allocation8 + $0xbe0] sm:$0xff]  ;;  %v8463_v34 = vpack.c.bf16 %v1721_v28, %v1705_v26  ;;  %v1831_v26 = vld [vmem:[#allocation8 + $0xf68] sm:$0xff] }
 0x52a   :  { %v1847_v28 = vld [vmem:[#allocation8 + $0xfe8] sm:$0xff] }
 0x52b   :  { %8194 = vmatpush1.bf16.msra.mxu0 %v8193_v41  ;;  %v1737_v41 = vld [vmem:[#allocation8 + $0xc78] sm:$0xff]  ;;  %v1927_v5 = vld [vmem:[#allocation8 + $0x1268] sm:$0xff] }
 0x52c   :  { %8450 = vmatpush1.bf16.msra.mxu1 %v8449_v42  ;;  %8196 = vmatprep.subr.bf16.mxu0 %v8195_v44  ;;  %v1753_v42 = vld [vmem:[#allocation8 + $0xcf8] sm:$0xff]  ;;  %v8209_v44 = vpack.c.bf16 %v1718_v32, %v1702_v25  ;;  %v8477_v25 = vpack.c.bf16 %v1816_v8, %v1800_v21  ;;  %v8223_v32 = vpack.c.bf16 %v1847_v28, %v1831_v26  ;;  %v1926_v21 = vld [vmem:[#allocation8 + $0x1260] sm:$0xff]  ;;  %v1928_v8 = vld [vmem:[#allocation8 + $0x1270] sm:$0xff] }
 0x52d   :  { %8452 = vmatprep.subr.bf16.mxu1 %v8451_v47  ;;  %v1750_v47 = vld [vmem:[#allocation8 + $0xce0] sm:$0xff]  ;;  %v8467_v10 = vpack.c.bf16 %v1753_v42, %v1737_v41  ;;  %v1863_v41 = vld [vmem:[#allocation8 + $0x1068] sm:$0xff]  ;;  %v1944_v28 = vld [vmem:[#allocation8 + $0x12f0] sm:$0xff] }
 0x52e   :  { %v1879_v42 = vld [vmem:[#allocation8 + $0x10e8] sm:$0xff] }
 0x52f   :  { %8198 = vmatpush1.bf16.msra.mxu0 %v8197_v52  ;;  %v1769_v52 = vld [vmem:[#allocation8 + $0xd78] sm:$0xff] }
 0x530   :  { %8454 = vmatpush1.bf16.msra.mxu1 %v8453_v53  ;;  %8200 = vmatprep.subr.bf16.mxu0 %v8199_v56  ;;  %v1785_v53 = vld [vmem:[#allocation8 + $0xdf8] sm:$0xff]  ;;  %v8213_v56 = vpack.c.bf16 %v1750_v47, %v1734_v46  ;;  %v8481_v46 = vpack.c.bf16 %v1848_v55, %v1832_v37  ;;  %v8227_v47 = vpack.c.bf16 %v1879_v42, %v1863_v41  ;;  %v1974_v37 = vld [vmem:[#allocation8 + $0x13e0] sm:$0xff]  ;;  %v1991_v41 = vld [vmem:[#allocation8 + $0x1468] sm:$0xff] }
 0x531   :  { %8456 = vmatprep.subr.bf16.mxu1 %v8455_v61  ;;  %v1782_v61 = vld [vmem:[#allocation8 + $0xde0] sm:$0xff]  ;;  %v8471_v63 = vpack.c.bf16 %v1785_v53, %v1769_v52  ;;  %v1895_v52 = vld [vmem:[#allocation8 + $0x1168] sm:$0xff] }
 0x532   :  { %v1911_v53 = vld [vmem:[#allocation8 + $0x11e8] sm:$0xff] }
 0x533   :  { %8202 = vmatpush1.bf16.msra.mxu0 %v8201_v6  ;;  %v1801_v6 = vld [vmem:[#allocation8 + $0xe78] sm:$0xff]  ;;  %v8231_v1 = vpack.c.bf16 %v1911_v53, %v1895_v52  ;;  %v2007_v42 = vld [vmem:[#allocation8 + $0x14e8] sm:$0xff] }
 0x534   :  { %8458 = vmatpush1.bf16.msra.mxu1 %v8457_v7  ;;  %8204 = vmatprep.subr.bf16.mxu0 %v8203_v11  ;;  %v1817_v7 = vld [vmem:[#allocation8 + $0xef8] sm:$0xff]  ;;  %v8217_v11 = vpack.c.bf16 %v1782_v61, %v1766_v60  ;;  %v8485_v60 = vpack.c.bf16 %v1880_v51, %v1864_v50  ;;  %v1894_v61 = vld [vmem:[#allocation8 + $0x1160] sm:$0xff]  ;;  %v2008_v51 = vld [vmem:[#allocation8 + $0x14f0] sm:$0xff] }
 0x535   :  { %8460 = vmatprep.subr.bf16.mxu1 %v8459_v20  ;;  %v1814_v20 = vld [vmem:[#allocation8 + $0xee0] sm:$0xff]  ;;  %v8475_v22 = vpack.c.bf16 %v1817_v7, %v1801_v6  ;;  %v1943_v6 = vld [vmem:[#allocation8 + $0x12e8] sm:$0xff] }
 0x536   :  { %v2023_v52 = vld [vmem:[#allocation8 + $0x1568] sm:$0xff] }
 0x537   :  { %8206 = vmatpush1.bf16.msra.mxu0 %v8205_v31  ;;  %v1833_v31 = vld [vmem:[#allocation8 + $0xf78] sm:$0xff]  ;;  %v2039_v53 = vld [vmem:[#allocation8 + $0x15e8] sm:$0xff] }
 0x538   :  { %8462 = vmatpush1.bf16.msra.mxu1 %v8461_v19  ;;  %8208 = vmatprep.subr.bf16.mxu0 %v8207_v15  ;;  %v1849_v19 = vld [vmem:[#allocation8 + $0xff8] sm:$0xff]  ;;  %v8221_v15 = vpack.c.bf16 %v1814_v20, %v1798_v18  ;;  %v8235_v20 = vpack.c.bf16 %v1943_v6, %v1927_v5  ;;  %v2040_v5 = vld [vmem:[#allocation8 + $0x15f0] sm:$0xff]  ;;  %v2055_v6 = vld [vmem:[#allocation8 + $0x1668] sm:$0xff] }
 0x539   :  { %8464 = vmatprep.subr.bf16.mxu1 %v8463_v34  ;;  %v1846_v34 = vld [vmem:[#allocation8 + $0xfe0] sm:$0xff]  ;;  %v8479_v39 = vpack.c.bf16 %v1849_v19, %v1833_v31  ;;  %v1959_v31 = vld [vmem:[#allocation8 + $0x1368] sm:$0xff] }
 0x53a   :  { %v1975_v19 = vld [vmem:[#allocation8 + $0x13e8] sm:$0xff] }
 0x53b   :  { %8210 = vmatpush1.bf16.msra.mxu0 %v8209_v44  ;;  %v1865_v44 = vld [vmem:[#allocation8 + $0x1078] sm:$0xff] }
 0x53c   :  { %8466 = vmatpush1.bf16.msra.mxu1 %v8465_v45  ;;  %8212 = vmatprep.subr.bf16.mxu0 %v8211_v2  ;;  %v1881_v45 = vld [vmem:[#allocation8 + $0x10f8] sm:$0xff]  ;;  %v8225_v2 = vpack.c.bf16 %v1846_v34, %v1830_v33  ;;  %v8239_v33 = vpack.c.bf16 %v1975_v19, %v1959_v31  ;;  %v1958_v34 = vld [vmem:[#allocation8 + $0x1360] sm:$0xff]  ;;  %v2087_v31 = vld [vmem:[#allocation8 + $0x1768] sm:$0xff] }
 0x53d   :  { %8468 = vmatprep.subr.bf16.mxu1 %v8467_v10  ;;  %v1878_v10 = vld [vmem:[#allocation8 + $0x10e0] sm:$0xff]  ;;  %v8483_v49 = vpack.c.bf16 %v1881_v45, %v1865_v44  ;;  %v1993_v44 = vld [vmem:[#allocation8 + $0x1478] sm:$0xff]  ;;  %v2103_v19 = vld [vmem:[#allocation8 + $0x17e8] sm:$0xff] }
 0x53e   :  { %v2009_v45 = vld [vmem:[#allocation8 + $0x14f8] sm:$0xff] }
 0x53f   :  { %8214 = vmatpush1.bf16.msra.mxu0 %v8213_v56  ;;  %v8229_v56 = vpack.c.bf16 %v1878_v10, %v1862_v48  ;;  %v1990_v48 = vld [vmem:[#allocation8 + $0x1460] sm:$0xff]  ;;  %v8499_v50 = vpack.c.bf16 %v2009_v45, %v1993_v44  ;;  %v2121_v44 = vld [vmem:[#allocation8 + $0x1878] sm:$0xff] }
 0x540   :  { %8470 = vmatpush1.bf16.msra.mxu1 %v8469_v57  ;;  %8216 = vmatprep.subr.bf16.mxu0 %v8215_v58  ;;  %v1897_v57 = vld [vmem:[#allocation8 + $0x1178] sm:$0xff]  ;;  %v2006_v10 = vld [vmem:[#allocation8 + $0x14e0] sm:$0xff] }
 0x541   :  { %8472 = vmatprep.subr.bf16.mxu1 %v8471_v63  ;;  %v1913_v58 = vld [vmem:[#allocation8 + $0x11f8] sm:$0xff]  ;;  %v1896_v63 = vld [vmem:[#allocation8 + $0x1170] sm:$0xff] }
 0x542   :  { %v8487_v7 = vpack.c.bf16 %v1913_v58, %v1897_v57  ;;  %v8489_v18 = vpack.c.bf16 %v1912_v3, %v1896_v63  ;;  %v2041_v57 = vld [vmem:[#allocation8 + $0x15f8] sm:$0xff]  ;;  %v8245_v58 = vpack.c.bf16 %v2006_v10, %v1990_v48  ;;  %v2038_v63 = vld [vmem:[#allocation8 + $0x15e0] sm:$0xff] }
 0x543   :  { %8218 = vmatpush1.bf16.msra.mxu0 %v8217_v11  ;;  %v1929_v11 = vld [vmem:[#allocation8 + $0x1278] sm:$0xff]  ;;  %v2118_v48 = vld [vmem:[#allocation8 + $0x1860] sm:$0xff] }
 0x544   :  { %8474 = vmatpush1.bf16.msra.mxu1 %v8473_v12  ;;  %8220 = vmatprep.subr.bf16.mxu0 %v8219_v14  ;;  %v1945_v12 = vld [vmem:[#allocation8 + $0x12f8] sm:$0xff]  ;;  %v8233_v14 = vpack.c.bf16 %v1910_v62, %v1894_v61  ;;  %v8247_v61 = vpack.c.bf16 %v2039_v53, %v2023_v52  ;;  %v2022_v62 = vld [vmem:[#allocation8 + $0x1560] sm:$0xff]  ;;  %v2151_v52 = vld [vmem:[#allocation8 + $0x1968] sm:$0xff] }
 0x545   :  { %8476 = vmatprep.subr.bf16.mxu1 %v8475_v22  ;;  %v1942_v22 = vld [vmem:[#allocation8 + $0x12e0] sm:$0xff]  ;;  %v8491_v26 = vpack.c.bf16 %v1945_v12, %v1929_v11  ;;  %v2057_v11 = vld [vmem:[#allocation8 + $0x1678] sm:$0xff]  ;;  %v2167_v53 = vld [vmem:[#allocation8 + $0x19e8] sm:$0xff] }
 0x546   :  { %v2073_v12 = vld [vmem:[#allocation8 + $0x16f8] sm:$0xff]  ;;  %v2134_v10 = vld [vmem:[#allocation8 + $0x18e0] sm:$0xff] }
 0x547   :  { %8222 = vmatpush1.bf16.msra.mxu0 %v8221_v15  ;;  %v1961_v15 = vld [vmem:[#allocation8 + $0x1378] sm:$0xff] }
 0x548   :  { %8478 = vmatpush1.bf16.msra.mxu1 %v8477_v25  ;;  %8224 = vmatprep.subr.bf16.mxu0 %v8223_v32  ;;  %v8237_v25 = vpack.c.bf16 %v1942_v22, %v1926_v21  ;;  %v8493_v32 = vpack.c.bf16 %v1944_v28, %v1928_v8  ;;  %v2054_v21 = vld [vmem:[#allocation8 + $0x1660] sm:$0xff]  ;;  %v2056_v8 = vld [vmem:[#allocation8 + $0x1670] sm:$0xff]  ;;  %v2137_v45 = vld [vmem:[#allocation8 + $0x18f8] sm:$0xff] }
 0x549   :  { %8480 = vmatprep.subr.bf16.mxu1 %v8479_v39  ;;  %v1960_v39 = vld [vmem:[#allocation8 + $0x1370] sm:$0xff]  ;;  %v2070_v22 = vld [vmem:[#allocation8 + $0x16e0] sm:$0xff] }
 0x54a   :  { %v2072_v28 = vld [vmem:[#allocation8 + $0x16f0] sm:$0xff] }
 0x54b   :  { %8226 = vmatpush1.bf16.msra.mxu0 %v8225_v2  ;;  %v8241_v2 = vpack.c.bf16 %v1974_v37, %v1958_v34  ;;  %v2086_v34 = vld [vmem:[#allocation8 + $0x1760] sm:$0xff] }
 0x54c   :  { %8482 = vmatpush1.bf16.msra.mxu1 %v8481_v46  ;;  %8228 = vmatprep.subr.bf16.mxu0 %v8227_v47  ;;  %v8243_v47 = vpack.c.bf16 %v2007_v42, %v1991_v41  ;;  %v2102_v37 = vld [vmem:[#allocation8 + $0x17e0] sm:$0xff]  ;;  %v2119_v41 = vld [vmem:[#allocation8 + $0x1868] sm:$0xff] }
 0x54d   :  { %8484 = vmatprep.subr.bf16.mxu1 %v8483_v49  ;;  %v1992_v49 = vld [vmem:[#allocation8 + $0x1470] sm:$0xff]  ;;  %v2135_v42 = vld [vmem:[#allocation8 + $0x18e8] sm:$0xff] }
 0x54e   :  { %5155 = vmatmul.mubr.f32.vlgmr.msra.gmra.mrb[14].mxu0 %v9028_v29 }
 0x54f   :  { %5439 = vmatmul.mubr.f32.vlgmr.msra.gmra.mrb[14].mxu1 %v9028_v29  ;;  %8230 = vmatpush1.bf16.msra.mxu0 %v8229_v56  ;;  %v1977_v29 = vld [vmem:[#allocation8 + $0x13f8] sm:$0xff] }
 0x550   :  { %5225 = vmatprep.mubr.f32.mxu0 %v9034_v35  ;;  %8486 = vmatpush1.bf16.msra.mxu1 %v8485_v60  ;;  %v8495_v55 = vpack.c.bf16 %v1977_v29, %v1961_v15  ;;  %v2025_v56 = vld [vmem:[#allocation8 + $0x1578] sm:$0xff]  ;;  %v8501_v60 = vpack.c.bf16 %v2008_v51, %v1992_v49  ;;  %v2120_v49 = vld [vmem:[#allocation8 + $0x1870] sm:$0xff] }
 0x551   :  { %5509 = vmatprep.mubr.f32.mxu1 %v9034_v35  ;;  %8232 = vmatprep.subr.bf16.mxu0 %v8231_v1  ;;  %v1976_v35 = vld [vmem:[#allocation8 + $0x13f0] sm:$0xff]  ;;  %v8503_v3 = vpack.c.bf16 %v2041_v57, %v2025_v56  ;;  %v2089_v15 = vld [vmem:[#allocation8 + $0x1778] sm:$0xff] }
 0x552   :  { %8488 = vmatprep.subr.bf16.mxu1 %v8487_v7  ;;  %v8497_v46 = vpack.c.bf16 %v1976_v35, %v1960_v39  ;;  %v2024_v1 = vld [vmem:[#allocation8 + $0x1570] sm:$0xff]  ;;  %v2071_v7 = vld [vmem:[#allocation8 + $0x16e8] sm:$0xff]  ;;  %v2105_v29 = vld [vmem:[#allocation8 + $0x17f8] sm:$0xff] }
 0x553   :  { %8234 = vmatpush1.bf16.msra.mxu0 %v8233_v14  ;;  %v8249_v14 = vpack.c.bf16 %v2038_v63, %v2022_v62  ;;  %v2088_v39 = vld [vmem:[#allocation8 + $0x1770] sm:$0xff]  ;;  %v2153_v56 = vld [vmem:[#allocation8 + $0x1978] sm:$0xff]  ;;  %v2150_v62 = vld [vmem:[#allocation8 + $0x1960] sm:$0xff] }
 0x554   :  { %8490 = vmatpush1.bf16.msra.mxu1 %v8489_v18  ;;  %8236 = vmatprep.subr.bf16.mxu0 %v8235_v20  ;;  %v8505_v18 = vpack.c.bf16 %v2040_v5, %v2024_v1  ;;  %v8251_v20 = vpack.c.bf16 %v2071_v7, %v2055_v6  ;;  %v2104_v35 = vld [vmem:[#allocation8 + $0x17f0] sm:$0xff]  ;;  %v2169_v57 = vld [vmem:[#allocation8 + $0x19f8] sm:$0xff]  ;;  %v2166_v63 = vld [vmem:[#allocation8 + $0x19e0] sm:$0xff] }
 0x555   :  { %8492 = vmatprep.subr.bf16.mxu1 %v8491_v26  ;;  %v8507_v26 = vpack.c.bf16 %v2073_v12, %v2057_v11  ;;  %v2136_v51 = vld [vmem:[#allocation8 + $0x18f0] sm:$0xff]  ;;  %v2183_v6 = vld [vmem:[#allocation8 + $0x1a68] sm:$0xff]  ;;  %v2185_v11 = vld [vmem:[#allocation8 + $0x1a78] sm:$0xff] }
 0x556   :  { %v2152_v1 = vld [vmem:[#allocation8 + $0x1970] sm:$0xff]  ;;  %v2199_v7 = vld [vmem:[#allocation8 + $0x1ae8] sm:$0xff]  ;;  %v2201_v12 = vld [vmem:[#allocation8 + $0x1af8] sm:$0xff] }
 0x557   :  { %8238 = vmatpush1.bf16.msra.mxu0 %v8237_v25  ;;  %v8253_v25 = vpack.c.bf16 %v2070_v22, %v2054_v21  ;;  %v2168_v5 = vld [vmem:[#allocation8 + $0x19f0] sm:$0xff]  ;;  %v2182_v21 = vld [vmem:[#allocation8 + $0x1a60] sm:$0xff] }
 0x558   :  { %8494 = vmatpush1.bf16.msra.mxu1 %v8493_v32  ;;  %8240 = vmatprep.subr.bf16.mxu0 %v8239_v33  ;;  %v8509_v32 = vpack.c.bf16 %v2072_v28, %v2056_v8  ;;  %v8255_v33 = vpack.c.bf16 %v2103_v19, %v2087_v31  ;;  %v2198_v22 = vld [vmem:[#allocation8 + $0x1ae0] sm:$0xff]  ;;  %v2184_v8 = vld [vmem:[#allocation8 + $0x1a70] sm:$0xff]  ;;  %v2215_v31 = vld [vmem:[#allocation8 + $0x1b68] sm:$0xff] }
 0x559   :  { %8496 = vmatprep.subr.bf16.mxu1 %v8495_v55  ;;  %v8511_v55 = vpack.c.bf16 %v2105_v29, %v2089_v15  ;;  %v2200_v28 = vld [vmem:[#allocation8 + $0x1af0] sm:$0xff]  ;;  %v2231_v19 = vld [vmem:[#allocation8 + $0x1be8] sm:$0xff]  ;;  %v2217_v15 = vld [vmem:[#allocation8 + $0x1b78] sm:$0xff] }
 0x55a   :  { %v2233_v29 = vld [vmem:[#allocation8 + $0x1bf8] sm:$0xff] }
 0x55b   :  { %8242 = vmatpush1.bf16.msra.mxu0 %v8241_v2  ;;  %v8257_v2 = vpack.c.bf16 %v2102_v37, %v2086_v34  ;;  %v2214_v34 = vld [vmem:[#allocation8 + $0x1b60] sm:$0xff] }
 0x55c   :  { %8498 = vmatpush1.bf16.msra.mxu1 %v8497_v46  ;;  %8244 = vmatprep.subr.bf16.mxu0 %v8243_v47  ;;  %v8513_v46 = vpack.c.bf16 %v2104_v35, %v2088_v39  ;;  %v8259_v47 = vpack.c.bf16 %v2135_v42, %v2119_v41  ;;  %v2230_v37 = vld [vmem:[#allocation8 + $0x1be0] sm:$0xff]  ;;  %v2216_v39 = vld [vmem:[#allocation8 + $0x1b70] sm:$0xff]  ;;  %v2247_v41 = vld [vmem:[#allocation8 + $0x1c68] sm:$0xff] }
 0x55d   :  { %8500 = vmatprep.subr.bf16.mxu1 %v8499_v50  ;;  %v8515_v50 = vpack.c.bf16 %v2137_v45, %v2121_v44  ;;  %v2232_v35 = vld [vmem:[#allocation8 + $0x1bf0] sm:$0xff]  ;;  %v2263_v42 = vld [vmem:[#allocation8 + $0x1ce8] sm:$0xff]  ;;  %v2249_v44 = vld [vmem:[#allocation8 + $0x1c78] sm:$0xff] }
 0x55e   :  { %v2265_v45 = vld [vmem:[#allocation8 + $0x1cf8] sm:$0xff] }
 0x55f   :  { %8246 = vmatpush1.bf16.msra.mxu0 %v8245_v58  ;;  %v8261_v58 = vpack.c.bf16 %v2134_v10, %v2118_v48  ;;  %v2246_v48 = vld [vmem:[#allocation8 + $0x1c60] sm:$0xff] }
 0x560   :  { %8502 = vmatpush1.bf16.msra.mxu1 %v8501_v60  ;;  %8248 = vmatprep.subr.bf16.mxu0 %v8247_v61  ;;  %v8517_v60 = vpack.c.bf16 %v2136_v51, %v2120_v49  ;;  %v8263_v61 = vpack.c.bf16 %v2167_v53, %v2151_v52  ;;  %v2262_v10 = vld [vmem:[#allocation8 + $0x1ce0] sm:$0xff]  ;;  %v2248_v49 = vld [vmem:[#allocation8 + $0x1c70] sm:$0xff]  ;;  %v2279_v52 = vld [vmem:[#allocation8 + $0x1d68] sm:$0xff] }
 0x561   :  { %8504 = vmatprep.subr.bf16.mxu1 %v8503_v3  ;;  %v8519_v3 = vpack.c.bf16 %v2169_v57, %v2153_v56  ;;  %v2264_v51 = vld [vmem:[#allocation8 + $0x1cf0] sm:$0xff]  ;;  %v2295_v53 = vld [vmem:[#allocation8 + $0x1de8] sm:$0xff]  ;;  %v2281_v56 = vld [vmem:[#allocation8 + $0x1d78] sm:$0xff] }
 0x562   :  { %v2297_v57 = vld [vmem:[#allocation8 + $0x1df8] sm:$0xff] }
 0x563   :  { %8250 = vmatpush1.bf16.msra.mxu0 %v8249_v14  ;;  %v8265_v14 = vpack.c.bf16 %v2166_v63, %v2150_v62  ;;  %v2278_v62 = vld [vmem:[#allocation8 + $0x1d60] sm:$0xff] }
 0x564   :  { %8506 = vmatpush1.bf16.msra.mxu1 %v8505_v18  ;;  %8252 = vmatprep.subr.bf16.mxu0 %v8251_v20  ;;  %v8521_v18 = vpack.c.bf16 %v2168_v5, %v2152_v1  ;;  %v8267_v20 = vpack.c.bf16 %v2199_v7, %v2183_v6  ;;  %v2294_v63 = vld [vmem:[#allocation8 + $0x1de0] sm:$0xff]  ;;  %v2280_v1 = vld [vmem:[#allocation8 + $0x1d70] sm:$0xff]  ;;  %v2311_v6 = vld [vmem:[#allocation8 + $0x1e68] sm:$0xff] }
 0x565   :  { %8508 = vmatprep.subr.bf16.mxu1 %v8507_v26  ;;  %v8523_v26 = vpack.c.bf16 %v2201_v12, %v2185_v11  ;;  %v2296_v5 = vld [vmem:[#allocation8 + $0x1df0] sm:$0xff]  ;;  %v2327_v7 = vld [vmem:[#allocation8 + $0x1ee8] sm:$0xff]  ;;  %v2313_v11 = vld [vmem:[#allocation8 + $0x1e78] sm:$0xff] }
 0x566   :  { %v2329_v12 = vld [vmem:[#allocation8 + $0x1ef8] sm:$0xff] }
 0x567   :  { %8254 = vmatpush1.bf16.msra.mxu0 %v8253_v25  ;;  %v8269_v25 = vpack.c.bf16 %v2198_v22, %v2182_v21  ;;  %v2310_v21 = vld [vmem:[#allocation8 + $0x1e60] sm:$0xff] }
 0x568   :  { %8510 = vmatpush1.bf16.msra.mxu1 %v8509_v32  ;;  %8256 = vmatprep.subr.bf16.mxu0 %v8255_v33  ;;  %v8525_v32 = vpack.c.bf16 %v2200_v28, %v2184_v8  ;;  %v8271_v33 = vpack.c.bf16 %v2231_v19, %v2215_v31  ;;  %v2326_v22 = vld [vmem:[#allocation8 + $0x1ee0] sm:$0xff]  ;;  %v2312_v8 = vld [vmem:[#allocation8 + $0x1e70] sm:$0xff]  ;;  %v2343_v31 = vld [vmem:[#allocation8 + $0x1f68] sm:$0xff] }
 0x569   :  { %8512 = vmatprep.subr.bf16.mxu1 %v8511_v55  ;;  %v8527_v55 = vpack.c.bf16 %v2233_v29, %v2217_v15  ;;  %v2328_v28 = vld [vmem:[#allocation8 + $0x1ef0] sm:$0xff]  ;;  %v2359_v19 = vld [vmem:[#allocation8 + $0x1fe8] sm:$0xff]  ;;  %v2345_v15 = vld [vmem:[#allocation8 + $0x1f78] sm:$0xff] }
 0x56a   :  { %v2361_v29 = vld [vmem:[#allocation8 + $0x1ff8] sm:$0xff] }
 0x56b   :  { %8258 = vmatpush1.bf16.msra.mxu0 %v8257_v2  ;;  %v8273_v2 = vpack.c.bf16 %v2230_v37, %v2214_v34  ;;  %v2342_v34 = vld [vmem:[#allocation8 + $0x1f60] sm:$0xff] }
 0x56c   :  { %8514 = vmatpush1.bf16.msra.mxu1 %v8513_v46  ;;  %8260 = vmatprep.subr.bf16.mxu0 %v8259_v47  ;;  %v8529_v46 = vpack.c.bf16 %v2232_v35, %v2216_v39  ;;  %v8275_v47 = vpack.c.bf16 %v2263_v42, %v2247_v41  ;;  %v2358_v37 = vld [vmem:[#allocation8 + $0x1fe0] sm:$0xff]  ;;  %v2344_v39 = vld [vmem:[#allocation8 + $0x1f70] sm:$0xff]  ;;  %v2375_v41 = vld [vmem:[#allocation8 + $0x2068] sm:$0xff] }
 0x56d   :  { %8516 = vmatprep.subr.bf16.mxu1 %v8515_v50  ;;  %v8531_v50 = vpack.c.bf16 %v2265_v45, %v2249_v44  ;;  %v2360_v35 = vld [vmem:[#allocation8 + $0x1ff0] sm:$0xff]  ;;  %v2391_v42 = vld [vmem:[#allocation8 + $0x20e8] sm:$0xff]  ;;  %v2377_v44 = vld [vmem:[#allocation8 + $0x2078] sm:$0xff] }
 0x56e   :  { %v2393_v45 = vld [vmem:[#allocation8 + $0x20f8] sm:$0xff] }
 0x56f   :  { %8262 = vmatpush1.bf16.msra.mxu0 %v8261_v58  ;;  %v8277_v58 = vpack.c.bf16 %v2262_v10, %v2246_v48  ;;  %v2374_v48 = vld [vmem:[#allocation8 + $0x2060] sm:$0xff] }
 0x570   :  { %8518 = vmatpush1.bf16.msra.mxu1 %v8517_v60  ;;  %8264 = vmatprep.subr.bf16.mxu0 %v8263_v61  ;;  %v8533_v60 = vpack.c.bf16 %v2264_v51, %v2248_v49  ;;  %v8279_v61 = vpack.c.bf16 %v2295_v53, %v2279_v52  ;;  %v2390_v10 = vld [vmem:[#allocation8 + $0x20e0] sm:$0xff]  ;;  %v8547_v49 = vpack.c.bf16 %v2393_v45, %v2377_v44  ;;  %v2392_v51 = vld [vmem:[#allocation8 + $0x20f0] sm:$0xff]  ;;  %v2407_v52 = vld [vmem:[#allocation8 + $0x2168] sm:$0xff] }
 0x571   :  { %8520 = vmatprep.subr.bf16.mxu1 %v8519_v3  ;;  %v8535_v3 = vpack.c.bf16 %v2297_v57, %v2281_v56  ;;  %v2423_v53 = vld [vmem:[#allocation8 + $0x21e8] sm:$0xff]  ;;  %v8293_v56 = vpack.c.bf16 %v2390_v10, %v2374_v48  ;;  %v2409_v57 = vld [vmem:[#allocation8 + $0x2178] sm:$0xff]  ;;  %v2504_v48 = vld [vmem:[#allocation8 + $0x2470] sm:$0xff] }
 0x573   :  { %8266 = vmatpush1.bf16.msra.mxu0 %v8265_v14  ;;  %v8281_v14 = vpack.c.bf16 %v2294_v63, %v2278_v62  ;;  %v2422_v62 = vld [vmem:[#allocation8 + $0x21e0] sm:$0xff]  ;;  %v2408_v63 = vld [vmem:[#allocation8 + $0x2170] sm:$0xff] }
 0x574   :  { %8522 = vmatpush1.bf16.msra.mxu1 %v8521_v18  ;;  %8268 = vmatprep.subr.bf16.mxu0 %v8267_v20  ;;  %v8537_v18 = vpack.c.bf16 %v2296_v5, %v2280_v1  ;;  %v8283_v20 = vpack.c.bf16 %v2327_v7, %v2311_v6  ;;  %v8295_v1 = vpack.c.bf16 %v2423_v53, %v2407_v52  ;;  %v2439_v5 = vld [vmem:[#allocation8 + $0x2268] sm:$0xff]  ;;  %v2537_v52 = vld [vmem:[#allocation8 + $0x2578] sm:$0xff] }
 0x575   :  { %8524 = vmatprep.subr.bf16.mxu1 %v8523_v26  ;;  %v8539_v26 = vpack.c.bf16 %v2329_v12, %v2313_v11  ;;  %v2455_v6 = vld [vmem:[#allocation8 + $0x22e8] sm:$0xff]  ;;  %v2441_v11 = vld [vmem:[#allocation8 + $0x2278] sm:$0xff] }
 0x576   :  { %v2457_v12 = vld [vmem:[#allocation8 + $0x22f8] sm:$0xff] }
 0x577   :  { %8270 = vmatpush1.bf16.msra.mxu0 %v8269_v25  ;;  %v8285_v25 = vpack.c.bf16 %v2326_v22, %v2310_v21  ;;  %v2438_v21 = vld [vmem:[#allocation8 + $0x2260] sm:$0xff]  ;;  %v2553_v53 = vld [vmem:[#allocation8 + $0x25f8] sm:$0xff] }
 0x578   :  { %8526 = vmatpush1.bf16.msra.mxu1 %v8525_v32  ;;  %8272 = vmatprep.subr.bf16.mxu0 %v8271_v33  ;;  %v8541_v32 = vpack.c.bf16 %v2328_v28, %v2312_v8  ;;  %v8287_v33 = vpack.c.bf16 %v2359_v19, %v2343_v31  ;;  %v2454_v22 = vld [vmem:[#allocation8 + $0x22e0] sm:$0xff]  ;;  %v2440_v8 = vld [vmem:[#allocation8 + $0x2270] sm:$0xff]  ;;  %v2471_v31 = vld [vmem:[#allocation8 + $0x2368] sm:$0xff] }
 0x579   :  { %8528 = vmatprep.subr.bf16.mxu1 %v8527_v55  ;;  %v8543_v55 = vpack.c.bf16 %v2361_v29, %v2345_v15  ;;  %v2456_v28 = vld [vmem:[#allocation8 + $0x22f0] sm:$0xff]  ;;  %v2487_v19 = vld [vmem:[#allocation8 + $0x23e8] sm:$0xff]  ;;  %v2473_v15 = vld [vmem:[#allocation8 + $0x2378] sm:$0xff]  ;;  %v8301_v29 = vpack.c.bf16 %v2454_v22, %v2438_v21 }
 0x57a   :  { %v2568_v21 = vld [vmem:[#allocation8 + $0x2670] sm:$0xff] }
 0x57b   :  { %8274 = vmatpush1.bf16.msra.mxu0 %v8273_v2  ;;  %v8289_v2 = vpack.c.bf16 %v2358_v37, %v2342_v34  ;;  %v2486_v34 = vld [vmem:[#allocation8 + $0x23e0] sm:$0xff]  ;;  %v2472_v37 = vld [vmem:[#allocation8 + $0x2370] sm:$0xff] }
 0x57c   :  { %8530 = vmatpush1.bf16.msra.mxu1 %v8529_v46  ;;  %8276 = vmatprep.subr.bf16.mxu0 %v8275_v47  ;;  %v8545_v46 = vpack.c.bf16 %v2360_v35, %v2344_v39  ;;  %v8291_v47 = vpack.c.bf16 %v2391_v42, %v2375_v41  ;;  %v2519_v35 = vld [vmem:[#allocation8 + $0x24e8] sm:$0xff]  ;;  %v2505_v41 = vld [vmem:[#allocation8 + $0x2478] sm:$0xff] }
 0x57d   :  { %8532 = vmatprep.subr.bf16.mxu1 %v8531_v50  ;;  %v2376_v50 = vld [vmem:[#allocation8 + $0x2070] sm:$0xff]  ;;  %v2521_v42 = vld [vmem:[#allocation8 + $0x24f8] sm:$0xff] }
 0x57e   :  { %v8563_v10 = vpack.c.bf16 %v2521_v42, %v2505_v41 }
 0x57f   :  { %8278 = vmatpush1.bf16.msra.mxu0 %v8277_v58  ;;  %v2425_v58 = vld [vmem:[#allocation8 + $0x21f8] sm:$0xff] }
 0x580   :  { %8534 = vmatpush1.bf16.msra.mxu1 %v8533_v60  ;;  %8280 = vmatprep.subr.bf16.mxu0 %v8279_v61  ;;  %v8549_v60 = vpack.c.bf16 %v2392_v51, %v2376_v50  ;;  %v2406_v61 = vld [vmem:[#allocation8 + $0x2160] sm:$0xff]  ;;  %v8551_v7 = vpack.c.bf16 %v2425_v58, %v2409_v57  ;;  %v2535_v50 = vld [vmem:[#allocation8 + $0x2568] sm:$0xff] }
 0x581   :  { %8536 = vmatprep.subr.bf16.mxu1 %v8535_v3  ;;  %v2424_v3 = vld [vmem:[#allocation8 + $0x21f0] sm:$0xff]  ;;  %v2551_v51 = vld [vmem:[#allocation8 + $0x25e8] sm:$0xff] }
 0x582   :  { %v8311_v58 = vpack.c.bf16 %v2551_v51, %v2535_v50  ;;  %v2665_v50 = vld [vmem:[#allocation8 + $0x2978] sm:$0xff] }
 0x583   :  { %8282 = vmatpush1.bf16.msra.mxu0 %v8281_v14  ;;  %v8297_v14 = vpack.c.bf16 %v2422_v62, %v2406_v61  ;;  %v2550_v61 = vld [vmem:[#allocation8 + $0x25e0] sm:$0xff]  ;;  %v2536_v62 = vld [vmem:[#allocation8 + $0x2570] sm:$0xff]  ;;  %v2681_v51 = vld [vmem:[#allocation8 + $0x29f8] sm:$0xff] }
 0x584   :  { %8538 = vmatpush1.bf16.msra.mxu1 %v8537_v18  ;;  %8284 = vmatprep.subr.bf16.mxu0 %v8283_v20  ;;  %v8553_v18 = vpack.c.bf16 %v2424_v3, %v2408_v63  ;;  %v8299_v20 = vpack.c.bf16 %v2455_v6, %v2439_v5  ;;  %v8567_v63 = vpack.c.bf16 %v2553_v53, %v2537_v52  ;;  %v2567_v3 = vld [vmem:[#allocation8 + $0x2668] sm:$0xff]  ;;  %v2569_v6 = vld [vmem:[#allocation8 + $0x2678] sm:$0xff] }
 0x585   :  { %8540 = vmatprep.subr.bf16.mxu1 %v8539_v26  ;;  %v8555_v26 = vpack.c.bf16 %v2457_v12, %v2441_v11  ;;  %v2583_v5 = vld [vmem:[#allocation8 + $0x26e8] sm:$0xff] }
 0x587   :  { %8286 = vmatpush1.bf16.msra.mxu0 %v8285_v25  ;;  %v8557_v25 = vpack.c.bf16 %v2456_v28, %v2440_v8  ;;  %v2584_v8 = vld [vmem:[#allocation8 + $0x26f0] sm:$0xff]  ;;  %v2615_v28 = vld [vmem:[#allocation8 + $0x27e8] sm:$0xff] }
 0x588   :  { %8542 = vmatpush1.bf16.msra.mxu1 %v8541_v32  ;;  %8288 = vmatprep.subr.bf16.mxu0 %v8287_v33  ;;  %v8303_v32 = vpack.c.bf16 %v2487_v19, %v2471_v31  ;;  %v2470_v33 = vld [vmem:[#allocation8 + $0x2360] sm:$0xff]  ;;  %v2601_v31 = vld [vmem:[#allocation8 + $0x2778] sm:$0xff] }
 0x589   :  { %8544 = vmatprep.subr.bf16.mxu1 %v8543_v55  ;;  %v2503_v55 = vld [vmem:[#allocation8 + $0x2468] sm:$0xff]  ;;  %v8305_v44 = vpack.c.bf16 %v2486_v34, %v2470_v33  ;;  %v2617_v19 = vld [vmem:[#allocation8 + $0x27f8] sm:$0xff]  ;;  %v2600_v33 = vld [vmem:[#allocation8 + $0x2770] sm:$0xff] }
 0x58a   :  { %v8575_v34 = vpack.c.bf16 %v2617_v19, %v2601_v31 }
 0x58b   :  { %8290 = vmatpush1.bf16.msra.mxu0 %v8289_v2  ;;  %v8307_v2 = vpack.c.bf16 %v2519_v35, %v2503_v55  ;;  %v2633_v55 = vld [vmem:[#allocation8 + $0x2878] sm:$0xff] }
 0x58c   :  { %8546 = vmatpush1.bf16.msra.mxu1 %v8545_v46  ;;  %8292 = vmatprep.subr.bf16.mxu0 %v8291_v47  ;;  %v2502_v46 = vld [vmem:[#allocation8 + $0x2460] sm:$0xff]  ;;  %v2649_v35 = vld [vmem:[#allocation8 + $0x28f8] sm:$0xff] }
 0x58d   :  { %8548 = vmatprep.subr.bf16.mxu1 %v8547_v49  ;;  %v2518_v47 = vld [vmem:[#allocation8 + $0x24e0] sm:$0xff]  ;;  %v2520_v49 = vld [vmem:[#allocation8 + $0x24f0] sm:$0xff] }
 0x58e   :  { %5226 = vmatmul.mubr.f32.vlgmr.msra.gmra.mrb[14].mxu0 %v9040_v54  ;;  %v8565_v57 = vpack.c.bf16 %v2520_v49, %v2504_v48  ;;  %v2648_v48 = vld [vmem:[#allocation8 + $0x28f0] sm:$0xff]  ;;  %v2679_v49 = vld [vmem:[#allocation8 + $0x29e8] sm:$0xff] }
 0x58f   :  { %5510 = vmatmul.mubr.f32.vlgmr.msra.gmra.mrb[14].mxu1 %v9040_v54  ;;  %8294 = vmatpush1.bf16.msra.mxu0 %v8293_v56  ;;  %v2489_v54 = vld [vmem:[#allocation8 + $0x23f8] sm:$0xff]  ;;  %v8309_v56 = vpack.c.bf16 %v2518_v47, %v2502_v46  ;;  %v2632_v46 = vld [vmem:[#allocation8 + $0x2870] sm:$0xff]  ;;  %v8579_v47 = vpack.c.bf16 %v2649_v35, %v2633_v55 }
 0x590   :  { %5296 = vmatprep.mubr.f32.mxu0 %v9051_v30  ;;  %8550 = vmatpush1.bf16.msra.mxu1 %v8549_v60  ;;  %v8559_v39 = vpack.c.bf16 %v2489_v54, %v2473_v15  ;;  %v2534_v60 = vld [vmem:[#allocation8 + $0x2560] sm:$0xff]  ;;  %v8573_v54 = vpack.c.bf16 %v2584_v8, %v2568_v21  ;;  %v8581_v53 = vpack.c.bf16 %v2648_v48, %v2632_v46  ;;  %v2712_v21 = vld [vmem:[#allocation8 + $0x2af0] sm:$0xff]  ;;  %v2743_v8 = vld [vmem:[#allocation8 + $0x2be8] sm:$0xff] }
 0x591   :  { %5580 = vmatprep.mubr.f32.mxu1 %v9051_v30  ;;  %8296 = vmatprep.subr.bf16.mxu0 %v8295_v1  ;;  %v2488_v30 = vld [vmem:[#allocation8 + $0x23f0] sm:$0xff]  ;;  %v8313_v11 = vpack.c.bf16 %v2550_v61, %v2534_v60  ;;  %v8583_v61 = vpack.c.bf16 %v2681_v51, %v2665_v50  ;;  %v2807_v48 = vld [vmem:[#allocation8 + $0x2de8] sm:$0xff] }
 0x592   :  { %8552 = vmatprep.subr.bf16.mxu1 %v8551_v7  ;;  %v8561_v45 = vpack.c.bf16 %v2488_v30, %v2472_v37  ;;  %v2552_v1 = vld [vmem:[#allocation8 + $0x25f0] sm:$0xff]  ;;  %v2585_v7 = vld [vmem:[#allocation8 + $0x26f8] sm:$0xff]  ;;  %v2647_v30 = vld [vmem:[#allocation8 + $0x28e8] sm:$0xff] }
 0x593   :  { %8298 = vmatpush1.bf16.msra.mxu0 %v8297_v14  ;;  %v8569_v12 = vpack.c.bf16 %v2552_v1, %v2536_v62  ;;  %v8315_v14 = vpack.c.bf16 %v2583_v5, %v2567_v3  ;;  %v8571_v22 = vpack.c.bf16 %v2585_v7, %v2569_v6  ;;  %v2616_v37 = vld [vmem:[#allocation8 + $0x27f0] sm:$0xff]  ;;  %v2711_v1 = vld [vmem:[#allocation8 + $0x2ae8] sm:$0xff]  ;;  %v2697_v3 = vld [vmem:[#allocation8 + $0x2a78] sm:$0xff] }
 0x594   :  { %8554 = vmatpush1.bf16.msra.mxu1 %v8553_v18  ;;  %8300 = vmatprep.subr.bf16.mxu0 %v8299_v20  ;;  %v2566_v18 = vld [vmem:[#allocation8 + $0x2660] sm:$0xff]  ;;  %v8577_v42 = vpack.c.bf16 %v2616_v37, %v2600_v33  ;;  %v2664_v60 = vld [vmem:[#allocation8 + $0x2970] sm:$0xff]  ;;  %v2713_v5 = vld [vmem:[#allocation8 + $0x2af8] sm:$0xff] }
 0x595   :  { %8556 = vmatprep.subr.bf16.mxu1 %v8555_v26  ;;  %v2582_v20 = vld [vmem:[#allocation8 + $0x26e0] sm:$0xff]  ;;  %v2599_v26 = vld [vmem:[#allocation8 + $0x2768] sm:$0xff]  ;;  %v2680_v62 = vld [vmem:[#allocation8 + $0x29f0] sm:$0xff] }
 0x596   :  { %v8317_v15 = vpack.c.bf16 %v2582_v20, %v2566_v18  ;;  %v8585_v7 = vpack.c.bf16 %v2680_v62, %v2664_v60  ;;  %v2696_v18 = vld [vmem:[#allocation8 + $0x2a70] sm:$0xff]  ;;  %v8587_v20 = vpack.c.bf16 %v2713_v5, %v2697_v3  ;;  %v2775_v37 = vld [vmem:[#allocation8 + $0x2ce8] sm:$0xff] }
 0x597   :  { %8302 = vmatpush1.bf16.msra.mxu0 %v8301_v29  ;;  %v8319_v29 = vpack.c.bf16 %v2615_v28, %v2599_v26  ;;  %v2729_v26 = vld [vmem:[#allocation8 + $0x2b78] sm:$0xff]  ;;  %v8589_v19 = vpack.c.bf16 %v2712_v21, %v2696_v18  ;;  %v2744_v33 = vld [vmem:[#allocation8 + $0x2bf0] sm:$0xff]  ;;  %v2839_v62 = vld [vmem:[#allocation8 + $0x2ee8] sm:$0xff] }
 0x598   :  { %8558 = vmatpush1.bf16.msra.mxu1 %v8557_v25  ;;  %8304 = vmatprep.subr.bf16.mxu0 %v8303_v32  ;;  %v2598_v25 = vld [vmem:[#allocation8 + $0x2760] sm:$0xff]  ;;  %v2745_v28 = vld [vmem:[#allocation8 + $0x2bf8] sm:$0xff]  ;;  %v2776_v46 = vld [vmem:[#allocation8 + $0x2cf0] sm:$0xff] }
 0x599   :  { %8560 = vmatprep.subr.bf16.mxu1 %v8559_v39  ;;  %v2614_v32 = vld [vmem:[#allocation8 + $0x27e0] sm:$0xff]  ;;  %v2631_v39 = vld [vmem:[#allocation8 + $0x2868] sm:$0xff]  ;;  %v2808_v60 = vld [vmem:[#allocation8 + $0x2df0] sm:$0xff] }
 0x59a   :  { %v8321_v41 = vpack.c.bf16 %v2614_v32, %v2598_v25  ;;  %v2728_v25 = vld [vmem:[#allocation8 + $0x2b70] sm:$0xff]  ;;  %v8591_v32 = vpack.c.bf16 %v2745_v28, %v2729_v26  ;;  %v2871_v21 = vld [vmem:[#allocation8 + $0x2fe8] sm:$0xff] }
 0x59b   :  { %8306 = vmatpush1.bf16.msra.mxu0 %v8305_v44  ;;  %v8323_v44 = vpack.c.bf16 %v2647_v30, %v2631_v39  ;;  %v2761_v39 = vld [vmem:[#allocation8 + $0x2c78] sm:$0xff]  ;;  %v8593_v35 = vpack.c.bf16 %v2744_v33, %v2728_v25  ;;  %v2840_v18 = vld [vmem:[#allocation8 + $0x2ef0] sm:$0xff]  ;;  %v2903_v33 = vld [vmem:[#allocation8 + $0x30e8] sm:$0xff] }
 0x59c   :  { %8562 = vmatpush1.bf16.msra.mxu1 %v8561_v45  ;;  %8308 = vmatprep.subr.bf16.mxu0 %v8307_v2  ;;  %v2630_v45 = vld [vmem:[#allocation8 + $0x2860] sm:$0xff]  ;;  %v2777_v30 = vld [vmem:[#allocation8 + $0x2cf8] sm:$0xff]  ;;  %v2872_v25 = vld [vmem:[#allocation8 + $0x2ff0] sm:$0xff] }
 0x59d   :  { %8564 = vmatprep.subr.bf16.mxu1 %v8563_v10  ;;  %v2646_v2 = vld [vmem:[#allocation8 + $0x28e0] sm:$0xff]  ;;  %v2663_v10 = vld [vmem:[#allocation8 + $0x2968] sm:$0xff] }
 0x59e   :  { %v8325_v52 = vpack.c.bf16 %v2646_v2, %v2630_v45  ;;  %v2760_v45 = vld [vmem:[#allocation8 + $0x2c70] sm:$0xff]  ;;  %v8595_v2 = vpack.c.bf16 %v2777_v30, %v2761_v39 }
 0x59f   :  { %8310 = vmatpush1.bf16.msra.mxu0 %v8309_v56  ;;  %v8327_v56 = vpack.c.bf16 %v2679_v49, %v2663_v10  ;;  %v2793_v10 = vld [vmem:[#allocation8 + $0x2d78] sm:$0xff]  ;;  %v8597_v51 = vpack.c.bf16 %v2776_v46, %v2760_v45  ;;  %v2904_v45 = vld [vmem:[#allocation8 + $0x30f0] sm:$0xff]  ;;  %v2935_v46 = vld [vmem:[#allocation8 + $0x31e8] sm:$0xff] }
 0x5a0   :  { %8566 = vmatpush1.bf16.msra.mxu1 %v8565_v57  ;;  %8312 = vmatprep.subr.bf16.mxu0 %v8311_v58  ;;  %v2662_v57 = vld [vmem:[#allocation8 + $0x2960] sm:$0xff]  ;;  %v2809_v49 = vld [vmem:[#allocation8 + $0x2df8] sm:$0xff] }
 0x5a1   :  { %8568 = vmatprep.subr.bf16.mxu1 %v8567_v63  ;;  %v2678_v58 = vld [vmem:[#allocation8 + $0x29e0] sm:$0xff]  ;;  %v2695_v63 = vld [vmem:[#allocation8 + $0x2a68] sm:$0xff] }
 0x5a2   :  { %v8329_v6 = vpack.c.bf16 %v2678_v58, %v2662_v57  ;;  %v2792_v57 = vld [vmem:[#allocation8 + $0x2d70] sm:$0xff]  ;;  %v8599_v58 = vpack.c.bf16 %v2809_v49, %v2793_v10  ;;  %v2937_v10 = vld [vmem:[#allocation8 + $0x31f8] sm:$0xff] }
 0x5a3   :  { %8314 = vmatpush1.bf16.msra.mxu0 %v8313_v11  ;;  %v8331_v11 = vpack.c.bf16 %v2711_v1, %v2695_v63  ;;  %v2825_v63 = vld [vmem:[#allocation8 + $0x2e78] sm:$0xff]  ;;  %v8601_v5 = vpack.c.bf16 %v2808_v60, %v2792_v57  ;;  %v2951_v57 = vld [vmem:[#allocation8 + $0x3268] sm:$0xff] }
 0x5a4   :  { %8570 = vmatpush1.bf16.msra.mxu1 %v8569_v12  ;;  %8316 = vmatprep.subr.bf16.mxu0 %v8315_v14  ;;  %v2694_v12 = vld [vmem:[#allocation8 + $0x2a60] sm:$0xff]  ;;  %v2841_v1 = vld [vmem:[#allocation8 + $0x2ef8] sm:$0xff] }
 0x5a5   :  { %8572 = vmatprep.subr.bf16.mxu1 %v8571_v22  ;;  %v2710_v14 = vld [vmem:[#allocation8 + $0x2ae0] sm:$0xff]  ;;  %v2727_v22 = vld [vmem:[#allocation8 + $0x2b68] sm:$0xff] }
 0x5a6   :  { %v8333_v31 = vpack.c.bf16 %v2710_v14, %v2694_v12  ;;  %v2824_v12 = vld [vmem:[#allocation8 + $0x2e70] sm:$0xff]  ;;  %v8603_v14 = vpack.c.bf16 %v2841_v1, %v2825_v63 }
 0x5a7   :  { %8318 = vmatpush1.bf16.msra.mxu0 %v8317_v15  ;;  %v8335_v15 = vpack.c.bf16 %v2743_v8, %v2727_v22  ;;  %v2857_v22 = vld [vmem:[#allocation8 + $0x2f78] sm:$0xff]  ;;  %v8605_v28 = vpack.c.bf16 %v2840_v18, %v2824_v12  ;;  %v2968_v12 = vld [vmem:[#allocation8 + $0x32f0] sm:$0xff]  ;;  %v2999_v18 = vld [vmem:[#allocation8 + $0x33e8] sm:$0xff] }
 0x5a8   :  { %8574 = vmatpush1.bf16.msra.mxu1 %v8573_v54  ;;  %8320 = vmatprep.subr.bf16.mxu0 %v8319_v29  ;;  %v2726_v54 = vld [vmem:[#allocation8 + $0x2b60] sm:$0xff]  ;;  %v2873_v8 = vld [vmem:[#allocation8 + $0x2ff8] sm:$0xff] }
 0x5a9   :  { %8576 = vmatprep.subr.bf16.mxu1 %v8575_v34  ;;  %v2742_v29 = vld [vmem:[#allocation8 + $0x2be0] sm:$0xff]  ;;  %v2759_v34 = vld [vmem:[#allocation8 + $0x2c68] sm:$0xff] }
 0x5aa   :  { %v8337_v55 = vpack.c.bf16 %v2742_v29, %v2726_v54  ;;  %v2856_v54 = vld [vmem:[#allocation8 + $0x2f70] sm:$0xff]  ;;  %v8607_v29 = vpack.c.bf16 %v2873_v8, %v2857_v22 }
 0x5ab   :  { %8322 = vmatpush1.bf16.msra.mxu0 %v8321_v41  ;;  %v8339_v41 = vpack.c.bf16 %v2775_v37, %v2759_v34  ;;  %v2889_v34 = vld [vmem:[#allocation8 + $0x3078] sm:$0xff]  ;;  %v8609_v30 = vpack.c.bf16 %v2872_v25, %v2856_v54  ;;  %v3031_v54 = vld [vmem:[#allocation8 + $0x34e8] sm:$0xff] }
 0x5ac   :  { %8578 = vmatpush1.bf16.msra.mxu1 %v8577_v42  ;;  %8324 = vmatprep.subr.bf16.mxu0 %v8323_v44  ;;  %v2758_v42 = vld [vmem:[#allocation8 + $0x2c60] sm:$0xff]  ;;  %v2905_v37 = vld [vmem:[#allocation8 + $0x30f8] sm:$0xff] }
 0x5ad   :  { %8580 = vmatprep.subr.bf16.mxu1 %v8579_v47  ;;  %v2774_v44 = vld [vmem:[#allocation8 + $0x2ce0] sm:$0xff]  ;;  %v2791_v47 = vld [vmem:[#allocation8 + $0x2d68] sm:$0xff]  ;;  %v3033_v25 = vld [vmem:[#allocation8 + $0x34f8] sm:$0xff] }
 0x5ae   :  { %v8341_v50 = vpack.c.bf16 %v2774_v44, %v2758_v42  ;;  %v8611_v42 = vpack.c.bf16 %v2905_v37, %v2889_v34  ;;  %v2888_v44 = vld [vmem:[#allocation8 + $0x3070] sm:$0xff]  ;;  %v3014_v37 = vld [vmem:[#allocation8 + $0x3460] sm:$0xff] }
 0x5af   :  { %8326 = vmatpush1.bf16.msra.mxu0 %v8325_v52  ;;  %v8343_v52 = vpack.c.bf16 %v2807_v48, %v2791_v47  ;;  %v2921_v48 = vld [vmem:[#allocation8 + $0x3178] sm:$0xff]  ;;  %v8613_v49 = vpack.c.bf16 %v2904_v45, %v2888_v44 }
 0x5b0   :  { %8582 = vmatpush1.bf16.msra.mxu1 %v8581_v53  ;;  %8328 = vmatprep.subr.bf16.mxu0 %v8327_v56  ;;  %v2790_v53 = vld [vmem:[#allocation8 + $0x2d60] sm:$0xff]  ;;  %v8615_v60 = vpack.c.bf16 %v2937_v10, %v2921_v48  ;;  %v3049_v44 = vld [vmem:[#allocation8 + $0x3578] sm:$0xff] }
 0x5b1   :  { %8584 = vmatprep.subr.bf16.mxu1 %v8583_v61  ;;  %v2806_v56 = vld [vmem:[#allocation8 + $0x2de0] sm:$0xff]  ;;  %v2823_v61 = vld [vmem:[#allocation8 + $0x2e68] sm:$0xff]  ;;  %v3065_v45 = vld [vmem:[#allocation8 + $0x35f8] sm:$0xff] }
 0x5b2   :  { %v8345_v3 = vpack.c.bf16 %v2806_v56, %v2790_v53  ;;  %v2936_v56 = vld [vmem:[#allocation8 + $0x31f0] sm:$0xff]  ;;  %v3046_v48 = vld [vmem:[#allocation8 + $0x3560] sm:$0xff] }
 0x5b3   :  { %8330 = vmatpush1.bf16.msra.mxu0 %v8329_v6  ;;  %v8347_v6 = vpack.c.bf16 %v2839_v62, %v2823_v61  ;;  %v2953_v61 = vld [vmem:[#allocation8 + $0x3278] sm:$0xff]  ;;  %v3062_v10 = vld [vmem:[#allocation8 + $0x35e0] sm:$0xff] }
 0x5b4   :  { %8586 = vmatpush1.bf16.msra.mxu1 %v8585_v7  ;;  %8332 = vmatprep.subr.bf16.mxu0 %v8331_v11  ;;  %v2822_v7 = vld [vmem:[#allocation8 + $0x2e60] sm:$0xff]  ;;  %v2969_v62 = vld [vmem:[#allocation8 + $0x32f8] sm:$0xff] }
 0x5b5   :  { %8588 = vmatprep.subr.bf16.mxu1 %v8587_v20  ;;  %v2838_v11 = vld [vmem:[#allocation8 + $0x2ee0] sm:$0xff]  ;;  %v2855_v20 = vld [vmem:[#allocation8 + $0x2f68] sm:$0xff] }
 0x5b6   :  { %v8349_v26 = vpack.c.bf16 %v2838_v11, %v2822_v7  ;;  %v2952_v7 = vld [vmem:[#allocation8 + $0x3270] sm:$0xff]  ;;  %v8619_v11 = vpack.c.bf16 %v2969_v62, %v2953_v61  ;;  %v3078_v62 = vld [vmem:[#allocation8 + $0x3660] sm:$0xff] }
 0x5b7   :  { %8334 = vmatpush1.bf16.msra.mxu0 %v8333_v31  ;;  %v8351_v31 = vpack.c.bf16 %v2871_v21, %v2855_v20  ;;  %v2985_v20 = vld [vmem:[#allocation8 + $0x3378] sm:$0xff]  ;;  %v8621_v22 = vpack.c.bf16 %v2968_v12, %v2952_v7  ;;  %v3111_v7 = vld [vmem:[#allocation8 + $0x3768] sm:$0xff] }
 0x5b8   :  { %8590 = vmatpush1.bf16.msra.mxu1 %v8589_v19  ;;  %8336 = vmatprep.subr.bf16.mxu0 %v8335_v15  ;;  %v2854_v19 = vld [vmem:[#allocation8 + $0x2f60] sm:$0xff] }
 0x5b9   :  { %8592 = vmatprep.subr.bf16.mxu1 %v8591_v32  ;;  %v2870_v15 = vld [vmem:[#allocation8 + $0x2fe0] sm:$0xff]  ;;  %v2887_v32 = vld [vmem:[#allocation8 + $0x3068] sm:$0xff] }
 0x5ba   :  { %v8353_v39 = vpack.c.bf16 %v2870_v15, %v2854_v19  ;;  %v3015_v15 = vld [vmem:[#allocation8 + $0x3468] sm:$0xff] }
 0x5bb   :  { %8338 = vmatpush1.bf16.msra.mxu0 %v8337_v55  ;;  %v8355_v55 = vpack.c.bf16 %v2903_v33, %v2887_v32  ;;  %v8371_v34 = vpack.c.bf16 %v3031_v54, %v3015_v15  ;;  %v3143_v15 = vld [vmem:[#allocation8 + $0x3868] sm:$0xff] }
 0x5bc   :  { %8594 = vmatpush1.bf16.msra.mxu1 %v8593_v35  ;;  %8340 = vmatprep.subr.bf16.mxu0 %v8339_v41  ;;  %v2886_v35 = vld [vmem:[#allocation8 + $0x3060] sm:$0xff]  ;;  %v3159_v54 = vld [vmem:[#allocation8 + $0x38e8] sm:$0xff] }
 0x5bd   :  { %8596 = vmatprep.subr.bf16.mxu1 %v8595_v2  ;;  %v2902_v41 = vld [vmem:[#allocation8 + $0x30e0] sm:$0xff]  ;;  %v2919_v2 = vld [vmem:[#allocation8 + $0x3168] sm:$0xff] }
 0x5be   :  { %v8357_v47 = vpack.c.bf16 %v2902_v41, %v2886_v35  ;;  %v8359_v53 = vpack.c.bf16 %v2935_v46, %v2919_v2  ;;  %v3032_v35 = vld [vmem:[#allocation8 + $0x34f0] sm:$0xff]  ;;  %v3047_v41 = vld [vmem:[#allocation8 + $0x3568] sm:$0xff] }
 0x5bf   :  { %8342 = vmatpush1.bf16.msra.mxu0 %v8341_v50  ;;  %v2918_v50 = vld [vmem:[#allocation8 + $0x3160] sm:$0xff] }
 0x5c0   :  { %8598 = vmatpush1.bf16.msra.mxu1 %v8597_v51  ;;  %8344 = vmatprep.subr.bf16.mxu0 %v8343_v52  ;;  %v2934_v51 = vld [vmem:[#allocation8 + $0x31e0] sm:$0xff]  ;;  %v2920_v52 = vld [vmem:[#allocation8 + $0x3170] sm:$0xff] }
 0x5c1   :  { %8600 = vmatprep.subr.bf16.mxu1 %v8599_v58  ;;  %v2967_v58 = vld [vmem:[#allocation8 + $0x32e8] sm:$0xff]  ;;  %v8361_v63 = vpack.c.bf16 %v2934_v51, %v2918_v50  ;;  %v8617_v1 = vpack.c.bf16 %v2936_v56, %v2920_v52  ;;  %v8631_v50 = vpack.c.bf16 %v3065_v45, %v3049_v44  ;;  %v3064_v51 = vld [vmem:[#allocation8 + $0x35f0] sm:$0xff]  ;;  %v3081_v56 = vld [vmem:[#allocation8 + $0x3678] sm:$0xff] }
 0x5c2   :  { %v3079_v52 = vld [vmem:[#allocation8 + $0x3668] sm:$0xff]  ;;  %v3177_v44 = vld [vmem:[#allocation8 + $0x3978] sm:$0xff] }
 0x5c3   :  { %8346 = vmatpush1.bf16.msra.mxu0 %v8345_v3  ;;  %v8363_v3 = vpack.c.bf16 %v2967_v58, %v2951_v57  ;;  %v3097_v57 = vld [vmem:[#allocation8 + $0x36f8] sm:$0xff]  ;;  %v8377_v58 = vpack.c.bf16 %v3062_v10, %v3046_v48  ;;  %v3174_v48 = vld [vmem:[#allocation8 + $0x3960] sm:$0xff] }
 0x5c4   :  { %8602 = vmatpush1.bf16.msra.mxu1 %v8601_v5  ;;  %8348 = vmatprep.subr.bf16.mxu0 %v8347_v6  ;;  %v2950_v5 = vld [vmem:[#allocation8 + $0x3260] sm:$0xff]  ;;  %v3193_v45 = vld [vmem:[#allocation8 + $0x39f8] sm:$0xff] }
 0x5c5   :  { %8604 = vmatprep.subr.bf16.mxu1 %v8603_v14  ;;  %v2966_v6 = vld [vmem:[#allocation8 + $0x32e0] sm:$0xff]  ;;  %v2983_v14 = vld [vmem:[#allocation8 + $0x3368] sm:$0xff] }
 0x5c6   :  { %v8365_v21 = vpack.c.bf16 %v2966_v6, %v2950_v5  ;;  %v8367_v8 = vpack.c.bf16 %v2999_v18, %v2983_v14  ;;  %v8635_v5 = vpack.c.bf16 %v3097_v57, %v3081_v56  ;;  %v3096_v6 = vld [vmem:[#allocation8 + $0x36f0] sm:$0xff]  ;;  %v3113_v18 = vld [vmem:[#allocation8 + $0x3778] sm:$0xff]  ;;  %v3190_v10 = vld [vmem:[#allocation8 + $0x39e0] sm:$0xff] }
 0x5c7   :  { %8350 = vmatpush1.bf16.msra.mxu0 %v8349_v26  ;;  %v2982_v26 = vld [vmem:[#allocation8 + $0x3360] sm:$0xff]  ;;  %v3209_v56 = vld [vmem:[#allocation8 + $0x3a78] sm:$0xff] }
 0x5c8   :  { %8606 = vmatpush1.bf16.msra.mxu1 %v8605_v28  ;;  %8352 = vmatprep.subr.bf16.mxu0 %v8351_v31  ;;  %v2998_v28 = vld [vmem:[#allocation8 + $0x33e0] sm:$0xff]  ;;  %v2984_v31 = vld [vmem:[#allocation8 + $0x3370] sm:$0xff]  ;;  %v3225_v57 = vld [vmem:[#allocation8 + $0x3af8] sm:$0xff] }
 0x5c9   :  { %8608 = vmatprep.subr.bf16.mxu1 %v8607_v29  ;;  %v3017_v29 = vld [vmem:[#allocation8 + $0x3478] sm:$0xff]  ;;  %v8369_v32 = vpack.c.bf16 %v2998_v28, %v2982_v26  ;;  %v3110_v26 = vld [vmem:[#allocation8 + $0x3760] sm:$0xff] }
 0x5ca   :  { %v3126_v28 = vld [vmem:[#allocation8 + $0x37e0] sm:$0xff] }
 0x5cb   :  { %8354 = vmatpush1.bf16.msra.mxu0 %v8353_v39  ;;  %v3030_v39 = vld [vmem:[#allocation8 + $0x34e0] sm:$0xff] }
 0x5cc   :  { %8610 = vmatpush1.bf16.msra.mxu1 %v8609_v30  ;;  %8356 = vmatprep.subr.bf16.mxu0 %v8355_v55  ;;  %v3016_v30 = vld [vmem:[#allocation8 + $0x3470] sm:$0xff]  ;;  %v8627_v55 = vpack.c.bf16 %v3033_v25, %v3017_v29  ;;  %v8373_v2 = vpack.c.bf16 %v3030_v39, %v3014_v37  ;;  %v3145_v29 = vld [vmem:[#allocation8 + $0x3878] sm:$0xff]  ;;  %v3142_v37 = vld [vmem:[#allocation8 + $0x3860] sm:$0xff] }
 0x5cd   :  { %8612 = vmatprep.subr.bf16.mxu1 %v8611_v42  ;;  %v3063_v42 = vld [vmem:[#allocation8 + $0x35e8] sm:$0xff]  ;;  %v8629_v46 = vpack.c.bf16 %v3032_v35, %v3016_v30  ;;  %v3161_v25 = vld [vmem:[#allocation8 + $0x38f8] sm:$0xff]  ;;  %v3158_v39 = vld [vmem:[#allocation8 + $0x38e0] sm:$0xff] }
 0x5ce   :  { %5297 = vmatmul.mubr.f32.vlgmr.msra.gmra.mrb[14].mxu0 %v9059_v36  ;;  %v3144_v30 = vld [vmem:[#allocation8 + $0x3870] sm:$0xff] }
 0x5cf   :  { %5581 = vmatmul.mubr.f32.vlgmr.msra.gmra.mrb[14].mxu1 %v9059_v36  ;;  %8358 = vmatpush1.bf16.msra.mxu0 %v8357_v47  ;;  %v3001_v36 = vld [vmem:[#allocation8 + $0x33f8] sm:$0xff]  ;;  %v8375_v47 = vpack.c.bf16 %v3063_v42, %v3047_v41  ;;  %v3160_v35 = vld [vmem:[#allocation8 + $0x38f0] sm:$0xff]  ;;  %v3175_v41 = vld [vmem:[#allocation8 + $0x3968] sm:$0xff] }
 0x5d0   :  { %5367 = vmatprep.mubr.f32.mxu0 %v9062_v43  ;;  %8614 = vmatpush1.bf16.msra.mxu1 %v8613_v49  ;;  %v8623_v19 = vpack.c.bf16 %v3001_v36, %v2985_v20  ;;  %v3048_v49 = vld [vmem:[#allocation8 + $0x3570] sm:$0xff]  ;;  %v3129_v20 = vld [vmem:[#allocation8 + $0x37f8] sm:$0xff]  ;;  %v3191_v42 = vld [vmem:[#allocation8 + $0x39e8] sm:$0xff] }
 0x5d1   :  { %5651 = vmatprep.mubr.f32.mxu1 %v9062_v43  ;;  %8360 = vmatprep.subr.bf16.mxu0 %v8359_v53  ;;  %v3000_v43 = vld [vmem:[#allocation8 + $0x33f0] sm:$0xff]  ;;  %v3095_v53 = vld [vmem:[#allocation8 + $0x36e8] sm:$0xff] }
 0x5d2   :  { %8616 = vmatprep.subr.bf16.mxu1 %v8615_v60  ;;  %v8625_v33 = vpack.c.bf16 %v3000_v43, %v2984_v31  ;;  %v8633_v60 = vpack.c.bf16 %v3064_v51, %v3048_v49  ;;  %v8379_v61 = vpack.c.bf16 %v3095_v53, %v3079_v52  ;;  %v3112_v31 = vld [vmem:[#allocation8 + $0x3770] sm:$0xff]  ;;  %v3207_v52 = vld [vmem:[#allocation8 + $0x3a68] sm:$0xff] }
 0x5d3   :  { %8362 = vmatpush1.bf16.msra.mxu0 %v8361_v63  ;;  %v3094_v63 = vld [vmem:[#allocation8 + $0x36e0] sm:$0xff]  ;;  %v3128_v43 = vld [vmem:[#allocation8 + $0x37f0] sm:$0xff]  ;;  %v3223_v53 = vld [vmem:[#allocation8 + $0x3ae8] sm:$0xff] }
 0x5d4   :  { %8618 = vmatpush1.bf16.msra.mxu1 %v8617_v1  ;;  %8364 = vmatprep.subr.bf16.mxu0 %v8363_v3  ;;  %v3080_v1 = vld [vmem:[#allocation8 + $0x3670] sm:$0xff] }
 0x5d5   :  { %8620 = vmatprep.subr.bf16.mxu1 %v8619_v11  ;;  %v3127_v11 = vld [vmem:[#allocation8 + $0x37e8] sm:$0xff]  ;;  %v3176_v49 = vld [vmem:[#allocation8 + $0x3970] sm:$0xff] }
 0x5d6   :  { %v3192_v51 = vld [vmem:[#allocation8 + $0x39f0] sm:$0xff] }
 0x5d7   :  { %8366 = vmatpush1.bf16.msra.mxu0 %v8365_v21  ;;  %v8381_v21 = vpack.c.bf16 %v3094_v63, %v3078_v62  ;;  %v3206_v62 = vld [vmem:[#allocation8 + $0x3a60] sm:$0xff] }
 0x5d8   :  { %8622 = vmatpush1.bf16.msra.mxu1 %v8621_v22  ;;  %8368 = vmatprep.subr.bf16.mxu0 %v8367_v8  ;;  %v8637_v22 = vpack.c.bf16 %v3096_v6, %v3080_v1  ;;  %v8383_v8 = vpack.c.bf16 %v3127_v11, %v3111_v7  ;;  %v3222_v63 = vld [vmem:[#allocation8 + $0x3ae0] sm:$0xff]  ;;  %v3208_v1 = vld [vmem:[#allocation8 + $0x3a70] sm:$0xff]  ;;  %v3239_v7 = vld [vmem:[#allocation8 + $0x3b68] sm:$0xff] }
 0x5d9   :  { %8624 = vmatprep.subr.bf16.mxu1 %v8623_v19  ;;  %v8639_v19 = vpack.c.bf16 %v3129_v20, %v3113_v18  ;;  %v3224_v6 = vld [vmem:[#allocation8 + $0x3af0] sm:$0xff]  ;;  %v3255_v11 = vld [vmem:[#allocation8 + $0x3be8] sm:$0xff]  ;;  %v3241_v18 = vld [vmem:[#allocation8 + $0x3b78] sm:$0xff] }
 0x5da   :  { %v3257_v20 = vld [vmem:[#allocation8 + $0x3bf8] sm:$0xff] }
 0x5db   :  { %8370 = vmatpush1.bf16.msra.mxu0 %v8369_v32  ;;  %v8385_v32 = vpack.c.bf16 %v3126_v28, %v3110_v26  ;;  %v3238_v26 = vld [vmem:[#allocation8 + $0x3b60] sm:$0xff] }
 0x5dc   :  { %8626 = vmatpush1.bf16.msra.mxu1 %v8625_v33  ;;  %8372 = vmatprep.subr.bf16.mxu0 %v8371_v34  ;;  %v8641_v33 = vpack.c.bf16 %v3128_v43, %v3112_v31  ;;  %v8387_v34 = vpack.c.bf16 %v3159_v54, %v3143_v15  ;;  %v3254_v28 = vld [vmem:[#allocation8 + $0x3be0] sm:$0xff]  ;;  %v3240_v31 = vld [vmem:[#allocation8 + $0x3b70] sm:$0xff]  ;;  %v3271_v15 = vld [vmem:[#allocation8 + $0x3c68] sm:$0xff] }
 0x5dd   :  { %8628 = vmatprep.subr.bf16.mxu1 %v8627_v55  ;;  %v8643_v55 = vpack.c.bf16 %v3161_v25, %v3145_v29  ;;  %v3256_v43 = vld [vmem:[#allocation8 + $0x3bf0] sm:$0xff]  ;;  %v3287_v54 = vld [vmem:[#allocation8 + $0x3ce8] sm:$0xff]  ;;  %v3273_v29 = vld [vmem:[#allocation8 + $0x3c78] sm:$0xff] }
 0x5de   :  { %v3289_v25 = vld [vmem:[#allocation8 + $0x3cf8] sm:$0xff] }
 0x5df   :  { %8374 = vmatpush1.bf16.msra.mxu0 %v8373_v2  ;;  %v8389_v2 = vpack.c.bf16 %v3158_v39, %v3142_v37  ;;  %v3270_v37 = vld [vmem:[#allocation8 + $0x3c60] sm:$0xff] }
 0x5e0   :  { %8630 = vmatpush1.bf16.msra.mxu1 %v8629_v46  ;;  %8376 = vmatprep.subr.bf16.mxu0 %v8375_v47  ;;  %v8645_v46 = vpack.c.bf16 %v3160_v35, %v3144_v30  ;;  %v8391_v47 = vpack.c.bf16 %v3191_v42, %v3175_v41  ;;  %v3286_v39 = vld [vmem:[#allocation8 + $0x3ce0] sm:$0xff]  ;;  %v3272_v30 = vld [vmem:[#allocation8 + $0x3c70] sm:$0xff]  ;;  %v3303_v41 = vld [vmem:[#allocation8 + $0x3d68] sm:$0xff] }
 0x5e1   :  { %v9136_v3 = vpop.f32.mrb[12].mxu0  ;;  %8632 = vmatprep.subr.bf16.mxu1 %v8631_v50  ;;  %v8647_v50 = vpack.c.bf16 %v3193_v45, %v3177_v44  ;;  %v3288_v35 = vld [vmem:[#allocation8 + $0x3cf0] sm:$0xff]  ;;  %v3319_v42 = vld [vmem:[#allocation8 + $0x3de8] sm:$0xff]  ;;  %v3305_v44 = vld [vmem:[#allocation8 + $0x3d78] sm:$0xff] }
 0x5e2   :  { %v9138_v12 = vpop.f32.mrb[12].mxu1  ;;  %v9140_v14 = vpop.f32.mrb[13].mxu0  ;;  %v3321_v45 = vld [vmem:[#allocation8 + $0x3df8] sm:$0xff] }
 0x5e3   :  { %v9142_v36 = vpop.f32.mrb[13].mxu1  ;;  %8378 = vmatpush1.bf16.msra.mxu0 %v8377_v58  ;;  %v8393_v58 = vpack.c.bf16 %v3190_v10, %v3174_v48  ;;  %v3302_v48 = vld [vmem:[#allocation8 + $0x3d60] sm:$0xff] }
 0x5e4   :  { %8634 = vmatpush1.bf16.msra.mxu1 %v8633_v60  ;;  %8380 = vmatprep.subr.bf16.mxu0 %v8379_v61  ;;  %v8649_v60 = vpack.c.bf16 %v3192_v51, %v3176_v49  ;;  %v8395_v61 = vpack.c.bf16 %v3223_v53, %v3207_v52  ;;  %v3318_v10 = vld [vmem:[#allocation8 + $0x3de0] sm:$0xff]  ;;  %v3304_v49 = vld [vmem:[#allocation8 + $0x3d70] sm:$0xff]  ;;  %v3335_v52 = vld [vmem:[#allocation8 + $0x3e68] sm:$0xff] }
 0x5e5   :  { %8636 = vmatprep.subr.bf16.mxu1 %v8635_v5  ;;  %v8651_v5 = vpack.c.bf16 %v3225_v57, %v3209_v56  ;;  %v3320_v51 = vld [vmem:[#allocation8 + $0x3df0] sm:$0xff]  ;;  %v3351_v53 = vld [vmem:[#allocation8 + $0x3ee8] sm:$0xff]  ;;  %v3337_v56 = vld [vmem:[#allocation8 + $0x3e78] sm:$0xff] }
 0x5e6   :  { %v3353_v57 = vld [vmem:[#allocation8 + $0x3ef8] sm:$0xff] }
 0x5e7   :  { %8382 = vmatpush1.bf16.msra.mxu0 %v8381_v21  ;;  %v8397_v21 = vpack.c.bf16 %v3222_v63, %v3206_v62  ;;  %v3334_v62 = vld [vmem:[#allocation8 + $0x3e60] sm:$0xff] }
 0x5e8   :  { %8638 = vmatpush1.bf16.msra.mxu1 %v8637_v22  ;;  %8384 = vmatprep.subr.bf16.mxu0 %v8383_v8  ;;  %v8653_v22 = vpack.c.bf16 %v3224_v6, %v3208_v1  ;;  %v8399_v8 = vpack.c.bf16 %v3255_v11, %v3239_v7  ;;  %v3350_v63 = vld [vmem:[#allocation8 + $0x3ee0] sm:$0xff]  ;;  %v3336_v1 = vld [vmem:[#allocation8 + $0x3e70] sm:$0xff]  ;;  %v3367_v7 = vld [vmem:[#allocation8 + $0x3f68] sm:$0xff] }
 0x5e9   :  { %8640 = vmatprep.subr.bf16.mxu1 %v8639_v19  ;;  %v8655_v19 = vpack.c.bf16 %v3257_v20, %v3241_v18  ;;  %v3352_v6 = vld [vmem:[#allocation8 + $0x3ef0] sm:$0xff]  ;;  %v3383_v11 = vld [vmem:[#allocation8 + $0x3fe8] sm:$0xff]  ;;  %v3369_v18 = vld [vmem:[#allocation8 + $0x3f78] sm:$0xff] }
 0x5ea   :  { %v3385_v20 = vld [vmem:[#allocation8 + $0x3ff8] sm:$0xff] }
 0x5eb   :  { %8386 = vmatpush1.bf16.msra.mxu0 %v8385_v32  ;;  %v8401_v32 = vpack.c.bf16 %v3254_v28, %v3238_v26  ;;  %v3366_v26 = vld [vmem:[#allocation8 + $0x3f60] sm:$0xff] }
 0x5ec   :  { %8642 = vmatpush1.bf16.msra.mxu1 %v8641_v33  ;;  %8388 = vmatprep.subr.bf16.mxu0 %v8387_v34  ;;  %v8657_v33 = vpack.c.bf16 %v3256_v43, %v3240_v31  ;;  %v8403_v34 = vpack.c.bf16 %v3287_v54, %v3271_v15  ;;  %v3382_v28 = vld [vmem:[#allocation8 + $0x3fe0] sm:$0xff]  ;;  %v8671_v31 = vpack.c.bf16 %v3385_v20, %v3369_v18  ;;  %v3384_v43 = vld [vmem:[#allocation8 + $0x3ff0] sm:$0xff] }
 0x5ed   :  { %8644 = vmatprep.subr.bf16.mxu1 %v8643_v55  ;;  %v8659_v55 = vpack.c.bf16 %v3289_v25, %v3273_v29  ;;  %v8417_v15 = vpack.c.bf16 %v3382_v28, %v3366_v26  ;;  %v5659_v29 = vmul.f32 %v8999_v16, %v9092_v24  ;;  %v5661_v25 = vmul.f32 %v8999_v16, %v9094_v27 }
 0x5ee   :  { %v5665_v24 = vmul.f32 %v8999_v16, %v9118_v4  ;;  %v5667_v27 = vmul.f32 %v8999_v16, %v9140_v14 }
 0x5ef   :  { %8390 = vmatpush1.bf16.msra.mxu0 %v8389_v2  ;;  %v8405_v2 = vpack.c.bf16 %v3286_v39, %v3270_v37 }
 0x5f0   :  { %8646 = vmatpush1.bf16.msra.mxu1 %v8645_v46  ;;  %8392 = vmatprep.subr.bf16.mxu0 %v8391_v47  ;;  %v8661_v46 = vpack.c.bf16 %v3288_v35, %v3272_v30  ;;  %v8407_v47 = vpack.c.bf16 %v3319_v42, %v3303_v41 }
 0x5f1   :  { %8648 = vmatprep.subr.bf16.mxu1 %v8647_v50  ;;  %v8663_v50 = vpack.c.bf16 %v3321_v45, %v3305_v44 }
 0x5f3   :  { %8394 = vmatpush1.bf16.msra.mxu0 %v8393_v58  ;;  %v8409_v58 = vpack.c.bf16 %v3318_v10, %v3302_v48 }
 0x5f4   :  { %8650 = vmatpush1.bf16.msra.mxu1 %v8649_v60  ;;  %8396 = vmatprep.subr.bf16.mxu0 %v8395_v61  ;;  %v8665_v60 = vpack.c.bf16 %v3320_v51, %v3304_v49  ;;  %v8411_v61 = vpack.c.bf16 %v3351_v53, %v3335_v52 }
 0x5f5   :  { %8652 = vmatprep.subr.bf16.mxu1 %v8651_v5  ;;  %v8667_v5 = vpack.c.bf16 %v3353_v57, %v3337_v56 }
 0x5f7   :  { %8398 = vmatpush1.bf16.msra.mxu0 %v8397_v21  ;;  %v8413_v21 = vpack.c.bf16 %v3350_v63, %v3334_v62 }
 0x5f8   :  { %8654 = vmatpush1.bf16.msra.mxu1 %v8653_v22  ;;  %8400 = vmatprep.subr.bf16.mxu0 %v8399_v8  ;;  %v8669_v22 = vpack.c.bf16 %v3352_v6, %v3336_v1  ;;  %v8415_v8 = vpack.c.bf16 %v3383_v11, %v3367_v7 }
 0x5f9   :  { %8656 = vmatprep.subr.bf16.mxu1 %v8655_v19  ;;  %v3368_v19 = vld [vmem:[#allocation8 + $0x3f70] sm:$0xff] }
 0x5fa   :  { %v8673_v54 = vpack.c.bf16 %v3384_v43, %v3368_v19 }
 0x5fb   :  { %8402 = vmatpush1.bf16.msra.mxu0 %v8401_v32  ;;  %v5658_v32 = vmul.f32 %v8999_v16, %v9088_v17  ;;  %v5662_v17 = vmul.f32 %v8999_v16, %v9112_v59  ;;  %v5666_v59 = vmul.f32 %v8999_v16, %v9136_v3 }
 0x5fc   :  { %8658 = vmatpush1.bf16.msra.mxu1 %v8657_v33  ;;  %8404 = vmatprep.subr.bf16.mxu0 %v8403_v34  ;;  %v5660_v33 = vmul.f32 %v8999_v16, %v9090_v23  ;;  %v5663_v34 = vmul.f32 %v8999_v16, %v9116_v0  ;;  %v5664_v23 = vmul.f32 %v8999_v16, %v9114_v9 }
 0x5fd   :  { %8660 = vmatprep.subr.bf16.mxu1 %v8659_v55  ;;  %v5668_v9 = vmul.f32 %v8999_v16, %v9138_v12 }
 0x5ff   :  { %8406 = vmatpush1.bf16.msra.mxu0 %v8405_v2 }
 0x600   :  { %8662 = vmatpush1.bf16.msra.mxu1 %v8661_v46  ;;  %8408 = vmatprep.subr.bf16.mxu0 %v8407_v47 }
 0x601   :  { %8664 = vmatprep.subr.bf16.mxu1 %v8663_v50 }
 0x603   :  { %8410 = vmatpush1.bf16.msra.mxu0 %v8409_v58 }
 0x604   :  { %8666 = vmatpush1.bf16.msra.mxu1 %v8665_v60  ;;  %8412 = vmatprep.subr.bf16.mxu0 %v8411_v61 }
 0x605   :  { %8668 = vmatprep.subr.bf16.mxu1 %v8667_v5 }
 0x607   :  { %8414 = vmatpush1.bf16.msra.mxu0 %v8413_v21 }
 0x608   :  { %8670 = vmatpush1.bf16.msra.mxu1 %v8669_v22  ;;  %8416 = vmatprep.subr.bf16.mxu0 %v8415_v8 }
 0x609   :  { %8672 = vmatprep.subr.bf16.mxu1 %v8671_v31 }
 0x60b   :  { %8418 = vmatpush1.bf16.msra.mxu0 %v8417_v15 }
 0x60c   :  { %8674 = vmatpush1.bf16.msra.mxu1 %v8673_v54  ;;  %5674 = vmatprep.subr.mxu0 %v5659_v29 }
 0x60d   :  { %5745 = vmatprep.subr.mxu1 %v5661_v25 }
 0x60e   :  { %5368 = vmatmul.mubr.f32.vlgmr.msra.gmra.mrb[14].mxu0 %v9070_v13 }
 0x60f   :  { %5652 = vmatmul.mubr.f32.vlgmr.msra.gmra.mrb[14].mxu1 %v9070_v13  ;;  %5675 = vmatpush1.msra.mxu0 %v5658_v32  ;;  %v5669_v13 = vmul.f32 %v8999_v16, %v9142_v36 }
 0x610   :  { %5746 = vmatpush1.msra.mxu1 %v5660_v33  ;;  %5816 = vmatprep.subr.mxu0 %v5663_v34 }
 0x611   :  { %5887 = vmatprep.subr.mxu1 %v5665_v24  ;;  %5738 = vmatprep.mubr.f32.mxu0 %v8871_v38 }
 0x612   :  { %5809 = vmatprep.mubr.f32.mxu1 %v8871_v38  ;;  %6307 = vmatmul.mubr.msk.f32.vlgmr.msra.gmra.mrb[16].mxu0 %vm70_vm4, %v9004_v40 }
 0x613   :  { %6308 = vmatmul.mubr.msk.f32.vlgmr.msra.gmra.mrb[16].mxu1 %vm70_vm4, %v9004_v40  ;;  %5817 = vmatpush1.msra.mxu0 %v5662_v17 }
 0x614   :  { %5888 = vmatpush1.msra.mxu1 %v5664_v23  ;;  %5958 = vmatprep.subr.mxu0 %v5667_v27 }
 0x615   :  { %6029 = vmatprep.subr.mxu1 %v5669_v13  ;;  %5880 = vmatprep.mubr.f32.mxu0 %v8871_v38 }
 0x616   :  { %5951 = vmatprep.mubr.f32.mxu1 %v8871_v38  ;;  %6309 = vmatmul.mubr.msk.f32.vlgmr.msra.gmra.mrb[18].mxu0 %vm70_vm4, %v9004_v40 }
 0x617   :  { %6310 = vmatmul.mubr.msk.f32.vlgmr.msra.gmra.mrb[18].mxu1 %vm70_vm4, %v9004_v40  ;;  %5959 = vmatpush1.msra.mxu0 %v5666_v59 }
 0x618   :  { %6030 = vmatpush1.msra.mxu1 %v5668_v9  ;;  %6022 = vmatprep.mubr.f32.mxu0 %v8871_v38 }
 0x619   :  { %6093 = vmatprep.mubr.f32.mxu1 %v8871_v38 }
 0x61a   :  { %6311 = vmatmul.mubr.msk.f32.vlgmr.msra.gmra.mrb[20].mxu0 %vm70_vm4, %v9004_v40 }
 0x61b   :  { %6312 = vmatmul.mubr.msk.f32.vlgmr.msra.gmra.mrb[20].mxu1 %vm70_vm4, %v9004_v40  ;;  %6164 = vmatprep.mubr.f32.mxu0 %v8871_v38 }
 0x61c   :  { %6235 = vmatprep.mubr.f32.mxu1 %v8871_v38 }
 0x6e1   :  { %v5369_v0 = vpop.f32.mrb[14].mxu0 }
 0x6e2   :  { %v5653_v4 = vpop.f32.mrb[14].mxu1  ;;  %v5371_v3 = vpop.f32.mrb[15].mxu0  ;;  %v5670_v36 = vmul.f32 %v8999_v16, %v5369_v0 }
 0x6e3   :  { %v5671_v12 = vmul.f32 %v8999_v16, %v5371_v3  ;;  %v5655_v14 = vpop.f32.mrb[15].mxu1  ;;  %v5672_v39 = vmul.f32 %v8999_v16, %v5653_v4 }
 0x6e4   :  { %v5673_v37 = vmul.f32 %v8999_v16, %v5655_v14 }
 0x6e5   :  { %v5740_v30 = vpop.f32.mrb[16].mxu0  ;;  %6100 = vmatprep.subr.mxu0 %v5671_v12 }
 0x6e6   :  { %v6242_v55 = vmul.f32 %v8999_v16, %v5740_v30  ;;  %v5811_v35 = vpop.f32.mrb[16].mxu1  ;;  %6171 = vmatprep.subr.mxu1 %v5673_v37  ;;  %v5742_v41 = vpop.f32.mrb[17].mxu0  ;;  %6101 = vmatpush1.msra.mxu0 %v5670_v36 }
 0x6e7   :  { %v6244_v38 = vmul.f32 %v8999_v16, %v5811_v35  ;;  %v6243_v42 = vmul.f32 %v8999_v16, %v5742_v41  ;;  %v5813_v44 = vpop.f32.mrb[17].mxu1  ;;  %6172 = vmatpush1.msra.mxu1 %v5672_v39  ;;  %6313 = vmatmul.mubr.msk.f32.vlgmr.msra.gmra.mrb[22].mxu0 %vm70_vm4, %v9004_v40 }
 0x6e8   :  { %6258 = vst [vmem:[#allocation10] sm:$0xff] %v6242_v55  ;;  %v6245_v45 = vmul.f32 %v8999_v16, %v5813_v44  ;;  %6314 = vmatmul.mubr.msk.f32.vlgmr.msra.gmra.mrb[22].mxu1 %vm70_vm4, %v9004_v40 }
 0x6e9   :  { %6260 = vst [vmem:[#allocation10 + $0x10] sm:$0xff] %v6244_v38  ;;  %6259 = vst [vmem:[#allocation10 + $0x8] sm:$0xff] %v6243_v42  ;;  %v5882_v2 = vpop.f32.mrb[18].mxu0 }
 0x6ea   :  { %6261 = vst [vmem:[#allocation10 + $0x18] sm:$0xff] %v6245_v45  ;;  %v6246_v46 = vmul.f32 %v8999_v16, %v5882_v2  ;;  %v5953_v47 = vpop.f32.mrb[18].mxu1  ;;  %v5884_v48 = vpop.f32.mrb[19].mxu0 }
 0x6eb   :  { %v6248_v10 = vmul.f32 %v8999_v16, %v5953_v47  ;;  %v6247_v49 = vmul.f32 %v8999_v16, %v5884_v48  ;;  %v5955_v50 = vpop.f32.mrb[19].mxu1 }
 0x6ec   :  { %6262 = vst [vmem:[#allocation10 + $0x20] sm:$0xff] %v6246_v46  ;;  %v6249_v51 = vmul.f32 %v8999_v16, %v5955_v50 }
 0x6ed   :  { %6264 = vst [vmem:[#allocation10 + $0x30] sm:$0xff] %v6248_v10  ;;  %6263 = vst [vmem:[#allocation10 + $0x28] sm:$0xff] %v6247_v49  ;;  %v6024_v52 = vpop.f32.mrb[20].mxu0 }
 0x6ee   :  { %6265 = vst [vmem:[#allocation10 + $0x38] sm:$0xff] %v6249_v51  ;;  %v6250_v40 = vmul.f32 %v8999_v16, %v6024_v52  ;;  %v6095_v53 = vpop.f32.mrb[20].mxu1  ;;  %v6026_v56 = vpop.f32.mrb[21].mxu0 }
 0x6ef   :  { %v6252_v57 = vmul.f32 %v8999_v16, %v6095_v53  ;;  %v6251_v58 = vmul.f32 %v8999_v16, %v6026_v56  ;;  %v6097_v60 = vpop.f32.mrb[21].mxu1 }
 0x6f0   :  { %6266 = vst [vmem:[#allocation10 + $0x40] sm:$0xff] %v6250_v40  ;;  %v6253_v61 = vmul.f32 %v8999_v16, %v6097_v60 }
 0x6f1   :  { %6268 = vst [vmem:[#allocation10 + $0x50] sm:$0xff] %v6252_v57  ;;  %6267 = vst [vmem:[#allocation10 + $0x48] sm:$0xff] %v6251_v58 }
 0x6f2   :  { %6269 = vst [vmem:[#allocation10 + $0x58] sm:$0xff] %v6253_v61 }
 0x7ba   :  { %v6166_v62 = vpop.f32.mrb[22].mxu0 }
 0x7bb   :  { %v6254_v63 = vmul.f32 %v8999_v16, %v6166_v62  ;;  %v6237_v1 = vpop.f32.mrb[22].mxu1  ;;  %v6168_v5 = vpop.f32.mrb[23].mxu0 }
 0x7bc   :  { %v6256_v6 = vmul.f32 %v8999_v16, %v6237_v1  ;;  %v6255_v7 = vmul.f32 %v8999_v16, %v6168_v5  ;;  %v6239_v11 = vpop.f32.mrb[23].mxu1 }
 0x7bd   :  { %6270 = vst [vmem:[#allocation10 + $0x60] sm:$0xff] %v6254_v63  ;;  %v6257_v18 = vmul.f32 %v8999_v16, %v6239_v11 }
 0x7be   :  { %6272 = vst [vmem:[#allocation10 + $0x70] sm:$0xff] %v6256_v6  ;;  %6271 = vst [vmem:[#allocation10 + $0x68] sm:$0xff] %v6255_v7 }
 0x7bf   :  { %6273 = vst [vmem:[#allocation10 + $0x78] sm:$0xff] %v6257_v18 }
 0x7c0   :  { %8843 = shalt.err (!%p8840_p8)
}
 0x7c1   :  { %s8844_s15 = scalar_lea.hbm %s9230_s4, 2048 }
 0x7c2   :  { %p8845_p9 = scmp.ne.s32.totalorder %s9230_s4, %s8844_s15  ;;  %p8848_p10 = scmp.lt.u32.totalorder %s8844_s15, %s9230_s4 }
 0x7c4   :  { %p8850_p11 = pnand %p8848_p10, %p8845_p9 }
 0x7c6   :  { %8853 = shalt.err (!%p8850_p11)
}
 0x7c7   :  { %6283 = dma.vmem_to_hbm [thread:$0]  %s6281_s11, 2048, %s9230_s4, [#allocation4]  }
 0x7c8   :  { %8860 = dma.done.wait [#allocation4], 2048  }
 0x7c9   :  { %8861 = vsyncadd [#allocation4], 4294965248 }
 0x7ca   :  { %6287 = vsyncpa [#allocation3], 1 }
 0x7cb   :  { %6288 = vsyncpa [#allocation6], 1 }
 0x7cc   :  { %6289 = vsyncpa [#allocation9], 1 }
 0x7cd   :  { %6290 = vsyncpa [#allocation4], 1 }

</bundles_post_ra>
